<compile_context>
chip_gen: v7x
topology: tpu7x:2x2x1
jax: 0.10.0
libtpu: 0.0.40
codegen_flags: <defaults>
</compile_context>

<pallas_src>
import jax
import jax.numpy as jnp
from jax.experimental import pallas as pl
from jax.experimental.pallas import tpu as pltpu  # noqa: F401  (TPU backend assumed)

# Scaled-down config (PyTorch module uses nz=100, gen_filters=64, num_channels=1)
NZ = 16        # latent dim
GF = 8         # gen_filters
NC = 1         # num_channels
BATCH = 2
BN_EPS = 1e-5


# ---------------------------------------------------------------------------
# Pallas kernels
# ---------------------------------------------------------------------------
def _l1_bn_relu_kernel(z_ref, w_ref, g_ref, b_ref, o_ref):
    # Layer 1: ConvTranspose2d(nz, gf*8, 4, 1, 0) on a 1x1 input + BN + ReLU.
    # z_ref: (Cin, N) bf16; w_ref: (Cout*16, Cin) bf16, rows ordered (co, kh, kw)
    # g_ref/b_ref: (Cout, 1) f32; o_ref: (Cout*16, N) f32
    y = jnp.dot(w_ref[...], z_ref[...], preferred_element_type=jnp.float32)
    cout = g_ref.shape[0]
    kk = y.shape[0] // cout
    n = y.shape[1]
    y3 = y.reshape(cout, kk, n)                    # leading-dim split: layout-trivial
    mean = jnp.mean(jnp.mean(y3, axis=2, keepdims=True), axis=1, keepdims=True)
    d = y3 - mean
    var = jnp.mean(jnp.mean(d * d, axis=2, keepdims=True), axis=1, keepdims=True)
    gamma = g_ref[...].reshape(cout, 1, 1)
    beta = b_ref[...].reshape(cout, 1, 1)
    yn = d * jax.lax.rsqrt(var + BN_EPS) * gamma + beta
    o_ref[...] = jnp.maximum(yn, 0.0).reshape(cout * kk, n)


def _up_bn_relu_kernel(p_ref, w_ref, g_ref, b_ref, o_ref):
    # stride-2 transposed conv via 4-phase decomposition + fused BN + ReLU.
    # p_ref: (4, Cin*4, M) bf16; w_ref: (4, Cout, Cin*4) bf16
    # g_ref/b_ref: (Cout, 1) f32; o_ref: (Cout, 4*M) f32 (lane-dense)
    nphase, _, m = p_ref.shape
    ys = [jnp.dot(w_ref[g], p_ref[g], preferred_element_type=jnp.float32)
          for g in range(nphase)]
    total = nphase * m
    mean = sum(jnp.sum(y, axis=-1, keepdims=True) for y in ys) / total
    var = sum(jnp.sum(jnp.square(y - mean), axis=-1, keepdims=True) for y in ys) / total
    scale = jax.lax.rsqrt(var + BN_EPS) * g_ref[...]
    shift = b_ref[...] - mean * scale
    for g in range(nphase):
        o_ref[:, g * m:(g + 1) * m] = jnp.maximum(ys[g] * scale + shift, 0.0)


def _up_bn_relu_proj_tanh_kernel(p_ref, w_ref, g_ref, b_ref, w5_ref, o_ref):
    # Layer 4 (stride-2 phase conv + BN + ReLU) fused with the final 1x1 conv
    # (ConvTranspose2d(gf, nc, 1, 1, 2)) as a VPU weighted sum + tanh epilogue.
    # w5_ref: (Cout, NC=1) f32; o_ref: (NC, 4*M) f32 (lane-dense, pre-crop grid).
    nphase, _, m = p_ref.shape
    ys = [jnp.dot(w_ref[g], p_ref[g], preferred_element_type=jnp.float32)
          for g in range(nphase)]
    total = nphase * m
    mean = sum(jnp.sum(y, axis=-1, keepdims=True) for y in ys) / total
    var = sum(jnp.sum(jnp.square(y - mean), axis=-1, keepdims=True) for y in ys) / total
    scale = jax.lax.rsqrt(var + BN_EPS) * g_ref[...]
    shift = b_ref[...] - mean * scale
    w5 = w5_ref[...]                                        # (Cout, 1)
    for g in range(nphase):
        act = jnp.maximum(ys[g] * scale + shift, 0.0)       # (Cout, M) ReLU(BN(x))
        proj = jnp.sum(act * w5, axis=0, keepdims=True)     # (1, M)  1x1-conv as VPU reduce
        o_ref[:, g * m:(g + 1) * m] = jnp.tanh(proj)


# ---------------------------------------------------------------------------
# Plain-JAX layout glue (patch building / phase de-interleave) + wrappers
# ---------------------------------------------------------------------------
def _phase_patches(x):
    # x: (N, Cin, H, W) f32 -> (4, Cin*4, N*H*W) bf16 phase patch stack.
    # Phase (a,b): taps xp[q+a+dh, r+b+dw], dh/dw in {0,1}, xp = 1-px zero pad.
    n, cin, h, w = x.shape
    xp = jnp.pad(x, ((0, 0), (0, 0), (1, 1), (1, 1)))
    phases = []
    for a in range(2):
        for b in range(2):
            taps = [xp[:, :, a + dh:a + dh + h, b + dw:b + dw + w]
                    for dh in range(2) for dw in range(2)]
            t = jnp.stack(taps, axis=2)                       # (N, Cin, 4, H, W)
            t = jnp.transpose(t, (1, 2, 0, 3, 4)).reshape(cin * 4, n * h * w)
            phases.append(t)
    return jnp.stack(phases, axis=0).astype(jnp.bfloat16)     # (4, Cin*4, N*H*W)


def _phase_weights(w):
    # PyTorch ConvTranspose2d weight (Cin, Cout, 4, 4), stride=2, pad=1
    # -> four 2x2 sub-kernels: W[a*2+b][co, ci*4+dh*2+dw] = w[ci,co,3-a-2dh,3-b-2dw]
    cin, cout = w.shape[0], w.shape[1]
    ws = []
    for a in range(2):
        for b in range(2):
            sub = w[:, :, (3 - a)::-2, (3 - b)::-2]           # (Cin, Cout, 2, 2)
            ws.append(jnp.transpose(sub, (1, 0, 2, 3)).reshape(cout, cin * 4))
    return jnp.stack(ws, axis=0).astype(jnp.bfloat16)         # (4, Cout, Cin*4)


def _reassemble(out, cout, n, h, w):
    # out: (Cout, 4*N*H*W), columns ordered (phase=a*2+b, n, q, r) -> NCHW.
    y = out.reshape(cout, 2, 2, n, h, w)
    y = jnp.transpose(y, (3, 0, 4, 1, 5, 2))                  # (n, co, q, a, r, b)
    return y.reshape(n, cout, 2 * h, 2 * w)


def _up_block(x, w_ph, gamma, beta):
    # ConvTranspose2d(cin, cout, 4, 2, 1) + BN + ReLU, one fused pallas_call.
    n, _, h, w = x.shape
    cout = w_ph.shape[1]
    m = n * h * w
    p = _phase_patches(x)
    out = pl.pallas_call(
        _up_bn_relu_kernel,
        out_shape=jax.ShapeDtypeStruct((cout, 4 * m), jnp.float32),
    )(p, w_ph, gamma, beta)
    return _reassemble(out, cout, n, h, w)


def _up_block_final(x, w_ph, gamma, beta, w5col):
    # Layer 4 + BN + ReLU + final 1x1 conv + tanh fused; 2-px crop in wrapper.
    n, _, h, w = x.shape
    m = n * h * w
    p = _phase_patches(x)
    out = pl.pallas_call(
        _up_bn_relu_proj_tanh_kernel,
        out_shape=jax.ShapeDtypeStruct((NC, 4 * m), jnp.float32),
    )(p, w_ph, gamma, beta, w5col)
    img = _reassemble(out, NC, n, h, w)                       # (N, 1, 2H, 2W)
    return img[:, :, 2:2 * h - 2, 2:2 * w - 2]                # crop = ConvT(k=1,s=1,p=2)


# ---------------------------------------------------------------------------
# Parameters (DCGAN-style init) and one-time layout preparation
# ---------------------------------------------------------------------------
def init_params(key):
    ks = jax.random.split(key, 9)

    def convw(k, cin, cout, ksz):
        return 0.02 * jax.random.normal(k, (cin, cout, ksz, ksz), jnp.float32)

    return {
        "w1": convw(ks[0], NZ, GF * 8, 4),       # ConvTranspose2d(nz, gf*8, 4, 1, 0)
        "w2": convw(ks[1], GF * 8, GF * 4, 4),   # ConvTranspose2d(gf*8, gf*4, 4, 2, 1)
        "w3": convw(ks[2], GF * 4, GF * 2, 4),   # ConvTranspose2d(gf*4, gf*2, 4, 2, 1)
        "w4": convw(ks[3], GF * 2, GF, 4),       # ConvTranspose2d(gf*2, gf,   4, 2, 1)
        "w5": convw(ks[4], GF, NC, 1),           # ConvTranspose2d(gf, nc, 1, 1, 2)
        "g1": 1.0 + 0.02 * jax.random.normal(ks[5], (GF * 8,), jnp.float32),
        "b1": jnp.zeros((GF * 8,), jnp.float32),
        "g2": 1.0 + 0.02 * jax.random.normal(ks[6], (GF * 4,), jnp.float32),
        "b2": jnp.zeros((GF * 4,), jnp.float32),
        "g3": 1.0 + 0.02 * jax.random.normal(ks[7], (GF * 2,), jnp.float32),
        "b3": jnp.zeros((GF * 2,), jnp.float32),
        "g4": 1.0 + 0.02 * jax.random.normal(ks[8], (GF,), jnp.float32),
        "b4": jnp.zeros((GF,), jnp.float32),
    }


def prepare_params(p):
    """One-time weight layout prep (hoisted out of the per-step forward)."""
    cout1 = GF * 8
    # Layer 1: rows ordered (co, kh, kw), contract over Cin.
    w1m = jnp.transpose(p["w1"], (1, 2, 3, 0)).reshape(cout1 * 16, NZ).astype(jnp.bfloat16)
    return {
        "w1m": w1m,
        "w2p": _phase_weights(p["w2"]),
        "w3p": _phase_weights(p["w3"]),
        "w4p": _phase_weights(p["w4"]),
        "w5c": p["w5"].reshape(GF, NC).astype(jnp.float32),   # (gf, 1) 1x1-conv weights
        "g1": p["g1"].reshape(-1, 1), "b1": p["b1"].reshape(-1, 1),
        "g2": p["g2"].reshape(-1, 1), "b2": p["b2"].reshape(-1, 1),
        "g3": p["g3"].reshape(-1, 1), "b3": p["b3"].reshape(-1, 1),
        "g4": p["g4"].reshape(-1, 1), "b4": p["b4"].reshape(-1, 1),
    }


# ---------------------------------------------------------------------------
# Forward pass
# ---------------------------------------------------------------------------
def generator_forward(params, z):
    # z: (N, nz, 1, 1) -> (N, nc, 28, 28)
    n = z.shape[0]
    cout1 = GF * 8

    # Layer 1: ConvTranspose2d(nz, gf*8, 4, 1, 0) + BN + ReLU (fused).
    zt = jnp.transpose(z.reshape(n, NZ)).astype(jnp.bfloat16)          # (nz, N)
    y1 = pl.pallas_call(
        _l1_bn_relu_kernel,
        out_shape=jax.ShapeDtypeStruct((cout1 * 16, n), jnp.float32),
    )(zt, params["w1m"], params["g1"], params["b1"])
    x = jnp.transpose(y1.reshape(cout1, 4, 4, n), (3, 0, 1, 2))        # (N, gf*8, 4, 4)

    # Layers 2-3: stride-2 phase-decomposed ConvT + BN + ReLU (fused per layer).
    x = _up_block(x, params["w2p"], params["g2"], params["b2"])        # (N, gf*4, 8, 8)
    x = _up_block(x, params["w3p"], params["g3"], params["b3"])        # (N, gf*2, 16, 16)

    # Layer 4 + BN + ReLU + final 1x1 conv + tanh fused; crop -> 28x28.
    x = _up_block_final(x, params["w4p"], params["g4"], params["b4"],
                        params["w5c"])                                 # (N, nc, 28, 28)
    return x


if __name__ == "__main__":
    key = jax.random.PRNGKey(0)
    pkey, zkey = jax.random.split(key)
    params = prepare_params(init_params(pkey))     # weight layout prep done once
    z = jax.random.normal(zkey, (BATCH, NZ, 1, 1), jnp.float32)

    out = jax.jit(generator_forward)(params, z)
    out = jax.block_until_ready(out)

    assert out.shape == (BATCH, NC, 28, 28), out.shape
    assert bool(jnp.all(jnp.isfinite(out)))
    assert bool(jnp.all(jnp.abs(out) <= 1.0 + 1e-6))   # tanh range
    print("KERNEL_OK")
</pallas_src>

<mosaic_0001>
module attributes {stable_mosaic.version = 11 : i64} {
  func.func @_l1_bn_relu_kernel(%arg0: memref<16x2xbf16, #tpu.memory_space<vmem>>, %arg1: memref<1024x16xbf16, #tpu.memory_space<vmem>>, %arg2: memref<64x1xf32, #tpu.memory_space<vmem>>, %arg3: memref<64x1xf32, #tpu.memory_space<vmem>>, %arg4: memref<1024x2xf32, #tpu.memory_space<vmem>>) attributes {dimension_semantics = [], scalar_prefetch = 0 : i64, scratch_operands = 0 : i64, tpu.core_type = #tpu.core_type<tc>} {
    %c0 = arith.constant 0 : index
    %c0_0 = arith.constant 0 : index
    %0 = vector.load %arg1[%c0, %c0_0] : memref<1024x16xbf16, #tpu.memory_space<vmem>>, vector<1024x16xbf16>
    %c0_1 = arith.constant 0 : index
    %c0_2 = arith.constant 0 : index
    %1 = vector.load %arg0[%c0_1, %c0_2] : memref<16x2xbf16, #tpu.memory_space<vmem>>, vector<16x2xbf16>
    %cst = arith.constant dense<0.000000e+00> : vector<1024x2xf32>
    %2 = tpu.matmul %0, %1, %cst {dimension_numbers = #tpu.dot_dimension_numbers<[1], [0], [0], [1], [0, 0, 1, 1], [], []>} : vector<1024x16xbf16>, vector<16x2xbf16>, vector<1024x2xf32> -> vector<1024x2xf32>
    %3 = vector.shape_cast %2 : vector<1024x2xf32> to vector<64x16x2xf32>
    %cst_3 = arith.constant dense<0.000000e+00> : vector<64x16xf32>
    %4 = vector.multi_reduction <add>, %3, %cst_3 [2] : vector<64x16x2xf32> to vector<64x16xf32>
    %5 = vector.shape_cast %4 : vector<64x16xf32> to vector<64x16x1xf32>
    %cst_4 = arith.constant 2.000000e+00 : f32
    %6 = vector.broadcast %cst_4 : f32 to vector<64x16x1xf32>
    %7 = arith.divf %5, %6 : vector<64x16x1xf32>
    %cst_5 = arith.constant dense<0.000000e+00> : vector<64x1xf32>
    %8 = vector.multi_reduction <add>, %7, %cst_5 [1] : vector<64x16x1xf32> to vector<64x1xf32>
    %9 = vector.shape_cast %8 : vector<64x1xf32> to vector<64x1x1xf32>
    %cst_6 = arith.constant 1.600000e+01 : f32
    %10 = vector.broadcast %cst_6 : f32 to vector<64x1x1xf32>
    %11 = arith.divf %9, %10 : vector<64x1x1xf32>
    %12 = vector.broadcast %11 : vector<64x1x1xf32> to vector<64x16x2xf32>
    %13 = arith.subf %3, %12 : vector<64x16x2xf32>
    %14 = arith.mulf %13, %13 : vector<64x16x2xf32>
    %cst_7 = arith.constant dense<0.000000e+00> : vector<64x16xf32>
    %15 = vector.multi_reduction <add>, %14, %cst_7 [2] : vector<64x16x2xf32> to vector<64x16xf32>
    %16 = vector.shape_cast %15 : vector<64x16xf32> to vector<64x16x1xf32>
    %cst_8 = arith.constant 2.000000e+00 : f32
    %17 = vector.broadcast %cst_8 : f32 to vector<64x16x1xf32>
    %18 = arith.divf %16, %17 : vector<64x16x1xf32>
    %cst_9 = arith.constant dense<0.000000e+00> : vector<64x1xf32>
    %19 = vector.multi_reduction <add>, %18, %cst_9 [1] : vector<64x16x1xf32> to vector<64x1xf32>
    %20 = vector.shape_cast %19 : vector<64x1xf32> to vector<64x1x1xf32>
    %cst_10 = arith.constant 1.600000e+01 : f32
    %21 = vector.broadcast %cst_10 : f32 to vector<64x1x1xf32>
    %22 = arith.divf %20, %21 : vector<64x1x1xf32>
    %c0_11 = arith.constant 0 : index
    %c0_12 = arith.constant 0 : index
    %23 = vector.load %arg2[%c0_11, %c0_12] : memref<64x1xf32, #tpu.memory_space<vmem>>, vector<64x1xf32>
    %24 = vector.shape_cast %23 : vector<64x1xf32> to vector<64x1x1xf32>
    %c0_13 = arith.constant 0 : index
    %c0_14 = arith.constant 0 : index
    %25 = vector.load %arg3[%c0_13, %c0_14] : memref<64x1xf32, #tpu.memory_space<vmem>>, vector<64x1xf32>
    %26 = vector.shape_cast %25 : vector<64x1xf32> to vector<64x1x1xf32>
    %cst_15 = arith.constant 9.99999974E-6 : f32
    %27 = vector.broadcast %cst_15 : f32 to vector<64x1x1xf32>
    %28 = arith.addf %22, %27 : vector<64x1x1xf32>
    %29 = math.rsqrt %28 : vector<64x1x1xf32>
    %30 = vector.broadcast %29 : vector<64x1x1xf32> to vector<64x16x2xf32>
    %31 = arith.mulf %13, %30 : vector<64x16x2xf32>
    %32 = vector.broadcast %24 : vector<64x1x1xf32> to vector<64x16x2xf32>
    %33 = arith.mulf %31, %32 : vector<64x16x2xf32>
    %34 = vector.broadcast %26 : vector<64x1x1xf32> to vector<64x16x2xf32>
    %35 = arith.addf %33, %34 : vector<64x16x2xf32>
    %cst_16 = arith.constant 0.000000e+00 : f32
    %36 = vector.broadcast %cst_16 : f32 to vector<64x16x2xf32>
    %37 = arith.maximumf %35, %36 : vector<64x16x2xf32>
    %38 = vector.shape_cast %37 : vector<64x16x2xf32> to vector<1024x2xf32>
    %c0_17 = arith.constant 0 : index
    %c0_18 = arith.constant 0 : index
    %39 = vector.load %arg4[%c0_17, %c0_18] : memref<1024x2xf32, #tpu.memory_space<vmem>>, vector<1024x2xf32>
    tpu.vector_store %arg4[%c0_17, %c0_18], %38 {strides = array<i32>} : memref<1024x2xf32, #tpu.memory_space<vmem>>, vector<1024x2xf32>,
    return
  }
}

module attributes {stable_mosaic.version = 11 : i64} {
  func.func @_up_bn_relu_kernel(%arg0: memref<4x256x32xbf16, #tpu.memory_space<vmem>>, %arg1: memref<4x32x256xbf16, #tpu.memory_space<vmem>>, %arg2: memref<32x1xf32, #tpu.memory_space<vmem>>, %arg3: memref<32x1xf32, #tpu.memory_space<vmem>>, %arg4: memref<32x128xf32, #tpu.memory_space<vmem>>) attributes {dimension_semantics = [], scalar_prefetch = 0 : i64, scratch_operands = 0 : i64, tpu.core_type = #tpu.core_type<tc>} {
    %c0 = arith.constant 0 : index
    %c0_0 = arith.constant 0 : index
    %c0_1 = arith.constant 0 : index
    %0 = vector.load %arg1[%c0, %c0_0, %c0_1] : memref<4x32x256xbf16, #tpu.memory_space<vmem>>, vector<1x32x256xbf16>
    %1 = vector.shape_cast %0 : vector<1x32x256xbf16> to vector<32x256xbf16>
    %c0_2 = arith.constant 0 : index
    %c0_3 = arith.constant 0 : index
    %c0_4 = arith.constant 0 : index
    %2 = vector.load %arg0[%c0_2, %c0_3, %c0_4] : memref<4x256x32xbf16, #tpu.memory_space<vmem>>, vector<1x256x32xbf16>
    %3 = vector.shape_cast %2 : vector<1x256x32xbf16> to vector<256x32xbf16>
    %cst = arith.constant dense<0.000000e+00> : vector<32x32xf32>
    %4 = tpu.matmul %1, %3, %cst {dimension_numbers = #tpu.dot_dimension_numbers<[1], [0], [0], [1], [0, 0, 1, 1], [], []>} : vector<32x256xbf16>, vector<256x32xbf16>, vector<32x32xf32> -> vector<32x32xf32>
    %c1 = arith.constant 1 : index
    %c0_5 = arith.constant 0 : index
    %c0_6 = arith.constant 0 : index
    %5 = vector.load %arg1[%c1, %c0_5, %c0_6] : memref<4x32x256xbf16, #tpu.memory_space<vmem>>, vector<1x32x256xbf16>
    %6 = vector.shape_cast %5 : vector<1x32x256xbf16> to vector<32x256xbf16>
    %c1_7 = arith.constant 1 : index
    %c0_8 = arith.constant 0 : index
    %c0_9 = arith.constant 0 : index
    %7 = vector.load %arg0[%c1_7, %c0_8, %c0_9] : memref<4x256x32xbf16, #tpu.memory_space<vmem>>, vector<1x256x32xbf16>
    %8 = vector.shape_cast %7 : vector<1x256x32xbf16> to vector<256x32xbf16>
    %cst_10 = arith.constant dense<0.000000e+00> : vector<32x32xf32>
    %9 = tpu.matmul %6, %8, %cst_10 {dimension_numbers = #tpu.dot_dimension_numbers<[1], [0], [0], [1], [0, 0, 1, 1], [], []>} : vector<32x256xbf16>, vector<256x32xbf16>, vector<32x32xf32> -> vector<32x32xf32>
    %c2 = arith.constant 2 : index
    %c0_11 = arith.constant 0 : index
    %c0_12 = arith.constant 0 : index
    %10 = vector.load %arg1[%c2, %c0_11, %c0_12] : memref<4x32x256xbf16, #tpu.memory_space<vmem>>, vector<1x32x256xbf16>
    %11 = vector.shape_cast %10 : vector<1x32x256xbf16> to vector<32x256xbf16>
    %c2_13 = arith.constant 2 : index
    %c0_14 = arith.constant 0 : index
    %c0_15 = arith.constant 0 : index
    %12 = vector.load %arg0[%c2_13, %c0_14, %c0_15] : memref<4x256x32xbf16, #tpu.memory_space<vmem>>, vector<1x256x32xbf16>
    %13 = vector.shape_cast %12 : vector<1x256x32xbf16> to vector<256x32xbf16>
    %cst_16 = arith.constant dense<0.000000e+00> : vector<32x32xf32>
    %14 = tpu.matmul %11, %13, %cst_16 {dimension_numbers = #tpu.dot_dimension_numbers<[1], [0], [0], [1], [0, 0, 1, 1], [], []>} : vector<32x256xbf16>, vector<256x32xbf16>, vector<32x32xf32> -> vector<32x32xf32>
    %c3 = arith.constant 3 : index
    %c0_17 = arith.constant 0 : index
    %c0_18 = arith.constant 0 : index
    %15 = vector.load %arg1[%c3, %c0_17, %c0_18] : memref<4x32x256xbf16, #tpu.memory_space<vmem>>, vector<1x32x256xbf16>
    %16 = vector.shape_cast %15 : vector<1x32x256xbf16> to vector<32x256xbf16>
    %c3_19 = arith.constant 3 : index
    %c0_20 = arith.constant 0 : index
    %c0_21 = arith.constant 0 : index
    %17 = vector.load %arg0[%c3_19, %c0_20, %c0_21] : memref<4x256x32xbf16, #tpu.memory_space<vmem>>, vector<1x256x32xbf16>
    %18 = vector.shape_cast %17 : vector<1x256x32xbf16> to vector<256x32xbf16>
    %cst_22 = arith.constant dense<0.000000e+00> : vector<32x32xf32>
    %19 = tpu.matmul %16, %18, %cst_22 {dimension_numbers = #tpu.dot_dimension_numbers<[1], [0], [0], [1], [0, 0, 1, 1], [], []>} : vector<32x256xbf16>, vector<256x32xbf16>, vector<32x32xf32> -> vector<32x32xf32>
    %cst_23 = arith.constant dense<0.000000e+00> : vector<32xf32>
    %20 = vector.multi_reduction <add>, %4, %cst_23 [1] : vector<32x32xf32> to vector<32xf32>
    %21 = vector.shape_cast %20 : vector<32xf32> to vector<32x1xf32>
    %cst_24 = arith.constant 0.000000e+00 : f32
    %22 = vector.broadcast %cst_24 : f32 to vector<32x1xf32>
    %23 = arith.addf %22, %21 : vector<32x1xf32>
    %cst_25 = arith.constant dense<0.000000e+00> : vector<32xf32>
    %24 = vector.multi_reduction <add>, %9, %cst_25 [1] : vector<32x32xf32> to vector<32xf32>
    %25 = vector.shape_cast %24 : vector<32xf32> to vector<32x1xf32>
    %26 = arith.addf %23, %25 : vector<32x1xf32>
    %cst_26 = arith.constant dense<0.000000e+00> : vector<32xf32>
    %27 = vector.multi_reduction <add>, %14, %cst_26 [1] : vector<32x32xf32> to vector<32xf32>
    %28 = vector.shape_cast %27 : vector<32xf32> to vector<32x1xf32>
    %29 = arith.addf %26, %28 : vector<32x1xf32>
    %cst_27 = arith.constant dense<0.000000e+00> : vector<32xf32>
    %30 = vector.multi_reduction <add>, %19, %cst_27 [1] : vector<32x32xf32> to vector<32xf32>
    %31 = vector.shape_cast %30 : vector<32xf32> to vector<32x1xf32>
    %32 = arith.addf %29, %31 : vector<32x1xf32>
    %cst_28 = arith.constant 1.280000e+02 : f32
    %33 = vector.broadcast %cst_28 : f32 to vector<32x1xf32>
    %34 = arith.divf %32, %33 : vector<32x1xf32>
    %35 = vector.broadcast %34 : vector<32x1xf32> to vector<32x32xf32>
    %36 = arith.subf %4, %35 : vector<32x32xf32>
    %37 = arith.mulf %36, %36 : vector<32x32xf32>
    %cst_29 = arith.constant dense<0.000000e+00> : vector<32xf32>
    %38 = vector.multi_reduction <add>, %37, %cst_29 [1] : vector<32x32xf32> to vector<32xf32>
    %39 = vector.shape_cast %38 : vector<32xf32> to vector<32x1xf32>
    %cst_30 = arith.constant 0.000000e+00 : f32
    %40 = vector.broadcast %cst_30 : f32 to vector<32x1xf32>
    %41 = arith.addf %40, %39 : vector<32x1xf32>
    %42 = vector.broadcast %34 : vector<32x1xf32> to vector<32x32xf32>
    %43 = arith.subf %9, %42 : vector<32x32xf32>
    %44 = arith.mulf %43, %43 : vector<32x32xf32>
    %cst_31 = arith.constant dense<0.000000e+00> : vector<32xf32>
    %45 = vector.multi_reduction <add>, %44, %cst_31 [1] : vector<32x32xf32> to vector<32xf32>
    %46 = vector.shape_cast %45 : vector<32xf32> to vector<32x1xf32>
    %47 = arith.addf %41, %46 : vector<32x1xf32>
    %48 = vector.broadcast %34 : vector<32x1xf32> to vector<32x32xf32>
    %49 = arith.subf %14, %48 : vector<32x32xf32>
    %50 = arith.mulf %49, %49 : vector<32x32xf32>
    %cst_32 = arith.constant dense<0.000000e+00> : vector<32xf32>
    %51 = vector.multi_reduction <add>, %50, %cst_32 [1] : vector<32x32xf32> to vector<32xf32>
    %52 = vector.shape_cast %51 : vector<32xf32> to vector<32x1xf32>
    %53 = arith.addf %47, %52 : vector<32x1xf32>
    %54 = vector.broadcast %34 : vector<32x1xf32> to vector<32x32xf32>
    %55 = arith.subf %19, %54 : vector<32x32xf32>
    %56 = arith.mulf %55, %55 : vector<32x32xf32>
    %cst_33 = arith.constant dense<0.000000e+00> : vector<32xf32>
    %57 = vector.multi_reduction <add>, %56, %cst_33 [1] : vector<32x32xf32> to vector<32xf32>
    %58 = vector.shape_cast %57 : vector<32xf32> to vector<32x1xf32>
    %59 = arith.addf %53, %58 : vector<32x1xf32>
    %cst_34 = arith.constant 1.280000e+02 : f32
    %60 = vector.broadcast %cst_34 : f32 to vector<32x1xf32>
    %61 = arith.divf %59, %60 : vector<32x1xf32>
    %cst_35 = arith.constant 9.99999974E-6 : f32
    %62 = vector.broadcast %cst_35 : f32 to vector<32x1xf32>
    %63 = arith.addf %61, %62 : vector<32x1xf32>
    %64 = math.rsqrt %63 : vector<32x1xf32>
    %c0_36 = arith.constant 0 : index
    %c0_37 = arith.constant 0 : index
    %65 = vector.load %arg2[%c0_36, %c0_37] : memref<32x1xf32, #tpu.memory_space<vmem>>, vector<32x1xf32>
    %66 = arith.mulf %64, %65 : vector<32x1xf32>
    %c0_38 = arith.constant 0 : index
    %c0_39 = arith.constant 0 : index
    %67 = vector.load %arg3[%c0_38, %c0_39] : memref<32x1xf32, #tpu.memory_space<vmem>>, vector<32x1xf32>
    %68 = arith.mulf %34, %66 : vector<32x1xf32>
    %69 = arith.subf %67, %68 : vector<32x1xf32>
    %70 = vector.broadcast %66 : vector<32x1xf32> to vector<32x32xf32>
    %71 = arith.mulf %4, %70 : vector<32x32xf32>
    %72 = vector.broadcast %69 : vector<32x1xf32> to vector<32x32xf32>
    %73 = arith.addf %71, %72 : vector<32x32xf32>
    %cst_40 = arith.constant 0.000000e+00 : f32
    %74 = vector.broadcast %cst_40 : f32 to vector<32x32xf32>
    %75 = arith.maximumf %73, %74 : vector<32x32xf32>
    %c0_41 = arith.constant 0 : index
    %c0_42 = arith.constant 0 : index
    %76 = vector.load %arg4[%c0_41, %c0_42] : memref<32x128xf32, #tpu.memory_space<vmem>>, vector<32x32xf32>
    tpu.vector_store %arg4[%c0_41, %c0_42], %75 {strides = array<i32>} : memref<32x128xf32, #tpu.memory_space<vmem>>, vector<32x32xf32>,
    %77 = vector.broadcast %66 : vector<32x1xf32> to vector<32x32xf32>
    %78 = arith.mulf %9, %77 : vector<32x32xf32>
    %79 = vector.broadcast %69 : vector<32x1xf32> to vector<32x32xf32>
    %80 = arith.addf %78, %79 : vector<32x32xf32>
    %cst_43 = arith.constant 0.000000e+00 : f32
    %81 = vector.broadcast %cst_43 : f32 to vector<32x32xf32>
    %82 = arith.maximumf %80, %81 : vector<32x32xf32>
    %c0_44 = arith.constant 0 : index
    %c32 = arith.constant 32 : index
    %83 = vector.load %arg4[%c0_44, %c32] : memref<32x128xf32, #tpu.memory_space<vmem>>, vector<32x32xf32>
    tpu.vector_store %arg4[%c0_44, %c32], %82 {strides = array<i32>} : memref<32x128xf32, #tpu.memory_space<vmem>>, vector<32x32xf32>,
    %84 = vector.broadcast %66 : vector<32x1xf32> to vector<32x32xf32>
    %85 = arith.mulf %14, %84 : vector<32x32xf32>
    %86 = vector.broadcast %69 : vector<32x1xf32> to vector<32x32xf32>
    %87 = arith.addf %85, %86 : vector<32x32xf32>
    %cst_45 = arith.constant 0.000000e+00 : f32
    %88 = vector.broadcast %cst_45 : f32 to vector<32x32xf32>
    %89 = arith.maximumf %87, %88 : vector<32x32xf32>
    %c0_46 = arith.constant 0 : index
    %c64 = arith.constant 64 : index
    %90 = vector.load %arg4[%c0_46, %c64] : memref<32x128xf32, #tpu.memory_space<vmem>>, vector<32x32xf32>
    tpu.vector_store %arg4[%c0_46, %c64], %89 {strides = array<i32>} : memref<32x128xf32, #tpu.memory_space<vmem>>, vector<32x32xf32>,
    %91 = vector.broadcast %66 : vector<32x1xf32> to vector<32x32xf32>
    %92 = arith.mulf %19, %91 : vector<32x32xf32>
    %93 = vector.broadcast %69 : vector<32x1xf32> to vector<32x32xf32>
    %94 = arith.addf %92, %93 : vector<32x32xf32>
    %cst_47 = arith.constant 0.000000e+00 : f32
    %95 = vector.broadcast %cst_47 : f32 to vector<32x32xf32>
    %96 = arith.maximumf %94, %95 : vector<32x32xf32>
    %c0_48 = arith.constant 0 : index
    %c96 = arith.constant 96 : index
    %97 = vector.load %arg4[%c0_48, %c96] : memref<32x128xf32, #tpu.memory_space<vmem>>, vector<32x32xf32>
    tpu.vector_store %arg4[%c0_48, %c96], %96 {strides = array<i32>} : memref<32x128xf32, #tpu.memory_space<vmem>>, vector<32x32xf32>,
    return
  }
}

module attributes {stable_mosaic.version = 11 : i64} {
  func.func @_up_bn_relu_kernel(%arg0: memref<4x128x128xbf16, #tpu.memory_space<vmem>>, %arg1: memref<4x16x128xbf16, #tpu.memory_space<vmem>>, %arg2: memref<16x1xf32, #tpu.memory_space<vmem>>, %arg3: memref<16x1xf32, #tpu.memory_space<vmem>>, %arg4: memref<16x512xf32, #tpu.memory_space<vmem>>) attributes {dimension_semantics = [], scalar_prefetch = 0 : i64, scratch_operands = 0 : i64, tpu.core_type = #tpu.core_type<tc>} {
    %c0 = arith.constant 0 : index
    %c0_0 = arith.constant 0 : index
    %c0_1 = arith.constant 0 : index
    %0 = vector.load %arg1[%c0, %c0_0, %c0_1] : memref<4x16x128xbf16, #tpu.memory_space<vmem>>, vector<1x16x128xbf16>
    %1 = vector.shape_cast %0 : vector<1x16x128xbf16> to vector<16x128xbf16>
    %c0_2 = arith.constant 0 : index
    %c0_3 = arith.constant 0 : index
    %c0_4 = arith.constant 0 : index
    %2 = vector.load %arg0[%c0_2, %c0_3, %c0_4] : memref<4x128x128xbf16, #tpu.memory_space<vmem>>, vector<1x128x128xbf16>
    %3 = vector.shape_cast %2 : vector<1x128x128xbf16> to vector<128x128xbf16>
    %cst = arith.constant dense<0.000000e+00> : vector<16x128xf32>
    %4 = tpu.matmul %1, %3, %cst {dimension_numbers = #tpu.dot_dimension_numbers<[1], [0], [0], [1], [0, 0, 1, 1], [], []>} : vector<16x128xbf16>, vector<128x128xbf16>, vector<16x128xf32> -> vector<16x128xf32>
    %c1 = arith.constant 1 : index
    %c0_5 = arith.constant 0 : index
    %c0_6 = arith.constant 0 : index
    %5 = vector.load %arg1[%c1, %c0_5, %c0_6] : memref<4x16x128xbf16, #tpu.memory_space<vmem>>, vector<1x16x128xbf16>
    %6 = vector.shape_cast %5 : vector<1x16x128xbf16> to vector<16x128xbf16>
    %c1_7 = arith.constant 1 : index
    %c0_8 = arith.constant 0 : index
    %c0_9 = arith.constant 0 : index
    %7 = vector.load %arg0[%c1_7, %c0_8, %c0_9] : memref<4x128x128xbf16, #tpu.memory_space<vmem>>, vector<1x128x128xbf16>
    %8 = vector.shape_cast %7 : vector<1x128x128xbf16> to vector<128x128xbf16>
    %cst_10 = arith.constant dense<0.000000e+00> : vector<16x128xf32>
    %9 = tpu.matmul %6, %8, %cst_10 {dimension_numbers = #tpu.dot_dimension_numbers<[1], [0], [0], [1], [0, 0, 1, 1], [], []>} : vector<16x128xbf16>, vector<128x128xbf16>, vector<16x128xf32> -> vector<16x128xf32>
    %c2 = arith.constant 2 : index
    %c0_11 = arith.constant 0 : index
    %c0_12 = arith.constant 0 : index
    %10 = vector.load %arg1[%c2, %c0_11, %c0_12] : memref<4x16x128xbf16, #tpu.memory_space<vmem>>, vector<1x16x128xbf16>
    %11 = vector.shape_cast %10 : vector<1x16x128xbf16> to vector<16x128xbf16>
    %c2_13 = arith.constant 2 : index
    %c0_14 = arith.constant 0 : index
    %c0_15 = arith.constant 0 : index
    %12 = vector.load %arg0[%c2_13, %c0_14, %c0_15] : memref<4x128x128xbf16, #tpu.memory_space<vmem>>, vector<1x128x128xbf16>
    %13 = vector.shape_cast %12 : vector<1x128x128xbf16> to vector<128x128xbf16>
    %cst_16 = arith.constant dense<0.000000e+00> : vector<16x128xf32>
    %14 = tpu.matmul %11, %13, %cst_16 {dimension_numbers = #tpu.dot_dimension_numbers<[1], [0], [0], [1], [0, 0, 1, 1], [], []>} : vector<16x128xbf16>, vector<128x128xbf16>, vector<16x128xf32> -> vector<16x128xf32>
    %c3 = arith.constant 3 : index
    %c0_17 = arith.constant 0 : index
    %c0_18 = arith.constant 0 : index
    %15 = vector.load %arg1[%c3, %c0_17, %c0_18] : memref<4x16x128xbf16, #tpu.memory_space<vmem>>, vector<1x16x128xbf16>
    %16 = vector.shape_cast %15 : vector<1x16x128xbf16> to vector<16x128xbf16>
    %c3_19 = arith.constant 3 : index
    %c0_20 = arith.constant 0 : index
    %c0_21 = arith.constant 0 : index
    %17 = vector.load %arg0[%c3_19, %c0_20, %c0_21] : memref<4x128x128xbf16, #tpu.memory_space<vmem>>, vector<1x128x128xbf16>
    %18 = vector.shape_cast %17 : vector<1x128x128xbf16> to vector<128x128xbf16>
    %cst_22 = arith.constant dense<0.000000e+00> : vector<16x128xf32>
    %19 = tpu.matmul %16, %18, %cst_22 {dimension_numbers = #tpu.dot_dimension_numbers<[1], [0], [0], [1], [0, 0, 1, 1], [], []>} : vector<16x128xbf16>, vector<128x128xbf16>, vector<16x128xf32> -> vector<16x128xf32>
    %cst_23 = arith.constant dense<0.000000e+00> : vector<16xf32>
    %20 = vector.multi_reduction <add>, %4, %cst_23 [1] : vector<16x128xf32> to vector<16xf32>
    %21 = vector.shape_cast %20 : vector<16xf32> to vector<16x1xf32>
    %cst_24 = arith.constant 0.000000e+00 : f32
    %22 = vector.broadcast %cst_24 : f32 to vector<16x1xf32>
    %23 = arith.addf %22, %21 : vector<16x1xf32>
    %cst_25 = arith.constant dense<0.000000e+00> : vector<16xf32>
    %24 = vector.multi_reduction <add>, %9, %cst_25 [1] : vector<16x128xf32> to vector<16xf32>
    %25 = vector.shape_cast %24 : vector<16xf32> to vector<16x1xf32>
    %26 = arith.addf %23, %25 : vector<16x1xf32>
    %cst_26 = arith.constant dense<0.000000e+00> : vector<16xf32>
    %27 = vector.multi_reduction <add>, %14, %cst_26 [1] : vector<16x128xf32> to vector<16xf32>
    %28 = vector.shape_cast %27 : vector<16xf32> to vector<16x1xf32>
    %29 = arith.addf %26, %28 : vector<16x1xf32>
    %cst_27 = arith.constant dense<0.000000e+00> : vector<16xf32>
    %30 = vector.multi_reduction <add>, %19, %cst_27 [1] : vector<16x128xf32> to vector<16xf32>
    %31 = vector.shape_cast %30 : vector<16xf32> to vector<16x1xf32>
    %32 = arith.addf %29, %31 : vector<16x1xf32>
    %cst_28 = arith.constant 5.120000e+02 : f32
    %33 = vector.broadcast %cst_28 : f32 to vector<16x1xf32>
    %34 = arith.divf %32, %33 : vector<16x1xf32>
    %35 = vector.broadcast %34 : vector<16x1xf32> to vector<16x128xf32>
    %36 = arith.subf %4, %35 : vector<16x128xf32>
    %37 = arith.mulf %36, %36 : vector<16x128xf32>
    %cst_29 = arith.constant dense<0.000000e+00> : vector<16xf32>
    %38 = vector.multi_reduction <add>, %37, %cst_29 [1] : vector<16x128xf32> to vector<16xf32>
    %39 = vector.shape_cast %38 : vector<16xf32> to vector<16x1xf32>
    %cst_30 = arith.constant 0.000000e+00 : f32
    %40 = vector.broadcast %cst_30 : f32 to vector<16x1xf32>
    %41 = arith.addf %40, %39 : vector<16x1xf32>
    %42 = vector.broadcast %34 : vector<16x1xf32> to vector<16x128xf32>
    %43 = arith.subf %9, %42 : vector<16x128xf32>
    %44 = arith.mulf %43, %43 : vector<16x128xf32>
    %cst_31 = arith.constant dense<0.000000e+00> : vector<16xf32>
    %45 = vector.multi_reduction <add>, %44, %cst_31 [1] : vector<16x128xf32> to vector<16xf32>
    %46 = vector.shape_cast %45 : vector<16xf32> to vector<16x1xf32>
    %47 = arith.addf %41, %46 : vector<16x1xf32>
    %48 = vector.broadcast %34 : vector<16x1xf32> to vector<16x128xf32>
    %49 = arith.subf %14, %48 : vector<16x128xf32>
    %50 = arith.mulf %49, %49 : vector<16x128xf32>
    %cst_32 = arith.constant dense<0.000000e+00> : vector<16xf32>
    %51 = vector.multi_reduction <add>, %50, %cst_32 [1] : vector<16x128xf32> to vector<16xf32>
    %52 = vector.shape_cast %51 : vector<16xf32> to vector<16x1xf32>
    %53 = arith.addf %47, %52 : vector<16x1xf32>
    %54 = vector.broadcast %34 : vector<16x1xf32> to vector<16x128xf32>
    %55 = arith.subf %19, %54 : vector<16x128xf32>
    %56 = arith.mulf %55, %55 : vector<16x128xf32>
    %cst_33 = arith.constant dense<0.000000e+00> : vector<16xf32>
    %57 = vector.multi_reduction <add>, %56, %cst_33 [1] : vector<16x128xf32> to vector<16xf32>
    %58 = vector.shape_cast %57 : vector<16xf32> to vector<16x1xf32>
    %59 = arith.addf %53, %58 : vector<16x1xf32>
    %cst_34 = arith.constant 5.120000e+02 : f32
    %60 = vector.broadcast %cst_34 : f32 to vector<16x1xf32>
    %61 = arith.divf %59, %60 : vector<16x1xf32>
    %cst_35 = arith.constant 9.99999974E-6 : f32
    %62 = vector.broadcast %cst_35 : f32 to vector<16x1xf32>
    %63 = arith.addf %61, %62 : vector<16x1xf32>
    %64 = math.rsqrt %63 : vector<16x1xf32>
    %c0_36 = arith.constant 0 : index
    %c0_37 = arith.constant 0 : index
    %65 = vector.load %arg2[%c0_36, %c0_37] : memref<16x1xf32, #tpu.memory_space<vmem>>, vector<16x1xf32>
    %66 = arith.mulf %64, %65 : vector<16x1xf32>
    %c0_38 = arith.constant 0 : index
    %c0_39 = arith.constant 0 : index
    %67 = vector.load %arg3[%c0_38, %c0_39] : memref<16x1xf32, #tpu.memory_space<vmem>>, vector<16x1xf32>
    %68 = arith.mulf %34, %66 : vector<16x1xf32>
    %69 = arith.subf %67, %68 : vector<16x1xf32>
    %70 = vector.broadcast %66 : vector<16x1xf32> to vector<16x128xf32>
    %71 = arith.mulf %4, %70 : vector<16x128xf32>
    %72 = vector.broadcast %69 : vector<16x1xf32> to vector<16x128xf32>
    %73 = arith.addf %71, %72 : vector<16x128xf32>
    %cst_40 = arith.constant 0.000000e+00 : f32
    %74 = vector.broadcast %cst_40 : f32 to vector<16x128xf32>
    %75 = arith.maximumf %73, %74 : vector<16x128xf32>
    %c0_41 = arith.constant 0 : index
    %c0_42 = arith.constant 0 : index
    %76 = vector.load %arg4[%c0_41, %c0_42] : memref<16x512xf32, #tpu.memory_space<vmem>>, vector<16x128xf32>
    tpu.vector_store %arg4[%c0_41, %c0_42], %75 {strides = array<i32>} : memref<16x512xf32, #tpu.memory_space<vmem>>, vector<16x128xf32>,
    %77 = vector.broadcast %66 : vector<16x1xf32> to vector<16x128xf32>
    %78 = arith.mulf %9, %77 : vector<16x128xf32>
    %79 = vector.broadcast %69 : vector<16x1xf32> to vector<16x128xf32>
    %80 = arith.addf %78, %79 : vector<16x128xf32>
    %cst_43 = arith.constant 0.000000e+00 : f32
    %81 = vector.broadcast %cst_43 : f32 to vector<16x128xf32>
    %82 = arith.maximumf %80, %81 : vector<16x128xf32>
    %c0_44 = arith.constant 0 : index
    %c128 = arith.constant 128 : index
    %83 = vector.load %arg4[%c0_44, %c128] : memref<16x512xf32, #tpu.memory_space<vmem>>, vector<16x128xf32>
    tpu.vector_store %arg4[%c0_44, %c128], %82 {strides = array<i32>} : memref<16x512xf32, #tpu.memory_space<vmem>>, vector<16x128xf32>,
    %84 = vector.broadcast %66 : vector<16x1xf32> to vector<16x128xf32>
    %85 = arith.mulf %14, %84 : vector<16x128xf32>
    %86 = vector.broadcast %69 : vector<16x1xf32> to vector<16x128xf32>
    %87 = arith.addf %85, %86 : vector<16x128xf32>
    %cst_45 = arith.constant 0.000000e+00 : f32
    %88 = vector.broadcast %cst_45 : f32 to vector<16x128xf32>
    %89 = arith.maximumf %87, %88 : vector<16x128xf32>
    %c0_46 = arith.constant 0 : index
    %c256 = arith.constant 256 : index
    %90 = vector.load %arg4[%c0_46, %c256] : memref<16x512xf32, #tpu.memory_space<vmem>>, vector<16x128xf32>
    tpu.vector_store %arg4[%c0_46, %c256], %89 {strides = array<i32>} : memref<16x512xf32, #tpu.memory_space<vmem>>, vector<16x128xf32>,
    %91 = vector.broadcast %66 : vector<16x1xf32> to vector<16x128xf32>
    %92 = arith.mulf %19, %91 : vector<16x128xf32>
    %93 = vector.broadcast %69 : vector<16x1xf32> to vector<16x128xf32>
    %94 = arith.addf %92, %93 : vector<16x128xf32>
    %cst_47 = arith.constant 0.000000e+00 : f32
    %95 = vector.broadcast %cst_47 : f32 to vector<16x128xf32>
    %96 = arith.maximumf %94, %95 : vector<16x128xf32>
    %c0_48 = arith.constant 0 : index
    %c384 = arith.constant 384 : index
    %97 = vector.load %arg4[%c0_48, %c384] : memref<16x512xf32, #tpu.memory_space<vmem>>, vector<16x128xf32>
    tpu.vector_store %arg4[%c0_48, %c384], %96 {strides = array<i32>} : memref<16x512xf32, #tpu.memory_space<vmem>>, vector<16x128xf32>,
    return
  }
}

module attributes {stable_mosaic.version = 11 : i64} {
  func.func @_up_bn_relu_proj_tanh_kernel(%arg0: memref<4x64x512xbf16, #tpu.memory_space<vmem>>, %arg1: memref<4x8x64xbf16, #tpu.memory_space<vmem>>, %arg2: memref<8x1xf32, #tpu.memory_space<vmem>>, %arg3: memref<8x1xf32, #tpu.memory_space<vmem>>, %arg4: memref<8x1xf32, #tpu.memory_space<vmem>>, %arg5: memref<1x2048xf32, #tpu.memory_space<vmem>>) attributes {dimension_semantics = [], scalar_prefetch = 0 : i64, scratch_operands = 0 : i64, tpu.core_type = #tpu.core_type<tc>} {
    %c0 = arith.constant 0 : index
    %c0_0 = arith.constant 0 : index
    %c0_1 = arith.constant 0 : index
    %0 = vector.load %arg1[%c0, %c0_0, %c0_1] : memref<4x8x64xbf16, #tpu.memory_space<vmem>>, vector<1x8x64xbf16>
    %1 = vector.shape_cast %0 : vector<1x8x64xbf16> to vector<8x64xbf16>
    %c0_2 = arith.constant 0 : index
    %c0_3 = arith.constant 0 : index
    %c0_4 = arith.constant 0 : index
    %2 = vector.load %arg0[%c0_2, %c0_3, %c0_4] : memref<4x64x512xbf16, #tpu.memory_space<vmem>>, vector<1x64x512xbf16>
    %3 = vector.shape_cast %2 : vector<1x64x512xbf16> to vector<64x512xbf16>
    %cst = arith.constant dense<0.000000e+00> : vector<8x512xf32>
    %4 = tpu.matmul %1, %3, %cst {dimension_numbers = #tpu.dot_dimension_numbers<[1], [0], [0], [1], [0, 0, 1, 1], [], []>} : vector<8x64xbf16>, vector<64x512xbf16>, vector<8x512xf32> -> vector<8x512xf32>
    %c1 = arith.constant 1 : index
    %c0_5 = arith.constant 0 : index
    %c0_6 = arith.constant 0 : index
    %5 = vector.load %arg1[%c1, %c0_5, %c0_6] : memref<4x8x64xbf16, #tpu.memory_space<vmem>>, vector<1x8x64xbf16>
    %6 = vector.shape_cast %5 : vector<1x8x64xbf16> to vector<8x64xbf16>
    %c1_7 = arith.constant 1 : index
    %c0_8 = arith.constant 0 : index
    %c0_9 = arith.constant 0 : index
    %7 = vector.load %arg0[%c1_7, %c0_8, %c0_9] : memref<4x64x512xbf16, #tpu.memory_space<vmem>>, vector<1x64x512xbf16>
    %8 = vector.shape_cast %7 : vector<1x64x512xbf16> to vector<64x512xbf16>
    %cst_10 = arith.constant dense<0.000000e+00> : vector<8x512xf32>
    %9 = tpu.matmul %6, %8, %cst_10 {dimension_numbers = #tpu.dot_dimension_numbers<[1], [0], [0], [1], [0, 0, 1, 1], [], []>} : vector<8x64xbf16>, vector<64x512xbf16>, vector<8x512xf32> -> vector<8x512xf32>
    %c2 = arith.constant 2 : index
    %c0_11 = arith.constant 0 : index
    %c0_12 = arith.constant 0 : index
    %10 = vector.load %arg1[%c2, %c0_11, %c0_12] : memref<4x8x64xbf16, #tpu.memory_space<vmem>>, vector<1x8x64xbf16>
    %11 = vector.shape_cast %10 : vector<1x8x64xbf16> to vector<8x64xbf16>
    %c2_13 = arith.constant 2 : index
    %c0_14 = arith.constant 0 : index
    %c0_15 = arith.constant 0 : index
    %12 = vector.load %arg0[%c2_13, %c0_14, %c0_15] : memref<4x64x512xbf16, #tpu.memory_space<vmem>>, vector<1x64x512xbf16>
    %13 = vector.shape_cast %12 : vector<1x64x512xbf16> to vector<64x512xbf16>
    %cst_16 = arith.constant dense<0.000000e+00> : vector<8x512xf32>
    %14 = tpu.matmul %11, %13, %cst_16 {dimension_numbers = #tpu.dot_dimension_numbers<[1], [0], [0], [1], [0, 0, 1, 1], [], []>} : vector<8x64xbf16>, vector<64x512xbf16>, vector<8x512xf32> -> vector<8x512xf32>
    %c3 = arith.constant 3 : index
    %c0_17 = arith.constant 0 : index
    %c0_18 = arith.constant 0 : index
    %15 = vector.load %arg1[%c3, %c0_17, %c0_18] : memref<4x8x64xbf16, #tpu.memory_space<vmem>>, vector<1x8x64xbf16>
    %16 = vector.shape_cast %15 : vector<1x8x64xbf16> to vector<8x64xbf16>
    %c3_19 = arith.constant 3 : index
    %c0_20 = arith.constant 0 : index
    %c0_21 = arith.constant 0 : index
    %17 = vector.load %arg0[%c3_19, %c0_20, %c0_21] : memref<4x64x512xbf16, #tpu.memory_space<vmem>>, vector<1x64x512xbf16>
    %18 = vector.shape_cast %17 : vector<1x64x512xbf16> to vector<64x512xbf16>
    %cst_22 = arith.constant dense<0.000000e+00> : vector<8x512xf32>
    %19 = tpu.matmul %16, %18, %cst_22 {dimension_numbers = #tpu.dot_dimension_numbers<[1], [0], [0], [1], [0, 0, 1, 1], [], []>} : vector<8x64xbf16>, vector<64x512xbf16>, vector<8x512xf32> -> vector<8x512xf32>
    %cst_23 = arith.constant dense<0.000000e+00> : vector<8xf32>
    %20 = vector.multi_reduction <add>, %4, %cst_23 [1] : vector<8x512xf32> to vector<8xf32>
    %21 = vector.shape_cast %20 : vector<8xf32> to vector<8x1xf32>
    %cst_24 = arith.constant 0.000000e+00 : f32
    %22 = vector.broadcast %cst_24 : f32 to vector<8x1xf32>
    %23 = arith.addf %22, %21 : vector<8x1xf32>
    %cst_25 = arith.constant dense<0.000000e+00> : vector<8xf32>
    %24 = vector.multi_reduction <add>, %9, %cst_25 [1] : vector<8x512xf32> to vector<8xf32>
    %25 = vector.shape_cast %24 : vector<8xf32> to vector<8x1xf32>
    %26 = arith.addf %23, %25 : vector<8x1xf32>
    %cst_26 = arith.constant dense<0.000000e+00> : vector<8xf32>
    %27 = vector.multi_reduction <add>, %14, %cst_26 [1] : vector<8x512xf32> to vector<8xf32>
    %28 = vector.shape_cast %27 : vector<8xf32> to vector<8x1xf32>
    %29 = arith.addf %26, %28 : vector<8x1xf32>
    %cst_27 = arith.constant dense<0.000000e+00> : vector<8xf32>
    %30 = vector.multi_reduction <add>, %19, %cst_27 [1] : vector<8x512xf32> to vector<8xf32>
    %31 = vector.shape_cast %30 : vector<8xf32> to vector<8x1xf32>
    %32 = arith.addf %29, %31 : vector<8x1xf32>
    %cst_28 = arith.constant 2.048000e+03 : f32
    %33 = vector.broadcast %cst_28 : f32 to vector<8x1xf32>
    %34 = arith.divf %32, %33 : vector<8x1xf32>
    %35 = vector.broadcast %34 : vector<8x1xf32> to vector<8x512xf32>
    %36 = arith.subf %4, %35 : vector<8x512xf32>
    %37 = arith.mulf %36, %36 : vector<8x512xf32>
    %cst_29 = arith.constant dense<0.000000e+00> : vector<8xf32>
    %38 = vector.multi_reduction <add>, %37, %cst_29 [1] : vector<8x512xf32> to vector<8xf32>
    %39 = vector.shape_cast %38 : vector<8xf32> to vector<8x1xf32>
    %cst_30 = arith.constant 0.000000e+00 : f32
    %40 = vector.broadcast %cst_30 : f32 to vector<8x1xf32>
    %41 = arith.addf %40, %39 : vector<8x1xf32>
    %42 = vector.broadcast %34 : vector<8x1xf32> to vector<8x512xf32>
    %43 = arith.subf %9, %42 : vector<8x512xf32>
    %44 = arith.mulf %43, %43 : vector<8x512xf32>
    %cst_31 = arith.constant dense<0.000000e+00> : vector<8xf32>
    %45 = vector.multi_reduction <add>, %44, %cst_31 [1] : vector<8x512xf32> to vector<8xf32>
    %46 = vector.shape_cast %45 : vector<8xf32> to vector<8x1xf32>
    %47 = arith.addf %41, %46 : vector<8x1xf32>
    %48 = vector.broadcast %34 : vector<8x1xf32> to vector<8x512xf32>
    %49 = arith.subf %14, %48 : vector<8x512xf32>
    %50 = arith.mulf %49, %49 : vector<8x512xf32>
    %cst_32 = arith.constant dense<0.000000e+00> : vector<8xf32>
    %51 = vector.multi_reduction <add>, %50, %cst_32 [1] : vector<8x512xf32> to vector<8xf32>
    %52 = vector.shape_cast %51 : vector<8xf32> to vector<8x1xf32>
    %53 = arith.addf %47, %52 : vector<8x1xf32>
    %54 = vector.broadcast %34 : vector<8x1xf32> to vector<8x512xf32>
    %55 = arith.subf %19, %54 : vector<8x512xf32>
    %56 = arith.mulf %55, %55 : vector<8x512xf32>
    %cst_33 = arith.constant dense<0.000000e+00> : vector<8xf32>
    %57 = vector.multi_reduction <add>, %56, %cst_33 [1] : vector<8x512xf32> to vector<8xf32>
    %58 = vector.shape_cast %57 : vector<8xf32> to vector<8x1xf32>
    %59 = arith.addf %53, %58 : vector<8x1xf32>
    %cst_34 = arith.constant 2.048000e+03 : f32
    %60 = vector.broadcast %cst_34 : f32 to vector<8x1xf32>
    %61 = arith.divf %59, %60 : vector<8x1xf32>
    %cst_35 = arith.constant 9.99999974E-6 : f32
    %62 = vector.broadcast %cst_35 : f32 to vector<8x1xf32>
    %63 = arith.addf %61, %62 : vector<8x1xf32>
    %64 = math.rsqrt %63 : vector<8x1xf32>
    %c0_36 = arith.constant 0 : index
    %c0_37 = arith.constant 0 : index
    %65 = vector.load %arg2[%c0_36, %c0_37] : memref<8x1xf32, #tpu.memory_space<vmem>>, vector<8x1xf32>
    %66 = arith.mulf %64, %65 : vector<8x1xf32>
    %c0_38 = arith.constant 0 : index
    %c0_39 = arith.constant 0 : index
    %67 = vector.load %arg3[%c0_38, %c0_39] : memref<8x1xf32, #tpu.memory_space<vmem>>, vector<8x1xf32>
    %68 = arith.mulf %34, %66 : vector<8x1xf32>
    %69 = arith.subf %67, %68 : vector<8x1xf32>
    %c0_40 = arith.constant 0 : index
    %c0_41 = arith.constant 0 : index
    %70 = vector.load %arg4[%c0_40, %c0_41] : memref<8x1xf32, #tpu.memory_space<vmem>>, vector<8x1xf32>
    %71 = vector.broadcast %66 : vector<8x1xf32> to vector<8x512xf32>
    %72 = arith.mulf %4, %71 : vector<8x512xf32>
    %73 = vector.broadcast %69 : vector<8x1xf32> to vector<8x512xf32>
    %74 = arith.addf %72, %73 : vector<8x512xf32>
    %cst_42 = arith.constant 0.000000e+00 : f32
    %75 = vector.broadcast %cst_42 : f32 to vector<8x512xf32>
    %76 = arith.maximumf %74, %75 : vector<8x512xf32>
    %77 = vector.broadcast %70 : vector<8x1xf32> to vector<8x512xf32>
    %78 = arith.mulf %76, %77 : vector<8x512xf32>
    %cst_43 = arith.constant dense<0.000000e+00> : vector<512xf32>
    %79 = vector.multi_reduction <add>, %78, %cst_43 [0] : vector<8x512xf32> to vector<512xf32>
    %80 = vector.shape_cast %79 : vector<512xf32> to vector<1x512xf32>
    %81 = math.tanh %80 : vector<1x512xf32>
    %c0_44 = arith.constant 0 : index
    %c0_45 = arith.constant 0 : index
    %82 = vector.load %arg5[%c0_44, %c0_45] : memref<1x2048xf32, #tpu.memory_space<vmem>>, vector<1x512xf32>
    tpu.vector_store %arg5[%c0_44, %c0_45], %81 {strides = array<i32>} : memref<1x2048xf32, #tpu.memory_space<vmem>>, vector<1x512xf32>,
    %83 = vector.broadcast %66 : vector<8x1xf32> to vector<8x512xf32>
    %84 = arith.mulf %9, %83 : vector<8x512xf32>
    %85 = vector.broadcast %69 : vector<8x1xf32> to vector<8x512xf32>
    %86 = arith.addf %84, %85 : vector<8x512xf32>
    %cst_46 = arith.constant 0.000000e+00 : f32
    %87 = vector.broadcast %cst_46 : f32 to vector<8x512xf32>
    %88 = arith.maximumf %86, %87 : vector<8x512xf32>
    %89 = vector.broadcast %70 : vector<8x1xf32> to vector<8x512xf32>
    %90 = arith.mulf %88, %89 : vector<8x512xf32>
    %cst_47 = arith.constant dense<0.000000e+00> : vector<512xf32>
    %91 = vector.multi_reduction <add>, %90, %cst_47 [0] : vector<8x512xf32> to vector<512xf32>
    %92 = vector.shape_cast %91 : vector<512xf32> to vector<1x512xf32>
    %93 = math.tanh %92 : vector<1x512xf32>
    %c0_48 = arith.constant 0 : index
    %c512 = arith.constant 512 : index
    %94 = vector.load %arg5[%c0_48, %c512] : memref<1x2048xf32, #tpu.memory_space<vmem>>, vector<1x512xf32>
    tpu.vector_store %arg5[%c0_48, %c512], %93 {strides = array<i32>} : memref<1x2048xf32, #tpu.memory_space<vmem>>, vector<1x512xf32>,
    %95 = vector.broadcast %66 : vector<8x1xf32> to vector<8x512xf32>
    %96 = arith.mulf %14, %95 : vector<8x512xf32>
    %97 = vector.broadcast %69 : vector<8x1xf32> to vector<8x512xf32>
    %98 = arith.addf %96, %97 : vector<8x512xf32>
    %cst_49 = arith.constant 0.000000e+00 : f32
    %99 = vector.broadcast %cst_49 : f32 to vector<8x512xf32>
    %100 = arith.maximumf %98, %99 : vector<8x512xf32>
    %101 = vector.broadcast %70 : vector<8x1xf32> to vector<8x512xf32>
    %102 = arith.mulf %100, %101 : vector<8x512xf32>
    %cst_50 = arith.constant dense<0.000000e+00> : vector<512xf32>
    %103 = vector.multi_reduction <add>, %102, %cst_50 [0] : vector<8x512xf32> to vector<512xf32>
    %104 = vector.shape_cast %103 : vector<512xf32> to vector<1x512xf32>
    %105 = math.tanh %104 : vector<1x512xf32>
    %c0_51 = arith.constant 0 : index
    %c1024 = arith.constant 1024 : index
    %106 = vector.load %arg5[%c0_51, %c1024] : memref<1x2048xf32, #tpu.memory_space<vmem>>, vector<1x512xf32>
    tpu.vector_store %arg5[%c0_51, %c1024], %105 {strides = array<i32>} : memref<1x2048xf32, #tpu.memory_space<vmem>>, vector<1x512xf32>,
    %107 = vector.broadcast %66 : vector<8x1xf32> to vector<8x512xf32>
    %108 = arith.mulf %19, %107 : vector<8x512xf32>
    %109 = vector.broadcast %69 : vector<8x1xf32> to vector<8x512xf32>
    %110 = arith.addf %108, %109 : vector<8x512xf32>
    %cst_52 = arith.constant 0.000000e+00 : f32
    %111 = vector.broadcast %cst_52 : f32 to vector<8x512xf32>
    %112 = arith.maximumf %110, %111 : vector<8x512xf32>
    %113 = vector.broadcast %70 : vector<8x1xf32> to vector<8x512xf32>
    %114 = arith.mulf %112, %113 : vector<8x512xf32>
    %cst_53 = arith.constant dense<0.000000e+00> : vector<512xf32>
    %115 = vector.multi_reduction <add>, %114, %cst_53 [0] : vector<8x512xf32> to vector<512xf32>
    %116 = vector.shape_cast %115 : vector<512xf32> to vector<1x512xf32>
    %117 = math.tanh %116 : vector<1x512xf32>
    %c0_54 = arith.constant 0 : index
    %c1536 = arith.constant 1536 : index
    %118 = vector.load %arg5[%c0_54, %c1536] : memref<1x2048xf32, #tpu.memory_space<vmem>>, vector<1x512xf32>
    tpu.vector_store %arg5[%c0_54, %c1536], %117 {strides = array<i32>} : memref<1x2048xf32, #tpu.memory_space<vmem>>, vector<1x512xf32>,
    return
  }
}

</mosaic_0001>

<bundles_post_ra>
// kernel: generator_forward.4
= control target key start
LH: loop header
LB: loop body
LE: loop exit
PB: predicated region body
PF: predicated region fallthrough
CT: control target
= control target key end

     0   :  { %vm474_vm0 = vcmask 130048   ;;  %vm1212_vm1 = vcmask 15360   ;;  %s10279_s0 = inlined_call_operand.vmem [shape: bf16[16,2], index: 0, kind: input, shape index: {}]   ;;  %s10280_s1 = inlined_call_operand.vmem [shape: bf16[1024,16], index: 1, kind: input, shape index: {}]   ;;  %s10281_s2 = inlined_call_operand.vmem [shape: f32[64,1], index: 2, kind: input, shape index: {}]   ;;  %s10282_s3 = inlined_call_operand.vmem [shape: f32[64,1], index: 3, kind: input, shape index: {}]   ;;  %s10283_s4 = inlined_call_operand.vmem [shape: f32[1024,2], index: 4, kind: output, shape index: {}]  }
   0x1   :  { %v6461_v0 = vld [vmem:[%s10279_s0] sm:$0xff]   ;;  %v6464_v3 = vld [vmem:[%s10280_s1 + $0x8] sm:$0xff]   ;;  %v6466_v5 = vld [vmem:[%s10280_s1 + $0x10] sm:$0xff]  }
   0x2   :  { %v6462_v1 = vld [vmem:[%s10280_s1] sm:$0xff]   ;;  %6325 = vmatprep.subr.bf16.mxu0 %v6461_v0  ;;  %6455 = vmatprep.subr.bf16.mxu1 %v6461_v0  ;;  %v6465_v4 = vld [vmem:[%s10280_s1 + $0x108] sm:$0xff]   ;;  %v6468_v6 = vld [vmem:[%s10280_s1 + $0x110] sm:$0xff]  }
   0x3   :  { %v6463_v2 = vld [vmem:[%s10280_s1 + $0x100] sm:$0xff]   ;;  %6326 = vmatpush3.bf16.msra.mxu0 %v6461_v0  ;;  %6456 = vmatpush3.bf16.msra.mxu1 %v6461_v0  ;;  %v6467_v7 = vld [vmem:[%s10280_s1 + $0x18] sm:$0xff]   ;;  %v6471_v11 = vld [vmem:[%s10280_s1 + $0x28] sm:$0xff]  }
   0x4   :  { %6327 = vmatprep.mubr.msk.bf16.mxu0 %vm474_vm0, %v6462_v1  ;;  %6391 = vmatprep.mubr.msk.bf16.mxu1 %vm474_vm0, %v6463_v2  ;;  %v6469_v8 = vld [vmem:[%s10280_s1 + $0x118] sm:$0xff]   ;;  %v6470_v9 = vld [vmem:[%s10280_s1 + $0x20] sm:$0xff]   ;;  %v6473_v12 = vld [vmem:[%s10280_s1 + $0x128] sm:$0xff]  }
   0x5   :  { %v6472_v10 = vld [vmem:[%s10280_s1 + $0x120] sm:$0xff]   ;;  %v6474_v13 = vld [vmem:[%s10280_s1 + $0x30] sm:$0xff]   ;;  %v6475_v15 = vld [vmem:[%s10280_s1 + $0x38] sm:$0xff]  }
   0x6   :  { %6328 = vmatmul.mubr.msk.bf16.vlgmr.msra.gmra.mrb[0].mxu0 %vm474_vm0, %v6464_v3  ;;  %6392 = vmatmul.mubr.msk.bf16.vlgmr.msra.gmra.mrb[0].mxu1 %vm474_vm0, %v6465_v4  ;;  %v6476_v14 = vld [vmem:[%s10280_s1 + $0x130] sm:$0xff]   ;;  %v6477_v16 = vld [vmem:[%s10280_s1 + $0x138] sm:$0xff]   ;;  %v6478_v17 = vld [vmem:[%s10280_s1 + $0x40] sm:$0xff]  }
   0x7   :  { %6331 = vmatprep.mubr.msk.bf16.mxu0 %vm474_vm0, %v6466_v5  ;;  %6395 = vmatprep.mubr.msk.bf16.mxu1 %vm474_vm0, %v6468_v6  ;;  %v6480_v18 = vld [vmem:[%s10280_s1 + $0x140] sm:$0xff]   ;;  %v6479_v19 = vld [vmem:[%s10280_s1 + $0x48] sm:$0xff]   ;;  %v6482_v21 = vld [vmem:[%s10280_s1 + $0x50] sm:$0xff]  }
   0x8   :  { %v6481_v20 = vld [vmem:[%s10280_s1 + $0x148] sm:$0xff]   ;;  %v6484_v22 = vld [vmem:[%s10280_s1 + $0x150] sm:$0xff]   ;;  %v6483_v23 = vld [vmem:[%s10280_s1 + $0x58] sm:$0xff]  }
   0x9   :  { %v6485_v24 = vld [vmem:[%s10280_s1 + $0x158] sm:$0xff]   ;;  %v6486_v25 = vld [vmem:[%s10280_s1 + $0x60] sm:$0xff]   ;;  %v6487_v27 = vld [vmem:[%s10280_s1 + $0x68] sm:$0xff]  }
   0xa   :  { %v6488_v26 = vld [vmem:[%s10280_s1 + $0x160] sm:$0xff]   ;;  %v6489_v28 = vld [vmem:[%s10280_s1 + $0x168] sm:$0xff]   ;;  %v6490_v29 = vld [vmem:[%s10280_s1 + $0x70] sm:$0xff]  }
   0xb   :  { %v6492_v30 = vld [vmem:[%s10280_s1 + $0x170] sm:$0xff]   ;;  %v6491_v31 = vld [vmem:[%s10280_s1 + $0x78] sm:$0xff]   ;;  %v6494_v33 = vld [vmem:[%s10280_s1 + $0x80] sm:$0xff]  }
   0xc   :  { %v6493_v32 = vld [vmem:[%s10280_s1 + $0x178] sm:$0xff]   ;;  %v6496_v34 = vld [vmem:[%s10280_s1 + $0x180] sm:$0xff]   ;;  %v6495_v35 = vld [vmem:[%s10280_s1 + $0x88] sm:$0xff]  }
   0xd   :  { %v6497_v36 = vld [vmem:[%s10280_s1 + $0x188] sm:$0xff]   ;;  %v6498_v37 = vld [vmem:[%s10280_s1 + $0x90] sm:$0xff]   ;;  %v6499_v39 = vld [vmem:[%s10280_s1 + $0x98] sm:$0xff]  }
   0xe   :  { %6332 = vmatmul.mubr.msk.bf16.gmra.mrb[4].mxu0 %vm474_vm0, %v6467_v7  ;;  %6396 = vmatmul.mubr.msk.bf16.gmra.mrb[4].mxu1 %vm474_vm0, %v6469_v8  ;;  %v6500_v38 = vld [vmem:[%s10280_s1 + $0x190] sm:$0xff]   ;;  %v6501_v40 = vld [vmem:[%s10280_s1 + $0x198] sm:$0xff]   ;;  %v6502_v41 = vld [vmem:[%s10280_s1 + $0xa0] sm:$0xff]  }
   0xf   :  { %6335 = vmatprep.mubr.msk.bf16.mxu0 %vm474_vm0, %v6470_v9  ;;  %6399 = vmatprep.mubr.msk.bf16.mxu1 %vm474_vm0, %v6472_v10  ;;  %v6504_v42 = vld [vmem:[%s10280_s1 + $0x1a0] sm:$0xff]   ;;  %v6503_v43 = vld [vmem:[%s10280_s1 + $0xa8] sm:$0xff]   ;;  %v6506_v45 = vld [vmem:[%s10280_s1 + $0xb0] sm:$0xff]  }
  0x10   :  { %v6505_v44 = vld [vmem:[%s10280_s1 + $0x1a8] sm:$0xff]   ;;  %v6508_v46 = vld [vmem:[%s10280_s1 + $0x1b0] sm:$0xff]   ;;  %v6507_v47 = vld [vmem:[%s10280_s1 + $0xb8] sm:$0xff]  }
  0x11   :  { %v6509_v48 = vld [vmem:[%s10280_s1 + $0x1b8] sm:$0xff]   ;;  %v6510_v49 = vld [vmem:[%s10280_s1 + $0xc0] sm:$0xff]   ;;  %v6511_v51 = vld [vmem:[%s10280_s1 + $0xc8] sm:$0xff]  }
  0x12   :  { %v6512_v50 = vld [vmem:[%s10280_s1 + $0x1c0] sm:$0xff]   ;;  %v6513_v52 = vld [vmem:[%s10280_s1 + $0x1c8] sm:$0xff]   ;;  %v6514_v53 = vld [vmem:[%s10280_s1 + $0xd0] sm:$0xff]  }
  0x13   :  { %v6516_v54 = vld [vmem:[%s10280_s1 + $0x1d0] sm:$0xff]   ;;  %v6515_v55 = vld [vmem:[%s10280_s1 + $0xd8] sm:$0xff]   ;;  %v6518_v57 = vld [vmem:[%s10280_s1 + $0xe0] sm:$0xff]  }
  0x14   :  { %v6517_v56 = vld [vmem:[%s10280_s1 + $0x1d8] sm:$0xff]   ;;  %v6520_v58 = vld [vmem:[%s10280_s1 + $0x1e0] sm:$0xff]   ;;  %v6519_v59 = vld [vmem:[%s10280_s1 + $0xe8] sm:$0xff]  }
  0x15   :  { %v6521_v60 = vld [vmem:[%s10280_s1 + $0x1e8] sm:$0xff]   ;;  %v6522_v61 = vld [vmem:[%s10280_s1 + $0xf0] sm:$0xff]   ;;  %v6523_v63 = vld [vmem:[%s10280_s1 + $0xf8] sm:$0xff]  }
  0x16   :  { %6336 = vmatmul.mubr.msk.bf16.gmra.mrb[8].mxu0 %vm474_vm0, %v6471_v11  ;;  %6400 = vmatmul.mubr.msk.bf16.gmra.mrb[8].mxu1 %vm474_vm0, %v6473_v12  ;;  %v6524_v62 = vld [vmem:[%s10280_s1 + $0x1f0] sm:$0xff]   ;;  %v6525_v0 = vld [vmem:[%s10280_s1 + $0x1f8] sm:$0xff]  }
  0x17   :  { %6339 = vmatprep.mubr.msk.bf16.mxu0 %vm474_vm0, %v6474_v13  ;;  %6403 = vmatprep.mubr.msk.bf16.mxu1 %vm474_vm0, %v6476_v14 }
  0x1e   :  { %6340 = vmatmul.mubr.msk.bf16.gmra.mrb[12].mxu0 %vm474_vm0, %v6475_v15  ;;  %6404 = vmatmul.mubr.msk.bf16.gmra.mrb[12].mxu1 %vm474_vm0, %v6477_v16 }
  0x1f   :  { %6343 = vmatprep.mubr.msk.bf16.mxu0 %vm474_vm0, %v6478_v17  ;;  %6407 = vmatprep.mubr.msk.bf16.mxu1 %vm474_vm0, %v6480_v18 }
  0x26   :  { %6344 = vmatmul.mubr.msk.bf16.gmra.mrb[16].mxu0 %vm474_vm0, %v6479_v19  ;;  %6408 = vmatmul.mubr.msk.bf16.gmra.mrb[16].mxu1 %vm474_vm0, %v6481_v20 }
  0x27   :  { %6347 = vmatprep.mubr.msk.bf16.mxu0 %vm474_vm0, %v6482_v21  ;;  %6411 = vmatprep.mubr.msk.bf16.mxu1 %vm474_vm0, %v6484_v22 }
  0x2e   :  { %6348 = vmatmul.mubr.msk.bf16.gmra.mrb[20].mxu0 %vm474_vm0, %v6483_v23  ;;  %6412 = vmatmul.mubr.msk.bf16.gmra.mrb[20].mxu1 %vm474_vm0, %v6485_v24 }
  0x2f   :  { %6351 = vmatprep.mubr.msk.bf16.mxu0 %vm474_vm0, %v6486_v25  ;;  %6415 = vmatprep.mubr.msk.bf16.mxu1 %vm474_vm0, %v6488_v26 }
  0x36   :  { %6352 = vmatmul.mubr.msk.bf16.gmra.mrb[24].mxu0 %vm474_vm0, %v6487_v27  ;;  %6416 = vmatmul.mubr.msk.bf16.gmra.mrb[24].mxu1 %vm474_vm0, %v6489_v28 }
  0x37   :  { %6355 = vmatprep.mubr.msk.bf16.mxu0 %vm474_vm0, %v6490_v29  ;;  %6419 = vmatprep.mubr.msk.bf16.mxu1 %vm474_vm0, %v6492_v30 }
  0x3e   :  { %6356 = vmatmul.mubr.msk.bf16.gmra.mrb[28].mxu0 %vm474_vm0, %v6491_v31  ;;  %6420 = vmatmul.mubr.msk.bf16.gmra.mrb[28].mxu1 %vm474_vm0, %v6493_v32 }
  0x3f   :  { %6359 = vmatprep.mubr.msk.bf16.mxu0 %vm474_vm0, %v6494_v33  ;;  %6423 = vmatprep.mubr.msk.bf16.mxu1 %vm474_vm0, %v6496_v34 }
  0x46   :  { %6360 = vmatmul.mubr.msk.bf16.gmra.mrb[32].mxu0 %vm474_vm0, %v6495_v35  ;;  %6424 = vmatmul.mubr.msk.bf16.gmra.mrb[32].mxu1 %vm474_vm0, %v6497_v36 }
  0x47   :  { %6363 = vmatprep.mubr.msk.bf16.mxu0 %vm474_vm0, %v6498_v37  ;;  %6427 = vmatprep.mubr.msk.bf16.mxu1 %vm474_vm0, %v6500_v38 }
  0x4e   :  { %6364 = vmatmul.mubr.msk.bf16.gmra.mrb[36].mxu0 %vm474_vm0, %v6499_v39  ;;  %6428 = vmatmul.mubr.msk.bf16.gmra.mrb[36].mxu1 %vm474_vm0, %v6501_v40 }
  0x4f   :  { %6367 = vmatprep.mubr.msk.bf16.mxu0 %vm474_vm0, %v6502_v41  ;;  %6431 = vmatprep.mubr.msk.bf16.mxu1 %vm474_vm0, %v6504_v42 }
  0x56   :  { %6368 = vmatmul.mubr.msk.bf16.gmra.mrb[40].mxu0 %vm474_vm0, %v6503_v43  ;;  %6432 = vmatmul.mubr.msk.bf16.gmra.mrb[40].mxu1 %vm474_vm0, %v6505_v44 }
  0x57   :  { %6371 = vmatprep.mubr.msk.bf16.mxu0 %vm474_vm0, %v6506_v45  ;;  %6435 = vmatprep.mubr.msk.bf16.mxu1 %vm474_vm0, %v6508_v46 }
  0x5e   :  { %6372 = vmatmul.mubr.msk.bf16.gmra.mrb[44].mxu0 %vm474_vm0, %v6507_v47  ;;  %6436 = vmatmul.mubr.msk.bf16.gmra.mrb[44].mxu1 %vm474_vm0, %v6509_v48 }
  0x5f   :  { %6375 = vmatprep.mubr.msk.bf16.mxu0 %vm474_vm0, %v6510_v49  ;;  %6439 = vmatprep.mubr.msk.bf16.mxu1 %vm474_vm0, %v6512_v50 }
  0x66   :  { %6376 = vmatmul.mubr.msk.bf16.gmra.mrb[48].mxu0 %vm474_vm0, %v6511_v51  ;;  %6440 = vmatmul.mubr.msk.bf16.gmra.mrb[48].mxu1 %vm474_vm0, %v6513_v52 }
  0x67   :  { %6379 = vmatprep.mubr.msk.bf16.mxu0 %vm474_vm0, %v6514_v53  ;;  %6443 = vmatprep.mubr.msk.bf16.mxu1 %vm474_vm0, %v6516_v54 }
  0x6e   :  { %6380 = vmatmul.mubr.msk.bf16.gmra.mrb[52].mxu0 %vm474_vm0, %v6515_v55  ;;  %6444 = vmatmul.mubr.msk.bf16.gmra.mrb[52].mxu1 %vm474_vm0, %v6517_v56 }
  0x6f   :  { %6383 = vmatprep.mubr.msk.bf16.mxu0 %vm474_vm0, %v6518_v57  ;;  %6447 = vmatprep.mubr.msk.bf16.mxu1 %vm474_vm0, %v6520_v58 }
  0x76   :  { %6384 = vmatmul.mubr.msk.bf16.gmra.mrb[56].mxu0 %vm474_vm0, %v6519_v59  ;;  %6448 = vmatmul.mubr.msk.bf16.gmra.mrb[56].mxu1 %vm474_vm0, %v6521_v60 }
  0x77   :  { %6387 = vmatprep.mubr.msk.bf16.mxu0 %vm474_vm0, %v6522_v61  ;;  %6451 = vmatprep.mubr.msk.bf16.mxu1 %vm474_vm0, %v6524_v62 }
  0x7e   :  { %6388 = vmatmul.mubr.msk.bf16.gmra.mrb[60].mxu0 %vm474_vm0, %v6523_v63  ;;  %6452 = vmatmul.mubr.msk.bf16.gmra.mrb[60].mxu1 %vm474_vm0, %v6525_v0 }
  0xd9   :  { %v6956_v1 = vpop.f32.mrb[0].mxu0  ;;  %v6958_v2 = vpop.f32.mrb[0].mxu1 }
  0xda   :  { %v6960_v3 = vpop.f32.mrb[1].mxu0  ;;  %v1411_v4 = vsel %vm1212_vm1, %v6958_v2, 0.0  ;;  %v1219_v5 = vsel %vm1212_vm1, %v6956_v1, 0.0  ;;  %v6966_v6 = vpop.f32.mrb[1].mxu1 }
  0xdb   :  { %1412 = vadd.xlane.f32.xlu0 %v1411_v4  ;;  %1220 = vadd.xlane.f32.xlu1 %v1219_v5  ;;  %v6968_v7 = vpop.f32.mrb[2].mxu0  ;;  %v6970_v8 = vpop.f32.mrb[2].mxu1  ;;  %v1213_v11 = vsel %vm1212_vm1, %v6960_v3, 0.0  ;;  %v1405_v15 = vsel %vm1212_vm1, %v6966_v6, 0.0 }
  0xdc   :  { %v6972_v9 = vpop.f32.mrb[3].mxu0  ;;  %v6974_v10 = vpop.f32.mrb[3].mxu1  ;;  %v1222_v12 = vsel %vm1212_vm1, %v6968_v7, 0.0  ;;  %v1414_v16 = vsel %vm1212_vm1, %v6970_v8, 0.0 }
  0xdd   :  { %v1408_v23 = vsel %vm1212_vm1, %v6974_v10, 0.0  ;;  %v1216_v24 = vsel %vm1212_vm1, %v6972_v9, 0.0 }
  0xdf   :  { %1214 = vadd.xlane.f32.xlu0 %v1213_v11  ;;  %1223 = vadd.xlane.f32.xlu1 %v1222_v12 }
  0xe1   :  { %v6980_v13 = vpop.f32.mrb[4].mxu0  ;;  %v6982_v14 = vpop.f32.mrb[4].mxu1 }
  0xe2   :  { %10619 = vst [vmem:[#allocation2_spill] sm:$0xff] %v6982_v14  ;;  %v6988_v17 = vpop.f32.mrb[5].mxu0  ;;  %v6990_v18 = vpop.f32.mrb[5].mxu1  ;;  %v1231_v27 = vsel %vm1212_vm1, %v6980_v13, 0.0  ;;  %v1423_v35 = vsel %vm1212_vm1, %v6982_v14, 0.0 }
  0xe3   :  { %10620 = vst [vmem:[#allocation3_spill] sm:$0xff] %v6988_v17  ;;  %10621 = vst [vmem:[#allocation4_spill] sm:$0xff] %v6990_v18  ;;  %1406 = vadd.xlane.f32.xlu0 %v1405_v15  ;;  %1415 = vadd.xlane.f32.xlu1 %v1414_v16  ;;  %v6992_v19 = vpop.f32.mrb[6].mxu0  ;;  %v6994_v20 = vpop.f32.mrb[6].mxu1  ;;  %v1225_v39 = vsel %vm1212_vm1, %v6988_v17, 0.0  ;;  %v1417_v47 = vsel %vm1212_vm1, %v6990_v18, 0.0 }
  0xe4   :  { %10622 = vst [vmem:[#allocation5_spill] sm:$0xff] %v6992_v19  ;;  %10623 = vst [vmem:[#allocation6_spill] sm:$0xff] %v6994_v20  ;;  %v6996_v21 = vpop.f32.mrb[7].mxu0  ;;  %v6998_v22 = vpop.f32.mrb[7].mxu1  ;;  %v1234_v28 = vsel %vm1212_vm1, %v6992_v19, 0.0  ;;  %v1426_v36 = vsel %vm1212_vm1, %v6994_v20, 0.0 }
  0xe5   :  { %10624 = vst [vmem:[#allocation7_spill] sm:$0xff] %v6996_v21  ;;  %10625 = vst [vmem:[#allocation8_spill] sm:$0xff] %v6998_v22  ;;  %v1228_v40 = vsel %vm1212_vm1, %v6996_v21, 0.0  ;;  %v1420_v48 = vsel %vm1212_vm1, %v6998_v22, 0.0 }
  0xe7   :  { %1409 = vadd.xlane.f32.xlu1 %v1408_v23  ;;  %1217 = vadd.xlane.f32.xlu0 %v1216_v24 }
  0xe9   :  { %v7004_v25 = vpop.f32.mrb[8].mxu0  ;;  %v7006_v26 = vpop.f32.mrb[8].mxu1 }
  0xea   :  { %10626 = vst [vmem:[#allocation9_spill] sm:$0xff] %v7004_v25  ;;  %10627 = vst [vmem:[#allocation10_spill] sm:$0xff] %v7006_v26  ;;  %v7012_v29 = vpop.f32.mrb[9].mxu0  ;;  %v7014_v30 = vpop.f32.mrb[9].mxu1  ;;  %v1243_v51 = vsel %vm1212_vm1, %v7004_v25, 0.0  ;;  %v1435_v59 = vsel %vm1212_vm1, %v7006_v26, 0.0 }
  0xeb   :  { %10628 = vst [vmem:[#allocation11_spill] sm:$0xff] %v7012_v29  ;;  %10629 = vst [vmem:[#allocation12_spill] sm:$0xff] %v7014_v30  ;;  %1232 = vadd.xlane.f32.xlu0 %v1231_v27  ;;  %1235 = vadd.xlane.f32.xlu1 %v1234_v28  ;;  %v7016_v31 = vpop.f32.mrb[10].mxu0  ;;  %v7018_v32 = vpop.f32.mrb[10].mxu1  ;;  %v1237_v63 = vsel %vm1212_vm1, %v7012_v29, 0.0  ;;  %v1429_v23 = vsel %vm1212_vm1, %v7014_v30, 0.0 }
  0xec   :  { %10630 = vst [vmem:[#allocation13_spill] sm:$0xff] %v7016_v31  ;;  %10631 = vst [vmem:[#allocation14_spill] sm:$0xff] %v7018_v32  ;;  %v7020_v33 = vpop.f32.mrb[11].mxu0  ;;  %v7022_v34 = vpop.f32.mrb[11].mxu1  ;;  %v1246_v52 = vsel %vm1212_vm1, %v7016_v31, 0.0  ;;  %v1438_v60 = vsel %vm1212_vm1, %v7018_v32, 0.0 }
  0xed   :  { %10632 = vst [vmem:[#allocation15_spill] sm:$0xff] %v7020_v33  ;;  %10633 = vst [vmem:[#allocation16_spill] sm:$0xff] %v7022_v34  ;;  %v1240_v0 = vsel %vm1212_vm1, %v7020_v33, 0.0  ;;  %v1432_v24 = vsel %vm1212_vm1, %v7022_v34, 0.0 }
  0xef   :  { %1424 = vadd.xlane.f32.xlu0 %v1423_v35  ;;  %1427 = vadd.xlane.f32.xlu1 %v1426_v36 }
  0xf1   :  { %v7028_v37 = vpop.f32.mrb[12].mxu0  ;;  %v7030_v38 = vpop.f32.mrb[12].mxu1 }
  0xf2   :  { %10634 = vst [vmem:[#allocation17_spill] sm:$0xff] %v7028_v37  ;;  %10635 = vst [vmem:[#allocation18_spill] sm:$0xff] %v7030_v38  ;;  %v7036_v41 = vpop.f32.mrb[13].mxu0  ;;  %v7038_v42 = vpop.f32.mrb[13].mxu1  ;;  %v1255_v35 = vsel %vm1212_vm1, %v7028_v37, 0.0 }
  0xf3   :  { %10636 = vst [vmem:[#allocation19_spill] sm:$0xff] %v7036_v41  ;;  %10637 = vst [vmem:[#allocation20_spill] sm:$0xff] %v7038_v42  ;;  %1226 = vadd.xlane.f32.xlu0 %v1225_v39  ;;  %1229 = vadd.xlane.f32.xlu1 %v1228_v40  ;;  %v7040_v43 = vpop.f32.mrb[14].mxu0  ;;  %v7042_v44 = vpop.f32.mrb[14].mxu1 }
  0xf4   :  { %10638 = vst [vmem:[#allocation21_spill] sm:$0xff] %v7040_v43  ;;  %10639 = vst [vmem:[#allocation22_spill] sm:$0xff] %v7042_v44  ;;  %v7044_v45 = vpop.f32.mrb[15].mxu0  ;;  %v7046_v46 = vpop.f32.mrb[15].mxu1  ;;  %v1258_v36 = vsel %vm1212_vm1, %v7040_v43, 0.0 }
  0xf5   :  { %10640 = vst [vmem:[#allocation23_spill] sm:$0xff] %v7044_v45  ;;  %10641 = vst [vmem:[#allocation24_spill] sm:$0xff] %v7046_v46 }
  0xf7   :  { %1418 = vadd.xlane.f32.xlu0 %v1417_v47  ;;  %1421 = vadd.xlane.f32.xlu1 %v1420_v48 }
  0xf9   :  { %v7052_v49 = vpop.f32.mrb[16].mxu0  ;;  %v7054_v50 = vpop.f32.mrb[16].mxu1 }
  0xfa   :  { %10642 = vst [vmem:[#allocation25_spill] sm:$0xff] %v7052_v49  ;;  %10643 = vst [vmem:[#allocation26_spill] sm:$0xff] %v7054_v50  ;;  %v7060_v53 = vpop.f32.mrb[17].mxu0  ;;  %v7062_v54 = vpop.f32.mrb[17].mxu1 }
  0xfb   :  { %10644 = vst [vmem:[#allocation27_spill] sm:$0xff] %v7060_v53  ;;  %10645 = vst [vmem:[#allocation28_spill] sm:$0xff] %v7062_v54  ;;  %1244 = vadd.xlane.f32.xlu0 %v1243_v51  ;;  %1247 = vadd.xlane.f32.xlu1 %v1246_v52  ;;  %v7064_v55 = vpop.f32.mrb[18].mxu0  ;;  %v7066_v56 = vpop.f32.mrb[18].mxu1 }
  0xfc   :  { %10646 = vst [vmem:[#allocation29_spill] sm:$0xff] %v7064_v55  ;;  %10647 = vst [vmem:[#allocation30_spill] sm:$0xff] %v7066_v56  ;;  %v7068_v57 = vpop.f32.mrb[19].mxu0  ;;  %v7070_v58 = vpop.f32.mrb[19].mxu1  ;;  %v1270_v37 = vsel %vm1212_vm1, %v7064_v55, 0.0  ;;  %v1462_v55 = vsel %vm1212_vm1, %v7066_v56, 0.0 }
  0xfd   :  { %10648 = vst [vmem:[#allocation31_spill] sm:$0xff] %v7068_v57  ;;  %10649 = vst [vmem:[#allocation32_spill] sm:$0xff] %v7070_v58  ;;  %v1264_v29 = vsel %vm1212_vm1, %v7068_v57, 0.0  ;;  %v1456_v57 = vsel %vm1212_vm1, %v7070_v58, 0.0 }
  0xff   :  { %1436 = vadd.xlane.f32.xlu0 %v1435_v59  ;;  %1439 = vadd.xlane.f32.xlu1 %v1438_v60  ;;  %v1447_v59 = vsel %vm1212_vm1, %v7030_v38, 0.0  ;;  %v1450_v60 = vsel %vm1212_vm1, %v7042_v44, 0.0 }
 0x101   :  { %v7076_v61 = vpop.f32.mrb[20].mxu0  ;;  %v7078_v62 = vpop.f32.mrb[20].mxu1 }
 0x102   :  { %10650 = vst [vmem:[#allocation33_spill] sm:$0xff] %v7076_v61  ;;  %10651 = vst [vmem:[#allocation34_spill] sm:$0xff] %v7078_v62  ;;  %v7084_v4 = vpop.f32.mrb[21].mxu0  ;;  %v7086_v5 = vpop.f32.mrb[21].mxu1 }
 0x103   :  { %10652 = vst [vmem:[#allocation35_spill] sm:$0xff] %v7084_v4  ;;  %10653 = vst [vmem:[#allocation36_spill] sm:$0xff] %v7086_v5  ;;  %1238 = vadd.xlane.f32.xlu0 %v1237_v63  ;;  %1241 = vadd.xlane.f32.xlu1 %v1240_v0  ;;  %v7088_v11 = vpop.f32.mrb[22].mxu0  ;;  %v7090_v12 = vpop.f32.mrb[22].mxu1 }
 0x104   :  { %10654 = vst [vmem:[#allocation37_spill] sm:$0xff] %v7088_v11  ;;  %10655 = vst [vmem:[#allocation38_spill] sm:$0xff] %v7090_v12  ;;  %v7092_v15 = vpop.f32.mrb[23].mxu0  ;;  %v7094_v16 = vpop.f32.mrb[23].mxu1  ;;  %v1282_v25 = vsel %vm1212_vm1, %v7088_v11, 0.0  ;;  %v1474_v11 = vsel %vm1212_vm1, %v7090_v12, 0.0 }
 0x105   :  { %10656 = vst [vmem:[#allocation39_spill] sm:$0xff] %v7092_v15  ;;  %10657 = vst [vmem:[#allocation40_spill] sm:$0xff] %v7094_v16  ;;  %v1276_v17 = vsel %vm1212_vm1, %v7092_v15, 0.0  ;;  %v1468_v15 = vsel %vm1212_vm1, %v7094_v16, 0.0 }
 0x107   :  { %1430 = vadd.xlane.f32.xlu0 %v1429_v23  ;;  %1433 = vadd.xlane.f32.xlu1 %v1432_v24  ;;  %v1249_v23 = vsel %vm1212_vm1, %v7036_v41, 0.0  ;;  %v1252_v24 = vsel %vm1212_vm1, %v7044_v45, 0.0  ;;  %v1441_v41 = vsel %vm1212_vm1, %v7038_v42, 0.0  ;;  %v1444_v45 = vsel %vm1212_vm1, %v7046_v46, 0.0 }
 0x109   :  { %v7100_v27 = vpop.f32.mrb[24].mxu0  ;;  %v7102_v28 = vpop.f32.mrb[24].mxu1 }
 0x10a   :  { %10658 = vst [vmem:[#allocation41_spill] sm:$0xff] %v7100_v27  ;;  %10659 = vst [vmem:[#allocation42_spill] sm:$0xff] %v7102_v28  ;;  %v7108_v39 = vpop.f32.mrb[25].mxu0  ;;  %v7110_v40 = vpop.f32.mrb[25].mxu1 }
 0x10b   :  { %10660 = vst [vmem:[#allocation43_spill] sm:$0xff] %v7108_v39  ;;  %10661 = vst [vmem:[#allocation44_spill] sm:$0xff] %v7110_v40  ;;  %1256 = vadd.xlane.f32.xlu0 %v1255_v35  ;;  %1259 = vadd.xlane.f32.xlu1 %v1258_v36  ;;  %v7112_v47 = vpop.f32.mrb[26].mxu0  ;;  %v7114_v48 = vpop.f32.mrb[26].mxu1 }
 0x10c   :  { %10662 = vst [vmem:[#allocation45_spill] sm:$0xff] %v7112_v47  ;;  %10663 = vst [vmem:[#allocation46_spill] sm:$0xff] %v7114_v48  ;;  %v7116_v51 = vpop.f32.mrb[27].mxu0  ;;  %v7118_v52 = vpop.f32.mrb[27].mxu1 }
 0x10d   :  { %10664 = vst [vmem:[#allocation47_spill] sm:$0xff] %v7116_v51  ;;  %10665 = vst [vmem:[#allocation48_spill] sm:$0xff] %v7118_v52 }
 0x10f   :  { %1448 = vadd.xlane.f32.xlu0 %v1447_v59  ;;  %1451 = vadd.xlane.f32.xlu1 %v1450_v60 }
 0x111   :  { %v7124_v63 = vpop.f32.mrb[28].mxu0  ;;  %v7126_v0 = vpop.f32.mrb[28].mxu1 }
 0x112   :  { %10666 = vst [vmem:[#allocation49_spill] sm:$0xff] %v7124_v63  ;;  %10667 = vst [vmem:[#allocation50_spill] sm:$0xff] %v7126_v0  ;;  %v7132_v35 = vpop.f32.mrb[29].mxu0  ;;  %v7134_v36 = vpop.f32.mrb[29].mxu1 }
 0x113   :  { %10668 = vst [vmem:[#allocation51_spill] sm:$0xff] %v7132_v35  ;;  %10669 = vst [vmem:[#allocation52_spill] sm:$0xff] %v7134_v36  ;;  %1250 = vadd.xlane.f32.xlu0 %v1249_v23  ;;  %1253 = vadd.xlane.f32.xlu1 %v1252_v24  ;;  %v7136_v38 = vpop.f32.mrb[30].mxu0  ;;  %v7138_v59 = vpop.f32.mrb[30].mxu1  ;;  %v1267_v24 = vsel %vm1212_vm1, %v7052_v49, 0.0  ;;  %v1459_v49 = vsel %vm1212_vm1, %v7054_v50, 0.0 }
 0x114   :  { %10670 = vst [vmem:[#allocation53_spill] sm:$0xff] %v7136_v38  ;;  %10671 = vst [vmem:[#allocation54_spill] sm:$0xff] %v7138_v59  ;;  %v7140_v60 = vpop.f32.mrb[31].mxu0  ;;  %v7142_v44 = vpop.f32.mrb[31].mxu1 }
 0x115   :  { %10672 = vst [vmem:[#allocation55_spill] sm:$0xff] %v7140_v60  ;;  %10673 = vst [vmem:[#allocation56_spill] sm:$0xff] %v7142_v44 }
 0x117   :  { %1442 = vadd.xlane.f32.xlu0 %v1441_v41  ;;  %1445 = vadd.xlane.f32.xlu1 %v1444_v45 }
 0x119   :  { %v7148_v43 = vpop.f32.mrb[32].mxu0  ;;  %v7150_v23 = vpop.f32.mrb[32].mxu1 }
 0x11a   :  { %10674 = vst [vmem:[#allocation57_spill] sm:$0xff] %v7148_v43  ;;  %10675 = vst [vmem:[#allocation58_spill] sm:$0xff] %v7150_v23  ;;  %v7156_v34 = vpop.f32.mrb[33].mxu0  ;;  %v7158_v30 = vpop.f32.mrb[33].mxu1 }
 0x11b   :  { %10676 = vst [vmem:[#allocation59_spill] sm:$0xff] %v7156_v34  ;;  %10677 = vst [vmem:[#allocation60_spill] sm:$0xff] %v7158_v30  ;;  %1268 = vadd.xlane.f32.xlu0 %v1267_v24  ;;  %1271 = vadd.xlane.f32.xlu1 %v1270_v37  ;;  %v7160_v42 = vpop.f32.mrb[34].mxu0  ;;  %v7162_v41 = vpop.f32.mrb[34].mxu1  ;;  %v1261_v37 = vsel %vm1212_vm1, %v7060_v53, 0.0  ;;  %v1453_v53 = vsel %vm1212_vm1, %v7062_v54, 0.0 }
 0x11c   :  { %10678 = vst [vmem:[#allocation61_spill] sm:$0xff] %v7160_v42  ;;  %10679 = vst [vmem:[#allocation62_spill] sm:$0xff] %v7162_v41  ;;  %v7164_v45 = vpop.f32.mrb[35].mxu0  ;;  %v7166_v46 = vpop.f32.mrb[35].mxu1 }
 0x11d   :  { %10680 = vst [vmem:[#allocation63_spill] sm:$0xff] %v7164_v45  ;;  %10681 = vst [vmem:[#allocation64_spill] sm:$0xff] %v7166_v46 }
 0x11f   :  { %1460 = vadd.xlane.f32.xlu0 %v1459_v49  ;;  %1463 = vadd.xlane.f32.xlu1 %v1462_v55 }
 0x121   :  { %v7172_v33 = vpop.f32.mrb[36].mxu0  ;;  %v7174_v24 = vpop.f32.mrb[36].mxu1 }
 0x122   :  { %10682 = vst [vmem:[#allocation65_spill] sm:$0xff] %v7172_v33  ;;  %10683 = vst [vmem:[#allocation66_spill] sm:$0xff] %v7174_v24  ;;  %v7180_v32 = vpop.f32.mrb[37].mxu0  ;;  %v7182_v26 = vpop.f32.mrb[37].mxu1 }
 0x123   :  { %10684 = vst [vmem:[#allocation67_spill] sm:$0xff] %v7180_v32  ;;  %10685 = vst [vmem:[#allocation68_spill] sm:$0xff] %v7182_v26  ;;  %1262 = vadd.xlane.f32.xlu0 %v1261_v37  ;;  %1265 = vadd.xlane.f32.xlu1 %v1264_v29  ;;  %v7184_v50 = vpop.f32.mrb[38].mxu0  ;;  %v7186_v49 = vpop.f32.mrb[38].mxu1  ;;  %v1279_v29 = vsel %vm1212_vm1, %v7076_v61, 0.0  ;;  %v1471_v61 = vsel %vm1212_vm1, %v7078_v62, 0.0 }
 0x124   :  { %10686 = vst [vmem:[#allocation69_spill] sm:$0xff] %v7184_v50  ;;  %10687 = vst [vmem:[#allocation70_spill] sm:$0xff] %v7186_v49  ;;  %v7188_v55 = vpop.f32.mrb[39].mxu0  ;;  %v7190_v56 = vpop.f32.mrb[39].mxu1 }
 0x125   :  { %10688 = vst [vmem:[#allocation71_spill] sm:$0xff] %v7188_v55  ;;  %10689 = vst [vmem:[#allocation72_spill] sm:$0xff] %v7190_v56 }
 0x127   :  { %1454 = vadd.xlane.f32.xlu0 %v1453_v53  ;;  %1457 = vadd.xlane.f32.xlu1 %v1456_v57 }
 0x129   :  { %v7196_v31 = vpop.f32.mrb[40].mxu0  ;;  %v7198_v37 = vpop.f32.mrb[40].mxu1 }
 0x12a   :  { %10690 = vst [vmem:[#allocation73_spill] sm:$0xff] %v7196_v31  ;;  %10691 = vst [vmem:[#allocation74_spill] sm:$0xff] %v7198_v37  ;;  %v7204_v22 = vpop.f32.mrb[41].mxu0  ;;  %v7206_v18 = vpop.f32.mrb[41].mxu1 }
 0x12b   :  { %10692 = vst [vmem:[#allocation75_spill] sm:$0xff] %v7204_v22  ;;  %10693 = vst [vmem:[#allocation76_spill] sm:$0xff] %v7206_v18  ;;  %1280 = vadd.xlane.f32.xlu0 %v1279_v29  ;;  %1283 = vadd.xlane.f32.xlu1 %v1282_v25  ;;  %v7208_v54 = vpop.f32.mrb[42].mxu0  ;;  %v7210_v53 = vpop.f32.mrb[42].mxu1  ;;  %v1273_v25 = vsel %vm1212_vm1, %v7084_v4, 0.0  ;;  %v1465_v4 = vsel %vm1212_vm1, %v7086_v5, 0.0 }
 0x12c   :  { %10694 = vst [vmem:[#allocation77_spill] sm:$0xff] %v7208_v54  ;;  %10695 = vst [vmem:[#allocation78_spill] sm:$0xff] %v7210_v53  ;;  %v7212_v57 = vpop.f32.mrb[43].mxu0  ;;  %v7214_v58 = vpop.f32.mrb[43].mxu1 }
 0x12d   :  { %10696 = vst [vmem:[#allocation79_spill] sm:$0xff] %v7212_v57  ;;  %10697 = vst [vmem:[#allocation80_spill] sm:$0xff] %v7214_v58 }
 0x12f   :  { %1472 = vadd.xlane.f32.xlu0 %v1471_v61  ;;  %1475 = vadd.xlane.f32.xlu1 %v1474_v11 }
 0x131   :  { %v7220_v21 = vpop.f32.mrb[44].mxu0  ;;  %v7222_v29 = vpop.f32.mrb[44].mxu1 }
 0x132   :  { %10698 = vst [vmem:[#allocation81_spill] sm:$0xff] %v7220_v21  ;;  %10699 = vst [vmem:[#allocation82_spill] sm:$0xff] %v7222_v29  ;;  %v7228_v20 = vpop.f32.mrb[45].mxu0  ;;  %v7230_v14 = vpop.f32.mrb[45].mxu1 }
 0x133   :  { %10700 = vst [vmem:[#allocation83_spill] sm:$0xff] %v7228_v20  ;;  %10701 = vst [vmem:[#allocation84_spill] sm:$0xff] %v7230_v14  ;;  %1274 = vadd.xlane.f32.xlu0 %v1273_v25  ;;  %1277 = vadd.xlane.f32.xlu1 %v1276_v17  ;;  %v7232_v62 = vpop.f32.mrb[46].mxu0  ;;  %v7234_v61 = vpop.f32.mrb[46].mxu1  ;;  %v1291_v17 = vsel %vm1212_vm1, %v7100_v27, 0.0  ;;  %v1294_v14 = vsel %vm1212_vm1, %v7112_v47, 0.0 }
 0x134   :  { %10702 = vst [vmem:[#allocation85_spill] sm:$0xff] %v7232_v62  ;;  %10703 = vst [vmem:[#allocation86_spill] sm:$0xff] %v7234_v61  ;;  %v7236_v11 = vpop.f32.mrb[47].mxu0  ;;  %v7238_v12 = vpop.f32.mrb[47].mxu1  ;;  %v1483_v27 = vsel %vm1212_vm1, %v7102_v28, 0.0  ;;  %v1486_v47 = vsel %vm1212_vm1, %v7114_v48, 0.0 }
 0x135   :  { %10704 = vst [vmem:[#allocation87_spill] sm:$0xff] %v7236_v11  ;;  %10705 = vst [vmem:[#allocation88_spill] sm:$0xff] %v7238_v12 }
 0x137   :  { %1466 = vadd.xlane.f32.xlu0 %v1465_v4  ;;  %1469 = vadd.xlane.f32.xlu1 %v1468_v15 }
 0x139   :  { %v7244_v19 = vpop.f32.mrb[48].mxu0  ;;  %v7246_v25 = vpop.f32.mrb[48].mxu1 }
 0x13a   :  { %10706 = vst [vmem:[#allocation89_spill] sm:$0xff] %v7244_v19  ;;  %10707 = vst [vmem:[#allocation90_spill] sm:$0xff] %v7246_v25  ;;  %v7252_v11 = vpop.f32.mrb[49].mxu0  ;;  %v7254_v12 = vpop.f32.mrb[49].mxu1 }
 0x13b   :  { %10708 = vst [vmem:[#allocation91_spill] sm:$0xff] %v7252_v11  ;;  %10709 = vst [vmem:[#allocation92_spill] sm:$0xff] %v7254_v12  ;;  %1292 = vadd.xlane.f32.xlu0 %v1291_v17  ;;  %1295 = vadd.xlane.f32.xlu1 %v1294_v14  ;;  %v7256_v5 = vpop.f32.mrb[50].mxu0  ;;  %v7258_v4 = vpop.f32.mrb[50].mxu1  ;;  %v1285_v14 = vsel %vm1212_vm1, %v7108_v39, 0.0  ;;  %v1288_v12 = vsel %vm1212_vm1, %v7116_v51, 0.0 }
 0x13c   :  { %10710 = vst [vmem:[#allocation93_spill] sm:$0xff] %v7256_v5  ;;  %10711 = vst [vmem:[#allocation94_spill] sm:$0xff] %v7258_v4  ;;  %v7260_v15 = vpop.f32.mrb[51].mxu0  ;;  %v7262_v16 = vpop.f32.mrb[51].mxu1  ;;  %v1477_v39 = vsel %vm1212_vm1, %v7110_v40, 0.0  ;;  %v1480_v51 = vsel %vm1212_vm1, %v7118_v52, 0.0 }
 0x13d   :  { %10712 = vst [vmem:[#allocation95_spill] sm:$0xff] %v7260_v15  ;;  %10713 = vst [vmem:[#allocation96_spill] sm:$0xff] %v7262_v16 }
 0x13f   :  { %1484 = vadd.xlane.f32.xlu0 %v1483_v27  ;;  %1487 = vadd.xlane.f32.xlu1 %v1486_v47 }
 0x141   :  { %v7268_v11 = vpop.f32.mrb[52].mxu0  ;;  %v7270_v17 = vpop.f32.mrb[52].mxu1 }
 0x142   :  { %10714 = vst [vmem:[#allocation97_spill] sm:$0xff] %v7268_v11  ;;  %10715 = vst [vmem:[#allocation98_spill] sm:$0xff] %v7270_v17  ;;  %v7276_v15 = vpop.f32.mrb[53].mxu0  ;;  %v7278_v16 = vpop.f32.mrb[53].mxu1 }
 0x143   :  { %10716 = vst [vmem:[#allocation99_spill] sm:$0xff] %v7276_v15  ;;  %10717 = vst [vmem:[#allocation100_spill] sm:$0xff] %v7278_v16  ;;  %1286 = vadd.xlane.f32.xlu0 %v1285_v14  ;;  %1289 = vadd.xlane.f32.xlu1 %v1288_v12  ;;  %v7280_v28 = vpop.f32.mrb[54].mxu0  ;;  %v7282_v27 = vpop.f32.mrb[54].mxu1  ;;  %v1303_v12 = vsel %vm1212_vm1, %v7124_v63, 0.0  ;;  %v1306_v16 = vsel %vm1212_vm1, %v7136_v38, 0.0 }
 0x144   :  { %10718 = vst [vmem:[#allocation101_spill] sm:$0xff] %v7280_v28  ;;  %10719 = vst [vmem:[#allocation102_spill] sm:$0xff] %v7282_v27  ;;  %v7284_v47 = vpop.f32.mrb[55].mxu0  ;;  %v7286_v48 = vpop.f32.mrb[55].mxu1  ;;  %v1495_v63 = vsel %vm1212_vm1, %v7126_v0, 0.0  ;;  %v1498_v38 = vsel %vm1212_vm1, %v7138_v59, 0.0 }
 0x145   :  { %10720 = vst [vmem:[#allocation103_spill] sm:$0xff] %v7284_v47  ;;  %10721 = vst [vmem:[#allocation104_spill] sm:$0xff] %v7286_v48 }
 0x147   :  { %1478 = vadd.xlane.f32.xlu0 %v1477_v39  ;;  %1481 = vadd.xlane.f32.xlu1 %v1480_v51 }
 0x149   :  { %v7292_v15 = vpop.f32.mrb[56].mxu0  ;;  %v7294_v14 = vpop.f32.mrb[56].mxu1 }
 0x14a   :  { %10722 = vst [vmem:[#allocation105_spill] sm:$0xff] %v7292_v15  ;;  %10723 = vst [vmem:[#allocation106_spill] sm:$0xff] %v7294_v14  ;;  %v7300_v47 = vpop.f32.mrb[57].mxu0  ;;  %v7302_v48 = vpop.f32.mrb[57].mxu1 }
 0x14b   :  { %10724 = vst [vmem:[#allocation107_spill] sm:$0xff] %v7300_v47  ;;  %10725 = vst [vmem:[#allocation108_spill] sm:$0xff] %v7302_v48  ;;  %1304 = vadd.xlane.f32.xlu0 %v1303_v12  ;;  %1307 = vadd.xlane.f32.xlu1 %v1306_v16  ;;  %v7304_v40 = vpop.f32.mrb[58].mxu0  ;;  %v7306_v39 = vpop.f32.mrb[58].mxu1  ;;  %v1297_v16 = vsel %vm1212_vm1, %v7132_v35, 0.0  ;;  %v1300_v48 = vsel %vm1212_vm1, %v7140_v60, 0.0 }
 0x14c   :  { %10726 = vst [vmem:[#allocation109_spill] sm:$0xff] %v7304_v40  ;;  %10727 = vst [vmem:[#allocation110_spill] sm:$0xff] %v7306_v39  ;;  %v7308_v51 = vpop.f32.mrb[59].mxu0  ;;  %v7310_v52 = vpop.f32.mrb[59].mxu1  ;;  %v1489_v35 = vsel %vm1212_vm1, %v7134_v36, 0.0  ;;  %v1492_v60 = vsel %vm1212_vm1, %v7142_v44, 0.0 }
 0x14d   :  { %10728 = vst [vmem:[#allocation111_spill] sm:$0xff] %v7308_v51  ;;  %10729 = vst [vmem:[#allocation112_spill] sm:$0xff] %v7310_v52 }
 0x14f   :  { %1496 = vadd.xlane.f32.xlu0 %v1495_v63  ;;  %1499 = vadd.xlane.f32.xlu1 %v1498_v38 }
 0x151   :  { %v7316_v47 = vpop.f32.mrb[60].mxu0  ;;  %v7318_v12 = vpop.f32.mrb[60].mxu1 }
 0x152   :  { %10730 = vst [vmem:[#allocation113_spill] sm:$0xff] %v7316_v47  ;;  %10731 = vst [vmem:[#allocation114_spill] sm:$0xff] %v7318_v12  ;;  %v7324_v51 = vpop.f32.mrb[61].mxu0  ;;  %v7326_v52 = vpop.f32.mrb[61].mxu1 }
 0x153   :  { %10732 = vst [vmem:[#allocation115_spill] sm:$0xff] %v7324_v51  ;;  %10733 = vst [vmem:[#allocation116_spill] sm:$0xff] %v7326_v52  ;;  %1298 = vadd.xlane.f32.xlu0 %v1297_v16  ;;  %1301 = vadd.xlane.f32.xlu1 %v1300_v48  ;;  %v7328_v0 = vpop.f32.mrb[62].mxu0  ;;  %v7330_v63 = vpop.f32.mrb[62].mxu1  ;;  %v1315_v16 = vsel %vm1212_vm1, %v7148_v43, 0.0  ;;  %v1318_v48 = vsel %vm1212_vm1, %v7160_v42, 0.0 }
 0x154   :  { %10734 = vst [vmem:[#allocation117_spill] sm:$0xff] %v7328_v0  ;;  %10735 = vst [vmem:[#allocation118_spill] sm:$0xff] %v7330_v63  ;;  %v7332_v38 = vpop.f32.mrb[63].mxu0  ;;  %v7334_v59 = vpop.f32.mrb[63].mxu1 }
 0x155   :  { %10736 = vst [vmem:[#allocation119_spill] sm:$0xff] %v7332_v38  ;;  %10737 = vst [vmem:[#allocation120_spill] sm:$0xff] %v7334_v59  ;;  %v1507_v38 = vsel %vm1212_vm1, %v7150_v23, 0.0  ;;  %v1510_v59 = vsel %vm1212_vm1, %v7162_v41, 0.0 }
 0x157   :  { %1490 = vadd.xlane.f32.xlu0 %v1489_v35  ;;  %1493 = vadd.xlane.f32.xlu1 %v1492_v60  ;;  %v1309_v35 = vsel %vm1212_vm1, %v7156_v34, 0.0  ;;  %v1312_v60 = vsel %vm1212_vm1, %v7164_v45, 0.0 }
 0x15b   :  { %1316 = vadd.xlane.f32.xlu0 %v1315_v16  ;;  %1319 = vadd.xlane.f32.xlu1 %v1318_v48  ;;  %v1501_v16 = vsel %vm1212_vm1, %v7158_v30, 0.0  ;;  %v1504_v48 = vsel %vm1212_vm1, %v7166_v46, 0.0  ;;  %v1519_v30 = vsel %vm1212_vm1, %v7174_v24, 0.0 }
 0x15f   :  { %1508 = vadd.xlane.f32.xlu0 %v1507_v38  ;;  %1511 = vadd.xlane.f32.xlu1 %v1510_v59  ;;  %v1327_v59 = vsel %vm1212_vm1, %v7172_v33, 0.0  ;;  %v1330_v38 = vsel %vm1212_vm1, %v7184_v50, 0.0 }
 0x163   :  { %1310 = vadd.xlane.f32.xlu0 %v1309_v35  ;;  %1313 = vadd.xlane.f32.xlu1 %v1312_v60 }
 0x167   :  { %1502 = vadd.xlane.f32.xlu0 %v1501_v16  ;;  %1505 = vadd.xlane.f32.xlu1 %v1504_v48  ;;  %v1522_v16 = vsel %vm1212_vm1, %v7186_v49, 0.0 }
 0x168   :  { %v1413_v23 = vpop.xlane.xlu0 %1412  ;;  %v1221_v41 = vpop.xlane.xlu1 %1220 }
 0x169   :  { %v1600_v45 = vmul.f32 0.5, %v1221_v41  ;;  %v1664_v42 = vmul.f32 0.5, %v1413_v23  ;;  %v1324_v41 = vsel %vm1212_vm1, %v7188_v55, 0.0 }
 0x16b   :  { %1328 = vadd.xlane.f32.xlu0 %v1327_v59  ;;  %1331 = vadd.xlane.f32.xlu1 %v1330_v38  ;;  %v1321_v59 = vsel %vm1212_vm1, %v7180_v32, 0.0  ;;  %v1516_v32 = vsel %vm1212_vm1, %v7190_v56, 0.0  ;;  %v1342_v56 = vsel %vm1212_vm1, %v7208_v54, 0.0 }
 0x16c   :  { %v1215_v35 = vpop.xlane.xlu0 %1214  ;;  %v1224_v60 = vpop.xlane.xlu1 %1223 }
 0x16d   :  { %v1601_v34 = vmul.f32 0.5, %v1224_v60  ;;  %v1598_v24 = vmul.f32 0.5, %v1215_v35 }
 0x16f   :  { %v1733_v48 = vadd.f32 %v1601_v34, %v1600_v45  ;;  %1520 = vadd.xlane.f32.xlu0 %v1519_v30  ;;  %1523 = vadd.xlane.f32.xlu1 %v1522_v16 }
 0x170   :  { %v1407_v46 = vpop.xlane.xlu0 %1406  ;;  %v1416_v33 = vpop.xlane.xlu1 %1415 }
 0x171   :  { %v1734_v43 = vrot.slane %v1733_v48, 4  ;;  %v1665_v50 = vmul.f32 0.5, %v1416_v33  ;;  %v1662_v49 = vmul.f32 0.5, %v1407_v46  ;;  %v1513_v33 = vsel %vm1212_vm1, %v7182_v26, 0.0 }
 0x172   :  { %v1339_v26 = vsel %vm1212_vm1, %v7196_v31, 0.0  ;;  %v1531_v31 = vsel %vm1212_vm1, %v7198_v37, 0.0 }
 0x173   :  { %v1735_v38 = vadd.f32 %v1734_v43, %v1733_v48  ;;  %v1957_v60 = vadd.f32 %v1665_v50, %v1664_v42  ;;  %1322 = vadd.xlane.f32.xlu0 %v1321_v59  ;;  %1325 = vadd.xlane.f32.xlu1 %v1324_v41 }
 0x174   :  { %v1410_v34 = vpop.xlane.xlu1 %1409  ;;  %v1218_v30 = vpop.xlane.xlu0 %1217 }
 0x175   :  { %v1736_v45 = vrot.slane %v1735_v38, 2  ;;  %v1958_v16 = vrot.slane %v1957_v60, 4  ;;  %v1663_v44 = vmul.f32 0.5, %v1410_v34  ;;  %v1599_v23 = vmul.f32 0.5, %v1218_v30 }
 0x177   :  { %v1737_v36 = vadd.f32 %v1736_v45, %v1735_v38  ;;  %v1959_v55 = vadd.f32 %v1958_v16, %v1957_v60  ;;  %v1950_v43 = vadd.f32 %v1663_v44, %v1662_v49  ;;  %v1726_v42 = vadd.f32 %v1599_v23, %v1598_v24  ;;  %1514 = vadd.xlane.f32.xlu0 %v1513_v33 }
 0x178   :  { %1517 = vadd.xlane.f32.xlu1 %v1516_v32  ;;  %v1233_v50 = vpop.xlane.xlu0 %1232  ;;  %v1236_v46 = vpop.xlane.xlu1 %1235 }
 0x179   :  { %v1738_v35 = vrot.slane %v1737_v36, 1  ;;  %v1960_v48 = vrot.slane %v1959_v55, 2  ;;  %v1951_v59 = vrot.slane %v1950_v43, 4  ;;  %v1727_v41 = vrot.slane %v1726_v42, 4 }
 0x17a   :  { %v1604_v34 = vmul.f32 0.5, %v1233_v50  ;;  %v1605_v30 = vmul.f32 0.5, %v1236_v46 }
 0x17b   :  { %v1961_v38 = vadd.f32 %v1960_v48, %v1959_v55  ;;  %v1952_v60 = vadd.f32 %v1951_v59, %v1950_v43  ;;  %v1728_v44 = vadd.f32 %v1727_v41, %v1726_v42  ;;  %1340 = vadd.xlane.f32.xlu0 %v1339_v26  ;;  %v1739_v24 = vadd.f32 %v1738_v35, %v1737_v36 }
 0x17c   :  { %v1747_v32 = vadd.f32 %v1605_v30, %v1604_v34  ;;  %1343 = vadd.xlane.f32.xlu1 %v1342_v56  ;;  %v1425_v49 = vpop.xlane.xlu0 %1424  ;;  %v1428_v45 = vpop.xlane.xlu1 %1427  ;;  %v1534_v26 = vsel %vm1212_vm1, %v7210_v53, 0.0 }
 0x17d   :  { %v1962_v16 = vrot.slane %v1961_v38, 1  ;;  %v1953_v23 = vrot.slane %v1952_v60, 2  ;;  %v1729_v33 = vrot.slane %v1728_v44, 2  ;;  %v1668_v50 = vmul.f32 0.5, %v1425_v49 }
 0x17e   :  { %v1748_v46 = vrot.slane %v1747_v32, 4  ;;  %v1669_v52 = vmul.f32 0.5, %v1428_v45  ;;  %v2176_v51 = vmul.f32 0.0625, %v1739_v24 }
 0x17f   :  { %v1954_v54 = vadd.f32 %v1953_v23, %v1952_v60  ;;  %v1730_v55 = vadd.f32 %v1729_v33, %v1728_v44  ;;  %1532 = vadd.xlane.f32.xlu0 %v1531_v31  ;;  %v1963_v36 = vadd.f32 %v1962_v16, %v1961_v38  ;;  %v1333_v38 = vsel %vm1212_vm1, %v7204_v22, 0.0 }
 0x180   :  { %v1749_v56 = vadd.f32 %v1748_v46, %v1747_v32  ;;  %v1971_v43 = vadd.f32 %v1669_v52, %v1668_v50  ;;  %1535 = vadd.xlane.f32.xlu1 %v1534_v26  ;;  %v1227_v42 = vpop.xlane.xlu0 %1226  ;;  %v1230_v35 = vpop.xlane.xlu1 %1229  ;;  %v7381_v48 = vsub.f32 %v6956_v1, %v2176_v51  ;;  %v7384_v59 = vsub.f32 %v6968_v7, %v2176_v51 }
 0x181   :  { %v1955_v41 = vrot.slane %v1954_v54, 1  ;;  %v1731_v34 = vrot.slane %v1730_v55, 1  ;;  %v1602_v30 = vmul.f32 0.5, %v1227_v42  ;;  %v1603_v60 = vmul.f32 0.5, %v1230_v35 }
 0x182   :  { %10738 = vst [vmem:[#allocation121_spill] sm:$0xff] %v7381_v48  ;;  %10739 = vst [vmem:[#allocation122_spill] sm:$0xff] %v7384_v59  ;;  %v1750_v31 = vrot.slane %v1749_v56, 2  ;;  %v1972_v44 = vrot.slane %v1971_v43, 4  ;;  %v1336_v52 = vsel %vm1212_vm1, %v7212_v57, 0.0  ;;  %v2208_v32 = vmul.f32 0.0625, %v1963_v36 }
 0x183   :  { %v1740_v24 = vadd.f32 %v1603_v60, %v1602_v30  ;;  %1334 = vadd.xlane.f32.xlu0 %v1333_v38  ;;  %v1732_v1 = vadd.f32 %v1731_v34, %v1730_v55  ;;  %v1956_v16 = vadd.f32 %v1955_v41, %v1954_v54  ;;  %v1525_v42 = vsel %vm1212_vm1, %v7206_v18, 0.0 }
 0x184   :  { %v1751_v49 = vadd.f32 %v1750_v31, %v1749_v56  ;;  %v1973_v45 = vadd.f32 %v1972_v44, %v1971_v43  ;;  %1337 = vadd.xlane.f32.xlu1 %v1336_v52  ;;  %v1419_v7 = vpop.xlane.xlu0 %1418  ;;  %v1422_v51 = vpop.xlane.xlu1 %1421  ;;  %v7391_v46 = vsub.f32 %v6958_v2, %v2208_v32  ;;  %v7396_v35 = vsub.f32 %v6970_v8, %v2208_v32 }
 0x185   :  { %v1741_v23 = vrot.slane %v1740_v24, 4  ;;  %v1666_v33 = vmul.f32 0.5, %v1419_v7  ;;  %v1667_v50 = vmul.f32 0.5, %v1422_v51  ;;  %v2175_v55 = vmul.f32 0.0625, %v1732_v1 }
 0x186   :  { %10740 = vst [vmem:[#allocation123_spill] sm:$0xff] %v7391_v46  ;;  %v1974_v26 = vrot.slane %v1973_v45, 2  ;;  %10741 = vst [vmem:[#allocation124_spill] sm:$0xff] %v7396_v35  ;;  %v1752_v36 = vrot.slane %v1751_v49, 1  ;;  %v1528_v54 = vsel %vm1212_vm1, %v7214_v58, 0.0  ;;  %v2207_v8 = vmul.f32 0.0625, %v1956_v16 }
 0x187   :  { %v1742_v56 = vadd.f32 %v1741_v23, %v1740_v24  ;;  %v1964_v43 = vadd.f32 %v1667_v50, %v1666_v33  ;;  %1526 = vadd.xlane.f32.xlu0 %v1525_v42  ;;  %v7401_v30 = vsub.f32 %v6960_v3, %v2175_v55  ;;  %v7404_v60 = vsub.f32 %v6972_v9, %v2175_v55 }
 0x188   :  { %v1975_v41 = vadd.f32 %v1974_v26, %v1973_v45  ;;  %1529 = vadd.xlane.f32.xlu1 %v1528_v54  ;;  %v1245_v34 = vpop.xlane.xlu0 %1244  ;;  %v1248_v2 = vpop.xlane.xlu1 %1247  ;;  %v1351_v52 = vsel %vm1212_vm1, %v7220_v21, 0.0  ;;  %v1354_v32 = vsel %vm1212_vm1, %v7232_v62, 0.0  ;;  %v7411_v16 = vsub.f32 %v6966_v6, %v2207_v8 }
 0x189   :  { %10742 = vst [vmem:[#allocation125_spill] sm:$0xff] %v7401_v30  ;;  %10743 = vst [vmem:[#allocation126_spill] sm:$0xff] %v7404_v60  ;;  %v1743_v31 = vrot.slane %v1742_v56, 2  ;;  %v1965_v44 = vrot.slane %v1964_v43, 4  ;;  %v1608_v38 = vmul.f32 0.5, %v1245_v34  ;;  %v1609_v24 = vmul.f32 0.5, %v1248_v2 }
 0x18a   :  { %v1976_v1 = vrot.slane %v1975_v41, 1  ;;  %10744 = vst [vmem:[#allocation127_spill] sm:$0xff] %v7411_v16  ;;  %v7414_v23 = vsub.f32 %v6974_v10, %v2207_v8  ;;  %v1753_v33 = vadd.f32 %v1752_v36, %v1751_v49  ;;  %v1345_v36 = vsel %vm1212_vm1, %v7228_v20, 0.0 }
 0x18b   :  { %v1744_v45 = vadd.f32 %v1743_v31, %v1742_v56  ;;  %v1966_v7 = vadd.f32 %v1965_v44, %v1964_v43  ;;  %v1761_v51 = vadd.f32 %v1609_v24, %v1608_v38  ;;  %1352 = vadd.xlane.f32.xlu0 %v1351_v52  ;;  %v1543_v56 = vsel %vm1212_vm1, %v7222_v29, 0.0 }
 0x18c   :  { %1355 = vadd.xlane.f32.xlu1 %v1354_v32  ;;  %v1437_v3 = vpop.xlane.xlu0 %1436  ;;  %v1440_v9 = vpop.xlane.xlu1 %1439  ;;  %10745 = vst [vmem:[#allocation128_spill] sm:$0xff] %v7414_v23  ;;  %v1546_v43 = vsel %vm1212_vm1, %v7234_v61, 0.0  ;;  %v2178_v6 = vmul.f32 0.0625, %v1753_v33  ;;  %v1977_v31 = vadd.f32 %v1976_v1, %v1975_v41  ;;  %v10749_v33 = vld [vmem:[#allocation87_spill] sm:$0xff] }
 0x18d   :  { %v1745_v50 = vrot.slane %v1744_v45, 1  ;;  %v1967_v26 = vrot.slane %v1966_v7, 2  ;;  %v1762_v42 = vrot.slane %v1761_v51, 4  ;;  %v1672_v55 = vmul.f32 0.5, %v1437_v3 }
 0x18e   :  { %v1673_v54 = vmul.f32 0.5, %v1440_v9  ;;  %v7423_v9 = vsub.f32 %v6980_v13, %v2178_v6  ;;  %v2210_v41 = vmul.f32 0.0625, %v1977_v31  ;;  %v10752_v31 = vld [vmem:[#allocation84_spill] sm:$0xff] }
 0x18f   :  { %v1968_v34 = vadd.f32 %v1967_v26, %v1966_v7  ;;  %v1763_v2 = vadd.f32 %v1762_v42, %v1761_v51  ;;  %1544 = vadd.xlane.f32.xlu0 %v1543_v56  ;;  %v1746_v8 = vadd.f32 %v1745_v50, %v1744_v45  ;;  %v10747_v7 = vld [vmem:[#allocation5_spill] sm:$0xff]  ;;  %v1348_v26 = vsel %vm1212_vm1, %v10749_v33, 0.0 }
 0x190   :  { %v1985_v44 = vadd.f32 %v1673_v54, %v1672_v55  ;;  %1547 = vadd.xlane.f32.xlu1 %v1546_v43  ;;  %v1239_v10 = vpop.xlane.xlu0 %1238  ;;  %v1242_v49 = vpop.xlane.xlu1 %1241  ;;  %10746 = vst [vmem:[#allocation129_spill] sm:$0xff] %v7423_v9  ;;  %v7426_v51 = vsub.f32 %v10747_v7, %v2178_v6  ;;  %v10750_v54 = vld [vmem:[#allocation2_spill] sm:$0xff] }
 0x191   :  { %v1969_v38 = vrot.slane %v1968_v34, 1  ;;  %v1764_v24 = vrot.slane %v1763_v2, 2  ;;  %v1606_v52 = vmul.f32 0.5, %v1239_v10  ;;  %v1607_v32 = vmul.f32 0.5, %v1242_v49 }
 0x192   :  { %v1986_v3 = vrot.slane %v1985_v44, 4  ;;  %10748 = vst [vmem:[#allocation5_spill] sm:$0xff] %v7426_v51  ;;  %v2177_v42 = vmul.f32 0.0625, %v1746_v8  ;;  %v7431_v56 = vsub.f32 %v10750_v54, %v2210_v41  ;;  %v10756_v54 = vld [vmem:[#allocation3_spill] sm:$0xff] }
 0x193   :  { %v1754_v1 = vadd.f32 %v1607_v32, %v1606_v52  ;;  %1346 = vadd.xlane.f32.xlu0 %v1345_v36  ;;  %v1970_v43 = vadd.f32 %v1969_v38, %v1968_v34  ;;  %v1765_v6 = vadd.f32 %v1764_v24, %v1763_v2  ;;  %v1537_v36 = vsel %vm1212_vm1, %v10752_v31, 0.0  ;;  %v10753_v52 = vld [vmem:[#allocation88_spill] sm:$0xff]  ;;  %v10758_v24 = vld [vmem:[#allocation7_spill] sm:$0xff] }
 0x194   :  { %v1987_v55 = vadd.f32 %v1986_v3, %v1985_v44  ;;  %1349 = vadd.xlane.f32.xlu1 %v1348_v26  ;;  %v1431_v45 = vpop.xlane.xlu0 %1430  ;;  %v1434_v50 = vpop.xlane.xlu1 %1433  ;;  %10751 = vst [vmem:[#allocation2_spill] sm:$0xff] %v7431_v56  ;;  %v1540_v32 = vsel %vm1212_vm1, %v10753_v52, 0.0  ;;  %v10754_v3 = vld [vmem:[#allocation6_spill] sm:$0xff]  ;;  %v7441_v33 = vsub.f32 %v10756_v54, %v2177_v42  ;;  %v10762_v54 = vld [vmem:[#allocation8_spill] sm:$0xff] }
 0x195   :  { %v1755_v13 = vrot.slane %v1754_v1, 4  ;;  %v1670_v10 = vmul.f32 0.5, %v1431_v45  ;;  %v1671_v49 = vmul.f32 0.5, %v1434_v50  ;;  %v7438_v26 = vsub.f32 %v10754_v3, %v2210_v41 }
 0x196   :  { %v1988_v7 = vrot.slane %v1987_v55, 2  ;;  %10757 = vst [vmem:[#allocation3_spill] sm:$0xff] %v7441_v33  ;;  %v7444_v45 = vsub.f32 %v10758_v24, %v2177_v42  ;;  %v2209_v50 = vmul.f32 0.0625, %v1970_v43  ;;  %v1363_v41 = vsel %vm1212_vm1, %v7244_v19, 0.0 }
 0x197   :  { %v1756_v8 = vadd.f32 %v1755_v13, %v1754_v1  ;;  %v1978_v44 = vadd.f32 %v1671_v49, %v1670_v10  ;;  %1538 = vadd.xlane.f32.xlu0 %v1537_v36  ;;  %10755 = vst [vmem:[#allocation6_spill] sm:$0xff] %v7438_v26  ;;  %v1766_v13 = vrot.slane %v1765_v6, 1  ;;  %v1366_v49 = vsel %vm1212_vm1, %v7256_v5, 0.0 }
 0x198   :  { %v1989_v34 = vadd.f32 %v1988_v7, %v1987_v55  ;;  %1541 = vadd.xlane.f32.xlu1 %v1540_v32  ;;  %v1257_v38 = vpop.xlane.xlu0 %1256  ;;  %v1260_v2 = vpop.xlane.xlu1 %1259  ;;  %10759 = vst [vmem:[#allocation7_spill] sm:$0xff] %v7444_v45  ;;  %v10760_v32 = vld [vmem:[#allocation4_spill] sm:$0xff] }
 0x199   :  { %v1757_v31 = vrot.slane %v1756_v8, 2  ;;  %v1979_v20 = vrot.slane %v1978_v44, 4  ;;  %v1612_v52 = vmul.f32 0.5, %v1257_v38  ;;  %v1613_v1 = vmul.f32 0.5, %v1260_v2 }
 0x19a   :  { %v1990_v10 = vrot.slane %v1989_v34, 1  ;;  %v7451_v42 = vsub.f32 %v10760_v32, %v2209_v50  ;;  %v7454_v38 = vsub.f32 %v10762_v54, %v2209_v50  ;;  %v10764_v54 = vld [vmem:[#allocation91_spill] sm:$0xff] }
 0x19b   :  { %v1758_v55 = vadd.f32 %v1757_v31, %v1756_v8  ;;  %v1980_v7 = vadd.f32 %v1979_v20, %v1978_v44  ;;  %v1775_v36 = vadd.f32 %v1613_v1, %v1612_v52  ;;  %1364 = vadd.xlane.f32.xlu0 %v1363_v41  ;;  %v1555_v31 = vsel %vm1212_vm1, %v7246_v25, 0.0 }
 0x19c   :  { %10761 = vst [vmem:[#allocation4_spill] sm:$0xff] %v7451_v42  ;;  %1367 = vadd.xlane.f32.xlu1 %v1366_v49  ;;  %v1449_v43 = vpop.xlane.xlu0 %1448  ;;  %v1452_v3 = vpop.xlane.xlu1 %1451  ;;  %10763 = vst [vmem:[#allocation8_spill] sm:$0xff] %v7454_v38  ;;  %v1558_v20 = vsel %vm1212_vm1, %v7258_v4, 0.0  ;;  %v1767_v52 = vadd.f32 %v1766_v13, %v1765_v6  ;;  %v1991_v1 = vadd.f32 %v1990_v10, %v1989_v34  ;;  %v10765_v4 = vld [vmem:[#allocation9_spill] sm:$0xff] }
 0x19d   :  { %v1759_v2 = vrot.slane %v1758_v55, 1  ;;  %v1981_v24 = vrot.slane %v1980_v7, 2  ;;  %v1776_v61 = vrot.slane %v1775_v36, 4  ;;  %v1676_v19 = vmul.f32 0.5, %v1449_v43 }
 0x19e   :  { %v1677_v29 = vmul.f32 0.5, %v1452_v3  ;;  %v1357_v43 = vsel %vm1212_vm1, %v10764_v54, 0.0  ;;  %v2180_v3 = vmul.f32 0.0625, %v1767_v52  ;;  %v2212_v34 = vmul.f32 0.0625, %v1991_v1  ;;  %v10772_v1 = vld [vmem:[#allocation92_spill] sm:$0xff] }
 0x19f   :  { %v1982_v8 = vadd.f32 %v1981_v24, %v1980_v7  ;;  %v1777_v44 = vadd.f32 %v1776_v61, %v1775_v36  ;;  %1556 = vadd.xlane.f32.xlu0 %v1555_v31  ;;  %v1760_v41 = vadd.f32 %v1759_v2, %v1758_v55  ;;  %v10767_v61 = vld [vmem:[#allocation13_spill] sm:$0xff]  ;;  %v10770_v24 = vld [vmem:[#allocation10_spill] sm:$0xff] }
 0x1a0   :  { %v1999_v49 = vadd.f32 %v1677_v29, %v1676_v19  ;;  %1559 = vadd.xlane.f32.xlu1 %v1558_v20  ;;  %v1251_v50 = vpop.xlane.xlu0 %1250  ;;  %v1254_v32 = vpop.xlane.xlu1 %1253  ;;  %v7463_v6 = vsub.f32 %v10765_v4, %v2180_v3  ;;  %v7466_v13 = vsub.f32 %v10767_v61, %v2180_v3  ;;  %v10769_v29 = vld [vmem:[#allocation95_spill] sm:$0xff]  ;;  %v7471_v31 = vsub.f32 %v10770_v24, %v2212_v34 }
 0x1a1   :  { %v1983_v5 = vrot.slane %v1982_v8, 1  ;;  %v1778_v62 = vrot.slane %v1777_v44, 2  ;;  %v1610_v25 = vmul.f32 0.5, %v1251_v50  ;;  %v1611_v21 = vmul.f32 0.5, %v1254_v32 }
 0x1a2   :  { %v2000_v58 = vrot.slane %v1999_v49, 4  ;;  %10766 = vst [vmem:[#allocation9_spill] sm:$0xff] %v7463_v6  ;;  %10768 = vst [vmem:[#allocation13_spill] sm:$0xff] %v7466_v13  ;;  %v1360_v10 = vsel %vm1212_vm1, %v10769_v29, 0.0  ;;  %v2179_v55 = vmul.f32 0.0625, %v1760_v41 }
 0x1a3   :  { %v1768_v19 = vadd.f32 %v1611_v21, %v1610_v25  ;;  %1358 = vadd.xlane.f32.xlu0 %v1357_v43  ;;  %10771 = vst [vmem:[#allocation10_spill] sm:$0xff] %v7471_v31  ;;  %v1984_v20 = vadd.f32 %v1983_v5, %v1982_v8  ;;  %v1779_v32 = vadd.f32 %v1778_v62, %v1777_v44  ;;  %v1549_v21 = vsel %vm1212_vm1, %v10772_v1, 0.0  ;;  %v10773_v25 = vld [vmem:[#allocation96_spill] sm:$0xff]  ;;  %v10778_v44 = vld [vmem:[#allocation15_spill] sm:$0xff] }
 0x1a4   :  { %v2001_v7 = vadd.f32 %v2000_v58, %v1999_v49  ;;  %1361 = vadd.xlane.f32.xlu1 %v1360_v10  ;;  %v1443_v36 = vpop.xlane.xlu0 %1442  ;;  %v1446_v2 = vpop.xlane.xlu1 %1445  ;;  %v1552_v43 = vsel %vm1212_vm1, %v10773_v25, 0.0  ;;  %v10774_v49 = vld [vmem:[#allocation14_spill] sm:$0xff]  ;;  %v10776_v10 = vld [vmem:[#allocation11_spill] sm:$0xff] }
 0x1a5   :  { %v1769_v4 = vrot.slane %v1768_v19, 4  ;;  %v1674_v52 = vmul.f32 0.5, %v1443_v36  ;;  %v1675_v50 = vmul.f32 0.5, %v1446_v2  ;;  %v7478_v61 = vsub.f32 %v10774_v49, %v2212_v34 }
 0x1a6   :  { %v2002_v3 = vrot.slane %v2001_v7, 2  ;;  %v7481_v24 = vsub.f32 %v10776_v10, %v2179_v55  ;;  %v7484_v36 = vsub.f32 %v10778_v44, %v2179_v55  ;;  %v2211_v2 = vmul.f32 0.0625, %v1984_v20  ;;  %v10782_v10 = vld [vmem:[#allocation16_spill] sm:$0xff] }
 0x1a7   :  { %v1770_v41 = vadd.f32 %v1769_v4, %v1768_v19  ;;  %v1992_v58 = vadd.f32 %v1675_v50, %v1674_v52  ;;  %1550 = vadd.xlane.f32.xlu0 %v1549_v21  ;;  %10775 = vst [vmem:[#allocation14_spill] sm:$0xff] %v7478_v61  ;;  %v1780_v4 = vrot.slane %v1779_v32, 1  ;;  %v1375_v34 = vsel %vm1212_vm1, %v7268_v11, 0.0 }
 0x1a8   :  { %10777 = vst [vmem:[#allocation11_spill] sm:$0xff] %v7481_v24  ;;  %v2003_v5 = vadd.f32 %v2002_v3, %v2001_v7  ;;  %1553 = vadd.xlane.f32.xlu1 %v1552_v43  ;;  %v1269_v8 = vpop.xlane.xlu0 %1268  ;;  %v1272_v62 = vpop.xlane.xlu1 %1271  ;;  %10779 = vst [vmem:[#allocation15_spill] sm:$0xff] %v7484_v36  ;;  %v1378_v50 = vsel %vm1212_vm1, %v7280_v28, 0.0  ;;  %v10780_v43 = vld [vmem:[#allocation12_spill] sm:$0xff] }
 0x1a9   :  { %v1771_v1 = vrot.slane %v1770_v41, 2  ;;  %v1993_v29 = vrot.slane %v1992_v58, 4  ;;  %v1616_v25 = vmul.f32 0.5, %v1269_v8  ;;  %v1617_v19 = vmul.f32 0.5, %v1272_v62 }
 0x1aa   :  { %v2004_v52 = vrot.slane %v2003_v5, 1  ;;  %v7491_v55 = vsub.f32 %v10780_v43, %v2211_v2  ;;  %v7494_v8 = vsub.f32 %v10782_v10, %v2211_v2  ;;  %v10784_v10 = vld [vmem:[#allocation99_spill] sm:$0xff] }
 0x1ab   :  { %v1772_v7 = vadd.f32 %v1771_v1, %v1770_v41  ;;  %v1994_v3 = vadd.f32 %v1993_v29, %v1992_v58  ;;  %v1789_v21 = vadd.f32 %v1617_v19, %v1616_v25  ;;  %1376 = vadd.xlane.f32.xlu0 %v1375_v34  ;;  %v1567_v1 = vsel %vm1212_vm1, %v7270_v17, 0.0 }
 0x1ac   :  { %10781 = vst [vmem:[#allocation12_spill] sm:$0xff] %v7491_v55  ;;  %1379 = vadd.xlane.f32.xlu1 %v1378_v50  ;;  %v1461_v20 = vpop.xlane.xlu0 %1460  ;;  %v1464_v49 = vpop.xlane.xlu1 %1463  ;;  %10783 = vst [vmem:[#allocation16_spill] sm:$0xff] %v7494_v8  ;;  %v1570_v29 = vsel %vm1212_vm1, %v7282_v27, 0.0  ;;  %v1781_v25 = vadd.f32 %v1780_v4, %v1779_v32  ;;  %v2005_v19 = vadd.f32 %v2004_v52, %v2003_v5  ;;  %v10785_v27 = vld [vmem:[#allocation17_spill] sm:$0xff] }
 0x1ad   :  { %v1773_v62 = vrot.slane %v1772_v7, 1  ;;  %v1995_v44 = vrot.slane %v1994_v3, 2  ;;  %v1790_v54 = vrot.slane %v1789_v21, 4  ;;  %v1680_v11 = vmul.f32 0.5, %v1461_v20 }
 0x1ae   :  { %v1681_v18 = vmul.f32 0.5, %v1464_v49  ;;  %v1369_v20 = vsel %vm1212_vm1, %v10784_v10, 0.0  ;;  %v2182_v49 = vmul.f32 0.0625, %v1781_v25  ;;  %v2214_v5 = vmul.f32 0.0625, %v2005_v19  ;;  %v10792_v19 = vld [vmem:[#allocation100_spill] sm:$0xff] }
 0x1af   :  { %v1996_v41 = vadd.f32 %v1995_v44, %v1994_v3  ;;  %v1791_v58 = vadd.f32 %v1790_v54, %v1789_v21  ;;  %1568 = vadd.xlane.f32.xlu0 %v1567_v1  ;;  %v1774_v34 = vadd.f32 %v1773_v62, %v1772_v7  ;;  %v10787_v54 = vld [vmem:[#allocation21_spill] sm:$0xff]  ;;  %v10790_v44 = vld [vmem:[#allocation18_spill] sm:$0xff] }
 0x1b0   :  { %v2013_v50 = vadd.f32 %v1681_v18, %v1680_v11  ;;  %1571 = vadd.xlane.f32.xlu1 %v1570_v29  ;;  %v1263_v2 = vpop.xlane.xlu0 %1262  ;;  %v1266_v43 = vpop.xlane.xlu1 %1265  ;;  %v7503_v32 = vsub.f32 %v10785_v27, %v2182_v49  ;;  %v7506_v4 = vsub.f32 %v10787_v54, %v2182_v49  ;;  %v10789_v11 = vld [vmem:[#allocation103_spill] sm:$0xff]  ;;  %v7511_v1 = vsub.f32 %v10790_v44, %v2214_v5 }
 0x1b1   :  { %v1997_v28 = vrot.slane %v1996_v41, 1  ;;  %v1792_v57 = vrot.slane %v1791_v58, 2  ;;  %v1614_v17 = vmul.f32 0.5, %v1263_v2  ;;  %v1615_v22 = vmul.f32 0.5, %v1266_v43 }
 0x1b2   :  { %v2014_v53 = vrot.slane %v2013_v50, 4  ;;  %10786 = vst [vmem:[#allocation17_spill] sm:$0xff] %v7503_v32  ;;  %10788 = vst [vmem:[#allocation21_spill] sm:$0xff] %v7506_v4  ;;  %v1372_v52 = vsel %vm1212_vm1, %v10789_v11, 0.0  ;;  %v2181_v7 = vmul.f32 0.0625, %v1774_v34 }
 0x1b3   :  { %v1782_v18 = vadd.f32 %v1615_v22, %v1614_v17  ;;  %1370 = vadd.xlane.f32.xlu0 %v1369_v20  ;;  %10791 = vst [vmem:[#allocation18_spill] sm:$0xff] %v7511_v1  ;;  %v1998_v29 = vadd.f32 %v1997_v28, %v1996_v41  ;;  %v1793_v43 = vadd.f32 %v1792_v57, %v1791_v58  ;;  %v1561_v22 = vsel %vm1212_vm1, %v10792_v19, 0.0  ;;  %v10793_v17 = vld [vmem:[#allocation104_spill] sm:$0xff]  ;;  %v10798_v58 = vld [vmem:[#allocation23_spill] sm:$0xff] }
 0x1b4   :  { %v2015_v3 = vadd.f32 %v2014_v53, %v2013_v50  ;;  %1373 = vadd.xlane.f32.xlu1 %v1372_v52  ;;  %v1455_v21 = vpop.xlane.xlu0 %1454  ;;  %v1458_v62 = vpop.xlane.xlu1 %1457  ;;  %v1564_v20 = vsel %vm1212_vm1, %v10793_v17, 0.0  ;;  %v10794_v50 = vld [vmem:[#allocation22_spill] sm:$0xff]  ;;  %v10796_v52 = vld [vmem:[#allocation19_spill] sm:$0xff] }
 0x1b5   :  { %v1783_v27 = vrot.slane %v1782_v18, 4  ;;  %v1678_v25 = vmul.f32 0.5, %v1455_v21  ;;  %v1679_v2 = vmul.f32 0.5, %v1458_v62  ;;  %v7518_v54 = vsub.f32 %v10794_v50, %v2214_v5 }
 0x1b6   :  { %v2016_v49 = vrot.slane %v2015_v3, 2  ;;  %v7521_v44 = vsub.f32 %v10796_v52, %v2181_v7  ;;  %v7524_v21 = vsub.f32 %v10798_v58, %v2181_v7  ;;  %v2213_v62 = vmul.f32 0.0625, %v1998_v29  ;;  %v10802_v52 = vld [vmem:[#allocation24_spill] sm:$0xff] }
 0x1b7   :  { %v1784_v34 = vadd.f32 %v1783_v27, %v1782_v18  ;;  %v2006_v53 = vadd.f32 %v1679_v2, %v1678_v25  ;;  %1562 = vadd.xlane.f32.xlu0 %v1561_v22  ;;  %10795 = vst [vmem:[#allocation22_spill] sm:$0xff] %v7518_v54  ;;  %v1794_v27 = vrot.slane %v1793_v43, 1  ;;  %v1387_v5 = vsel %vm1212_vm1, %v7292_v15, 0.0 }
 0x1b8   :  { %10797 = vst [vmem:[#allocation19_spill] sm:$0xff] %v7521_v44  ;;  %v2017_v28 = vadd.f32 %v2016_v49, %v2015_v3  ;;  %1565 = vadd.xlane.f32.xlu1 %v1564_v20  ;;  %v1281_v41 = vpop.xlane.xlu0 %1280  ;;  %v1284_v57 = vpop.xlane.xlu1 %1283  ;;  %10799 = vst [vmem:[#allocation23_spill] sm:$0xff] %v7524_v21  ;;  %v1390_v2 = vsel %vm1212_vm1, %v7304_v40, 0.0  ;;  %v10800_v20 = vld [vmem:[#allocation20_spill] sm:$0xff] }
 0x1b9   :  { %v1785_v19 = vrot.slane %v1784_v34, 2  ;;  %v2007_v11 = vrot.slane %v2006_v53, 4  ;;  %v1620_v17 = vmul.f32 0.5, %v1281_v41  ;;  %v1621_v18 = vmul.f32 0.5, %v1284_v57 }
 0x1ba   :  { %v2018_v25 = vrot.slane %v2017_v28, 1  ;;  %v7531_v7 = vsub.f32 %v10800_v20, %v2213_v62  ;;  %v7534_v41 = vsub.f32 %v10802_v52, %v2213_v62  ;;  %v10804_v52 = vld [vmem:[#allocation107_spill] sm:$0xff] }
 0x1bb   :  { %v1786_v3 = vadd.f32 %v1785_v19, %v1784_v34  ;;  %v2008_v49 = vadd.f32 %v2007_v11, %v2006_v53  ;;  %v1803_v22 = vadd.f32 %v1621_v18, %v1620_v17  ;;  %1388 = vadd.xlane.f32.xlu0 %v1387_v5  ;;  %v1579_v19 = vsel %vm1212_vm1, %v7294_v14, 0.0 }
 0x1bc   :  { %10801 = vst [vmem:[#allocation20_spill] sm:$0xff] %v7531_v7  ;;  %1391 = vadd.xlane.f32.xlu1 %v1390_v2  ;;  %v1473_v29 = vpop.xlane.xlu0 %1472  ;;  %v1476_v50 = vpop.xlane.xlu1 %1475  ;;  %10803 = vst [vmem:[#allocation24_spill] sm:$0xff] %v7534_v41  ;;  %v1582_v11 = vsel %vm1212_vm1, %v7306_v39, 0.0  ;;  %v1795_v17 = vadd.f32 %v1794_v27, %v1793_v43  ;;  %v2019_v18 = vadd.f32 %v2018_v25, %v2017_v28  ;;  %v10805_v39 = vld [vmem:[#allocation25_spill] sm:$0xff] }
 0x1bd   :  { %v1787_v57 = vrot.slane %v1786_v3, 1  ;;  %v2009_v58 = vrot.slane %v2008_v49, 2  ;;  %v1804_v10 = vrot.slane %v1803_v22, 4  ;;  %v1684_v15 = vmul.f32 0.5, %v1473_v29 }
 0x1be   :  { %v1685_v37 = vmul.f32 0.5, %v1476_v50  ;;  %v1381_v29 = vsel %vm1212_vm1, %v10804_v52, 0.0  ;;  %v2184_v50 = vmul.f32 0.0625, %v1795_v17  ;;  %v2216_v28 = vmul.f32 0.0625, %v2019_v18  ;;  %v10812_v18 = vld [vmem:[#allocation108_spill] sm:$0xff] }
 0x1bf   :  { %v2010_v34 = vadd.f32 %v2009_v58, %v2008_v49  ;;  %v1805_v53 = vadd.f32 %v1804_v10, %v1803_v22  ;;  %1580 = vadd.xlane.f32.xlu0 %v1579_v19  ;;  %v1788_v5 = vadd.f32 %v1787_v57, %v1786_v3  ;;  %v10807_v10 = vld [vmem:[#allocation29_spill] sm:$0xff]  ;;  %v10810_v58 = vld [vmem:[#allocation26_spill] sm:$0xff] }
 0x1c0   :  { %v2027_v2 = vadd.f32 %v1685_v37, %v1684_v15  ;;  %1583 = vadd.xlane.f32.xlu1 %v1582_v11  ;;  %v1275_v62 = vpop.xlane.xlu0 %1274  ;;  %v1278_v20 = vpop.xlane.xlu1 %1277  ;;  %v7543_v43 = vsub.f32 %v10805_v39, %v2184_v50  ;;  %v7546_v27 = vsub.f32 %v10807_v10, %v2184_v50  ;;  %v10809_v15 = vld [vmem:[#allocation111_spill] sm:$0xff]  ;;  %v7551_v19 = vsub.f32 %v10810_v58, %v2216_v28 }
 0x1c1   :  { %v2011_v40 = vrot.slane %v2010_v34, 1  ;;  %v1806_v41 = vrot.slane %v1805_v53, 2  ;;  %v1618_v14 = vmul.f32 0.5, %v1275_v62  ;;  %v1619_v7 = vmul.f32 0.5, %v1278_v20 }
 0x1c2   :  { %v2028_v21 = vrot.slane %v2027_v2, 4  ;;  %10806 = vst [vmem:[#allocation25_spill] sm:$0xff] %v7543_v43  ;;  %10808 = vst [vmem:[#allocation29_spill] sm:$0xff] %v7546_v27  ;;  %v1384_v25 = vsel %vm1212_vm1, %v10809_v15, 0.0  ;;  %v2183_v3 = vmul.f32 0.0625, %v1788_v5 }
 0x1c3   :  { %v1796_v37 = vadd.f32 %v1619_v7, %v1618_v14  ;;  %1382 = vadd.xlane.f32.xlu0 %v1381_v29  ;;  %10811 = vst [vmem:[#allocation26_spill] sm:$0xff] %v7551_v19  ;;  %v2012_v11 = vadd.f32 %v2011_v40, %v2010_v34  ;;  %v1807_v20 = vadd.f32 %v1806_v41, %v1805_v53  ;;  %v1573_v14 = vsel %vm1212_vm1, %v10812_v18, 0.0  ;;  %v10813_v7 = vld [vmem:[#allocation112_spill] sm:$0xff]  ;;  %v10818_v53 = vld [vmem:[#allocation31_spill] sm:$0xff] }
 0x1c4   :  { %v2029_v49 = vadd.f32 %v2028_v21, %v2027_v2  ;;  %1385 = vadd.xlane.f32.xlu1 %v1384_v25  ;;  %v1467_v22 = vpop.xlane.xlu0 %1466  ;;  %v1470_v57 = vpop.xlane.xlu1 %1469  ;;  %v1576_v29 = vsel %vm1212_vm1, %v10813_v7, 0.0  ;;  %v10814_v2 = vld [vmem:[#allocation30_spill] sm:$0xff]  ;;  %v10816_v25 = vld [vmem:[#allocation27_spill] sm:$0xff] }
 0x1c5   :  { %v1797_v39 = vrot.slane %v1796_v37, 4  ;;  %v1682_v17 = vmul.f32 0.5, %v1467_v22  ;;  %v1683_v62 = vmul.f32 0.5, %v1470_v57  ;;  %v7558_v10 = vsub.f32 %v10814_v2, %v2216_v28 }
 0x1c6   :  { %v2030_v50 = vrot.slane %v2029_v49, 2  ;;  %v7561_v58 = vsub.f32 %v10816_v25, %v2183_v3  ;;  %v7564_v22 = vsub.f32 %v10818_v53, %v2183_v3  ;;  %v2215_v57 = vmul.f32 0.0625, %v2012_v11 }
 0x1c7   :  { %v1798_v5 = vadd.f32 %v1797_v39, %v1796_v37  ;;  %v2020_v21 = vadd.f32 %v1683_v62, %v1682_v17  ;;  %1574 = vadd.xlane.f32.xlu0 %v1573_v14  ;;  %10815 = vst [vmem:[#allocation30_spill] sm:$0xff] %v7558_v10  ;;  %v1808_v39 = vrot.slane %v1807_v20, 1  ;;  %v1399_v28 = vsel %vm1212_vm1, %v7316_v47, 0.0 }
 0x1c8   :  { %10817 = vst [vmem:[#allocation27_spill] sm:$0xff] %v7561_v58  ;;  %v2031_v40 = vadd.f32 %v2030_v50, %v2029_v49  ;;  %1577 = vadd.xlane.f32.xlu1 %v1576_v29  ;;  %v1293_v34 = vpop.xlane.xlu0 %1292  ;;  %v1296_v41 = vpop.xlane.xlu1 %1295  ;;  %10819 = vst [vmem:[#allocation31_spill] sm:$0xff] %v7564_v22  ;;  %v1402_v62 = vsel %vm1212_vm1, %v7328_v0, 0.0  ;;  %v10820_v29 = vld [vmem:[#allocation28_spill] sm:$0xff]  ;;  %v1591_v25 = vsel %vm1212_vm1, %v7318_v12, 0.0 }
 0x1c9   :  { %v1799_v18 = vrot.slane %v1798_v5, 2  ;;  %v2021_v15 = vrot.slane %v2020_v21, 4  ;;  %v1624_v7 = vmul.f32 0.5, %v1293_v34  ;;  %v1625_v37 = vmul.f32 0.5, %v1296_v41  ;;  %v10822_v34 = vld [vmem:[#allocation32_spill] sm:$0xff] }
 0x1ca   :  { %v2032_v17 = vrot.slane %v2031_v40, 1  ;;  %v7571_v3 = vsub.f32 %v10820_v29, %v2215_v57  ;;  %v7576_v41 = vsub.f32 %v10822_v34, %v2215_v57 }
 0x1cb   :  { %v1800_v49 = vadd.f32 %v1799_v18, %v1798_v5  ;;  %v2022_v50 = vadd.f32 %v2021_v15, %v2020_v21  ;;  %v1817_v14 = vadd.f32 %v1625_v37, %v1624_v7  ;;  %1400 = vadd.xlane.f32.xlu0 %v1399_v28  ;;  %v1594_v15 = vsel %vm1212_vm1, %v7330_v63, 0.0  ;;  %v10824_v7 = vld [vmem:[#allocation115_spill] sm:$0xff] }
 0x1cc   :  { %10821 = vst [vmem:[#allocation28_spill] sm:$0xff] %v7571_v3  ;;  %1403 = vadd.xlane.f32.xlu1 %v1402_v62  ;;  %v1485_v11 = vpop.xlane.xlu0 %1484  ;;  %v1488_v2 = vpop.xlane.xlu1 %1487  ;;  %10823 = vst [vmem:[#allocation32_spill] sm:$0xff] %v7576_v41  ;;  %v1393_v5 = vsel %vm1212_vm1, %v10824_v7, 0.0  ;;  %v1809_v21 = vadd.f32 %v1808_v39, %v1807_v20  ;;  %v2033_v62 = vadd.f32 %v2032_v17, %v2031_v40  ;;  %v10825_v41 = vld [vmem:[#allocation116_spill] sm:$0xff]  ;;  %v10828_v40 = vld [vmem:[#allocation37_spill] sm:$0xff] }
 0x1cd   :  { %v1801_v53 = vrot.slane %v1800_v49, 1  ;;  %v2023_v47 = vrot.slane %v2022_v50, 2  ;;  %v1818_v52 = vrot.slane %v1817_v14, 4  ;;  %v1688_v0 = vmul.f32 0.5, %v1485_v11 }
 0x1ce   :  { %v1689_v18 = vmul.f32 0.5, %v1488_v2  ;;  %v1585_v11 = vsel %vm1212_vm1, %v10825_v41, 0.0  ;;  %v2369_v2 = vmul.f32 %v7381_v48, %v7381_v48  ;;  %v2186_v63 = vmul.f32 0.0625, %v1809_v21 }
 0x1cf   :  { %v2024_v37 = vadd.f32 %v2023_v47, %v2022_v50  ;;  %v1819_v28 = vadd.f32 %v1818_v52, %v1817_v14  ;;  %1592 = vadd.xlane.f32.xlu0 %v1591_v25  ;;  %v1802_v29 = vadd.f32 %v1801_v53, %v1800_v49  ;;  %v10826_v52 = vld [vmem:[#allocation33_spill] sm:$0xff]  ;;  %v2218_v17 = vmul.f32 0.0625, %v2033_v62  ;;  %v10830_v49 = vld [vmem:[#allocation119_spill] sm:$0xff]  ;;  %v10831_v14 = vld [vmem:[#allocation120_spill] sm:$0xff] }
 0x1d0   :  { %v2041_v12 = vadd.f32 %v1689_v18, %v1688_v0  ;;  %1595 = vadd.xlane.f32.xlu1 %v1594_v15  ;;  %v1287_v57 = vpop.xlane.xlu0 %1286  ;;  %v1290_v34 = vpop.xlane.xlu1 %1289  ;;  %v7587_v39 = vsub.f32 %v10826_v52, %v2186_v63  ;;  %v7590_v0 = vsub.f32 %v10828_v40, %v2186_v63  ;;  %v1396_v50 = vsel %vm1212_vm1, %v10830_v49, 0.0  ;;  %v10832_v52 = vld [vmem:[#allocation34_spill] sm:$0xff] }
 0x1d1   :  { %v2025_v3 = vrot.slane %v2024_v37, 1  ;;  %v1820_v22 = vrot.slane %v1819_v28, 2  ;;  %v1622_v7 = vmul.f32 0.5, %v1287_v57  ;;  %v1623_v20 = vmul.f32 0.5, %v1290_v34 }
 0x1d2   :  { %v2042_v47 = vrot.slane %v2041_v12, 4  ;;  %10827 = vst [vmem:[#allocation33_spill] sm:$0xff] %v7587_v39  ;;  %10829 = vst [vmem:[#allocation37_spill] sm:$0xff] %v7590_v0  ;;  %v1588_v25 = vsel %vm1212_vm1, %v10831_v14, 0.0  ;;  %v2185_v18 = vmul.f32 0.0625, %v1802_v29  ;;  %v2370_v34 = vmul.f32 %v7384_v59, %v7384_v59 }
 0x1d3   :  { %v1810_v53 = vadd.f32 %v1623_v20, %v1622_v7  ;;  %1394 = vadd.xlane.f32.xlu0 %v1393_v5  ;;  %v7599_v63 = vsub.f32 %v10832_v52, %v2218_v17  ;;  %v2026_v62 = vadd.f32 %v2025_v3, %v2024_v37  ;;  %v2501_v49 = vsel %vm1212_vm1, %v2369_v2, 0.0  ;;  %v10836_v3 = vld [vmem:[#allocation35_spill] sm:$0xff] }
 0x1d4   :  { %v2043_v15 = vadd.f32 %v2042_v47, %v2041_v12  ;;  %1397 = vadd.xlane.f32.xlu1 %v1396_v50  ;;  %v1479_v21 = vpop.xlane.xlu0 %1478  ;;  %v1482_v57 = vpop.xlane.xlu1 %1481  ;;  %v1821_v14 = vadd.f32 %v1820_v22, %v1819_v28  ;;  %v2433_v12 = vmul.f32 %v7391_v46, %v7391_v46  ;;  %v2434_v5 = vmul.f32 %v7396_v35, %v7396_v35  ;;  %v10834_v47 = vld [vmem:[#allocation38_spill] sm:$0xff]  ;;  %v10840_v35 = vld [vmem:[#allocation36_spill] sm:$0xff] }
 0x1d5   :  { %10833 = vst [vmem:[#allocation34_spill] sm:$0xff] %v7599_v63  ;;  %v1811_v40 = vrot.slane %v1810_v53, 4  ;;  %v1686_v48 = vmul.f32 0.5, %v1479_v21  ;;  %v1687_v41 = vmul.f32 0.5, %v1482_v57  ;;  %v7607_v50 = vsub.f32 %v10834_v47, %v2218_v17  ;;  %v10838_v57 = vld [vmem:[#allocation39_spill] sm:$0xff] }
 0x1d6   :  { %v2044_v7 = vrot.slane %v2043_v15, 2  ;;  %v7610_v37 = vsub.f32 %v10836_v3, %v2185_v18  ;;  %v2367_v28 = vmul.f32 %v7401_v30, %v7401_v30  ;;  %v7615_v52 = vsub.f32 %v10838_v57, %v2185_v18 }
 0x1d7   :  { %v1812_v29 = vadd.f32 %v1811_v40, %v1810_v53  ;;  %v2034_v20 = vadd.f32 %v1687_v41, %v1686_v48  ;;  %1586 = vadd.xlane.f32.xlu0 %v1585_v11  ;;  %10835 = vst [vmem:[#allocation38_spill] sm:$0xff] %v7607_v50  ;;  %v2217_v59 = vmul.f32 0.0625, %v2026_v62  ;;  %v1822_v17 = vrot.slane %v1821_v14, 1 }
 0x1d8   :  { %10837 = vst [vmem:[#allocation35_spill] sm:$0xff] %v7610_v37  ;;  %v2045_v21 = vadd.f32 %v2044_v7, %v2043_v15  ;;  %1589 = vadd.xlane.f32.xlu1 %v1588_v25  ;;  %v1305_v2 = vpop.xlane.xlu0 %1304  ;;  %v1308_v22 = vpop.xlane.xlu1 %1307  ;;  %10839 = vst [vmem:[#allocation39_spill] sm:$0xff] %v7615_v52  ;;  %v2504_v47 = vsel %vm1212_vm1, %v2370_v34, 0.0  ;;  %v2693_v15 = vsel %vm1212_vm1, %v2433_v12, 0.0  ;;  %v2696_v57 = vsel %vm1212_vm1, %v2434_v5, 0.0  ;;  %v10842_v34 = vld [vmem:[#allocation40_spill] sm:$0xff] }
 0x1d9   :  { %v1813_v53 = vrot.slane %v1812_v29, 2  ;;  %v2035_v48 = vrot.slane %v2034_v20, 4  ;;  %v1628_v41 = vmul.f32 0.5, %v1305_v2  ;;  %v1629_v11 = vmul.f32 0.5, %v1308_v22 }
 0x1da   :  { %v2046_v40 = vrot.slane %v2045_v21, 1  ;;  %v7620_v30 = vsub.f32 %v10840_v35, %v2217_v59  ;;  %v2495_v2 = vsel %vm1212_vm1, %v2367_v28, 0.0  ;;  %v2368_v22 = vmul.f32 %v7404_v60, %v7404_v60 }
 0x1db   :  { %v1814_v25 = vadd.f32 %v1813_v53, %v1812_v29  ;;  %v2036_v7 = vadd.f32 %v2035_v48, %v2034_v20  ;;  %v1831_v3 = vadd.f32 %v1629_v11, %v1628_v41  ;;  %2502 = vadd.xlane.f32.xlu0 %v2501_v49  ;;  %v7627_v46 = vsub.f32 %v10842_v34, %v2217_v59 }
 0x1dc   :  { %10841 = vst [vmem:[#allocation36_spill] sm:$0xff] %v7620_v30  ;;  %2505 = vadd.xlane.f32.xlu1 %v2504_v47  ;;  %v1497_v18 = vpop.xlane.xlu0 %1496  ;;  %v1500_v62 = vpop.xlane.xlu1 %1499  ;;  %v2431_v35 = vmul.f32 %v7411_v16, %v7411_v16  ;;  %v2432_v48 = vmul.f32 %v7414_v23, %v7414_v23  ;;  %v1823_v5 = vadd.f32 %v1822_v17, %v1821_v14  ;;  %v10844_v17 = vld [vmem:[#allocation41_spill] sm:$0xff] }
 0x1dd   :  { %10843 = vst [vmem:[#allocation40_spill] sm:$0xff] %v7627_v46  ;;  %v1815_v12 = vrot.slane %v1814_v25, 1  ;;  %v2037_v29 = vrot.slane %v2036_v7, 2  ;;  %v1832_v20 = vrot.slane %v1831_v3, 4  ;;  %v1692_v49 = vmul.f32 0.5, %v1497_v18 }
 0x1de   :  { %v1693_v53 = vmul.f32 0.5, %v1500_v62  ;;  %v2047_v11 = vadd.f32 %v2046_v40, %v2045_v21  ;;  %v2498_v46 = vsel %vm1212_vm1, %v2368_v22, 0.0  ;;  %v2373_v18 = vmul.f32 %v7423_v9, %v7423_v9  ;;  %v10846_v21 = vld [vmem:[#allocation45_spill] sm:$0xff] }
 0x1df   :  { %v2038_v41 = vadd.f32 %v2037_v29, %v2036_v7  ;;  %v1833_v28 = vadd.f32 %v1832_v20, %v1831_v3  ;;  %2694 = vadd.xlane.f32.xlu0 %v2693_v15  ;;  %v1816_v47 = vadd.f32 %v1815_v12, %v1814_v25  ;;  %v2188_v62 = vmul.f32 0.0625, %v1823_v5 }
 0x1e0   :  { %v2055_v60 = vadd.f32 %v1693_v53, %v1692_v49  ;;  %2697 = vadd.xlane.f32.xlu1 %v2696_v57  ;;  %v1299_v59 = vpop.xlane.xlu0 %1298  ;;  %v1302_v34 = vpop.xlane.xlu1 %1301  ;;  %v2220_v15 = vmul.f32 0.0625, %v2047_v11  ;;  %v2687_v3 = vsel %vm1212_vm1, %v2431_v35, 0.0  ;;  %v2690_v57 = vsel %vm1212_vm1, %v2432_v48, 0.0  ;;  %v10848_v53 = vld [vmem:[#allocation42_spill] sm:$0xff] }
 0x1e1   :  { %v2039_v16 = vrot.slane %v2038_v41, 1  ;;  %v1834_v30 = vrot.slane %v1833_v28, 2  ;;  %v1626_v52 = vmul.f32 0.5, %v1299_v59  ;;  %v1627_v23 = vmul.f32 0.5, %v1302_v34 }
 0x1e2   :  { %v2056_v14 = vrot.slane %v2055_v60, 4  ;;  %v7637_v7 = vsub.f32 %v10844_v17, %v2188_v62  ;;  %v7640_v40 = vsub.f32 %v10846_v21, %v2188_v62  ;;  %v2187_v22 = vmul.f32 0.0625, %v1816_v47  ;;  %v10850_v62 = vld [vmem:[#allocation46_spill] sm:$0xff]  ;;  %v10854_v21 = vld [vmem:[#allocation47_spill] sm:$0xff] }
 0x1e3   :  { %v1824_v25 = vadd.f32 %v1627_v23, %v1626_v52  ;;  %2496 = vadd.xlane.f32.xlu0 %v2495_v2  ;;  %v2374_v49 = vmul.f32 %v7426_v51, %v7426_v51  ;;  %v7647_v5 = vsub.f32 %v10848_v53, %v2220_v15  ;;  %v2040_v59 = vadd.f32 %v2039_v16, %v2038_v41  ;;  %v10852_v16 = vld [vmem:[#allocation43_spill] sm:$0xff] }
 0x1e4   :  { %10845 = vst [vmem:[#allocation41_spill] sm:$0xff] %v7637_v7  ;;  %10847 = vst [vmem:[#allocation45_spill] sm:$0xff] %v7640_v40  ;;  %v2057_v12 = vadd.f32 %v2056_v14, %v2055_v60  ;;  %2499 = vadd.xlane.f32.xlu1 %v2498_v46  ;;  %v1491_v29 = vpop.xlane.xlu0 %1490  ;;  %v1494_v20 = vpop.xlane.xlu1 %1493  ;;  %v2513_v52 = vsel %vm1212_vm1, %v2373_v18, 0.0  ;;  %v1835_v2 = vadd.f32 %v1834_v30, %v1833_v28 }
 0x1e5   :  { %10849 = vst [vmem:[#allocation42_spill] sm:$0xff] %v7647_v5  ;;  %v1825_v34 = vrot.slane %v1824_v25, 4  ;;  %v1690_v11 = vmul.f32 0.5, %v1491_v29  ;;  %v1691_v23 = vmul.f32 0.5, %v1494_v20  ;;  %v2437_v60 = vmul.f32 %v7431_v56, %v7431_v56 }
 0x1e6   :  { %v2058_v35 = vrot.slane %v2057_v12, 2  ;;  %v2438_v46 = vmul.f32 %v7438_v26, %v7438_v26  ;;  %v7655_v14 = vsub.f32 %v10850_v62, %v2220_v15  ;;  %v7658_v41 = vsub.f32 %v10852_v16, %v2187_v22  ;;  %v10856_v16 = vld [vmem:[#allocation44_spill] sm:$0xff] }
 0x1e7   :  { %v1826_v48 = vadd.f32 %v1825_v34, %v1824_v25  ;;  %v2048_v47 = vadd.f32 %v1691_v23, %v1690_v11  ;;  %2688 = vadd.xlane.f32.xlu0 %v2687_v3  ;;  %v2371_v28 = vmul.f32 %v7441_v33, %v7441_v33  ;;  %v7663_v29 = vsub.f32 %v10854_v21, %v2187_v22 }
 0x1e8   :  { %10851 = vst [vmem:[#allocation46_spill] sm:$0xff] %v7655_v14  ;;  %10853 = vst [vmem:[#allocation43_spill] sm:$0xff] %v7658_v41  ;;  %v2059_v17 = vadd.f32 %v2058_v35, %v2057_v12  ;;  %2691 = vadd.xlane.f32.xlu1 %v2690_v57  ;;  %v1317_v18 = vpop.xlane.xlu0 %1316  ;;  %v1320_v30 = vpop.xlane.xlu1 %1319  ;;  %v2219_v20 = vmul.f32 0.0625, %v2040_v59  ;;  %v1836_v15 = vrot.slane %v1835_v2, 1  ;;  %v2516_v23 = vsel %vm1212_vm1, %v2374_v49, 0.0  ;;  %v10858_v49 = vld [vmem:[#allocation48_spill] sm:$0xff] }
 0x1e9   :  { %10855 = vst [vmem:[#allocation47_spill] sm:$0xff] %v7663_v29  ;;  %v1827_v25 = vrot.slane %v1826_v48, 2  ;;  %v2049_v53 = vrot.slane %v2048_v47, 4  ;;  %v1632_v3 = vmul.f32 0.5, %v1317_v18  ;;  %v1633_v34 = vmul.f32 0.5, %v1320_v30 }
 0x1ea   :  { %v2060_v11 = vrot.slane %v2059_v17, 1  ;;  %v2705_v12 = vsel %vm1212_vm1, %v2437_v60, 0.0  ;;  %v7668_v51 = vsub.f32 %v10856_v16, %v2219_v20  ;;  %v2708_v21 = vsel %vm1212_vm1, %v2438_v46, 0.0 }
 0x1eb   :  { %v1828_v57 = vadd.f32 %v1827_v25, %v1826_v48  ;;  %v2050_v35 = vadd.f32 %v2049_v53, %v2048_v47  ;;  %v1845_v62 = vadd.f32 %v1633_v34, %v1632_v3  ;;  %2514 = vadd.xlane.f32.xlu0 %v2513_v52  ;;  %v2507_v18 = vsel %vm1212_vm1, %v2371_v28, 0.0 }
 0x1ec   :  { %10857 = vst [vmem:[#allocation44_spill] sm:$0xff] %v7668_v51  ;;  %2517 = vadd.xlane.f32.xlu1 %v2516_v23  ;;  %v1509_v22 = vpop.xlane.xlu0 %1508  ;;  %v1512_v59 = vpop.xlane.xlu1 %1511  ;;  %v2372_v30 = vmul.f32 %v7444_v45, %v7444_v45  ;;  %v7675_v9 = vsub.f32 %v10858_v49, %v2219_v20  ;;  %v2435_v53 = vmul.f32 %v7451_v42, %v7451_v42 }
 0x1ed   :  { %v1829_v60 = vrot.slane %v1828_v57, 1  ;;  %v2051_v48 = vrot.slane %v2050_v35, 2  ;;  %v1846_v47 = vrot.slane %v1845_v62, 4  ;;  %v1696_v52 = vmul.f32 0.5, %v1509_v22 }
 0x1ee   :  { %10859 = vst [vmem:[#allocation48_spill] sm:$0xff] %v7675_v9  ;;  %v1697_v25 = vmul.f32 0.5, %v1512_v59  ;;  %v2436_v3 = vmul.f32 %v7454_v38, %v7454_v38  ;;  %v1837_v46 = vadd.f32 %v1836_v15, %v1835_v2  ;;  %v2061_v23 = vadd.f32 %v2060_v11, %v2059_v17  ;;  %v10860_v15 = vld [vmem:[#allocation49_spill] sm:$0xff] }
 0x1ef   :  { %v2052_v34 = vadd.f32 %v2051_v48, %v2050_v35  ;;  %v1847_v28 = vadd.f32 %v1846_v47, %v1845_v62  ;;  %2706 = vadd.xlane.f32.xlu0 %v2705_v12  ;;  %v1830_v16 = vadd.f32 %v1829_v60, %v1828_v57  ;;  %v2510_v33 = vsel %vm1212_vm1, %v2372_v30, 0.0  ;;  %v10862_v17 = vld [vmem:[#allocation53_spill] sm:$0xff] }
 0x1f0   :  { %v2069_v45 = vadd.f32 %v1697_v25, %v1696_v52  ;;  %2709 = vadd.xlane.f32.xlu1 %v2708_v21  ;;  %v1311_v20 = vpop.xlane.xlu0 %1310  ;;  %v1314_v49 = vpop.xlane.xlu1 %1313  ;;  %v2377_v22 = vmul.f32 %v7463_v6, %v7463_v6  ;;  %v2190_v59 = vmul.f32 0.0625, %v1837_v46  ;;  %v2222_v12 = vmul.f32 0.0625, %v2061_v23  ;;  %v10864_v25 = vld [vmem:[#allocation50_spill] sm:$0xff] }
 0x1f1   :  { %v2053_v42 = vrot.slane %v2052_v34, 1  ;;  %v1848_v26 = vrot.slane %v1847_v28, 2  ;;  %v1630_v56 = vmul.f32 0.5, %v1311_v20  ;;  %v1631_v38 = vmul.f32 0.5, %v1314_v49 }
 0x1f2   :  { %v2070_v2 = vrot.slane %v2069_v45, 4  ;;  %v7685_v35 = vsub.f32 %v10860_v15, %v2190_v59  ;;  %v7688_v11 = vsub.f32 %v10862_v17, %v2190_v59  ;;  %v2699_v62 = vsel %vm1212_vm1, %v2435_v53, 0.0  ;;  %v10866_v59 = vld [vmem:[#allocation54_spill] sm:$0xff]  ;;  %v10870_v17 = vld [vmem:[#allocation55_spill] sm:$0xff] }
 0x1f3   :  { %v1838_v57 = vadd.f32 %v1631_v38, %v1630_v56  ;;  %2508 = vadd.xlane.f32.xlu0 %v2507_v18  ;;  %v2702_v21 = vsel %vm1212_vm1, %v2436_v3, 0.0  ;;  %v2189_v30 = vmul.f32 0.0625, %v1830_v16  ;;  %v2378_v52 = vmul.f32 %v7466_v13, %v7466_v13 }
 0x1f4   :  { %10861 = vst [vmem:[#allocation49_spill] sm:$0xff] %v7685_v35  ;;  %10863 = vst [vmem:[#allocation53_spill] sm:$0xff] %v7688_v11  ;;  %v2071_v60 = vadd.f32 %v2070_v2, %v2069_v45  ;;  %2511 = vadd.xlane.f32.xlu1 %v2510_v33  ;;  %v1503_v48 = vpop.xlane.xlu0 %1502  ;;  %v1506_v47 = vpop.xlane.xlu1 %1505  ;;  %v7695_v46 = vsub.f32 %v10864_v25, %v2222_v12  ;;  %v2054_v20 = vadd.f32 %v2053_v42, %v2052_v34  ;;  %v10868_v42 = vld [vmem:[#allocation51_spill] sm:$0xff] }
 0x1f5   :  { %v1839_v49 = vrot.slane %v1838_v57, 4  ;;  %v1694_v23 = vmul.f32 0.5, %v1503_v48  ;;  %v1695_v56 = vmul.f32 0.5, %v1506_v47  ;;  %v2525_v38 = vsel %vm1212_vm1, %v2377_v22, 0.0 }
 0x1f6   :  { %10865 = vst [vmem:[#allocation50_spill] sm:$0xff] %v7695_v46  ;;  %v1849_v18 = vadd.f32 %v1848_v26, %v1847_v28  ;;  %v2072_v53 = vrot.slane %v2071_v60, 2  ;;  %v2441_v45 = vmul.f32 %v7471_v31, %v7471_v31  ;;  %v2442_v33 = vmul.f32 %v7478_v61, %v7478_v61  ;;  %v10894_v31 = vld [vmem:[#allocation65_spill] sm:$0xff] }
 0x1f7   :  { %v1840_v3 = vadd.f32 %v1839_v49, %v1838_v57  ;;  %v2062_v16 = vadd.f32 %v1695_v56, %v1694_v23  ;;  %2700 = vadd.xlane.f32.xlu0 %v2699_v62  ;;  %v7703_v2 = vsub.f32 %v10866_v59, %v2222_v12  ;;  %v7706_v34 = vsub.f32 %v10868_v42, %v2189_v30  ;;  %v10872_v42 = vld [vmem:[#allocation52_spill] sm:$0xff] }
 0x1f8   :  { %v2073_v15 = vadd.f32 %v2072_v53, %v2071_v60  ;;  %2703 = vadd.xlane.f32.xlu1 %v2702_v21  ;;  %v1329_v22 = vpop.xlane.xlu0 %1328  ;;  %v1332_v26 = vpop.xlane.xlu1 %1331  ;;  %v2375_v28 = vmul.f32 %v7481_v24, %v7481_v24  ;;  %v7711_v48 = vsub.f32 %v10870_v17, %v2189_v30  ;;  %v2221_v47 = vmul.f32 0.0625, %v2054_v20 }
 0x1f9   :  { %10867 = vst [vmem:[#allocation54_spill] sm:$0xff] %v7703_v2  ;;  %10869 = vst [vmem:[#allocation51_spill] sm:$0xff] %v7706_v34  ;;  %v1841_v57 = vrot.slane %v1840_v3, 2  ;;  %v2063_v25 = vrot.slane %v2062_v16, 4  ;;  %v1636_v62 = vmul.f32 0.5, %v1329_v22  ;;  %v1637_v49 = vmul.f32 0.5, %v1332_v26 }
 0x1fa   :  { %10871 = vst [vmem:[#allocation55_spill] sm:$0xff] %v7711_v48  ;;  %v1850_v12 = vrot.slane %v1849_v18, 1  ;;  %v2074_v23 = vrot.slane %v2073_v15, 1  ;;  %v2528_v56 = vsel %vm1212_vm1, %v2378_v52, 0.0  ;;  %v2376_v21 = vmul.f32 %v7484_v36, %v7484_v36  ;;  %v10874_v52 = vld [vmem:[#allocation56_spill] sm:$0xff] }
 0x1fb   :  { %v1842_v60 = vadd.f32 %v1841_v57, %v1840_v3  ;;  %v2064_v53 = vadd.f32 %v2063_v25, %v2062_v16  ;;  %v1859_v59 = vadd.f32 %v1637_v49, %v1636_v62  ;;  %2526 = vadd.xlane.f32.xlu0 %v2525_v38  ;;  %v7717_v13 = vsub.f32 %v10872_v42, %v2221_v47 }
 0x1fc   :  { %2529 = vadd.xlane.f32.xlu1 %v2528_v56  ;;  %v1521_v30 = vpop.xlane.xlu0 %1520  ;;  %v1524_v20 = vpop.xlane.xlu1 %1523  ;;  %v2717_v22 = vsel %vm1212_vm1, %v2441_v45, 0.0  ;;  %v2720_v26 = vsel %vm1212_vm1, %v2442_v33, 0.0  ;;  %v2519_v17 = vsel %vm1212_vm1, %v2375_v28, 0.0  ;;  %v7723_v6 = vsub.f32 %v10874_v52, %v2221_v47 }
 0x1fd   :  { %10873 = vst [vmem:[#allocation52_spill] sm:$0xff] %v7717_v13  ;;  %v1843_v36 = vrot.slane %v1842_v60, 1  ;;  %v2065_v3 = vrot.slane %v2064_v53, 2  ;;  %v1860_v16 = vrot.slane %v1859_v59, 4  ;;  %v1700_v57 = vmul.f32 0.5, %v1521_v30 }
 0x1fe   :  { %10875 = vst [vmem:[#allocation56_spill] sm:$0xff] %v7723_v6  ;;  %v1701_v38 = vmul.f32 0.5, %v1524_v20  ;;  %v2522_v25 = vsel %vm1212_vm1, %v2376_v21, 0.0  ;;  %v2439_v62 = vmul.f32 %v7491_v55, %v7491_v55  ;;  %v1851_v49 = vadd.f32 %v1850_v12, %v1849_v18 }
 0x1ff   :  { %v2066_v56 = vadd.f32 %v2065_v3, %v2064_v53  ;;  %v1861_v45 = vadd.f32 %v1860_v16, %v1859_v59  ;;  %2718 = vadd.xlane.f32.xlu0 %v2717_v22  ;;  %v2075_v33 = vadd.f32 %v2074_v23, %v2073_v15  ;;  %v1844_v42 = vadd.f32 %v1843_v36, %v1842_v60  ;;  %v10876_v53 = vld [vmem:[#allocation57_spill] sm:$0xff] }
 0x200   :  { %v2083_v28 = vadd.f32 %v1701_v38, %v1700_v57  ;;  %2721 = vadd.xlane.f32.xlu1 %v2720_v26  ;;  %v1323_v47 = vpop.xlane.xlu0 %1322  ;;  %v1326_v52 = vpop.xlane.xlu1 %1325  ;;  %v2440_v24 = vmul.f32 %v7494_v8, %v7494_v8  ;;  %v2381_v30 = vmul.f32 %v7503_v32, %v7503_v32  ;;  %v2192_v21 = vmul.f32 0.0625, %v1851_v49  ;;  %v10878_v36 = vld [vmem:[#allocation61_spill] sm:$0xff]  ;;  %v10880_v38 = vld [vmem:[#allocation58_spill] sm:$0xff] }
 0x201   :  { %v2067_v20 = vrot.slane %v2066_v56, 1  ;;  %v1862_v61 = vrot.slane %v1861_v45, 2  ;;  %v1634_v55 = vmul.f32 0.5, %v1323_v47  ;;  %v1635_v18 = vmul.f32 0.5, %v1326_v52 }
 0x202   :  { %v2084_v12 = vrot.slane %v2083_v28, 4  ;;  %v7733_v59 = vsub.f32 %v10876_v53, %v2192_v21  ;;  %v7736_v15 = vsub.f32 %v10878_v36, %v2192_v21  ;;  %v2224_v23 = vmul.f32 0.0625, %v2075_v33  ;;  %v10882_v33 = vld [vmem:[#allocation62_spill] sm:$0xff] }
 0x203   :  { %v1863_v60 = vadd.f32 %v1862_v61, %v1861_v45  ;;  %v1852_v22 = vadd.f32 %v1635_v18, %v1634_v55  ;;  %2520 = vadd.xlane.f32.xlu0 %v2519_v17  ;;  %v2382_v26 = vmul.f32 %v7506_v4, %v7506_v4  ;;  %v2191_v3 = vmul.f32 0.0625, %v1844_v42 }
 0x204   :  { %10877 = vst [vmem:[#allocation57_spill] sm:$0xff] %v7733_v59  ;;  %10879 = vst [vmem:[#allocation61_spill] sm:$0xff] %v7736_v15  ;;  %v2085_v16 = vadd.f32 %v2084_v12, %v2083_v28  ;;  %2523 = vadd.xlane.f32.xlu1 %v2522_v25  ;;  %v1515_v57 = vpop.xlane.xlu0 %1514  ;;  %v7741_v49 = vsub.f32 %v10880_v38, %v2224_v23  ;;  %v2068_v47 = vadd.f32 %v2067_v20, %v2066_v56  ;;  %v10884_v56 = vld [vmem:[#allocation59_spill] sm:$0xff] }
 0x205   :  { %v1853_v52 = vrot.slane %v1852_v22, 4  ;;  %v1698_v53 = vmul.f32 0.5, %v1515_v57  ;;  %v1518_v32 = vpop.xlane.xlu1 %1517  ;;  %v2711_v21 = vsel %vm1212_vm1, %v2439_v62, 0.0  ;;  %v7745_v61 = vsub.f32 %v10882_v33, %v2224_v23  ;;  %v10886_v23 = vld [vmem:[#allocation63_spill] sm:$0xff] }
 0x206   :  { %10881 = vst [vmem:[#allocation58_spill] sm:$0xff] %v7741_v49  ;;  %v2086_v55 = vrot.slane %v2085_v16, 2  ;;  %v1699_v17 = vmul.f32 0.5, %v1518_v32  ;;  %v2714_v45 = vsel %vm1212_vm1, %v2440_v24, 0.0  ;;  %v2537_v42 = vsel %vm1212_vm1, %v2381_v30, 0.0 }
 0x207   :  { %10883 = vst [vmem:[#allocation62_spill] sm:$0xff] %v7745_v61  ;;  %v1864_v25 = vrot.slane %v1863_v60, 1  ;;  %v1854_v28 = vadd.f32 %v1853_v52, %v1852_v22  ;;  %2712 = vadd.xlane.f32.xlu0 %v2711_v21  ;;  %v2540_v18 = vsel %vm1212_vm1, %v2382_v26, 0.0  ;;  %v7751_v20 = vsub.f32 %v10884_v56, %v2191_v3 }
 0x208   :  { %v2087_v12 = vadd.f32 %v2086_v55, %v2085_v16  ;;  %v2076_v36 = vadd.f32 %v1699_v17, %v1698_v53  ;;  %2715 = vadd.xlane.f32.xlu1 %v2714_v45  ;;  %v1341_v62 = vpop.xlane.xlu0 %1340  ;;  %v7754_v57 = vsub.f32 %v10886_v23, %v2191_v3  ;;  %v2223_v32 = vmul.f32 0.0625, %v2068_v47  ;;  %v10888_v53 = vld [vmem:[#allocation23_spill] sm:$0xff]  ;;  %v10889_v47 = vld [vmem:[#allocation60_spill] sm:$0xff] }
 0x209   :  { %10885 = vst [vmem:[#allocation59_spill] sm:$0xff] %v7751_v20  ;;  %v1855_v38 = vrot.slane %v1854_v28, 2  ;;  %v1640_v24 = vmul.f32 0.5, %v1341_v62  ;;  %v1344_v33 = vpop.xlane.xlu1 %1343  ;;  %v2445_v30 = vmul.f32 %v7511_v1, %v7511_v1  ;;  %v2446_v22 = vmul.f32 %v7518_v54, %v7518_v54  ;;  %v10891_v45 = vld [vmem:[#allocation64_spill] sm:$0xff] }
 0x20a   :  { %10887 = vst [vmem:[#allocation63_spill] sm:$0xff] %v7754_v57  ;;  %v2077_v26 = vrot.slane %v2076_v36, 4  ;;  %v1641_v52 = vmul.f32 0.5, %v1344_v33  ;;  %v2379_v16 = vmul.f32 %v7521_v44, %v7521_v44  ;;  %v2380_v21 = vmul.f32 %v10888_v53, %v10888_v53 }
 0x20b   :  { %v2088_v3 = vrot.slane %v2087_v12, 1  ;;  %v1856_v55 = vadd.f32 %v1855_v38, %v1854_v28  ;;  %2538 = vadd.xlane.f32.xlu0 %v2537_v42  ;;  %v7765_v17 = vsub.f32 %v10889_v47, %v2223_v32  ;;  %v7768_v56 = vsub.f32 %v10891_v45, %v2223_v32 }
 0x20c   :  { %v2078_v62 = vadd.f32 %v2077_v26, %v2076_v36  ;;  %v1873_v23 = vadd.f32 %v1641_v52, %v1640_v24  ;;  %2541 = vadd.xlane.f32.xlu1 %v2540_v18  ;;  %v1533_v4 = vpop.xlane.xlu0 %1532  ;;  %v1865_v33 = vadd.f32 %v1864_v25, %v1863_v60  ;;  %v2729_v1 = vsel %vm1212_vm1, %v2445_v30, 0.0  ;;  %v10893_v36 = vld [vmem:[#allocation20_spill] sm:$0xff] }
 0x20d   :  { %10890 = vst [vmem:[#allocation60_spill] sm:$0xff] %v7765_v17  ;;  %10892 = vst [vmem:[#allocation64_spill] sm:$0xff] %v7768_v56  ;;  %v1857_v8 = vrot.slane %v1856_v55, 1  ;;  %v1704_v54 = vmul.f32 0.5, %v1533_v4  ;;  %v1536_v44 = vpop.xlane.xlu1 %1535  ;;  %v2732_v53 = vsel %vm1212_vm1, %v2446_v22, 0.0  ;;  %v2531_v47 = vsel %vm1212_vm1, %v2379_v16, 0.0 }
 0x20e   :  { %v2079_v28 = vrot.slane %v2078_v62, 2  ;;  %v1874_v42 = vrot.slane %v1873_v23, 4  ;;  %v1705_v38 = vmul.f32 0.5, %v1536_v44  ;;  %v2534_v32 = vsel %vm1212_vm1, %v2380_v21, 0.0  ;;  %v10896_v16 = vld [vmem:[#allocation69_spill] sm:$0xff] }
 0x20f   :  { %2730 = vadd.xlane.f32.xlu0 %v2729_v1  ;;  %v2443_v18 = vmul.f32 %v10893_v36, %v10893_v36  ;;  %v2194_v24 = vmul.f32 0.0625, %v1865_v33  ;;  %v2089_v60 = vadd.f32 %v2088_v3, %v2087_v12  ;;  %v1858_v52 = vadd.f32 %v1857_v8, %v1856_v55  ;;  %v10898_v33 = vld [vmem:[#allocation24_spill] sm:$0xff] }
 0x210   :  { %v2080_v25 = vadd.f32 %v2079_v28, %v2078_v62  ;;  %v1875_v4 = vadd.f32 %v1874_v42, %v1873_v23  ;;  %v2097_v26 = vadd.f32 %v1705_v38, %v1704_v54  ;;  %2733 = vadd.xlane.f32.xlu1 %v2732_v53  ;;  %v1335_v30 = vpop.xlane.xlu0 %1334  ;;  %v2444_v12 = vmul.f32 %v10898_v33, %v10898_v33  ;;  %v10899_v54 = vld [vmem:[#allocation66_spill] sm:$0xff] }
 0x211   :  { %v1638_v22 = vmul.f32 0.5, %v1335_v30  ;;  %v1338_v45 = vpop.xlane.xlu1 %1337  ;;  %v7777_v44 = vsub.f32 %v10894_v31, %v2194_v24  ;;  %v7780_v1 = vsub.f32 %v10896_v16, %v2194_v24  ;;  %v2226_v21 = vmul.f32 0.0625, %v2089_v60  ;;  %v10901_v31 = vld [vmem:[#allocation70_spill] sm:$0xff] }
 0x212   :  { %v1876_v56 = vrot.slane %v1875_v4, 2  ;;  %v2098_v17 = vrot.slane %v2097_v26, 4  ;;  %v1639_v36 = vmul.f32 0.5, %v1338_v45  ;;  %v2081_v3 = vrot.slane %v2080_v25, 1 }
 0x213   :  { %10895 = vst [vmem:[#allocation65_spill] sm:$0xff] %v7777_v44  ;;  %10897 = vst [vmem:[#allocation69_spill] sm:$0xff] %v7780_v1  ;;  %2532 = vadd.xlane.f32.xlu0 %v2531_v47  ;;  %v2385_v8 = vmul.f32 %v7543_v43, %v7543_v43  ;;  %v7787_v53 = vsub.f32 %v10899_v54, %v2226_v21  ;;  %v7790_v55 = vsub.f32 %v10901_v31, %v2226_v21 }
 0x214   :  { %v1877_v62 = vadd.f32 %v1876_v56, %v1875_v4  ;;  %v2099_v23 = vadd.f32 %v2098_v17, %v2097_v26  ;;  %v1866_v28 = vadd.f32 %v1639_v36, %v1638_v22  ;;  %2535 = vadd.xlane.f32.xlu1 %v2534_v32  ;;  %v1527_v42 = vpop.xlane.xlu0 %1526  ;;  %v2193_v38 = vmul.f32 0.0625, %v1858_v52  ;;  %v10903_v36 = vld [vmem:[#allocation67_spill] sm:$0xff] }
 0x215   :  { %10900 = vst [vmem:[#allocation66_spill] sm:$0xff] %v7787_v53  ;;  %10902 = vst [vmem:[#allocation70_spill] sm:$0xff] %v7790_v55  ;;  %v1702_v24 = vmul.f32 0.5, %v1527_v42  ;;  %v1530_v60 = vpop.xlane.xlu1 %1529  ;;  %v2723_v30 = vsel %vm1212_vm1, %v2443_v18, 0.0  ;;  %v2386_v47 = vmul.f32 %v7546_v27, %v7546_v27  ;;  %v2449_v45 = vmul.f32 %v7551_v19, %v7551_v19  ;;  %v10905_v26 = vld [vmem:[#allocation71_spill] sm:$0xff] }
 0x216   :  { %v2100_v16 = vrot.slane %v2099_v23, 2  ;;  %v1867_v54 = vrot.slane %v1866_v28, 4  ;;  %v1703_v21 = vmul.f32 0.5, %v1530_v60  ;;  %v2726_v56 = vsel %vm1212_vm1, %v2444_v12, 0.0 }
 0x217   :  { %v1878_v17 = vrot.slane %v1877_v62, 1  ;;  %2724 = vadd.xlane.f32.xlu0 %v2723_v30  ;;  %v2549_v32 = vsel %vm1212_vm1, %v2385_v8, 0.0  ;;  %v7800_v4 = vsub.f32 %v10903_v36, %v2193_v38  ;;  %v7803_v18 = vsub.f32 %v10905_v26, %v2193_v38 }
 0x218   :  { %v2101_v52 = vadd.f32 %v2100_v16, %v2099_v23  ;;  %v1868_v22 = vadd.f32 %v1867_v54, %v1866_v28  ;;  %v2090_v31 = vadd.f32 %v1703_v21, %v1702_v24  ;;  %2727 = vadd.xlane.f32.xlu1 %v2726_v56  ;;  %v1353_v42 = vpop.xlane.xlu0 %1352  ;;  %v2082_v33 = vadd.f32 %v2081_v3, %v2080_v25  ;;  %v10907_v28 = vld [vmem:[#allocation31_spill] sm:$0xff] }
 0x219   :  { %10904 = vst [vmem:[#allocation67_spill] sm:$0xff] %v7800_v4  ;;  %10906 = vst [vmem:[#allocation71_spill] sm:$0xff] %v7803_v18  ;;  %v1644_v19 = vmul.f32 0.5, %v1353_v42  ;;  %v1356_v60 = vpop.xlane.xlu1 %1355  ;;  %v2552_v12 = vsel %vm1212_vm1, %v2386_v47, 0.0  ;;  %v2741_v30 = vsel %vm1212_vm1, %v2449_v45, 0.0  ;;  %v2450_v8 = vmul.f32 %v7558_v10, %v7558_v10  ;;  %v10908_v42 = vld [vmem:[#allocation68_spill] sm:$0xff] }
 0x21a   :  { %v2102_v36 = vrot.slane %v2101_v52, 1  ;;  %v1869_v27 = vrot.slane %v1868_v22, 2  ;;  %v2091_v43 = vrot.slane %v2090_v31, 4  ;;  %v1645_v38 = vmul.f32 0.5, %v1356_v60 }
 0x21b   :  { %2550 = vadd.xlane.f32.xlu0 %v2549_v32  ;;  %v2383_v23 = vmul.f32 %v7561_v58, %v7561_v58  ;;  %v2384_v25 = vmul.f32 %v10907_v28, %v10907_v28  ;;  %v2225_v3 = vmul.f32 0.0625, %v2082_v33  ;;  %v1879_v24 = vadd.f32 %v1878_v17, %v1877_v62  ;;  %v10910_v32 = vld [vmem:[#allocation72_spill] sm:$0xff]  ;;  %v10914_v17 = vld [vmem:[#allocation77_spill] sm:$0xff] }
 0x21c   :  { %v1870_v16 = vadd.f32 %v1869_v27, %v1868_v22  ;;  %v2092_v47 = vadd.f32 %v2091_v43, %v2090_v31  ;;  %v1887_v54 = vadd.f32 %v1645_v38, %v1644_v19  ;;  %2553 = vadd.xlane.f32.xlu1 %v2552_v12  ;;  %v1545_v45 = vpop.xlane.xlu0 %1544  ;;  %v2103_v21 = vadd.f32 %v2102_v36, %v2101_v52  ;;  %v10912_v19 = vld [vmem:[#allocation73_spill] sm:$0xff] }
 0x21d   :  { %v1708_v56 = vmul.f32 0.5, %v1545_v45  ;;  %v1548_v26 = vpop.xlane.xlu1 %1547  ;;  %v7814_v10 = vsub.f32 %v10908_v42, %v2225_v3  ;;  %v7817_v60 = vsub.f32 %v10910_v32, %v2225_v3  ;;  %v2196_v58 = vmul.f32 0.0625, %v1879_v24  ;;  %v10916_v45 = vld [vmem:[#allocation28_spill] sm:$0xff] }
 0x21e   :  { %v2093_v18 = vrot.slane %v2092_v47, 2  ;;  %v1888_v4 = vrot.slane %v1887_v54, 4  ;;  %v1709_v28 = vmul.f32 0.5, %v1548_v26  ;;  %v2744_v33 = vsel %vm1212_vm1, %v2450_v8, 0.0 }
 0x21f   :  { %10909 = vst [vmem:[#allocation68_spill] sm:$0xff] %v7814_v10  ;;  %10911 = vst [vmem:[#allocation72_spill] sm:$0xff] %v7817_v60  ;;  %v1871_v27 = vrot.slane %v1870_v16, 1  ;;  %2742 = vadd.xlane.f32.xlu0 %v2741_v30  ;;  %v2543_v43 = vsel %vm1212_vm1, %v2383_v23, 0.0  ;;  %v7822_v62 = vsub.f32 %v10912_v19, %v2196_v58  ;;  %v7825_v52 = vsub.f32 %v10914_v17, %v2196_v58  ;;  %v10917_v30 = vld [vmem:[#allocation32_spill] sm:$0xff] }
 0x220   :  { %v2094_v22 = vadd.f32 %v2093_v18, %v2092_v47  ;;  %v1889_v31 = vadd.f32 %v1888_v4, %v1887_v54  ;;  %v2111_v12 = vadd.f32 %v1709_v28, %v1708_v56  ;;  %2745 = vadd.xlane.f32.xlu1 %v2744_v33  ;;  %v1347_v36 = vpop.xlane.xlu0 %1346  ;;  %v2228_v38 = vmul.f32 0.0625, %v2103_v21  ;;  %v10918_v47 = vld [vmem:[#allocation74_spill] sm:$0xff] }
 0x221   :  { %10913 = vst [vmem:[#allocation73_spill] sm:$0xff] %v7822_v62  ;;  %10915 = vst [vmem:[#allocation77_spill] sm:$0xff] %v7825_v52  ;;  %v1642_v3 = vmul.f32 0.5, %v1347_v36  ;;  %v1350_v24 = vpop.xlane.xlu1 %1349  ;;  %v2447_v8 = vmul.f32 %v10916_v45, %v10916_v45  ;;  %v2448_v23 = vmul.f32 %v10917_v30, %v10917_v30  ;;  %v2389_v26 = vmul.f32 %v7587_v39, %v7587_v39  ;;  %v10920_v21 = vld [vmem:[#allocation78_spill] sm:$0xff] }
 0x222   :  { %v1890_v42 = vrot.slane %v1889_v31, 2  ;;  %v2112_v58 = vrot.slane %v2111_v12, 4  ;;  %v1643_v32 = vmul.f32 0.5, %v1350_v24  ;;  %v2546_v4 = vsel %vm1212_vm1, %v2384_v25, 0.0 }
 0x223   :  { %v2095_v18 = vrot.slane %v2094_v22, 1  ;;  %2544 = vadd.xlane.f32.xlu0 %v2543_v43  ;;  %v2390_v28 = vmul.f32 %v7590_v0, %v7590_v0  ;;  %v7837_v54 = vsub.f32 %v10918_v47, %v2228_v38  ;;  %v7840_v56 = vsub.f32 %v10920_v21, %v2228_v38 }
 0x224   :  { %v1891_v33 = vadd.f32 %v1890_v42, %v1889_v31  ;;  %v2113_v19 = vadd.f32 %v2112_v58, %v2111_v12  ;;  %v1880_v17 = vadd.f32 %v1643_v32, %v1642_v3  ;;  %2547 = vadd.xlane.f32.xlu1 %v2546_v4  ;;  %v1539_v36 = vpop.xlane.xlu0 %1538  ;;  %v1872_v30 = vadd.f32 %v1871_v27, %v1870_v16  ;;  %v10922_v32 = vld [vmem:[#allocation75_spill] sm:$0xff] }
 0x225   :  { %10919 = vst [vmem:[#allocation74_spill] sm:$0xff] %v7837_v54  ;;  %10921 = vst [vmem:[#allocation78_spill] sm:$0xff] %v7840_v56  ;;  %v1706_v24 = vmul.f32 0.5, %v1539_v36  ;;  %v1542_v45 = vpop.xlane.xlu1 %1541  ;;  %v2735_v25 = vsel %vm1212_vm1, %v2447_v8, 0.0  ;;  %v2738_v43 = vsel %vm1212_vm1, %v2448_v23, 0.0  ;;  %v2561_v0 = vsel %vm1212_vm1, %v2389_v26, 0.0 }
 0x226   :  { %v1892_v39 = vrot.slane %v1891_v33, 1  ;;  %v2114_v47 = vrot.slane %v2113_v19, 2  ;;  %v1881_v54 = vrot.slane %v1880_v17, 4  ;;  %v1707_v52 = vmul.f32 0.5, %v1542_v45  ;;  %v10924_v45 = vld [vmem:[#allocation79_spill] sm:$0xff] }
 0x227   :  { %2736 = vadd.xlane.f32.xlu0 %v2735_v25  ;;  %v2564_v31 = vsel %vm1212_vm1, %v2390_v28, 0.0  ;;  %v2453_v12 = vmul.f32 %v7599_v63, %v7599_v63  ;;  %v2195_v38 = vmul.f32 0.0625, %v1872_v30  ;;  %v2096_v16 = vadd.f32 %v2095_v18, %v2094_v22 }
 0x228   :  { %v2115_v27 = vadd.f32 %v2114_v47, %v2113_v19  ;;  %v1882_v3 = vadd.f32 %v1881_v54, %v1880_v17  ;;  %v2104_v42 = vadd.f32 %v1707_v52, %v1706_v24  ;;  %2739 = vadd.xlane.f32.xlu1 %v2738_v43  ;;  %v1365_v8 = vpop.xlane.xlu0 %1364  ;;  %v1893_v23 = vadd.f32 %v1892_v39, %v1891_v33  ;;  %v10926_v52 = vld [vmem:[#allocation76_spill] sm:$0xff] }
 0x229   :  { %v1648_v58 = vmul.f32 0.5, %v1365_v8  ;;  %v1368_v26 = vpop.xlane.xlu1 %1367  ;;  %v7849_v4 = vsub.f32 %v10922_v32, %v2195_v38  ;;  %v7852_v21 = vsub.f32 %v10924_v45, %v2195_v38  ;;  %v2227_v28 = vmul.f32 0.0625, %v2096_v16  ;;  %v10928_v54 = vld [vmem:[#allocation80_spill] sm:$0xff] }
 0x22a   :  { %v1883_v36 = vrot.slane %v1882_v3, 2  ;;  %v2105_v25 = vrot.slane %v2104_v42, 4  ;;  %v1649_v63 = vmul.f32 0.5, %v1368_v26  ;;  %v2454_v22 = vmul.f32 %v7607_v50, %v7607_v50  ;;  %v10931_v32 = vld [vmem:[#allocation36_spill] sm:$0xff] }
 0x22b   :  { %10923 = vst [vmem:[#allocation75_spill] sm:$0xff] %v7849_v4  ;;  %10925 = vst [vmem:[#allocation79_spill] sm:$0xff] %v7852_v21  ;;  %v2116_v30 = vrot.slane %v2115_v27, 1  ;;  %2562 = vadd.xlane.f32.xlu0 %v2561_v0  ;;  %v2387_v39 = vmul.f32 %v7610_v37, %v7610_v37  ;;  %v7859_v18 = vsub.f32 %v10926_v52, %v2227_v28  ;;  %v2198_v47 = vmul.f32 0.0625, %v1893_v23  ;;  %v10930_v0 = vld [vmem:[#allocation39_spill] sm:$0xff]  ;;  %v10936_v37 = vld [vmem:[#allocation40_spill] sm:$0xff] }
 0x22c   :  { %v7862_v33 = vsub.f32 %v10928_v54, %v2227_v28  ;;  %v1884_v19 = vadd.f32 %v1883_v36, %v1882_v3  ;;  %v2106_v17 = vadd.f32 %v2105_v25, %v2104_v42  ;;  %v1901_v24 = vadd.f32 %v1649_v63, %v1648_v58  ;;  %2565 = vadd.xlane.f32.xlu1 %v2564_v31  ;;  %v1557_v43 = vpop.xlane.xlu0 %1556  ;;  %v10932_v31 = vld [vmem:[#allocation81_spill] sm:$0xff] }
 0x22d   :  { %10927 = vst [vmem:[#allocation76_spill] sm:$0xff] %v7859_v18  ;;  %v1712_v38 = vmul.f32 0.5, %v1557_v43  ;;  %v1560_v16 = vpop.xlane.xlu1 %1559  ;;  %v2753_v8 = vsel %vm1212_vm1, %v2453_v12, 0.0  ;;  %v2388_v26 = vmul.f32 %v10930_v0, %v10930_v0  ;;  %v2451_v45 = vmul.f32 %v10931_v32, %v10931_v32  ;;  %v10934_v58 = vld [vmem:[#allocation85_spill] sm:$0xff] }
 0x22e   :  { %10929 = vst [vmem:[#allocation80_spill] sm:$0xff] %v7862_v33  ;;  %v2107_v52 = vrot.slane %v2106_v17, 2  ;;  %v1902_v50 = vrot.slane %v1901_v24, 4  ;;  %v1713_v28 = vmul.f32 0.5, %v1560_v16  ;;  %v2756_v3 = vsel %vm1212_vm1, %v2454_v22, 0.0 }
 0x22f   :  { %v1885_v42 = vrot.slane %v1884_v19, 1  ;;  %2754 = vadd.xlane.f32.xlu0 %v2753_v8  ;;  %v2555_v63 = vsel %vm1212_vm1, %v2387_v39, 0.0  ;;  %v7872_v23 = vsub.f32 %v10932_v31, %v2198_v47  ;;  %v7875_v12 = vsub.f32 %v10934_v58, %v2198_v47  ;;  %v10937_v58 = vld [vmem:[#allocation82_spill] sm:$0xff] }
 0x230   :  { %v2108_v36 = vadd.f32 %v2107_v52, %v2106_v17  ;;  %v1903_v25 = vadd.f32 %v1902_v50, %v1901_v24  ;;  %v2125_v54 = vadd.f32 %v1713_v28, %v1712_v38  ;;  %2757 = vadd.xlane.f32.xlu1 %v2756_v3  ;;  %v1359_v43 = vpop.xlane.xlu0 %1358  ;;  %v2117_v32 = vadd.f32 %v2116_v30, %v2115_v27 }
 0x231   :  { %10933 = vst [vmem:[#allocation81_spill] sm:$0xff] %v7872_v23  ;;  %10935 = vst [vmem:[#allocation85_spill] sm:$0xff] %v7875_v12  ;;  %v1646_v0 = vmul.f32 0.5, %v1359_v43  ;;  %v1362_v16 = vpop.xlane.xlu1 %1361  ;;  %v2558_v22 = vsel %vm1212_vm1, %v2388_v26, 0.0  ;;  %v2747_v8 = vsel %vm1212_vm1, %v2451_v45, 0.0  ;;  %v2452_v39 = vmul.f32 %v10936_v37, %v10936_v37 }
 0x232   :  { %v2109_v31 = vrot.slane %v2108_v36, 1  ;;  %v1904_v23 = vrot.slane %v1903_v25, 2  ;;  %v2126_v33 = vrot.slane %v2125_v54, 4  ;;  %v1647_v47 = vmul.f32 0.5, %v1362_v16 }
 0x233   :  { %2556 = vadd.xlane.f32.xlu0 %v2555_v63  ;;  %v2393_v50 = vmul.f32 %v7637_v7, %v7637_v7  ;;  %v2394_v27 = vmul.f32 %v7640_v40, %v7640_v40  ;;  %v2230_v30 = vmul.f32 0.0625, %v2117_v32  ;;  %v1886_v17 = vadd.f32 %v1885_v42, %v1884_v19  ;;  %v10939_v63 = vld [vmem:[#allocation86_spill] sm:$0xff] }
 0x234   :  { %v1905_v24 = vadd.f32 %v1904_v23, %v1903_v25  ;;  %v2127_v38 = vadd.f32 %v2126_v33, %v2125_v54  ;;  %v1894_v26 = vadd.f32 %v1647_v47, %v1646_v0  ;;  %2559 = vadd.xlane.f32.xlu1 %v2558_v22  ;;  %v1551_v45 = vpop.xlane.xlu0 %1550  ;;  %v2110_v52 = vadd.f32 %v2109_v31, %v2108_v36  ;;  %v10941_v0 = vld [vmem:[#allocation83_spill] sm:$0xff] }
 0x235   :  { %v1710_v28 = vmul.f32 0.5, %v1551_v45  ;;  %v1554_v3 = vpop.xlane.xlu1 %1553  ;;  %v7886_v43 = vsub.f32 %v10937_v58, %v2230_v30  ;;  %v7889_v16 = vsub.f32 %v10939_v63, %v2230_v30  ;;  %v2197_v37 = vmul.f32 0.0625, %v1886_v17  ;;  %v10943_v23 = vld [vmem:[#allocation87_spill] sm:$0xff] }
 0x236   :  { %v2128_v7 = vrot.slane %v2127_v38, 2  ;;  %v1895_v12 = vrot.slane %v1894_v26, 4  ;;  %v1711_v40 = vmul.f32 0.5, %v1554_v3  ;;  %v2750_v19 = vsel %vm1212_vm1, %v2452_v39, 0.0 }
 0x237   :  { %10938 = vst [vmem:[#allocation82_spill] sm:$0xff] %v7886_v43  ;;  %10940 = vst [vmem:[#allocation86_spill] sm:$0xff] %v7889_v16  ;;  %v1906_v32 = vrot.slane %v1905_v24, 1  ;;  %2748 = vadd.xlane.f32.xlu0 %v2747_v8  ;;  %v2573_v33 = vsel %vm1212_vm1, %v2393_v50, 0.0  ;;  %v7894_v42 = vsub.f32 %v10941_v0, %v2197_v37  ;;  %v7897_v36 = vsub.f32 %v10943_v23, %v2197_v37 }
 0x238   :  { %v2129_v25 = vadd.f32 %v2128_v7, %v2127_v38  ;;  %v1896_v54 = vadd.f32 %v1895_v12, %v1894_v26  ;;  %v2118_v22 = vadd.f32 %v1711_v40, %v1710_v28  ;;  %2751 = vadd.xlane.f32.xlu1 %v2750_v19  ;;  %v1377_v31 = vpop.xlane.xlu0 %1376  ;;  %v2229_v47 = vmul.f32 0.0625, %v2110_v52  ;;  %v10945_v38 = vld [vmem:[#allocation84_spill] sm:$0xff] }
 0x239   :  { %10942 = vst [vmem:[#allocation83_spill] sm:$0xff] %v7894_v42  ;;  %10944 = vst [vmem:[#allocation87_spill] sm:$0xff] %v7897_v36  ;;  %v1652_v30 = vmul.f32 0.5, %v1377_v31  ;;  %v1380_v17 = vpop.xlane.xlu1 %1379  ;;  %v2576_v39 = vsel %vm1212_vm1, %v2394_v27, 0.0  ;;  %v2457_v8 = vmul.f32 %v7647_v5, %v7647_v5  ;;  %v2458_v50 = vmul.f32 %v7655_v14, %v7655_v14  ;;  %v10947_v27 = vld [vmem:[#allocation88_spill] sm:$0xff] }
 0x23a   :  { %v1897_v45 = vrot.slane %v1896_v54, 2  ;;  %v2119_v3 = vrot.slane %v2118_v22, 4  ;;  %v1653_v37 = vmul.f32 0.5, %v1380_v17  ;;  %v2391_v7 = vmul.f32 %v7658_v41, %v7658_v41 }
 0x23b   :  { %v2130_v40 = vrot.slane %v2129_v25, 1  ;;  %2574 = vadd.xlane.f32.xlu0 %v2573_v33  ;;  %v2392_v12 = vmul.f32 %v7663_v29, %v7663_v29  ;;  %v7909_v26 = vsub.f32 %v10945_v38, %v2229_v47  ;;  %v7912_v52 = vsub.f32 %v10947_v27, %v2229_v47 }
 0x23c   :  { %v1898_v28 = vadd.f32 %v1897_v45, %v1896_v54  ;;  %v2120_v58 = vadd.f32 %v2119_v3, %v2118_v22  ;;  %v1915_v63 = vadd.f32 %v1653_v37, %v1652_v30  ;;  %2577 = vadd.xlane.f32.xlu1 %v2576_v39  ;;  %v1569_v19 = vpop.xlane.xlu0 %1568  ;;  %v1907_v0 = vadd.f32 %v1906_v32, %v1905_v24 }
 0x23d   :  { %10946 = vst [vmem:[#allocation84_spill] sm:$0xff] %v7909_v26  ;;  %10948 = vst [vmem:[#allocation88_spill] sm:$0xff] %v7912_v52  ;;  %v1716_v23 = vmul.f32 0.5, %v1569_v19  ;;  %v1572_v31 = vpop.xlane.xlu1 %1571  ;;  %v2765_v17 = vsel %vm1212_vm1, %v2457_v8, 0.0  ;;  %v2768_v33 = vsel %vm1212_vm1, %v2458_v50, 0.0  ;;  %v2567_v47 = vsel %vm1212_vm1, %v2391_v7, 0.0 }
 0x23e   :  { %v1899_v14 = vrot.slane %v1898_v28, 1  ;;  %v2121_v5 = vrot.slane %v2120_v58, 2  ;;  %v1916_v29 = vrot.slane %v1915_v63, 4  ;;  %v1717_v38 = vmul.f32 0.5, %v1572_v31  ;;  %v10949_v50 = vld [vmem:[#allocation89_spill] sm:$0xff] }
 0x23f   :  { %2766 = vadd.xlane.f32.xlu0 %v2765_v17  ;;  %v2570_v54 = vsel %vm1212_vm1, %v2392_v12, 0.0  ;;  %v2200_v22 = vmul.f32 0.0625, %v1907_v0  ;;  %v2131_v30 = vadd.f32 %v2130_v40, %v2129_v25  ;;  %v10951_v19 = vld [vmem:[#allocation93_spill] sm:$0xff]  ;;  %v10953_v25 = vld [vmem:[#allocation90_spill] sm:$0xff] }
 0x240   :  { %v2122_v39 = vadd.f32 %v2121_v5, %v2120_v58  ;;  %v1917_v45 = vadd.f32 %v1916_v29, %v1915_v63  ;;  %v2139_v24 = vadd.f32 %v1717_v38, %v1716_v23  ;;  %2769 = vadd.xlane.f32.xlu1 %v2768_v33  ;;  %v1371_v32 = vpop.xlane.xlu0 %1370  ;;  %v1900_v3 = vadd.f32 %v1899_v14, %v1898_v28  ;;  %v10955_v28 = vld [vmem:[#allocation94_spill] sm:$0xff] }
 0x241   :  { %v1650_v8 = vmul.f32 0.5, %v1371_v32  ;;  %v1374_v37 = vpop.xlane.xlu1 %1373  ;;  %v7919_v27 = vsub.f32 %v10949_v50, %v2200_v22  ;;  %v7922_v31 = vsub.f32 %v10951_v19, %v2200_v22  ;;  %v2232_v17 = vmul.f32 0.0625, %v2131_v30 }
 0x242   :  { %v1918_v7 = vrot.slane %v1917_v45, 2  ;;  %v2140_v41 = vrot.slane %v2139_v24, 4  ;;  %v1651_v12 = vmul.f32 0.5, %v1374_v37  ;;  %v2455_v5 = vmul.f32 %v7668_v51, %v7668_v51 }
 0x243   :  { %10950 = vst [vmem:[#allocation89_spill] sm:$0xff] %v7919_v27  ;;  %10952 = vst [vmem:[#allocation93_spill] sm:$0xff] %v7922_v31  ;;  %v2123_v29 = vrot.slane %v2122_v39, 1  ;;  %2568 = vadd.xlane.f32.xlu0 %v2567_v47  ;;  %v2456_v14 = vmul.f32 %v7675_v9, %v7675_v9  ;;  %v7929_v40 = vsub.f32 %v10953_v25, %v2232_v17  ;;  %v2199_v38 = vmul.f32 0.0625, %v1900_v3 }
 0x244   :  { %v7932_v58 = vsub.f32 %v10955_v28, %v2232_v17  ;;  %v1919_v63 = vadd.f32 %v1918_v7, %v1917_v45  ;;  %v2141_v0 = vadd.f32 %v2140_v41, %v2139_v24  ;;  %v1908_v23 = vadd.f32 %v1651_v12, %v1650_v8  ;;  %2571 = vadd.xlane.f32.xlu1 %v2570_v54  ;;  %v1563_v33 = vpop.xlane.xlu0 %1562  ;;  %v10957_v24 = vld [vmem:[#allocation91_spill] sm:$0xff] }
 0x245   :  { %10954 = vst [vmem:[#allocation90_spill] sm:$0xff] %v7929_v40  ;;  %v1714_v22 = vmul.f32 0.5, %v1563_v33  ;;  %v1566_v30 = vpop.xlane.xlu1 %1565  ;;  %v2397_v47 = vmul.f32 %v7685_v35, %v7685_v35  ;;  %v2398_v32 = vmul.f32 %v7688_v11, %v7688_v11  ;;  %v2461_v37 = vmul.f32 %v7695_v46, %v7695_v46  ;;  %v10959_v8 = vld [vmem:[#allocation95_spill] sm:$0xff] }
 0x246   :  { %10956 = vst [vmem:[#allocation94_spill] sm:$0xff] %v7932_v58  ;;  %v2142_v50 = vrot.slane %v2141_v0, 2  ;;  %v1909_v19 = vrot.slane %v1908_v23, 4  ;;  %v1715_v17 = vmul.f32 0.5, %v1566_v30  ;;  %v2759_v41 = vsel %vm1212_vm1, %v2455_v5, 0.0 }
 0x247   :  { %v1920_v45 = vrot.slane %v1919_v63, 1  ;;  %2760 = vadd.xlane.f32.xlu0 %v2759_v41  ;;  %v2762_v54 = vsel %vm1212_vm1, %v2456_v14, 0.0  ;;  %v7943_v3 = vsub.f32 %v10957_v24, %v2199_v38  ;;  %v7946_v7 = vsub.f32 %v10959_v8, %v2199_v38  ;;  %v10963_v8 = vld [vmem:[#allocation96_spill] sm:$0xff] }
 0x248   :  { %v2143_v12 = vadd.f32 %v2142_v50, %v2141_v0  ;;  %v1910_v25 = vadd.f32 %v1909_v19, %v1908_v23  ;;  %v2132_v28 = vadd.f32 %v1715_v17, %v1714_v22  ;;  %2763 = vadd.xlane.f32.xlu1 %v2762_v54  ;;  %v1389_v33 = vpop.xlane.xlu0 %1388  ;;  %v2124_v9 = vadd.f32 %v2123_v29, %v2122_v39  ;;  %v10961_v17 = vld [vmem:[#allocation92_spill] sm:$0xff] }
 0x249   :  { %10958 = vst [vmem:[#allocation91_spill] sm:$0xff] %v7943_v3  ;;  %10960 = vst [vmem:[#allocation95_spill] sm:$0xff] %v7946_v7  ;;  %v1656_v51 = vmul.f32 0.5, %v1389_v33  ;;  %v1392_v30 = vpop.xlane.xlu1 %1391  ;;  %v2585_v5 = vsel %vm1212_vm1, %v2397_v47, 0.0  ;;  %v2588_v41 = vsel %vm1212_vm1, %v2398_v32, 0.0  ;;  %v2777_v14 = vsel %vm1212_vm1, %v2461_v37, 0.0 }
 0x24a   :  { %v2144_v46 = vrot.slane %v2143_v12, 1  ;;  %v1911_v24 = vrot.slane %v1910_v25, 2  ;;  %v2133_v11 = vrot.slane %v2132_v28, 4  ;;  %v1657_v35 = vmul.f32 0.5, %v1392_v30 }
 0x24b   :  { %2586 = vadd.xlane.f32.xlu0 %v2585_v5  ;;  %v2462_v0 = vmul.f32 %v7703_v2, %v7703_v2  ;;  %v2395_v23 = vmul.f32 %v7706_v34, %v7706_v34  ;;  %v2231_v39 = vmul.f32 0.0625, %v2124_v9  ;;  %v1921_v29 = vadd.f32 %v1920_v45, %v1919_v63  ;;  %v10967_v63 = vld [vmem:[#allocation101_spill] sm:$0xff] }
 0x24c   :  { %v1912_v38 = vadd.f32 %v1911_v24, %v1910_v25  ;;  %v2134_v22 = vadd.f32 %v2133_v11, %v2132_v28  ;;  %v1929_v47 = vadd.f32 %v1657_v35, %v1656_v51  ;;  %2589 = vadd.xlane.f32.xlu1 %v2588_v41  ;;  %v1581_v32 = vpop.xlane.xlu0 %1580  ;;  %v2145_v50 = vadd.f32 %v2144_v46, %v2143_v12  ;;  %v10965_v35 = vld [vmem:[#allocation97_spill] sm:$0xff] }
 0x24d   :  { %v1720_v37 = vmul.f32 0.5, %v1581_v32  ;;  %v1584_v19 = vpop.xlane.xlu1 %1583  ;;  %v7956_v54 = vsub.f32 %v10961_v17, %v2231_v39  ;;  %v7959_v33 = vsub.f32 %v10963_v8, %v2231_v39  ;;  %v2202_v30 = vmul.f32 0.0625, %v1921_v29 }
 0x24e   :  { %v2135_v5 = vrot.slane %v2134_v22, 2  ;;  %v1930_v2 = vrot.slane %v1929_v47, 4  ;;  %v1721_v34 = vmul.f32 0.5, %v1584_v19  ;;  %v2396_v9 = vmul.f32 %v7711_v48, %v7711_v48 }
 0x24f   :  { %10962 = vst [vmem:[#allocation92_spill] sm:$0xff] %v7956_v54  ;;  %10964 = vst [vmem:[#allocation96_spill] sm:$0xff] %v7959_v33  ;;  %v1913_v11 = vrot.slane %v1912_v38, 1  ;;  %2778 = vadd.xlane.f32.xlu0 %v2777_v14  ;;  %v2780_v51 = vsel %vm1212_vm1, %v2462_v0, 0.0  ;;  %v7965_v46 = vsub.f32 %v10965_v35, %v2202_v30  ;;  %v7968_v45 = vsub.f32 %v10967_v63, %v2202_v30 }
 0x250   :  { %v2136_v12 = vadd.f32 %v2135_v5, %v2134_v22  ;;  %v1931_v25 = vadd.f32 %v1930_v2, %v1929_v47  ;;  %v2153_v28 = vadd.f32 %v1721_v34, %v1720_v37  ;;  %2781 = vadd.xlane.f32.xlu1 %v2780_v51  ;;  %v1383_v41 = vpop.xlane.xlu0 %1382  ;;  %v2234_v24 = vmul.f32 0.0625, %v2145_v50  ;;  %v10969_v47 = vld [vmem:[#allocation98_spill] sm:$0xff] }
 0x251   :  { %10966 = vst [vmem:[#allocation97_spill] sm:$0xff] %v7965_v46  ;;  %10968 = vst [vmem:[#allocation101_spill] sm:$0xff] %v7968_v45  ;;  %v1654_v39 = vmul.f32 0.5, %v1383_v41  ;;  %v1386_v29 = vpop.xlane.xlu1 %1385  ;;  %v2579_v32 = vsel %vm1212_vm1, %v2395_v23, 0.0  ;;  %v2459_v14 = vmul.f32 %v7717_v13, %v7717_v13  ;;  %v2460_v0 = vmul.f32 %v7723_v6, %v7723_v6  ;;  %v10971_v23 = vld [vmem:[#allocation102_spill] sm:$0xff] }
 0x252   :  { %v1932_v19 = vrot.slane %v1931_v25, 2  ;;  %v2154_v17 = vrot.slane %v2153_v28, 4  ;;  %v1655_v8 = vmul.f32 0.5, %v1386_v29  ;;  %v2582_v22 = vsel %vm1212_vm1, %v2396_v9, 0.0 }
 0x253   :  { %v2137_v2 = vrot.slane %v2136_v12, 1  ;;  %2580 = vadd.xlane.f32.xlu0 %v2579_v32  ;;  %v2401_v34 = vmul.f32 %v7733_v59, %v7733_v59  ;;  %v7979_v50 = vsub.f32 %v10969_v47, %v2234_v24  ;;  %v7982_v37 = vsub.f32 %v10971_v23, %v2234_v24  ;;  %v10973_v23 = vld [vmem:[#allocation99_spill] sm:$0xff] }
 0x254   :  { %v1933_v30 = vadd.f32 %v1932_v19, %v1931_v25  ;;  %v2155_v5 = vadd.f32 %v2154_v17, %v2153_v28  ;;  %v1922_v51 = vadd.f32 %v1655_v8, %v1654_v39  ;;  %2583 = vadd.xlane.f32.xlu1 %v2582_v22  ;;  %v1575_v35 = vpop.xlane.xlu0 %1574  ;;  %v1914_v63 = vadd.f32 %v1913_v11, %v1912_v38 }
 0x255   :  { %10970 = vst [vmem:[#allocation98_spill] sm:$0xff] %v7979_v50  ;;  %10972 = vst [vmem:[#allocation102_spill] sm:$0xff] %v7982_v37  ;;  %v1718_v41 = vmul.f32 0.5, %v1575_v35  ;;  %v1578_v29 = vpop.xlane.xlu1 %1577  ;;  %v2771_v9 = vsel %vm1212_vm1, %v2459_v14, 0.0  ;;  %v2774_v32 = vsel %vm1212_vm1, %v2460_v0, 0.0  ;;  %v2402_v6 = vmul.f32 %v7736_v15, %v7736_v15 }
 0x256   :  { %v1934_v47 = vrot.slane %v1933_v30, 1  ;;  %v2156_v13 = vrot.slane %v2155_v5, 2  ;;  %v1923_v48 = vrot.slane %v1922_v51, 4  ;;  %v1719_v24 = vmul.f32 0.5, %v1578_v29  ;;  %v10975_v29 = vld [vmem:[#allocation103_spill] sm:$0xff] }
 0x257   :  { %2772 = vadd.xlane.f32.xlu0 %v2771_v9  ;;  %v2597_v25 = vsel %vm1212_vm1, %v2401_v34, 0.0  ;;  %v2465_v28 = vmul.f32 %v7741_v49, %v7741_v49  ;;  %v2201_v38 = vmul.f32 0.0625, %v1914_v63  ;;  %v2138_v11 = vadd.f32 %v2137_v2, %v2136_v12  ;;  %v10977_v2 = vld [vmem:[#allocation100_spill] sm:$0xff] }
 0x258   :  { %v2157_v39 = vadd.f32 %v2156_v13, %v2155_v5  ;;  %v1924_v19 = vadd.f32 %v1923_v48, %v1922_v51  ;;  %v2146_v14 = vadd.f32 %v1719_v24, %v1718_v41  ;;  %2775 = vadd.xlane.f32.xlu1 %v2774_v32  ;;  %v1401_v0 = vpop.xlane.xlu0 %1400  ;;  %v1935_v17 = vadd.f32 %v1934_v47, %v1933_v30  ;;  %v10979_v5 = vld [vmem:[#allocation104_spill] sm:$0xff] }
 0x259   :  { %v1660_v8 = vmul.f32 0.5, %v1401_v0  ;;  %v1404_v22 = vpop.xlane.xlu1 %1403  ;;  %v7992_v35 = vsub.f32 %v10973_v23, %v2201_v38  ;;  %v7995_v9 = vsub.f32 %v10975_v29, %v2201_v38  ;;  %v2233_v34 = vmul.f32 0.0625, %v2138_v11 }
 0x25a   :  { %v1925_v15 = vrot.slane %v1924_v19, 2  ;;  %v2147_v59 = vrot.slane %v2146_v14, 4  ;;  %v1661_v49 = vmul.f32 0.5, %v1404_v22  ;;  %v2466_v13 = vmul.f32 %v7745_v61, %v7745_v61 }
 0x25b   :  { %10974 = vst [vmem:[#allocation99_spill] sm:$0xff] %v7992_v35  ;;  %10976 = vst [vmem:[#allocation103_spill] sm:$0xff] %v7995_v9  ;;  %v2158_v48 = vrot.slane %v2157_v39, 1  ;;  %2598 = vadd.xlane.f32.xlu0 %v2597_v25  ;;  %v2600_v12 = vsel %vm1212_vm1, %v2402_v6, 0.0  ;;  %v8001_v30 = vsub.f32 %v10977_v2, %v2233_v34  ;;  %v8004_v51 = vsub.f32 %v10979_v5, %v2233_v34 }
 0x25c   :  { %v1926_v63 = vadd.f32 %v1925_v15, %v1924_v19  ;;  %v2148_v41 = vadd.f32 %v2147_v59, %v2146_v14  ;;  %v1943_v32 = vadd.f32 %v1661_v49, %v1660_v8  ;;  %2601 = vadd.xlane.f32.xlu1 %v2600_v12  ;;  %v1593_v47 = vpop.xlane.xlu0 %1592  ;;  %v2204_v24 = vmul.f32 0.0625, %v1935_v17  ;;  %v10981_v49 = vld [vmem:[#allocation60_spill] sm:$0xff]  ;;  %v10982_v14 = vld [vmem:[#allocation105_spill] sm:$0xff] }
 0x25d   :  { %10978 = vst [vmem:[#allocation100_spill] sm:$0xff] %v8001_v30  ;;  %10980 = vst [vmem:[#allocation104_spill] sm:$0xff] %v8004_v51  ;;  %v1724_v38 = vmul.f32 0.5, %v1593_v47  ;;  %v1596_v11 = vpop.xlane.xlu1 %1595  ;;  %v2789_v0 = vsel %vm1212_vm1, %v2465_v28, 0.0  ;;  %v2399_v25 = vmul.f32 %v7751_v20, %v7751_v20  ;;  %v2400_v6 = vmul.f32 %v7754_v57, %v7754_v57  ;;  %v10984_v28 = vld [vmem:[#allocation109_spill] sm:$0xff]  ;;  %v10986_v57 = vld [vmem:[#allocation64_spill] sm:$0xff] }
 0x25e   :  { %v2149_v22 = vrot.slane %v2148_v41, 2  ;;  %v1944_v23 = vrot.slane %v1943_v32, 4  ;;  %v1725_v29 = vmul.f32 0.5, %v1596_v11  ;;  %v2792_v15 = vsel %vm1212_vm1, %v2466_v13, 0.0 }
 0x25f   :  { %v1927_v59 = vrot.slane %v1926_v63, 1  ;;  %2790 = vadd.xlane.f32.xlu0 %v2789_v0  ;;  %v2463_v19 = vmul.f32 %v10981_v49, %v10981_v49  ;;  %v8015_v17 = vsub.f32 %v10982_v14, %v2204_v24  ;;  %v8018_v8 = vsub.f32 %v10984_v28, %v2204_v24  ;;  %v10987_v28 = vld [vmem:[#allocation106_spill] sm:$0xff] }
 0x260   :  { %v2150_v34 = vadd.f32 %v2149_v22, %v2148_v41  ;;  %v1945_v12 = vadd.f32 %v1944_v23, %v1943_v32  ;;  %v2167_v2 = vadd.f32 %v1725_v29, %v1724_v38  ;;  %2793 = vadd.xlane.f32.xlu1 %v2792_v15  ;;  %v1395_v5 = vpop.xlane.xlu0 %1394  ;;  %v2159_v47 = vadd.f32 %v2158_v48, %v2157_v39 }
 0x261   :  { %10983 = vst [vmem:[#allocation105_spill] sm:$0xff] %v8015_v17  ;;  %10985 = vst [vmem:[#allocation109_spill] sm:$0xff] %v8018_v8  ;;  %v1658_v11 = vmul.f32 0.5, %v1395_v5  ;;  %v1398_v61 = vpop.xlane.xlu1 %1397  ;;  %v2591_v13 = vsel %vm1212_vm1, %v2399_v25, 0.0  ;;  %v2594_v0 = vsel %vm1212_vm1, %v2400_v6, 0.0  ;;  %v2464_v49 = vmul.f32 %v10986_v57, %v10986_v57 }
 0x262   :  { %v2151_v14 = vrot.slane %v2150_v34, 1  ;;  %v1946_v20 = vrot.slane %v1945_v12, 2  ;;  %v2168_v17 = vrot.slane %v2167_v2, 4  ;;  %v1659_v24 = vmul.f32 0.5, %v1398_v61  ;;  %v10989_v61 = vld [vmem:[#allocation110_spill] sm:$0xff] }
 0x263   :  { %2592 = vadd.xlane.f32.xlu0 %v2591_v13  ;;  %v2783_v41 = vsel %vm1212_vm1, %v2463_v19, 0.0  ;;  %v2405_v32 = vmul.f32 %v7777_v44, %v7777_v44  ;;  %v2236_v39 = vmul.f32 0.0625, %v2159_v47  ;;  %v1928_v48 = vadd.f32 %v1927_v59, %v1926_v63 }
 0x264   :  { %v1947_v38 = vadd.f32 %v1946_v20, %v1945_v12  ;;  %v2169_v22 = vadd.f32 %v2168_v17, %v2167_v2  ;;  %v1936_v25 = vadd.f32 %v1659_v24, %v1658_v11  ;;  %2595 = vadd.xlane.f32.xlu1 %v2594_v0  ;;  %v1587_v6 = vpop.xlane.xlu0 %1586  ;;  %v2152_v23 = vadd.f32 %v2151_v14, %v2150_v34  ;;  %v10991_v17 = vld [vmem:[#allocation107_spill] sm:$0xff] }
 0x265   :  { %v1722_v29 = vmul.f32 0.5, %v1587_v6  ;;  %v1590_v15 = vpop.xlane.xlu1 %1589  ;;  %v8028_v5 = vsub.f32 %v10987_v28, %v2236_v39  ;;  %v8031_v13 = vsub.f32 %v10989_v61, %v2236_v39  ;;  %v2203_v19 = vmul.f32 0.0625, %v1928_v48  ;;  %v10993_v12 = vld [vmem:[#allocation111_spill] sm:$0xff] }
 0x266   :  { %v2170_v57 = vrot.slane %v2169_v22, 2  ;;  %v1937_v8 = vrot.slane %v1936_v25, 4  ;;  %v1723_v44 = vmul.f32 0.5, %v1590_v15  ;;  %v2786_v63 = vsel %vm1212_vm1, %v2464_v49, 0.0 }
 0x267   :  { %10988 = vst [vmem:[#allocation106_spill] sm:$0xff] %v8028_v5  ;;  %10990 = vst [vmem:[#allocation110_spill] sm:$0xff] %v8031_v13  ;;  %v1948_v20 = vrot.slane %v1947_v38, 1  ;;  %2784 = vadd.xlane.f32.xlu0 %v2783_v41  ;;  %v2406_v59 = vmul.f32 %v7780_v1, %v7780_v1  ;;  %v8037_v34 = vsub.f32 %v10991_v17, %v2203_v19  ;;  %v2235_v24 = vmul.f32 0.0625, %v2152_v23 }
 0x268   :  { %v8040_v2 = vsub.f32 %v10993_v12, %v2203_v19  ;;  %v2171_v47 = vadd.f32 %v2170_v57, %v2169_v22  ;;  %v1938_v11 = vadd.f32 %v1937_v8, %v1936_v25  ;;  %v2160_v0 = vadd.f32 %v1723_v44, %v1722_v29  ;;  %2787 = vadd.xlane.f32.xlu1 %v2786_v63  ;;  %v2503_v14 = vpop.xlane.xlu0 %2502  ;;  %v10995_v44 = vld [vmem:[#allocation108_spill] sm:$0xff] }
 0x269   :  { %10992 = vst [vmem:[#allocation107_spill] sm:$0xff] %v8037_v34  ;;  %v2881_v39 = vmul.f32 0.5, %v2503_v14  ;;  %v2506_v48 = vpop.xlane.xlu1 %2505  ;;  %v2609_v49 = vsel %vm1212_vm1, %v2405_v32, 0.0  ;;  %v2469_v41 = vmul.f32 %v7787_v53, %v7787_v53  ;;  %v2470_v61 = vmul.f32 %v7790_v55, %v7790_v55  ;;  %v10997_v22 = vld [vmem:[#allocation112_spill] sm:$0xff] }
 0x26a   :  { %10994 = vst [vmem:[#allocation111_spill] sm:$0xff] %v8040_v2  ;;  %v1939_v6 = vrot.slane %v1938_v11, 2  ;;  %v2161_v15 = vrot.slane %v2160_v0, 4  ;;  %v2882_v28 = vmul.f32 0.5, %v2506_v48  ;;  %v2172_v19 = vrot.slane %v2171_v47, 1 }
 0x26b   :  { %2610 = vadd.xlane.f32.xlu0 %v2609_v49  ;;  %v2612_v57 = vsel %vm1212_vm1, %v2406_v59, 0.0  ;;  %v8049_v8 = vsub.f32 %v10995_v44, %v2235_v24  ;;  %v8052_v25 = vsub.f32 %v10997_v22, %v2235_v24  ;;  %v1949_v17 = vadd.f32 %v1948_v20, %v1947_v38  ;;  %v10999_v44 = vld [vmem:[#allocation67_spill] sm:$0xff] }
 0x26c   :  { %v1940_v32 = vadd.f32 %v1939_v6, %v1938_v11  ;;  %v2162_v23 = vadd.f32 %v2161_v15, %v2160_v0  ;;  %v8054_v29 = vadd.f32 %v2882_v28, %v2881_v39  ;;  %2613 = vadd.xlane.f32.xlu1 %v2612_v57  ;;  %v2695_v63 = vpop.xlane.xlu0 %2694  ;;  %v2801_v48 = vsel %vm1212_vm1, %v2469_v41, 0.0  ;;  %v11000_v11 = vld [vmem:[#allocation71_spill] sm:$0xff]  ;;  %v11001_v57 = vld [vmem:[#allocation113_spill] sm:$0xff] }
 0x26d   :  { %10996 = vst [vmem:[#allocation108_spill] sm:$0xff] %v8049_v8  ;;  %10998 = vst [vmem:[#allocation112_spill] sm:$0xff] %v8052_v25  ;;  %v2945_v12 = vmul.f32 0.5, %v2695_v63  ;;  %v2698_v14 = vpop.xlane.xlu1 %2697  ;;  %v2804_v59 = vsel %vm1212_vm1, %v2470_v61, 0.0  ;;  %v2403_v53 = vmul.f32 %v10999_v44, %v10999_v44  ;;  %v2404_v0 = vmul.f32 %v11000_v11, %v11000_v11  ;;  %v11003_v61 = vld [vmem:[#allocation117_spill] sm:$0xff] }
 0x26e   :  { %v1941_v49 = vrot.slane %v1940_v32, 1  ;;  %v2946_v55 = vmul.f32 0.5, %v2698_v14  ;;  %v2163_v24 = vrot.slane %v2162_v23, 2  ;;  %v2206_v39 = vmul.f32 0.0625, %v1949_v17  ;;  %v11005_v17 = vld [vmem:[#allocation114_spill] sm:$0xff] }
 0x26f   :  { %2802 = vadd.xlane.f32.xlu0 %v2801_v48  ;;  %v2173_v6 = vadd.f32 %v2172_v19, %v2171_v47  ;;  %v2603_v44 = vsel %vm1212_vm1, %v2403_v53, 0.0  ;;  %v2467_v47 = vmul.f32 %v7814_v10, %v7814_v10 }
 0x270   :  { %v8062_v15 = vadd.f32 %v2946_v55, %v2945_v12  ;;  %2805 = vadd.xlane.f32.xlu1 %v2804_v59  ;;  %v2497_v38 = vpop.xlane.xlu0 %2496  ;;  %v1942_v20 = vadd.f32 %v1941_v49, %v1940_v32  ;;  %v8065_v22 = vsub.f32 %v11001_v57, %v2206_v39  ;;  %v8068_v63 = vsub.f32 %v11003_v61, %v2206_v39  ;;  %v11007_v49 = vld [vmem:[#allocation118_spill] sm:$0xff] }
 0x271   :  { %v2879_v41 = vmul.f32 0.5, %v2497_v38  ;;  %v2500_v28 = vpop.xlane.xlu1 %2499  ;;  %v2238_v14 = vmul.f32 0.0625, %v2173_v6  ;;  %v2468_v55 = vmul.f32 %v7817_v60, %v7817_v60  ;;  %v2164_v19 = vadd.f32 %v2163_v24, %v2162_v23 }
 0x272   :  { %11002 = vst [vmem:[#allocation113_spill] sm:$0xff] %v8065_v22  ;;  %11004 = vst [vmem:[#allocation117_spill] sm:$0xff] %v8068_v63  ;;  %v2880_v48 = vmul.f32 0.5, %v2500_v28  ;;  %v2606_v32 = vsel %vm1212_vm1, %v2404_v0, 0.0  ;;  %v2205_v6 = vmul.f32 0.0625, %v1942_v20  ;;  %v2795_v61 = vsel %vm1212_vm1, %v2467_v47, 0.0 }
 0x273   :  { %2604 = vadd.xlane.f32.xlu0 %v2603_v44  ;;  %v8077_v12 = vsub.f32 %v11005_v17, %v2238_v14  ;;  %v8080_v59 = vsub.f32 %v11007_v49, %v2238_v14  ;;  %v2798_v23 = vsel %vm1212_vm1, %v2468_v55, 0.0  ;;  %v2409_v44 = vmul.f32 %v7822_v62, %v7822_v62  ;;  %v11009_v0 = vld [vmem:[#allocation77_spill] sm:$0xff] }
 0x274   :  { %v8082_v39 = vadd.f32 %v2880_v48, %v2879_v41  ;;  %2607 = vadd.xlane.f32.xlu1 %v2606_v32  ;;  %v2689_v53 = vpop.xlane.xlu0 %2688  ;;  %v2165_v24 = vrot.slane %v2164_v19, 1  ;;  %v2410_v14 = vmul.f32 %v11009_v0, %v11009_v0  ;;  %v11010_v41 = vld [vmem:[#allocation115_spill] sm:$0xff]  ;;  %v2474_v60 = vmul.f32 %v7840_v56, %v7840_v56 }
 0x275   :  { %11006 = vst [vmem:[#allocation114_spill] sm:$0xff] %v8077_v12  ;;  %11008 = vst [vmem:[#allocation118_spill] sm:$0xff] %v8080_v59  ;;  %v2943_v38 = vmul.f32 0.5, %v2689_v53  ;;  %v2692_v28 = vpop.xlane.xlu1 %2691  ;;  %v8091_v48 = vsub.f32 %v11010_v41, %v2205_v6  ;;  %v11012_v32 = vld [vmem:[#allocation119_spill] sm:$0xff]  ;;  %v2621_v53 = vsel %vm1212_vm1, %v2409_v44, 0.0  ;;  %v6670_v56 = vmov 0  }
 0x276   :  { %v2944_v57 = vmul.f32 0.5, %v2692_v28  ;;  %v8094_v20 = vsub.f32 %v11012_v32, %v2205_v6  ;;  %v11014_v28 = vld [vmem:[#allocation74_spill] sm:$0xff]  ;;  %v2624_v41 = vsel %vm1212_vm1, %v2410_v14, 0.0  ;;  %v2166_v6 = vadd.f32 %v2165_v24, %v2164_v19  ;;  %6460 = vset.pattern.permute.xlu1 %v6670_v56  ;;  %6459 = vset.pattern.permute.xlu0 %v6670_v56  ;;  %v11017_v14 = vld [vmem:[#allocation120_spill] sm:$0xff] }
 0x277   :  { %2796 = vadd.xlane.f32.xlu0 %v2795_v61  ;;  %11011 = vst [vmem:[#allocation115_spill] sm:$0xff] %v8091_v48  ;;  %v2473_v61 = vmul.f32 %v11014_v28, %v11014_v28  ;;  %v2816_v11 = vsel %vm1212_vm1, %v2474_v60, 0.0  ;;  %v2407_v28 = vmul.f32 %v7849_v4, %v7849_v4  ;;  %v2408_v19 = vmul.f32 %v7852_v21, %v7852_v21 }
 0x278   :  { %11013 = vst [vmem:[#allocation119_spill] sm:$0xff] %v8094_v20  ;;  %v8096_v17 = vadd.f32 %v2944_v57, %v2943_v38  ;;  %2799 = vadd.xlane.f32.xlu1 %v2798_v23  ;;  %v2515_v47 = vpop.xlane.xlu0 %2514  ;;  %v6671_v4 = vmov 1966171168  }
 0x279   :  { %v2885_v49 = vmul.f32 0.5, %v2515_v47  ;;  %v2518_v55 = vpop.xlane.xlu1 %2517  ;;  %v2237_v47 = vmul.f32 0.0625, %v2166_v6  ;;  %v2813_v44 = vsel %vm1212_vm1, %v2473_v61, 0.0  ;;  %v2615_v56 = vsel %vm1212_vm1, %v2407_v28, 0.0 }
 0x27a   :  { %v2886_v10 = vmul.f32 0.5, %v2518_v55 }
 0x27b   :  { %2622 = vadd.xlane.f32.xlu0 %v2621_v53 }
 0x27c   :  { %2625 = vadd.xlane.f32.xlu1 %v2624_v41  ;;  %v2707_v38 = vpop.xlane.xlu0 %2706  ;;  %v8104_v57 = vadd.f32 %v2886_v10, %v2885_v49  ;;  %v11015_v10 = vld [vmem:[#allocation116_spill] sm:$0xff]  ;;  %v8116_v49 = vsub.f32 %v11017_v14, %v2237_v47 }
 0x27d   :  { %v2949_v23 = vmul.f32 0.5, %v2707_v38  ;;  %v2710_v32 = vpop.xlane.xlu1 %2709  ;;  %v8113_v24 = vsub.f32 %v11015_v10, %v2237_v47  ;;  %v2471_v38 = vmul.f32 %v7859_v18, %v7859_v18  ;;  %v11021_v18 = vld [vmem:[#allocation85_spill] sm:$0xff] }
 0x27e   :  { %v2950_v55 = vmul.f32 0.5, %v2710_v32  ;;  %11018 = vst [vmem:[#allocation120_spill] sm:$0xff] %v8116_v49  ;;  %v2618_v32 = vsel %vm1212_vm1, %v2408_v19, 0.0  ;;  %v2414_v19 = vmul.f32 %v11021_v18, %v11021_v18 }
 0x27f   :  { %2814 = vadd.xlane.f32.xlu0 %v2813_v44  ;;  %11016 = vst [vmem:[#allocation116_spill] sm:$0xff] %v8113_v24  ;;  %v11019_v44 = vld [vmem:[#allocation80_spill] sm:$0xff] }
 0x280   :  { %2817 = vadd.xlane.f32.xlu1 %v2816_v11  ;;  %v2509_v53 = vpop.xlane.xlu0 %2508  ;;  %v8118_v60 = vadd.f32 %v2950_v55, %v2949_v23  ;;  %v2472_v10 = vmul.f32 %v11019_v44, %v11019_v44 }
 0x281   :  { %v2883_v61 = vmul.f32 0.5, %v2509_v53  ;;  %v2512_v41 = vpop.xlane.xlu1 %2511  ;;  %v2807_v53 = vsel %vm1212_vm1, %v2471_v38, 0.0  ;;  %v2477_v38 = vmul.f32 %v7886_v43, %v7886_v43 }
 0x282   :  { %v2884_v6 = vmul.f32 0.5, %v2512_v41  ;;  %v11020_v41 = vld [vmem:[#allocation81_spill] sm:$0xff] }
 0x283   :  { %2616 = vadd.xlane.f32.xlu0 %v2615_v56  ;;  %v2413_v28 = vmul.f32 %v11020_v41, %v11020_v41  ;;  %v2810_v56 = vsel %vm1212_vm1, %v2472_v10, 0.0  ;;  %v2478_v10 = vmul.f32 %v7889_v16, %v7889_v16  ;;  %v3253_v41 = vrot.slane %v8118_v60, 4 }
 0x284   :  { %v8126_v47 = vadd.f32 %v2884_v6, %v2883_v61  ;;  %2619 = vadd.xlane.f32.xlu1 %v2618_v32  ;;  %v2701_v11 = vpop.xlane.xlu0 %2700 }
 0x285   :  { %v2947_v23 = vmul.f32 0.5, %v2701_v11  ;;  %v2704_v55 = vpop.xlane.xlu1 %2703 }
 0x286   :  { %v2948_v14 = vmul.f32 0.5, %v2704_v55  ;;  %v2633_v55 = vsel %vm1212_vm1, %v2413_v28, 0.0  ;;  %v2411_v28 = vmul.f32 %v7894_v42, %v7894_v42 }
 0x287   :  { %2808 = vadd.xlane.f32.xlu0 %v2807_v53  ;;  %v2636_v53 = vsel %vm1212_vm1, %v2414_v19, 0.0  ;;  %v2412_v19 = vmul.f32 %v7897_v36, %v7897_v36 }
 0x288   :  { %v8134_v21 = vadd.f32 %v2948_v14, %v2947_v23  ;;  %2811 = vadd.xlane.f32.xlu1 %v2810_v56  ;;  %v2527_v61 = vpop.xlane.xlu0 %2526 }
 0x289   :  { %v2889_v6 = vmul.f32 0.5, %v2527_v61  ;;  %v2530_v32 = vpop.xlane.xlu1 %2529 }
 0x28a   :  { %v2890_v11 = vmul.f32 0.5, %v2530_v32  ;;  %v2825_v32 = vsel %vm1212_vm1, %v2477_v38, 0.0  ;;  %v2475_v38 = vmul.f32 %v7909_v26, %v7909_v26 }
 0x28b   :  { %2634 = vadd.xlane.f32.xlu0 %v2633_v55  ;;  %v2828_v55 = vsel %vm1212_vm1, %v2478_v10, 0.0  ;;  %v2476_v10 = vmul.f32 %v7912_v52, %v7912_v52 }
 0x28c   :  { %v8142_v44 = vadd.f32 %v2890_v11, %v2889_v6  ;;  %2637 = vadd.xlane.f32.xlu1 %v2636_v53  ;;  %v2719_v23 = vpop.xlane.xlu0 %2718 }
 0x28d   :  { %v2953_v14 = vmul.f32 0.5, %v2719_v23  ;;  %v2722_v56 = vpop.xlane.xlu1 %2721  ;;  %v2627_v23 = vsel %vm1212_vm1, %v2411_v28, 0.0  ;;  %v2417_v28 = vmul.f32 %v7919_v27, %v7919_v27 }
 0x28e   :  { %v2954_v61 = vmul.f32 0.5, %v2722_v56 }
 0x28f   :  { %2826 = vadd.xlane.f32.xlu0 %v2825_v32  ;;  %v2630_v32 = vsel %vm1212_vm1, %v2412_v19, 0.0  ;;  %v2418_v19 = vmul.f32 %v7922_v31, %v7922_v31  ;;  %v2645_v52 = vsel %vm1212_vm1, %v2417_v28, 0.0  ;;  %v2415_v28 = vmul.f32 %v7943_v3, %v7943_v3 }
 0x290   :  { %v8150_v43 = vadd.f32 %v2954_v61, %v2953_v14  ;;  %2829 = vadd.xlane.f32.xlu1 %v2828_v55  ;;  %v2521_v6 = vpop.xlane.xlu0 %2520  ;;  %v2423_v3 = vmul.f32 %v8037_v34, %v8037_v34  ;;  %v2429_v34 = vmul.f32 %v8065_v22, %v8065_v22  ;;  %v3539_v22 = vlaneseq }
 0x291   :  { %v2887_v11 = vmul.f32 0.5, %v2521_v6  ;;  %v2524_v53 = vpop.xlane.xlu1 %2523  ;;  %v2819_v6 = vsel %vm1212_vm1, %v2475_v38, 0.0  ;;  %v2481_v38 = vmul.f32 %v7929_v40, %v7929_v40  ;;  %v11022_v40 = vld [vmem:[#allocation105_spill] sm:$0xff] }
 0x292   :  { %v2888_v56 = vmul.f32 0.5, %v2524_v53  ;;  %v2822_v53 = vsel %vm1212_vm1, %v2476_v10, 0.0  ;;  %v2482_v10 = vmul.f32 %v7932_v58, %v7932_v58 }
 0x293   :  { %2628 = vadd.xlane.f32.xlu0 %v2627_v23 }
 0x294   :  { %2631 = vadd.xlane.f32.xlu1 %v2630_v32  ;;  %v2713_v16 = vpop.xlane.xlu0 %2712  ;;  %v8158_v14 = vadd.f32 %v2888_v56, %v2887_v11 }
 0x295   :  { %v2951_v61 = vmul.f32 0.5, %v2713_v16  ;;  %v2716_v55 = vpop.xlane.xlu1 %2715 }
 0x296   :  { %v2952_v36 = vmul.f32 0.5, %v2716_v55  ;;  %v2648_v55 = vsel %vm1212_vm1, %v2418_v19, 0.0  ;;  %v2416_v19 = vmul.f32 %v7946_v7, %v7946_v7 }
 0x297   :  { %2820 = vadd.xlane.f32.xlu0 %v2819_v6 }
 0x298   :  { %2823 = vadd.xlane.f32.xlu1 %v2822_v53  ;;  %v2539_v23 = vpop.xlane.xlu0 %2538  ;;  %v8166_v32 = vadd.f32 %v2952_v36, %v2951_v61 }
 0x299   :  { %v2893_v11 = vmul.f32 0.5, %v2539_v23  ;;  %v2542_v56 = vpop.xlane.xlu1 %2541 }
 0x29a   :  { %v2894_v16 = vmul.f32 0.5, %v2542_v56  ;;  %v2837_v56 = vsel %vm1212_vm1, %v2481_v38, 0.0  ;;  %v2479_v38 = vmul.f32 %v7956_v54, %v7956_v54 }
 0x29b   :  { %2646 = vadd.xlane.f32.xlu0 %v2645_v52  ;;  %v2840_v52 = vsel %vm1212_vm1, %v2482_v10, 0.0  ;;  %v2480_v10 = vmul.f32 %v7959_v33, %v7959_v33  ;;  %v2419_v33 = vmul.f32 %v7992_v35, %v7992_v35  ;;  %v2489_v35 = vmul.f32 %v8028_v5, %v8028_v5 }
 0x29c   :  { %v8174_v6 = vadd.f32 %v2894_v16, %v2893_v11  ;;  %2649 = vadd.xlane.f32.xlu1 %v2648_v55  ;;  %v2731_v53 = vpop.xlane.xlu0 %2730  ;;  %v2487_v5 = vmul.f32 %v8049_v8, %v8049_v8  ;;  %v2493_v8 = vmul.f32 %v8077_v12, %v8077_v12 }
 0x29d   :  { %v2957_v36 = vmul.f32 0.5, %v2731_v53  ;;  %v2734_v61 = vpop.xlane.xlu1 %2733 }
 0x29e   :  { %v2958_v23 = vmul.f32 0.5, %v2734_v61  ;;  %v2639_v61 = vsel %vm1212_vm1, %v2415_v28, 0.0  ;;  %v2421_v28 = vmul.f32 %v7965_v46, %v7965_v46  ;;  %v3029_v46 = vrot.slane %v8104_v57, 4 }
 0x29f   :  { %2838 = vadd.xlane.f32.xlu0 %v2837_v56  ;;  %v2642_v56 = vsel %vm1212_vm1, %v2416_v19, 0.0  ;;  %v2422_v19 = vmul.f32 %v7968_v45, %v7968_v45 }
 0x2a0   :  { %v8182_v26 = vadd.f32 %v2958_v23, %v2957_v36  ;;  %2841 = vadd.xlane.f32.xlu1 %v2840_v52  ;;  %v2533_v11 = vpop.xlane.xlu0 %2532  ;;  %v2831_v52 = vsel %vm1212_vm1, %v2479_v38, 0.0  ;;  %v3030_v18 = vadd.f32 %v3029_v46, %v8104_v57 }
 0x2a1   :  { %v2891_v16 = vmul.f32 0.5, %v2533_v11  ;;  %v2536_v55 = vpop.xlane.xlu1 %2535  ;;  %v2834_v11 = vsel %vm1212_vm1, %v2480_v10, 0.0  ;;  %v2660_v38 = vsel %vm1212_vm1, %v2422_v19, 0.0 }
 0x2a2   :  { %v2892_v53 = vmul.f32 0.5, %v2536_v55 }
 0x2a3   :  { %2640 = vadd.xlane.f32.xlu0 %v2639_v61  ;;  %v2485_v61 = vmul.f32 %v7979_v50, %v7979_v50 }
 0x2a4   :  { %v8190_v58 = vadd.f32 %v2892_v53, %v2891_v16  ;;  %2643 = vadd.xlane.f32.xlu1 %v2642_v56  ;;  %v8192_v36 = vpop.xlane.xlu0 %2724  ;;  %v2657_v53 = vsel %vm1212_vm1, %v2421_v28, 0.0  ;;  %v2486_v56 = vmul.f32 %v7982_v37, %v7982_v37  ;;  %v2483_v37 = vmul.f32 %v8001_v30, %v8001_v30  ;;  %v11023_v30 = vld [vmem:[#allocation109_spill] sm:$0xff] }
 0x2a5   :  { %v8194_v23 = vpop.xlane.xlu1 %2727 }
 0x2a6   :  { %v2852_v28 = vsel %vm1212_vm1, %v2486_v56, 0.0 }
 0x2a7   :  { %2832 = vadd.xlane.f32.xlu0 %v2831_v52 }
 0x2a8   :  { %2835 = vadd.xlane.f32.xlu1 %v2834_v11  ;;  %v8202_v55 = vpop.xlane.xlu0 %2550  ;;  %v2849_v11 = vsel %vm1212_vm1, %v2485_v61, 0.0 }
 0x2a9   :  { %v8204_v16 = vpop.xlane.xlu1 %2553 }
 0x2ab   :  { %2658 = vadd.xlane.f32.xlu0 %v2657_v53  ;;  %v2420_v53 = vmul.f32 %v7995_v9, %v7995_v9  ;;  %v2425_v9 = vmul.f32 %v11022_v40, %v11022_v40  ;;  %v3540_v40 = vshrl.u32 %v3539_v22, 7  ;;  %v3239_v22 = vrot.slane %v8062_v15, 4 }
 0x2ac   :  { %2661 = vadd.xlane.f32.xlu1 %v2660_v38  ;;  %v8212_v10 = vpop.xlane.xlu0 %2742  ;;  %v2651_v38 = vsel %vm1212_vm1, %v2419_v33, 0.0 }
 0x2ad   :  { %v8214_v52 = vpop.xlane.xlu1 %2745  ;;  %v2654_v61 = vsel %vm1212_vm1, %v2420_v53, 0.0  ;;  %v3240_v45 = vadd.f32 %v3239_v22, %v8062_v15  ;;  %v3520_v15 = vld [vmem:[%s10281_s2 + $0x8] sm:$0xff] }
 0x2af   :  { %2850 = vadd.xlane.f32.xlu0 %v2849_v11  ;;  %v2484_v11 = vmul.f32 %v8004_v51, %v8004_v51 }
 0x2b0   :  { %2853 = vadd.xlane.f32.xlu1 %v2852_v28  ;;  %v8222_v19 = vpop.xlane.xlu0 %2544  ;;  %v2843_v28 = vsel %vm1212_vm1, %v2483_v37, 0.0 }
 0x2b1   :  { %v8224_v54 = vpop.xlane.xlu1 %2547  ;;  %v2846_v33 = vsel %vm1212_vm1, %v2484_v11, 0.0 }
 0x2b3   :  { %2652 = vadd.xlane.f32.xlu0 %v2651_v38  ;;  %v2426_v38 = vmul.f32 %v11023_v30, %v11023_v30 }
 0x2b4   :  { %2655 = vadd.xlane.f32.xlu1 %v2654_v61  ;;  %v8232_v56 = vpop.xlane.xlu0 %2736  ;;  %v2669_v61 = vsel %vm1212_vm1, %v2425_v9, 0.0 }
 0x2b5   :  { %v8234_v50 = vpop.xlane.xlu1 %2739  ;;  %v2672_v37 = vsel %vm1212_vm1, %v2426_v38, 0.0 }
 0x2b7   :  { %2844 = vadd.xlane.f32.xlu0 %v2843_v28  ;;  %v2490_v28 = vmul.f32 %v8031_v13, %v8031_v13 }
 0x2b8   :  { %2847 = vadd.xlane.f32.xlu1 %v2846_v33  ;;  %v8242_v53 = vpop.xlane.xlu0 %2562  ;;  %v2861_v33 = vsel %vm1212_vm1, %v2489_v35, 0.0 }
 0x2b9   :  { %v8244_v51 = vpop.xlane.xlu1 %2565  ;;  %v2864_v9 = vsel %vm1212_vm1, %v2490_v28, 0.0 }
 0x2bb   :  { %2670 = vadd.xlane.f32.xlu0 %v2669_v61  ;;  %v2424_v61 = vmul.f32 %v8040_v2, %v8040_v2 }
 0x2bc   :  { %2673 = vadd.xlane.f32.xlu1 %v2672_v37  ;;  %v8252_v11 = vpop.xlane.xlu0 %2754  ;;  %v2663_v37 = vsel %vm1212_vm1, %v2423_v3, 0.0 }
 0x2bd   :  { %v8254_v7 = vpop.xlane.xlu1 %2757  ;;  %v2666_v35 = vsel %vm1212_vm1, %v2424_v61, 0.0 }
 0x2bf   :  { %2862 = vadd.xlane.f32.xlu0 %v2861_v33  ;;  %v2488_v33 = vmul.f32 %v8052_v25, %v8052_v25 }
 0x2c0   :  { %2865 = vadd.xlane.f32.xlu1 %v2864_v9  ;;  %v8262_v38 = vpop.xlane.xlu0 %2556  ;;  %v2855_v9 = vsel %vm1212_vm1, %v2487_v5, 0.0 }
 0x2c1   :  { %v8264_v13 = vpop.xlane.xlu1 %2559  ;;  %v2858_v3 = vsel %vm1212_vm1, %v2488_v33, 0.0  ;;  %v3015_v33 = vrot.slane %v8054_v29, 4 }
 0x2c3   :  { %2664 = vadd.xlane.f32.xlu0 %v2663_v37  ;;  %v2430_v37 = vmul.f32 %v8068_v63, %v8068_v63  ;;  %v3537_v63 = vunpack.c.l.s4 %v6671_v4 }
 0x2c4   :  { %2667 = vadd.xlane.f32.xlu1 %v2666_v35  ;;  %v8272_v28 = vpop.xlane.xlu0 %2748  ;;  %v2681_v35 = vsel %vm1212_vm1, %v2429_v34, 0.0  ;;  %v2873_v34 = vsel %vm1212_vm1, %v2493_v8, 0.0 }
 0x2c5   :  { %v8274_v2 = vpop.xlane.xlu1 %2751  ;;  %v2684_v5 = vsel %vm1212_vm1, %v2430_v37, 0.0  ;;  %v3538_v4 = vunpack.c.0.s8 %v3537_v63 }
 0x2c7   :  { %2856 = vadd.xlane.f32.xlu0 %v2855_v9  ;;  %v2494_v9 = vmul.f32 %v8080_v59, %v8080_v59  ;;  %v2428_v59 = vmul.f32 %v8094_v20, %v8094_v20 }
 0x2c8   :  { %2859 = vadd.xlane.f32.xlu1 %v2858_v3  ;;  %v8282_v61 = vpop.xlane.xlu0 %2574 }
 0x2c9   :  { %v8284_v25 = vpop.xlane.xlu1 %2577  ;;  %v2876_v37 = vsel %vm1212_vm1, %v2494_v9, 0.0  ;;  %v2678_v9 = vsel %vm1212_vm1, %v2428_v59, 0.0  ;;  %v3008_v59 = vrot.slane %v8082_v39, 4 }
 0x2cb   :  { %2682 = vadd.xlane.f32.xlu0 %v2681_v35  ;;  %v2427_v35 = vmul.f32 %v8091_v48, %v8091_v48  ;;  %v2491_v48 = vmul.f32 %v8113_v24, %v8113_v24  ;;  %v3009_v31 = vadd.f32 %v3008_v59, %v8082_v39  ;;  %v3022_v39 = vrot.slane %v8126_v47, 4 }
 0x2cc   :  { %2685 = vadd.xlane.f32.xlu1 %v2684_v5  ;;  %v8293_v42 = vpop.xlane.xlu0 %2766  ;;  %v3016_v5 = vadd.f32 %v3015_v33, %v8054_v29 }
 0x2cd   :  { %v8295_v3 = vpop.xlane.xlu1 %2769  ;;  %v2675_v8 = vsel %vm1212_vm1, %v2427_v35, 0.0  ;;  %v2867_v63 = vsel %vm1212_vm1, %v2491_v48, 0.0  ;;  %v3519_v35 = vld [vmem:[%s10281_s2] sm:$0xff]  ;;  %v3232_v48 = vrot.slane %v8096_v17, 4  ;;  %v3010_v22 = vrot.slane %v3009_v31, 2 }
 0x2ce   :  { %v3017_v20 = vrot.slane %v3016_v5, 2 }
 0x2cf   :  { %2874 = vadd.xlane.f32.xlu0 %v2873_v34  ;;  %v2492_v34 = vmul.f32 %v8116_v49, %v8116_v49 }
 0x2d0   :  { %2877 = vadd.xlane.f32.xlu1 %v2876_v37  ;;  %v8304_v12 = vpop.xlane.xlu0 %2568  ;;  %v8318_v37 = vsub.s32 %v3538_v4, %v3540_v40 }
 0x2d1   :  { %11024 = vst [vmem:[#allocation130_spill] sm:$0xff] %v8304_v12  ;;  %v8306_v30 = vpop.xlane.xlu1 %2571 }
 0x2d2   :  { %11025 = vst [vmem:[#allocation131_spill] sm:$0xff] %v8306_v30  ;;  %v3542_v4 = vrot.slane %v3519_v35, %v8318_v37 }
 0x2d3   :  { %2676 = vadd.xlane.f32.xlu0 %v2675_v8  ;;  %v2870_v8 = vsel %vm1212_vm1, %v2492_v34, 0.0 }
 0x2d4   :  { %2679 = vadd.xlane.f32.xlu1 %v2678_v9  ;;  %v8314_v29 = vpop.xlane.xlu0 %2760  ;;  %v3018_v9 = vadd.f32 %v3017_v20, %v3016_v5  ;;  %v3550_v20 = vcombine.high %v3542_v4, %v3542_v4  ;;  %v3241_v5 = vrot.slane %v3240_v45, 2  ;;  %v3558_v46 = vrot.slane %v3542_v4, %v8318_v37 }
 0x2d5   :  { %11026 = vst [vmem:[#allocation132_spill] sm:$0xff] %v8314_v29  ;;  %v8316_v33 = vpop.xlane.xlu1 %2763 }
 0x2d6   :  { %11027 = vst [vmem:[#allocation133_spill] sm:$0xff] %v8316_v33  ;;  %v3019_v27 = vrot.slane %v3018_v9, 1  ;;  %v3572_v1 = vrot.slane %v3550_v20, %v8318_v37  ;;  %v3242_v57 = vadd.f32 %v3241_v5, %v3240_v45  ;;  %v3580_v33 = vcombine.high %v3558_v46, %v3558_v46 }
 0x2d7   :  { %2868 = vadd.xlane.f32.xlu0 %v2867_v63  ;;  %v3584_v5 = vcombine.high %v3520_v15, %v3520_v15 }
 0x2d8   :  { %2871 = vadd.xlane.f32.xlu1 %v2870_v8  ;;  %v8327_v49 = vpop.xlane.xlu0 %2586  ;;  %v3233_v8 = vadd.f32 %v3232_v48, %v8096_v17  ;;  %v3020_v59 = vadd.f32 %v3019_v27, %v3018_v9  ;;  %v8356_v17 = vrot.slane %v3520_v15, %v8318_v37  ;;  %v3023_v27 = vadd.f32 %v3022_v39, %v8126_v47 }
 0x2d9   :  { %11028 = vst [vmem:[#allocation134_spill] sm:$0xff] %v8327_v49  ;;  %v8329_v24 = vpop.xlane.xlu1 %2589  ;;  %v3254_v49 = vadd.f32 %v3253_v41, %v8118_v60 }
 0x2da   :  { %11029 = vst [vmem:[#allocation135_spill] sm:$0xff] %v8329_v24  ;;  %v3234_v48 = vrot.slane %v3233_v8, 2  ;;  %v3011_v24 = vadd.f32 %v3010_v22, %v3009_v31  ;;  %v3456_v9 = vmul.f32 0.0625, %v3020_v59  ;;  %v3599_v45 = vcombine.high %v8356_v17, %v8356_v17 }
 0x2db   :  { %v3243_v31 = vrot.slane %v3242_v57, 1  ;;  %v3255_v47 = vrot.slane %v3254_v49, 2  ;;  %v3024_v39 = vrot.slane %v3023_v27, 2 }
 0x2dc   :  { %v8336_v63 = vpop.xlane.xlu0 %2778  ;;  %v3235_v22 = vadd.f32 %v3234_v48, %v3233_v8  ;;  %v3012_v41 = vrot.slane %v3011_v24, 1  ;;  %v4336_v59 = vadd.f32 1e-05, %v3456_v9 }
 0x2dd   :  { %11030 = vst [vmem:[#allocation136_spill] sm:$0xff] %v8336_v63  ;;  %v8338_v34 = vpop.xlane.xlu1 %2781  ;;  %v3031_v63 = vrot.slane %v3030_v18, 2  ;;  %v3244_v8 = vadd.f32 %v3243_v31, %v3242_v57  ;;  %v3256_v9 = vadd.f32 %v3255_v47, %v3254_v49 }
 0x2de   :  { %11031 = vst [vmem:[#allocation137_spill] sm:$0xff] %v8338_v34  ;;  %v8352_v34 = vsub.s32 0, %v3540_v40  ;;  %v3535_v40 = vcombine.high %v3519_v35, %v3519_v35  ;;  %v3582_v35 = vcombine.high %v3572_v1, %v3572_v1  ;;  %v3236_v48 = vrot.slane %v3235_v22, 1 }
 0x2df   :  { %v3032_v60 = vadd.f32 %v3031_v63, %v3030_v18  ;;  %v3621_v18 = vrot.slane %v3599_v45, %v8318_v37  ;;  %v8378_v63 = vrot.slane %v3584_v5, %v8318_v37  ;;  %6542 = vrsqrt.f32 %v4336_v59 }
 0x2e0   :  { %v8347_v0 = vpop.xlane.xlu0 %2580  ;;  %v4598_v4 = vrot.slane %v3572_v1, %v8352_v34  ;;  %v4602_v12 = vrot.slane %v3580_v33, %v8352_v34  ;;  %v4594_v15 = vrot.slane %v3558_v46, %v8352_v34  ;;  %v3013_v1 = vadd.f32 %v3012_v41, %v3011_v24 }
 0x2e1   :  { %11032 = vst [vmem:[#allocation138_spill] sm:$0xff] %v8347_v0  ;;  %v8349_v62 = vpop.xlane.xlu1 %2583  ;;  %v4606_v33 = vrot.slane %v3582_v35, %v8352_v34  ;;  %v4630_v5 = vrot.slane %v3621_v18, %v8352_v34  ;;  %v3631_v24 = vcombine.high %v3621_v18, %v3621_v18  ;;  %v3600_v49 = vcombine.high %v8378_v63, %v8378_v63 }
 0x2e2   :  { %11033 = vst [vmem:[#allocation139_spill] sm:$0xff] %v8349_v62  ;;  %v3246_v62 = vrot.slane %v8134_v21, 4  ;;  %v3237_v31 = vadd.f32 %v3236_v48, %v3235_v22 }
 0x2e3   :  { %v4638_v48 = vrot.slane %v3631_v24, %v8352_v34 }
 0x2e4   :  { %v8361_v0 = vpop.xlane.xlu0 %2772  ;;  %v3247_v29 = vadd.f32 %v3246_v62, %v8134_v21  ;;  %v3033_v62 = vrot.slane %v3032_v60, 1  ;;  %v3043_v21 = vrot.slane %v8142_v44, 4 }
 0x2e5   :  { %11034 = vst [vmem:[#allocation140_spill] sm:$0xff] %v8361_v0  ;;  %v8363_v20 = vpop.xlane.xlu1 %2775 }
 0x2e6   :  { %11035 = vst [vmem:[#allocation141_spill] sm:$0xff] %v8363_v20  ;;  %v3549_v20 = vrot.slane %v3535_v40, %v8318_v37  ;;  %v3025_v40 = vadd.f32 %v3024_v39, %v3023_v27  ;;  %v3488_v27 = vmul.f32 0.0625, %v3244_v8  ;;  %v3034_v41 = vadd.f32 %v3033_v62, %v3032_v60  ;;  %v3521_v39 = vld [vmem:[%s10281_s2 + $0x10] sm:$0xff] }
 0x2e7   :  { %v3044_v47 = vadd.f32 %v3043_v21, %v8142_v44  ;;  %v3455_v44 = vmul.f32 0.0625, %v3013_v1  ;;  %v8409_v62 = vrot.slane %v3521_v39, %v8318_v37 }
 0x2e8   :  { %v8369_v0 = vpop.xlane.xlu0 %2598  ;;  %v8386_v46 = vrot.slane %v3549_v20, %v8318_v37  ;;  %v3551_v45 = vcombine.high %v3549_v20, %v3549_v20  ;;  %v3257_v20 = vrot.slane %v3256_v9, 1  ;;  %v3458_v59 = vmul.f32 0.0625, %v3034_v41 }
 0x2e9   :  { %11036 = vst [vmem:[#allocation142_spill] sm:$0xff] %v8369_v0  ;;  %4852 = vperm.xlu1 %6460, %v4598_v4   ;;  %v8372_v30 = vpop.xlane.xlu1 %2601  ;;  %v3267_v4 = vrot.slane %v8150_v43, 4  ;;  %v3045_v21 = vrot.slane %v3044_v47, 2 }
 0x2ea   :  { %11037 = vst [vmem:[#allocation143_spill] sm:$0xff] %v8372_v30  ;;  %v3248_v30 = vrot.slane %v3247_v29, 2  ;;  %v4610_v22 = vrot.slane %v8386_v46, %v8352_v34  ;;  %v3579_v60 = vrot.slane %v3551_v45, %v8318_v37  ;;  %v3581_v24 = vcombine.high %v8386_v46, %v8386_v46 }
 0x2eb   :  { %v3268_v35 = vadd.f32 %v3267_v4, %v8150_v43  ;;  %v3628_v43 = vrot.slane %v3600_v49, %v8318_v37  ;;  %v3258_v4 = vadd.f32 %v3257_v20, %v3256_v9  ;;  %v3633_v49 = vcombine.high %v3521_v39, %v3521_v39 }
 0x2ec   :  { %v8382_v0 = vpop.xlane.xlu0 %2790  ;;  %v3249_v18 = vadd.f32 %v3248_v30, %v3247_v29  ;;  %v4368_v30 = vadd.f32 1e-05, %v3488_v27  ;;  %v3487_v29 = vmul.f32 0.0625, %v3237_v31  ;;  %v3046_v41 = vadd.f32 %v3045_v21, %v3044_v47 }
 0x2ed   :  { %11038 = vst [vmem:[#allocation144_spill] sm:$0xff] %v8382_v0  ;;  %4856 = vperm.xlu1 %6460, %v4602_v12   ;;  %v8388_v57 = vpop.xlane.xlu1 %2793  ;;  %4848 = vperm.xlu0 %6459, %v4594_v15   ;;  %v3026_v12 = vrot.slane %v3025_v40, 1  ;;  %v3036_v15 = vrot.slane %v8158_v14, 4  ;;  %v3269_v0 = vrot.slane %v3268_v35, 2  ;;  %v4646_v9 = vrot.slane %v3628_v43, %v8352_v34 }
 0x2ee   :  { %11039 = vst [vmem:[#allocation145_spill] sm:$0xff] %v8388_v57  ;;  %6544 = vrsqrt.f32 %v4368_v30  ;;  %v4367_v31 = vadd.f32 1e-05, %v3487_v29  ;;  %v3260_v20 = vrot.slane %v8166_v32, 4  ;;  %v4618_v47 = vrot.slane %v3581_v24, %v8352_v34 }
 0x2ef   :  { %v3037_v1 = vadd.f32 %v3036_v15, %v8158_v14  ;;  %v3648_v14 = vcombine.high %v8409_v62, %v8409_v62  ;;  %v3490_v15 = vmul.f32 0.0625, %v3258_v4  ;;  %v3270_v46 = vadd.f32 %v3269_v0, %v3268_v35  ;;  %v8433_v35 = vpop.eup %6542 }
 0x2f0   :  { %v8399_v57 = vpop.xlane.xlu0 %2592  ;;  %11044 = vst [vmem:[#allocation150_spill] sm:$0xff] %v8433_v35  ;;  %v3057_v21 = vrot.slane %v8174_v6, 4 }
 0x2f1   :  { %11040 = vst [vmem:[#allocation146_spill] sm:$0xff] %v8399_v57  ;;  %4860 = vperm.xlu1 %6460, %v4606_v33   ;;  %v8404_v8 = vpop.xlane.xlu1 %2595  ;;  %4884 = vperm.xlu0 %6459, %v4630_v5   ;;  %v3027_v57 = vadd.f32 %v3026_v12, %v3025_v40  ;;  %v3250_v33 = vrot.slane %v3249_v18, 1  ;;  %v4614_v5 = vrot.slane %v3579_v60, %v8352_v34  ;;  %v4338_v12 = vadd.f32 1e-05, %v3458_v59 }
 0x2f2   :  { %11041 = vst [vmem:[#allocation147_spill] sm:$0xff] %v8404_v8  ;;  %v4335_v8 = vadd.f32 1e-05, %v3455_v44  ;;  %v3632_v40 = vcombine.high %v3628_v43, %v3628_v43  ;;  %v3038_v39 = vrot.slane %v3037_v1, 2  ;;  %v3670_v0 = vrot.slane %v3648_v14, %v8318_v37 }
 0x2f3   :  { %v3457_v44 = vmul.f32 0.0625, %v3027_v57  ;;  %v3047_v57 = vrot.slane %v3046_v41, 1  ;;  %v3271_v29 = vrot.slane %v3270_v46, 1 }
 0x2f4   :  { %v8412_v45 = vpop.xlane.xlu0 %2784  ;;  %6546 = vrsqrt.f32 %v4335_v8  ;;  %v4654_v30 = vrot.slane %v3632_v40, %v8352_v34  ;;  %v3039_v8 = vadd.f32 %v3038_v39, %v3037_v1  ;;  %v3607_v1 = vrot.slane %v8356_v17, %v8318_v37 }
 0x2f5   :  { %11042 = vst [vmem:[#allocation148_spill] sm:$0xff] %v8412_v45  ;;  %4864 = vperm.xlu1 %6460, %v4610_v22   ;;  %v8417_v27 = vpop.xlane.xlu1 %2787  ;;  %4892 = vperm.xlu0 %6459, %v4638_v48   ;;  %v3251_v22 = vadd.f32 %v3250_v33, %v3249_v18  ;;  %v3583_v48 = vcombine.high %v3579_v60, %v3579_v60  ;;  %6548 = vrsqrt.f32 %v4367_v31  ;;  %v4370_v60 = vadd.f32 1e-05, %v3490_v15 }
 0x2f6   :  { %11043 = vst [vmem:[#allocation149_spill] sm:$0xff] %v8417_v27  ;;  %v8426_v27 = vrot.slane %v3633_v49, %v8318_v37  ;;  %v3261_v18 = vadd.f32 %v3260_v20, %v8166_v32  ;;  %6550 = vrsqrt.f32 %v4338_v12  ;;  %v4337_v59 = vadd.f32 1e-05, %v3457_v44  ;;  %v3522_v12 = vld [vmem:[%s10281_s2 + $0x18] sm:$0xff] }
 0x2f7   :  { %v4622_v33 = vrot.slane %v3583_v48, %v8352_v34  ;;  %v3489_v24 = vmul.f32 0.0625, %v3251_v22  ;;  %v4662_v32 = vrot.slane %v3670_v0, %v8352_v34  ;;  %v3048_v40 = vadd.f32 %v3047_v57, %v3046_v41 }
 0x2f8   :  { %v8423_v45 = vpop.xlane.xlu0 %2610  ;;  %v3262_v14 = vrot.slane %v3261_v18, 2  ;;  %v2955_v31 = vmul.f32 0.5, %v8192_v36  ;;  %v2956_v20 = vmul.f32 0.5, %v8194_v23  ;;  %6552 = vrsqrt.f32 %v4370_v60  ;;  %v8452_v44 = vpop.eup %6544 }
 0x2f9   :  { %4868 = vperm.xlu1 %6460, %v4614_v5   ;;  %v8428_v43 = vpop.xlane.xlu1 %2613  ;;  %4900 = vperm.xlu0 %6459, %v4646_v9   ;;  %v3649_v5 = vcombine.high %v8426_v27, %v8426_v27  ;;  %v3680_v9 = vcombine.high %v3670_v0, %v3670_v0  ;;  %v3272_v15 = vadd.f32 %v3271_v29, %v3270_v46  ;;  %v3040_v39 = vrot.slane %v3039_v8, 1 }
 0x2fa   :  { %11045 = vst [vmem:[#allocation151_spill] sm:$0xff] %v8452_v44  ;;  %6554 = vrsqrt.f32 %v4337_v59  ;;  %v3058_v22 = vadd.f32 %v3057_v21, %v8174_v6  ;;  %v3629_v41 = vcombine.high %v3607_v1, %v3607_v1  ;;  %v4369_v36 = vadd.f32 1e-05, %v3489_v24 }
 0x2fb   :  { %v3677_v48 = vrot.slane %v3649_v5, %v8318_v37  ;;  %v4670_v46 = vrot.slane %v3680_v9, %v8352_v34  ;;  %v3460_v0 = vmul.f32 0.0625, %v3048_v40  ;;  %v3263_v57 = vadd.f32 %v3262_v14, %v3261_v18 }
 0x2fc   :  { %v8437_v4 = vpop.xlane.xlu0 %2802  ;;  %v3281_v6 = vrot.slane %v8182_v26, 4  ;;  %v3273_v60 = vadd.f32 %v2956_v20, %v2955_v31  ;;  %v3492_v59 = vmul.f32 0.0625, %v3272_v15  ;;  %v3041_v21 = vadd.f32 %v3040_v39, %v3039_v8 }
 0x2fd   :  { %4872 = vperm.xlu1 %6460, %v4618_v47   ;;  %v8442_v49 = vpop.xlane.xlu1 %2805  ;;  %4908 = vperm.xlu0 %6459, %v4654_v30   ;;  %v4626_v47 = vrot.slane %v3607_v1, %v8352_v34  ;;  %v8463_v30 = vrot.slane %v3522_v12, %v8318_v37  ;;  %v2898_v5 = vmul.f32 0.5, %v8204_v16  ;;  %v4634_v9 = vrot.slane %v3629_v41, %v8352_v34 }
 0x2fe   :  { %v8466_v29 = vpop.eup %6546  ;;  %v4678_v18 = vrot.slane %v3677_v48, %v8352_v34  ;;  %v3614_v40 = vrot.slane %v8378_v63, %v8318_v37  ;;  %6556 = vrsqrt.f32 %v4369_v36  ;;  %v3682_v31 = vcombine.high %v3522_v12, %v3522_v12 }
 0x2ff   :  { %11046 = vst [vmem:[#allocation152_spill] sm:$0xff] %v8466_v29  ;;  %v8470_v24 = vpop.eup %6548  ;;  %v3697_v16 = vcombine.high %v8463_v30, %v8463_v30  ;;  %v3264_v20 = vrot.slane %v3263_v57, 1  ;;  %v3282_v15 = vadd.f32 %v3281_v6, %v8182_v26  ;;  %v3050_v39 = vrot.slane %v8190_v58, 4 }
 0x300   :  { %v8455_v17 = vpop.xlane.xlu0 %2604  ;;  %11047 = vst [vmem:[#allocation153_spill] sm:$0xff] %v8470_v24  ;;  %v8478_v14 = vpop.eup %6550  ;;  %v3274_v41 = vrot.slane %v3273_v60, 4  ;;  %v4340_v29 = vadd.f32 1e-05, %v3460_v0  ;;  %v2962_v36 = vmul.f32 0.5, %v8214_v52  ;;  %v3630_v35 = vcombine.high %v3614_v40, %v3614_v40 }
 0x301   :  { %4876 = vperm.xlu1 %6460, %v4622_v33   ;;  %v8458_v23 = vpop.xlane.xlu1 %2607  ;;  %4916 = vperm.xlu0 %6459, %v4662_v32   ;;  %v2897_v33 = vmul.f32 0.5, %v8202_v55  ;;  %v3059_v32 = vrot.slane %v3058_v22, 2  ;;  %11048 = vst [vmem:[#allocation154_spill] sm:$0xff] %v8478_v14  ;;  %v3681_v55 = vcombine.high %v3677_v48, %v3677_v48  ;;  %v2961_v14 = vmul.f32 0.5, %v8212_v10 }
 0x302   :  { %v4642_v48 = vrot.slane %v3614_v40, %v8352_v34  ;;  %v8491_v12 = vpop.eup %6552  ;;  %v3459_v44 = vmul.f32 0.0625, %v3041_v21  ;;  %v3719_v10 = vrot.slane %v3697_v16, %v8318_v37  ;;  %v8498_v52 = vrot.slane %v3682_v31, %v8318_v37 }
 0x303   :  { %v3070_v63 = vadd.f32 %v2898_v5, %v2897_v33  ;;  %v3060_v24 = vadd.f32 %v3059_v32, %v3058_v22  ;;  %11049 = vst [vmem:[#allocation155_spill] sm:$0xff] %v8491_v12  ;;  %v4686_v0 = vrot.slane %v3681_v55, %v8352_v34  ;;  %v3265_v6 = vadd.f32 %v3264_v20, %v3263_v57 }
 0x304   :  { %v8472_v1 = vpop.xlane.xlu0 %2796  ;;  %v8500_v22 = vpop.eup %6554  ;;  %v3051_v33 = vadd.f32 %v3050_v39, %v8190_v58  ;;  %v3275_v5 = vadd.f32 %v3274_v41, %v3273_v60  ;;  %v3294_v21 = vadd.f32 %v2962_v36, %v2961_v14  ;;  %v2959_v40 = vmul.f32 0.5, %v8232_v56 }
 0x305   :  { %4880 = vperm.xlu1 %6460, %v4626_v47   ;;  %v8480_v8 = vpop.xlane.xlu1 %2799  ;;  %4924 = vperm.xlu0 %6459, %v4670_v46   ;;  %v4372_v47 = vadd.f32 1e-05, %v3492_v59  ;;  %11050 = vst [vmem:[#allocation156_spill] sm:$0xff] %v8500_v22  ;;  %v3283_v59 = vrot.slane %v3282_v15, 2  ;;  %v3071_v32 = vrot.slane %v3070_v63, 4  ;;  %v2960_v55 = vmul.f32 0.5, %v8234_v50 }
 0x306   :  { %v4650_v31 = vrot.slane %v3630_v35, %v8352_v34  ;;  %v3656_v57 = vrot.slane %v8409_v62, %v8318_v37  ;;  %6558 = vrsqrt.f32 %v4340_v29  ;;  %v3729_v60 = vcombine.high %v3719_v10, %v3719_v10  ;;  %v3523_v35 = vld [vmem:[%s10281_s2 + $0x20] sm:$0xff] }
 0x307   :  { %v4339_v56 = vadd.f32 1e-05, %v3459_v44  ;;  %v3061_v50 = vrot.slane %v3060_v24, 1  ;;  %v3284_v14 = vadd.f32 %v3283_v59, %v3282_v15  ;;  %v3052_v20 = vrot.slane %v3051_v33, 2 }
 0x308   :  { %v8488_v46 = vpop.xlane.xlu0 %2622  ;;  %v8520_v62 = vpop.eup %6556  ;;  %v3276_v29 = vrot.slane %v3275_v5, 2  ;;  %v3072_v39 = vadd.f32 %v3071_v32, %v3070_v63  ;;  %v3295_v41 = vrot.slane %v3294_v21, 4  ;;  %6560 = vrsqrt.f32 %v4372_v47 }
 0x309   :  { %4888 = vperm.xlu1 %6460, %v4634_v9   ;;  %v8493_v26 = vpop.xlane.xlu1 %2625  ;;  %4932 = vperm.xlu0 %6459, %v4678_v18   ;;  %v2895_v9 = vmul.f32 0.5, %v8222_v19  ;;  %v2896_v18 = vmul.f32 0.5, %v8224_v54  ;;  %v4694_v19 = vrot.slane %v3719_v10, %v8352_v34  ;;  %v3698_v54 = vcombine.high %v8498_v52, %v8498_v52  ;;  %11051 = vst [vmem:[#allocation157_spill] sm:$0xff] %v8520_v62 }
 0x30a   :  { %v4658_v10 = vrot.slane %v3656_v57, %v8352_v34  ;;  %v3678_v44 = vcombine.high %v3656_v57, %v3656_v57  ;;  %v3491_v22 = vmul.f32 0.0625, %v3265_v6  ;;  %v4702_v59 = vrot.slane %v3729_v60, %v8352_v34 }
 0x30b   :  { %v3063_v36 = vadd.f32 %v2896_v18, %v2895_v9  ;;  %v3726_v62 = vrot.slane %v3698_v54, %v8318_v37  ;;  %v8530_v63 = vrot.slane %v3523_v35, %v8318_v37  ;;  %6562 = vrsqrt.f32 %v4339_v56 }
 0x30c   :  { %v8507_v16 = vpop.xlane.xlu0 %2814  ;;  %v3062_v47 = vadd.f32 %v3061_v50, %v3060_v24  ;;  %v3285_v32 = vrot.slane %v3284_v14, 1  ;;  %v3053_v9 = vadd.f32 %v3052_v20, %v3051_v33  ;;  %v3277_v18 = vadd.f32 %v3276_v29, %v3275_v5 }
 0x30d   :  { %4896 = vperm.xlu1 %6460, %v4642_v48   ;;  %v8512_v58 = vpop.xlane.xlu1 %2817  ;;  %4940 = vperm.xlu0 %6459, %v4686_v0   ;;  %v3287_v48 = vadd.f32 %v2960_v55, %v2959_v40  ;;  %v3073_v40 = vrot.slane %v3072_v39, 2  ;;  %v3296_v55 = vadd.f32 %v3295_v41, %v3294_v21  ;;  %v3064_v57 = vrot.slane %v3063_v36, 4 }
 0x30e   :  { %v3663_v60 = vrot.slane %v8426_v27, %v8318_v37  ;;  %v3731_v54 = vcombine.high %v3523_v35, %v3523_v35  ;;  %v4371_v12 = vadd.f32 1e-05, %v3491_v22  ;;  %v4710_v24 = vrot.slane %v3726_v62, %v8352_v34 }
 0x30f   :  { %v3288_v6 = vrot.slane %v3287_v48, 4  ;;  %v3730_v33 = vcombine.high %v3726_v62, %v3726_v62  ;;  %v3746_v5 = vcombine.high %v8530_v63, %v8530_v63  ;;  %v3462_v21 = vmul.f32 0.0625, %v3062_v47 }
 0x310   :  { %v8522_v0 = vpop.xlane.xlu0 %2616  ;;  %v3286_v56 = vadd.f32 %v3285_v32, %v3284_v14  ;;  %v2901_v50 = vmul.f32 0.5, %v8242_v53  ;;  %v2902_v20 = vmul.f32 0.5, %v8244_v51  ;;  %v8544_v29 = vpop.eup %6558  ;;  %v3054_v27 = vrot.slane %v3053_v9, 1 }
 0x311   :  { %4904 = vperm.xlu1 %6460, %v4650_v31   ;;  %v8525_v15 = vpop.xlane.xlu1 %2619  ;;  %4948 = vperm.xlu0 %6459, %v4694_v19   ;;  %v4666_v19 = vrot.slane %v3678_v44, %v8352_v34  ;;  %11054 = vst [vmem:[#allocation160_spill] sm:$0xff] %v8544_v29  ;;  %v3278_v22 = vrot.slane %v3277_v18, 1  ;;  %v3074_v35 = vadd.f32 %v3073_v40, %v3072_v39  ;;  %v3297_v41 = vrot.slane %v3296_v55, 2 }
 0x312   :  { %11052 = vst [vmem:[#allocation158_spill] sm:$0xff] %v8525_v15  ;;  %v3289_v44 = vadd.f32 %v3288_v6, %v3287_v48  ;;  %v3679_v62 = vcombine.high %v3663_v60, %v3663_v60  ;;  %6564 = vrsqrt.f32 %v4371_v12  ;;  %v4674_v51 = vrot.slane %v3663_v60, %v8352_v34  ;;  %v8556_v47 = vpop.eup %6560 }
 0x313   :  { %v4718_v53 = vrot.slane %v3730_v33, %v8352_v34  ;;  %v3768_v39 = vrot.slane %v3746_v5, %v8318_v37  ;;  %11055 = vst [vmem:[#allocation161_spill] sm:$0xff] %v8556_v47  ;;  %v3084_v48 = vadd.f32 %v2902_v20, %v2901_v50  ;;  %v2965_v32 = vmul.f32 0.5, %v8252_v11 }
 0x314   :  { %v8532_v31 = vpop.xlane.xlu0 %2808  ;;  %v2966_v40 = vmul.f32 0.5, %v8254_v7  ;;  %v3055_v12 = vadd.f32 %v3054_v27, %v3053_v9  ;;  %v3075_v6 = vrot.slane %v3074_v35, 1  ;;  %v4682_v33 = vrot.slane %v3679_v62, %v8352_v34  ;;  %v3524_v27 = vld [vmem:[%s10281_s2 + $0x28] sm:$0xff] }
 0x315   :  { %4912 = vperm.xlu1 %6460, %v4658_v10   ;;  %v8537_v15 = vpop.xlane.xlu1 %2811  ;;  %4956 = vperm.xlu0 %6459, %v4702_v59   ;;  %v3065_v10 = vadd.f32 %v3064_v57, %v3063_v36  ;;  %v4342_v36 = vadd.f32 1e-05, %v3462_v21  ;;  %v3494_v57 = vmul.f32 0.0625, %v3286_v56  ;;  %v3290_v21 = vrot.slane %v3289_v44, 2 }
 0x316   :  { %11053 = vst [vmem:[#allocation159_spill] sm:$0xff] %v8537_v15  ;;  %v8549_v15 = vrot.slane %v3731_v54, %v8318_v37  ;;  %v8560_v54 = vpop.eup %6562  ;;  %v4726_v7 = vrot.slane %v3768_v39, %v8352_v34  ;;  %v3705_v9 = vrot.slane %v8463_v30, %v8318_v37  ;;  %v3308_v56 = vadd.f32 %v2966_v40, %v2965_v32 }
 0x317   :  { %11056 = vst [vmem:[#allocation162_spill] sm:$0xff] %v8560_v54  ;;  %v3066_v60 = vrot.slane %v3065_v10, 2  ;;  %v2899_v50 = vmul.f32 0.5, %v8262_v38  ;;  %v2900_v20 = vmul.f32 0.5, %v8264_v13  ;;  %6566 = vrsqrt.f32 %v4342_v36 }
 0x318   :  { %v8546_v59 = vpop.xlane.xlu0 %2634  ;;  %v3747_v5 = vcombine.high %v8549_v15, %v8549_v15  ;;  %v3727_v30 = vcombine.high %v3705_v9, %v3705_v9  ;;  %v4690_v13 = vrot.slane %v3705_v9, %v8352_v34  ;;  %v8585_v36 = vrot.slane %v3524_v27, %v8318_v37 }
 0x319   :  { %4920 = vperm.xlu1 %6460, %v4666_v19   ;;  %v8551_v14 = vpop.xlane.xlu1 %2637  ;;  %4964 = vperm.xlu0 %6459, %v4710_v24   ;;  %v3298_v19 = vadd.f32 %v3297_v41, %v3296_v55  ;;  %v3279_v24 = vadd.f32 %v3278_v22, %v3277_v18  ;;  %v3778_v55 = vcombine.high %v3768_v39, %v3768_v39  ;;  %v3085_v18 = vrot.slane %v3084_v48, 4 }
 0x31a   :  { %v4374_v22 = vadd.f32 1e-05, %v3494_v57  ;;  %v3076_v41 = vadd.f32 %v3075_v6, %v3074_v35  ;;  %v3775_v39 = vrot.slane %v3747_v5, %v8318_v37  ;;  %v3291_v35 = vadd.f32 %v3290_v21, %v3289_v44 }
 0x31b   :  { %v3299_v62 = vrot.slane %v3298_v19, 1  ;;  %v3493_v32 = vmul.f32 0.0625, %v3279_v24  ;;  %v4734_v40 = vrot.slane %v3778_v55, %v8352_v34  ;;  %v3086_v57 = vadd.f32 %v3085_v18, %v3084_v48 }
 0x31c   :  { %v8562_v29 = vpop.xlane.xlu0 %2826  ;;  %v8587_v6 = vpop.eup %6564  ;;  %v2963_v24 = vmul.f32 0.5, %v8272_v28  ;;  %v4698_v9 = vrot.slane %v3727_v30, %v8352_v34  ;;  %v4742_v55 = vrot.slane %v3775_v39, %v8352_v34  ;;  %v3712_v44 = vrot.slane %v8498_v52, %v8318_v37 }
 0x31d   :  { %4928 = vperm.xlu1 %6460, %v4674_v51   ;;  %v8567_v11 = vpop.xlane.xlu1 %2829  ;;  %4972 = vperm.xlu0 %6459, %v4718_v53   ;;  %v3461_v51 = vmul.f32 0.0625, %v3055_v12  ;;  %v3067_v53 = vadd.f32 %v3066_v60, %v3065_v10  ;;  %v3309_v10 = vrot.slane %v3308_v56, 4  ;;  %v3077_v12 = vadd.f32 %v2900_v20, %v2899_v50  ;;  %11057 = vst [vmem:[#allocation163_spill] sm:$0xff] %v8587_v6 }
 0x31e   :  { %v3464_v60 = vmul.f32 0.0625, %v3076_v41  ;;  %v3300_v5 = vadd.f32 %v3299_v62, %v3298_v19  ;;  %v3779_v19 = vcombine.high %v3775_v39, %v3775_v39  ;;  %v3795_v28 = vcombine.high %v8585_v36, %v8585_v36 }
 0x31f   :  { %v4341_v48 = vadd.f32 1e-05, %v3461_v51  ;;  %v3292_v18 = vrot.slane %v3291_v35, 1  ;;  %v3087_v50 = vrot.slane %v3086_v57, 2  ;;  %v3310_v20 = vadd.f32 %v3309_v10, %v3308_v56 }
 0x320   :  { %v8577_v54 = vpop.xlane.xlu0 %2628  ;;  %v3078_v41 = vrot.slane %v3077_v12, 4  ;;  %6568 = vrsqrt.f32 %v4374_v22  ;;  %v4373_v62 = vadd.f32 1e-05, %v3493_v32  ;;  %v4344_v30 = vadd.f32 1e-05, %v3464_v60 }
 0x321   :  { %4936 = vperm.xlu1 %6460, %v4682_v33   ;;  %v8580_v38 = vpop.xlane.xlu1 %2631  ;;  %4980 = vperm.xlu0 %6459, %v4726_v7   ;;  %v2964_v33 = vmul.f32 0.5, %v8274_v2  ;;  %v3068_v7 = vrot.slane %v3067_v53, 1  ;;  %v3780_v2 = vcombine.high %v3524_v27, %v3524_v27  ;;  %v8604_v39 = vpop.eup %6566  ;;  %6570 = vrsqrt.f32 %v4341_v48 }
 0x322   :  { %11059 = vst [vmem:[#allocation165_spill] sm:$0xff] %v8604_v39  ;;  %v4750_v56 = vrot.slane %v3779_v19, %v8352_v34  ;;  %v3817_v22 = vrot.slane %v3795_v28, %v8318_v37  ;;  %v3088_v10 = vadd.f32 %v3087_v50, %v3086_v57  ;;  %v3311_v60 = vrot.slane %v3310_v20, 2 }
 0x323   :  { %v3301_v6 = vadd.f32 %v2964_v33, %v2963_v24  ;;  %v3069_v52 = vadd.f32 %v3068_v7, %v3067_v53  ;;  %v8611_v32 = vrot.slane %v3780_v2, %v8318_v37  ;;  %v3293_v53 = vadd.f32 %v3292_v18, %v3291_v35  ;;  %v3525_v18 = vld [vmem:[%s10281_s2 + $0x30] sm:$0xff] }
 0x324   :  { %v8591_v47 = vpop.xlane.xlu0 %2820  ;;  %6572 = vrsqrt.f32 %v4373_v62  ;;  %v2905_v33 = vmul.f32 0.5, %v8282_v61  ;;  %v2906_v7 = vmul.f32 0.5, %v8284_v25  ;;  %v3754_v48 = vrot.slane %v8530_v63, %v8318_v37 }
 0x325   :  { %11058 = vst [vmem:[#allocation164_spill] sm:$0xff] %v8591_v47  ;;  %4944 = vperm.xlu1 %6460, %v4690_v13   ;;  %v8597_v21 = vpop.xlane.xlu1 %2823  ;;  %4988 = vperm.xlu0 %6459, %v4734_v40   ;;  %v3496_v47 = vmul.f32 0.0625, %v3300_v5  ;;  %v4706_v13 = vrot.slane %v3712_v44, %v8352_v34  ;;  %v3728_v40 = vcombine.high %v3712_v44, %v3712_v44  ;;  %v3302_v24 = vrot.slane %v3301_v6, 4 }
 0x326   :  { %v3079_v5 = vadd.f32 %v3078_v41, %v3077_v12  ;;  %6574 = vrsqrt.f32 %v4344_v30  ;;  %v3463_v19 = vmul.f32 0.0625, %v3069_v52  ;;  %v4758_v57 = vrot.slane %v3817_v22, %v8352_v34  ;;  %v11063_v30 = vld [vmem:[#allocation130_spill] sm:$0xff] }
 0x327   :  { %v4714_v44 = vrot.slane %v3728_v40, %v8352_v34  ;;  %v3827_v12 = vcombine.high %v3817_v22, %v3817_v22  ;;  %v3796_v25 = vcombine.high %v8611_v32, %v8611_v32  ;;  %v3495_v61 = vmul.f32 0.0625, %v3293_v53 }
 0x328   :  { %v8601_v51 = vpop.xlane.xlu0 %2646  ;;  %v3312_v28 = vadd.f32 %v3311_v60, %v3310_v20  ;;  %v3080_v2 = vrot.slane %v3079_v5, 2  ;;  %v3303_v63 = vadd.f32 %v3302_v24, %v3301_v6  ;;  %v3098_v50 = vadd.f32 %v2906_v7, %v2905_v33 }
 0x329   :  { %4952 = vperm.xlu1 %6460, %v4698_v9   ;;  %v8606_v27 = vpop.xlane.xlu1 %2649  ;;  %4996 = vperm.xlu0 %6459, %v4742_v55   ;;  %v4376_v9 = vadd.f32 1e-05, %v3496_v47  ;;  %v3089_v47 = vrot.slane %v3088_v10, 1  ;;  %v2969_v41 = vmul.f32 0.5, %v8293_v42  ;;  %v2970_v62 = vmul.f32 0.5, %v8295_v3 }
 0x32a   :  { %11060 = vst [vmem:[#allocation166_spill] sm:$0xff] %v8606_v27  ;;  %v2903_v52 = vmul.f32 0.5, %v11063_v30  ;;  %v4722_v22 = vrot.slane %v3754_v48, %v8352_v34  ;;  %v3776_v20 = vcombine.high %v3754_v48, %v3754_v48  ;;  %v8635_v53 = vpop.eup %6568  ;;  %v4343_v60 = vadd.f32 1e-05, %v3463_v19 }
 0x32b   :  { %v4766_v42 = vrot.slane %v3827_v12, %v8352_v34  ;;  %v3824_v3 = vrot.slane %v3796_v25, %v8318_v37  ;;  %v8642_v6 = vrot.slane %v3525_v18, %v8318_v37  ;;  %6576 = vrsqrt.f32 %v4376_v9  ;;  %v8644_v30 = vpop.eup %6570 }
 0x32c   :  { %v8615_v55 = vpop.xlane.xlu0 %2838  ;;  %v4375_v24 = vadd.f32 1e-05, %v3495_v61  ;;  %v3090_v33 = vadd.f32 %v3089_v47, %v3088_v10  ;;  %v3313_v7 = vrot.slane %v3312_v28, 1  ;;  %11068 = vst [vmem:[#allocation170_spill] sm:$0xff] %v8644_v30  ;;  %v3081_v48 = vadd.f32 %v3080_v2, %v3079_v5  ;;  %v11078_v30 = vld [vmem:[#allocation135_spill] sm:$0xff] }
 0x32d   :  { %11061 = vst [vmem:[#allocation167_spill] sm:$0xff] %v8615_v55  ;;  %4960 = vperm.xlu1 %6460, %v4706_v13   ;;  %v8620_v35 = vpop.xlane.xlu1 %2841  ;;  %5004 = vperm.xlu0 %6459, %v4750_v56   ;;  %v11064_v13 = vld [vmem:[#allocation131_spill] sm:$0xff]  ;;  %v3099_v19 = vrot.slane %v3098_v50, 4  ;;  %v3761_v12 = vrot.slane %v8549_v15, %v8318_v37  ;;  %v3829_v25 = vcombine.high %v3525_v18, %v3525_v18  ;;  %6578 = vrsqrt.f32 %v4343_v60 }
 0x32e   :  { %11062 = vst [vmem:[#allocation168_spill] sm:$0xff] %v8620_v35  ;;  %v2904_v40 = vmul.f32 0.5, %v11064_v13  ;;  %11066 = vst [vmem:[#allocation131_spill] sm:$0xff] %v8635_v53  ;;  %v3304_v13 = vrot.slane %v3303_v63, 2  ;;  %v4774_v5 = vrot.slane %v3824_v3, %v8352_v34  ;;  %v3828_v9 = vcombine.high %v3824_v3, %v3824_v3 }
 0x32f   :  { %v3844_v61 = vcombine.high %v8642_v6, %v8642_v6  ;;  %6580 = vrsqrt.f32 %v4375_v24  ;;  %v3314_v2 = vadd.f32 %v3313_v7, %v3312_v28  ;;  %v3100_v18 = vadd.f32 %v3099_v19, %v3098_v50  ;;  %v11075_v50 = vld [vmem:[#allocation132_spill] sm:$0xff]  ;;  %v11076_v7 = vld [vmem:[#allocation133_spill] sm:$0xff]  ;;  %v11077_v19 = vld [vmem:[#allocation134_spill] sm:$0xff] }
 0x330   :  { %v8632_v56 = vpop.xlane.xlu0 %2640  ;;  %v3091_v53 = vadd.f32 %v2904_v40, %v2903_v52  ;;  %v3305_v15 = vadd.f32 %v3304_v13, %v3303_v63  ;;  %v3466_v60 = vmul.f32 0.0625, %v3090_v33  ;;  %v4738_v3 = vrot.slane %v3761_v12, %v8352_v34 }
 0x331   :  { %11065 = vst [vmem:[#allocation130_spill] sm:$0xff] %v8632_v56  ;;  %4968 = vperm.xlu1 %6460, %v4714_v44   ;;  %v8637_v39 = vpop.xlane.xlu1 %2643  ;;  %5012 = vperm.xlu0 %6459, %v4758_v57   ;;  %v3322_v44 = vadd.f32 %v2970_v62, %v2969_v41  ;;  %v4730_v57 = vrot.slane %v3776_v20, %v8352_v34  ;;  %v8651_v56 = vpop.eup %6572  ;;  %v3082_v41 = vrot.slane %v3081_v48, 1  ;;  %v2967_v24 = vmul.f32 0.5, %v11075_v50 }
 0x332   :  { %11067 = vst [vmem:[#allocation169_spill] sm:$0xff] %v8637_v39  ;;  %11070 = vst [vmem:[#allocation172_spill] sm:$0xff] %v8651_v56  ;;  %v8658_v47 = vpop.eup %6574  ;;  %v3092_v52 = vrot.slane %v3091_v53, 4  ;;  %v8663_v20 = vrot.slane %v3829_v25, %v8318_v37  ;;  %v4782_v28 = vrot.slane %v3828_v9, %v8352_v34  ;;  %v3866_v63 = vrot.slane %v3844_v61, %v8318_v37 }
 0x333   :  { %11072 = vst [vmem:[#allocation174_spill] sm:$0xff] %v8658_v47  ;;  %v3323_v62 = vrot.slane %v3322_v44, 4  ;;  %v2968_v13 = vmul.f32 0.5, %v11076_v7  ;;  %v2909_v56 = vmul.f32 0.5, %v11077_v19  ;;  %v2910_v25 = vmul.f32 0.5, %v11078_v30 }
 0x334   :  { %v8646_v39 = vpop.xlane.xlu0 %2832  ;;  %v3498_v47 = vmul.f32 0.0625, %v3314_v2  ;;  %v3083_v33 = vadd.f32 %v3082_v41, %v3081_v48  ;;  %v3845_v61 = vcombine.high %v8663_v20, %v8663_v20  ;;  %v4346_v50 = vadd.f32 1e-05, %v3466_v60  ;;  %v11082_v41 = vld [vmem:[#allocation136_spill] sm:$0xff]  ;;  %v3526_v60 = vld [vmem:[%s10281_s2 + $0x38] sm:$0xff] }
 0x335   :  { %11069 = vst [vmem:[#allocation171_spill] sm:$0xff] %v8646_v39  ;;  %4976 = vperm.xlu1 %6460, %v4722_v22   ;;  %v8653_v10 = vpop.xlane.xlu1 %2835  ;;  %5020 = vperm.xlu0 %6459, %v4766_v42   ;;  %v3777_v22 = vcombine.high %v3761_v12, %v3761_v12  ;;  %v3093_v12 = vadd.f32 %v3092_v52, %v3091_v53  ;;  %v11083_v52 = vld [vmem:[#allocation137_spill] sm:$0xff] }
 0x336   :  { %11071 = vst [vmem:[#allocation173_spill] sm:$0xff] %v8653_v10  ;;  %v4790_v30 = vrot.slane %v3866_v63, %v8352_v34  ;;  %v3803_v48 = vrot.slane %v8585_v36, %v8318_v37  ;;  %v3876_v2 = vcombine.high %v3866_v63, %v3866_v63  ;;  %v3112_v53 = vadd.f32 %v2910_v25, %v2909_v56 }
 0x337   :  { %v4746_v9 = vrot.slane %v3777_v22, %v8352_v34  ;;  %v2974_v22 = vmul.f32 0.5, %v11083_v52  ;;  %v4378_v19 = vadd.f32 1e-05, %v3498_v47  ;;  %v3873_v25 = vrot.slane %v3845_v61, %v8318_v37 }
 0x338   :  { %v8660_v40 = vpop.xlane.xlu0 %2658  ;;  %v4754_v47 = vrot.slane %v3803_v48, %v8352_v34  ;;  %6582 = vrsqrt.f32 %v4346_v50 }
 0x339   :  { %11073 = vst [vmem:[#allocation175_spill] sm:$0xff] %v8660_v40  ;;  %4984 = vperm.xlu1 %6460, %v4730_v57   ;;  %v8665_v42 = vpop.xlane.xlu1 %2661  ;;  %5028 = vperm.xlu0 %6459, %v4774_v5   ;;  %v3306_v57 = vrot.slane %v3305_v15, 1  ;;  %v3101_v40 = vrot.slane %v3100_v18, 2  ;;  %v3324_v5 = vadd.f32 %v3323_v62, %v3322_v44  ;;  %v3315_v44 = vadd.f32 %v2968_v13, %v2967_v24 }
 0x33a   :  { %11074 = vst [vmem:[#allocation176_spill] sm:$0xff] %v8665_v42  ;;  %v8674_v42 = vpop.eup %6576  ;;  %v2973_v62 = vmul.f32 0.5, %v11082_v41  ;;  %v3825_v13 = vcombine.high %v3803_v48, %v3803_v48  ;;  %v3465_v41 = vmul.f32 0.0625, %v3083_v33  ;;  %v11091_v33 = vld [vmem:[#allocation141_spill] sm:$0xff]  ;;  %v4806_v48 = vrot.slane %v3873_v25, %v8352_v34 }
 0x33b   :  { %11079 = vst [vmem:[#allocation132_spill] sm:$0xff] %v8674_v42  ;;  %v11085_v42 = vld [vmem:[#allocation138_spill] sm:$0xff]  ;;  %v3307_v63 = vadd.f32 %v3306_v57, %v3305_v15  ;;  %v3325_v56 = vrot.slane %v3324_v5, 2  ;;  %v3316_v15 = vrot.slane %v3315_v44, 4  ;;  %6584 = vrsqrt.f32 %v4378_v19 }
 0x33c   :  { %v8676_v10 = vpop.xlane.xlu0 %2850  ;;  %v3336_v57 = vadd.f32 %v2974_v22, %v2973_v62  ;;  %v3878_v62 = vcombine.high %v3526_v60, %v3526_v60 }
 0x33d   :  { %11080 = vst [vmem:[#allocation133_spill] sm:$0xff] %v8676_v10  ;;  %4992 = vperm.xlu1 %6460, %v4738_v3   ;;  %v8681_v7 = vpop.xlane.xlu1 %2853  ;;  %5036 = vperm.xlu0 %6459, %v4782_v28   ;;  %v8691_v3 = vpop.eup %6578  ;;  %v3102_v28 = vadd.f32 %v3101_v40, %v3100_v18  ;;  %v11086_v10 = vld [vmem:[#allocation139_spill] sm:$0xff]  ;;  %v4798_v18 = vrot.slane %v3876_v2, %v8352_v34  ;;  %v3094_v40 = vrot.slane %v3093_v12, 2  ;;  %v3497_v27 = vmul.f32 0.0625, %v3307_v63 }
 0x33e   :  { %11081 = vst [vmem:[#allocation134_spill] sm:$0xff] %v8681_v7  ;;  %11084 = vst [vmem:[#allocation135_spill] sm:$0xff] %v8691_v3  ;;  %v2907_v7 = vmul.f32 0.5, %v11085_v42  ;;  %v2908_v39 = vmul.f32 0.5, %v11086_v10  ;;  %v8695_v36 = vpop.eup %6580  ;;  %v8705_v10 = vrot.slane %v3526_v60, %v8318_v37  ;;  %v3113_v42 = vrot.slane %v3112_v53, 4 }
 0x33f   :  { %11087 = vst [vmem:[#allocation136_spill] sm:$0xff] %v8695_v36  ;;  %v3103_v36 = vrot.slane %v3102_v28, 1  ;;  %v3326_v35 = vadd.f32 %v3325_v56, %v3324_v5  ;;  %v3810_v2 = vrot.slane %v8611_v32, %v8318_v37  ;;  %v3095_v5 = vadd.f32 %v3094_v40, %v3093_v12  ;;  %v11095_v40 = vld [vmem:[#allocation142_spill] sm:$0xff] }
 0x340   :  { %v8697_v24 = vpop.xlane.xlu0 %2652  ;;  %v3105_v3 = vadd.f32 %v2908_v39, %v2907_v7  ;;  %v3877_v39 = vcombine.high %v3873_v25, %v3873_v25  ;;  %v3893_v7 = vcombine.high %v8705_v10, %v8705_v10  ;;  %v3317_v22 = vadd.f32 %v3316_v15, %v3315_v44 }
 0x341   :  { %11088 = vst [vmem:[#allocation137_spill] sm:$0xff] %v8697_v24  ;;  %5000 = vperm.xlu1 %6460, %v4746_v9   ;;  %v8700_v52 = vpop.xlane.xlu1 %2655  ;;  %5044 = vperm.xlu0 %6459, %v4790_v30   ;;  %v11090_v24 = vld [vmem:[#allocation140_spill] sm:$0xff]  ;;  %v2972_v9 = vmul.f32 0.5, %v11091_v33  ;;  %v4762_v30 = vrot.slane %v3825_v13, %v8352_v34  ;;  %v3114_v56 = vadd.f32 %v3113_v42, %v3112_v53  ;;  %v4345_v13 = vadd.f32 1e-05, %v3465_v41  ;;  %v11096_v42 = vld [vmem:[#allocation143_spill] sm:$0xff] }
 0x342   :  { %11089 = vst [vmem:[#allocation138_spill] sm:$0xff] %v8700_v52  ;;  %v2971_v61 = vmul.f32 0.5, %v11090_v24  ;;  %v3337_v24 = vrot.slane %v3336_v57, 4  ;;  %v3106_v33 = vrot.slane %v3105_v3, 4  ;;  %v3104_v32 = vadd.f32 %v3103_v36, %v3102_v28 }
 0x343   :  { %v3327_v25 = vrot.slane %v3326_v35, 1  ;;  %v4814_v12 = vrot.slane %v3877_v39, %v8352_v34  ;;  %v3915_v44 = vrot.slane %v3893_v7, %v8318_v37  ;;  %v8727_v53 = vrot.slane %v3878_v62, %v8318_v37 }
 0x344   :  { %v8709_v52 = vpop.xlane.xlu0 %2844  ;;  %v3096_v60 = vrot.slane %v3095_v5, 1  ;;  %v3318_v19 = vrot.slane %v3317_v22, 2  ;;  %v3115_v28 = vrot.slane %v3114_v56, 2  ;;  %v3338_v36 = vadd.f32 %v3337_v24, %v3336_v57 }
 0x345   :  { %11092 = vst [vmem:[#allocation139_spill] sm:$0xff] %v8709_v52  ;;  %5008 = vperm.xlu1 %6460, %v4754_v47   ;;  %v8715_v55 = vpop.xlane.xlu1 %2847  ;;  %5052 = vperm.xlu0 %6459, %v4798_v18   ;;  %v3329_v52 = vadd.f32 %v2972_v9, %v2971_v61  ;;  %v4770_v47 = vrot.slane %v3810_v2, %v8352_v34  ;;  %v2913_v15 = vmul.f32 0.5, %v11095_v40  ;;  %v2914_v61 = vmul.f32 0.5, %v11096_v42  ;;  %v11100_v42 = vld [vmem:[#allocation144_spill] sm:$0xff] }
 0x346   :  { %11093 = vst [vmem:[#allocation140_spill] sm:$0xff] %v8715_v55  ;;  %v3826_v18 = vcombine.high %v3810_v2, %v3810_v2  ;;  %v3107_v63 = vadd.f32 %v3106_v33, %v3105_v3  ;;  %6586 = vrsqrt.f32 %v4345_v13  ;;  %v4377_v9 = vadd.f32 1e-05, %v3497_v27 }
 0x347   :  { %v3330_v41 = vrot.slane %v3329_v52, 4  ;;  %v3852_v2 = vrot.slane %v8642_v6, %v8318_v37  ;;  %v3468_v39 = vmul.f32 0.0625, %v3104_v32  ;;  %v4822_v3 = vrot.slane %v3915_v44, %v8352_v34  ;;  %v8744_v6 = vpop.eup %6582 }
 0x348   :  { %v8719_v50 = vpop.xlane.xlu0 %2670  ;;  %v3925_v57 = vcombine.high %v3915_v44, %v3915_v44  ;;  %v3894_v62 = vcombine.high %v8727_v53, %v8727_v53  ;;  %v3328_v24 = vadd.f32 %v3327_v25, %v3326_v35  ;;  %v3097_v27 = vadd.f32 %v3096_v60, %v3095_v5  ;;  %11099 = vst [vmem:[#allocation177_spill] sm:$0xff] %v8744_v6  ;;  %v11101_v44 = vld [vmem:[#allocation145_spill] sm:$0xff] }
 0x349   :  { %5016 = vperm.xlu1 %6460, %v4762_v30   ;;  %v8722_v55 = vpop.xlane.xlu1 %2673  ;;  %5060 = vperm.xlu0 %6459, %v4806_v48   ;;  %v4778_v48 = vrot.slane %v3826_v18, %v8352_v34  ;;  %v3319_v13 = vadd.f32 %v3318_v19, %v3317_v22  ;;  %v3116_v33 = vadd.f32 %v3115_v28, %v3114_v56  ;;  %v3927_v18 = vld [vmem:[%s10282_s3] sm:$0xff]  ;;  %v3339_v32 = vrot.slane %v3338_v36, 2  ;;  %v8751_v22 = vpop.eup %6584 }
 0x34a   :  { %11094 = vst [vmem:[#allocation141_spill] sm:$0xff] %v8722_v55  ;;  %v3331_v40 = vadd.f32 %v3330_v41, %v3329_v52  ;;  %v4786_v35 = vrot.slane %v3852_v2, %v8352_v34  ;;  %v3874_v5 = vcombine.high %v3852_v2, %v3852_v2  ;;  %11102 = vst [vmem:[#allocation144_spill] sm:$0xff] %v8751_v22  ;;  %v4348_v56 = vadd.f32 1e-05, %v3468_v39 }
 0x34b   :  { %v4830_v60 = vrot.slane %v3925_v57, %v8352_v34  ;;  %v3922_v52 = vrot.slane %v3894_v62, %v8318_v37  ;;  %v8758_v19 = vrot.slane %v3927_v18, %v8318_v37  ;;  %v3500_v28 = vmul.f32 0.0625, %v3328_v24 }
 0x34c   :  { %v8731_v30 = vpop.xlane.xlu0 %2862  ;;  %v3467_v41 = vmul.f32 0.0625, %v3097_v27  ;;  %v3859_v57 = vrot.slane %v8663_v20, %v8318_v37  ;;  %v3943_v62 = vcombine.high %v3927_v18, %v3927_v18  ;;  %6588 = vrsqrt.f32 %v4377_v9 }
 0x34d   :  { %11097 = vst [vmem:[#allocation142_spill] sm:$0xff] %v8731_v30  ;;  %5024 = vperm.xlu1 %6460, %v4770_v47   ;;  %v8736_v7 = vpop.xlane.xlu1 %2865  ;;  %5068 = vperm.xlu0 %6459, %v4814_v12   ;;  %v3108_v47 = vrot.slane %v3107_v63, 2  ;;  %v3126_v12 = vadd.f32 %v2914_v61, %v2913_v15  ;;  %v2978_v30 = vmul.f32 0.5, %v11101_v44  ;;  %v3320_v15 = vrot.slane %v3319_v13, 1 }
 0x34e   :  { %11098 = vst [vmem:[#allocation143_spill] sm:$0xff] %v8736_v7  ;;  %v2977_v7 = vmul.f32 0.5, %v11100_v42  ;;  %v3117_v61 = vrot.slane %v3116_v33, 1  ;;  %v3340_v42 = vadd.f32 %v3339_v32, %v3338_v36  ;;  %v3332_v44 = vrot.slane %v3331_v40, 2 }
 0x34f   :  { %v3109_v2 = vadd.f32 %v3108_v47, %v3107_v63  ;;  %v3127_v22 = vrot.slane %v3126_v12, 4  ;;  %v4838_v24 = vrot.slane %v3922_v52, %v8352_v34  ;;  %v3926_v36 = vcombine.high %v3922_v52, %v3922_v52 }
 0x350   :  { %v8748_v55 = vpop.xlane.xlu0 %2664  ;;  %v3350_v39 = vadd.f32 %v2978_v30, %v2977_v7  ;;  %v3958_v63 = vcombine.high %v8758_v19, %v8758_v19  ;;  %v8770_v30 = vpop.eup %6586  ;;  %6590 = vrsqrt.f32 %v4348_v56  ;;  %v4380_v7 = vadd.f32 1e-05, %v3500_v28 }
 0x351   :  { %5032 = vperm.xlu1 %6460, %v4778_v48   ;;  %v8753_v25 = vpop.xlane.xlu1 %2667  ;;  %5076 = vperm.xlu0 %6459, %v4822_v3   ;;  %v4794_v3 = vrot.slane %v3874_v5, %v8352_v34  ;;  %11105 = vst [vmem:[#allocation179_spill] sm:$0xff] %v8770_v30  ;;  %v4347_v27 = vadd.f32 1e-05, %v3467_v41  ;;  %v3321_v32 = vadd.f32 %v3320_v15, %v3319_v13  ;;  %v3341_v20 = vrot.slane %v3340_v42, 1  ;;  %v11110_v41 = vld [vmem:[#allocation148_spill] sm:$0xff] }
 0x352   :  { %v3118_v47 = vadd.f32 %v3117_v61, %v3116_v33  ;;  %v3128_v18 = vadd.f32 %v3127_v22, %v3126_v12  ;;  %v3333_v9 = vadd.f32 %v3332_v44, %v3331_v40  ;;  %v3110_v52 = vrot.slane %v3109_v2, 1  ;;  %v11108_v12 = vld [vmem:[#allocation146_spill] sm:$0xff]  ;;  %v11109_v22 = vld [vmem:[#allocation147_spill] sm:$0xff]  ;;  %v11111_v61 = vld [vmem:[#allocation149_spill] sm:$0xff] }
 0x353   :  { %v4802_v56 = vrot.slane %v3859_v57, %v8352_v34  ;;  %v4846_v13 = vrot.slane %v3926_v36, %v8352_v34  ;;  %v3980_v33 = vrot.slane %v3958_v63, %v8318_v37  ;;  %v2911_v40 = vmul.f32 0.5, %v11108_v12 }
 0x354   :  { %v8760_v48 = vpop.xlane.xlu0 %2856  ;;  %v2912_v28 = vmul.f32 0.5, %v11109_v22  ;;  %v2975_v15 = vmul.f32 0.5, %v11110_v41  ;;  %v2976_v44 = vmul.f32 0.5, %v11111_v61  ;;  %6592 = vrsqrt.f32 %v4380_v7 }
 0x355   :  { %11103 = vst [vmem:[#allocation145_spill] sm:$0xff] %v8760_v48  ;;  %5040 = vperm.xlu1 %6460, %v4786_v35   ;;  %v8765_v6 = vpop.xlane.xlu1 %2859  ;;  %5084 = vperm.xlu0 %6459, %v4830_v60   ;;  %v3351_v35 = vrot.slane %v3350_v39, 4  ;;  %v3875_v60 = vcombine.high %v3859_v57, %v3859_v57  ;;  %v3129_v30 = vrot.slane %v3128_v18, 2  ;;  %6594 = vrsqrt.f32 %v4347_v27 }
 0x356   :  { %11104 = vst [vmem:[#allocation178_spill] sm:$0xff] %v8765_v6  ;;  %v8775_v6 = vrot.slane %v3943_v62, %v8318_v37  ;;  %v3499_v62 = vmul.f32 0.0625, %v3321_v32  ;;  %v5238_v12 = vrot.slane %v3980_v33, %v8352_v34  ;;  %v3901_v7 = vrot.slane %v8705_v10, %v8318_v37 }
 0x357   :  { %v4810_v57 = vrot.slane %v3875_v60, %v8352_v34  ;;  %v3990_v32 = vcombine.high %v3980_v33, %v3980_v33  ;;  %v8799_v60 = vpop.eup %6588  ;;  %v2918_v22 = vmul.f32 0.5, %v8428_v43 }
 0x358   :  { %v8772_v5 = vpop.xlane.xlu0 %2682  ;;  %v3959_v36 = vcombine.high %v8775_v6, %v8775_v6  ;;  %11114 = vst [vmem:[#allocation148_spill] sm:$0xff] %v8799_v60  ;;  %v4379_v27 = vadd.f32 1e-05, %v3499_v62  ;;  %v3908_v60 = vrot.slane %v8727_v53, %v8318_v37 }
 0x359   :  { %11106 = vst [vmem:[#allocation180_spill] sm:$0xff] %v8772_v5  ;;  %5048 = vperm.xlu1 %6460, %v4794_v3   ;;  %v8777_v48 = vpop.xlane.xlu1 %2685  ;;  %5092 = vperm.xlu0 %6459, %v4838_v24   ;;  %v3470_v3 = vmul.f32 0.0625, %v3118_v47  ;;  %v3352_v24 = vadd.f32 %v3351_v35, %v3350_v39  ;;  %v3334_v39 = vrot.slane %v3333_v9, 1  ;;  %v3119_v47 = vadd.f32 %v2912_v28, %v2911_v40  ;;  %v3928_v35 = vld [vmem:[%s10282_s3 + $0x8] sm:$0xff] }
 0x35a   :  { %11107 = vst [vmem:[#allocation181_spill] sm:$0xff] %v8777_v48  ;;  %v3342_v48 = vadd.f32 %v3341_v20, %v3340_v42  ;;  %v3111_v42 = vadd.f32 %v3110_v52, %v3109_v2  ;;  %v3343_v20 = vadd.f32 %v2976_v44, %v2975_v15  ;;  %v8803_v41 = vpop.eup %6590  ;;  %v3923_v2 = vcombine.high %v3901_v7, %v3901_v7 }
 0x35b   :  { %v4350_v10 = vadd.f32 1e-05, %v3470_v3  ;;  %v3353_v33 = vrot.slane %v3352_v24, 2  ;;  %v3987_v52 = vrot.slane %v3959_v36, %v8318_v37  ;;  %v4818_v15 = vrot.slane %v3901_v7, %v8352_v34 }
 0x35c   :  { %v8786_v5 = vpop.xlane.xlu0 %2874  ;;  %v3502_v40 = vmul.f32 0.0625, %v3342_v48  ;;  %v3469_v43 = vmul.f32 0.0625, %v3111_v42  ;;  %v3120_v61 = vrot.slane %v3119_v47, 4  ;;  %v3344_v44 = vrot.slane %v3343_v20, 4 }
 0x35d   :  { %11112 = vst [vmem:[#allocation146_spill] sm:$0xff] %v8786_v5  ;;  %5056 = vperm.xlu1 %6460, %v4802_v56   ;;  %v8791_v63 = vpop.xlane.xlu1 %2877  ;;  %5100 = vperm.xlu0 %6459, %v4846_v13   ;;  %v3130_v56 = vadd.f32 %v3129_v30, %v3128_v18  ;;  %v2917_v13 = vmul.f32 0.5, %v8423_v45  ;;  %v5246_v30 = vrot.slane %v3990_v32, %v8352_v34  ;;  %v2981_v48 = vmul.f32 0.5, %v8437_v4 }
 0x35e   :  { %11113 = vst [vmem:[#allocation147_spill] sm:$0xff] %v8791_v63  ;;  %v8811_v45 = vrot.slane %v3928_v35, %v8318_v37  ;;  %v3335_v18 = vadd.f32 %v3334_v39, %v3333_v9  ;;  %v4826_v7 = vrot.slane %v3923_v2, %v8352_v34  ;;  %v5254_v32 = vrot.slane %v3987_v52, %v8352_v34  ;;  %v8821_v42 = vpop.eup %6592 }
 0x35f   :  { %v3131_v3 = vrot.slane %v3130_v56, 1  ;;  %v3140_v36 = vadd.f32 %v2918_v22, %v2917_v13  ;;  %11115 = vst [vmem:[#allocation149_spill] sm:$0xff] %v8821_v42  ;;  %6596 = vrsqrt.f32 %v4379_v27  ;;  %v3991_v39 = vcombine.high %v3987_v52, %v3987_v52  ;;  %v8827_v22 = vpop.eup %6594 }
 0x360   :  { %v8813_v62 = vpop.xlane.xlu0 %2676  ;;  %v4007_v4 = vcombine.high %v8811_v45, %v8811_v45  ;;  %6598 = vrsqrt.f32 %v4350_v10  ;;  %v3345_v13 = vadd.f32 %v3344_v44, %v3343_v20  ;;  %11117 = vst [vmem:[#allocation183_spill] sm:$0xff] %v8827_v22  ;;  %v4349_v2 = vadd.f32 1e-05, %v3469_v43  ;;  %v11125_v22 = vld [vmem:[#allocation158_spill] sm:$0xff] }
 0x361   :  { %5064 = vperm.xlu1 %6460, %v4810_v57   ;;  %v8806_v28 = vpop.xlane.xlu1 %2679  ;;  %5492 = vperm.xlu0 %6459, %v5238_v12   ;;  %v2982_v57 = vmul.f32 0.5, %v8442_v49  ;;  %v3354_v12 = vadd.f32 %v3353_v33, %v3352_v24  ;;  %v3992_v49 = vcombine.high %v3928_v35, %v3928_v35  ;;  %v3121_v24 = vadd.f32 %v3120_v61, %v3119_v47 }
 0x362   :  { %v4382_v33 = vadd.f32 1e-05, %v3502_v40  ;;  %v3141_v53 = vrot.slane %v3140_v36, 4  ;;  %v3132_v42 = vadd.f32 %v3131_v3, %v3130_v56  ;;  %v3924_v52 = vcombine.high %v3908_v60, %v3908_v60 }
 0x363   :  { %v3364_v63 = vadd.f32 %v2982_v57, %v2981_v48  ;;  %v3355_v27 = vrot.slane %v3354_v12, 1  ;;  %v5262_v47 = vrot.slane %v3991_v39, %v8352_v34  ;;  %v4029_v20 = vrot.slane %v4007_v4, %v8318_v37  ;;  %v8856_v4 = vld [vmem:[%s10282_s3 + $0x10] sm:$0xff] }
 0x364   :  { %v8837_v35 = vrot.slane %v3992_v49, %v8318_v37  ;;  %v3122_v10 = vrot.slane %v3121_v24, 2  ;;  %v3346_v56 = vrot.slane %v3345_v13, 2  ;;  %v2915_v40 = vmul.f32 0.5, %v8455_v17 }
 0x365   :  { %5072 = vperm.xlu1 %6460, %v4818_v15   ;;  %v8823_v9 = vpop.xlane.xlu1 %2871  ;;  %5500 = vperm.xlu0 %6459, %v5246_v30   ;;  %v8829_v15 = vpop.xlane.xlu0 %2868  ;;  %v4834_v30 = vrot.slane %v3908_v60, %v8352_v34  ;;  %v2916_v43 = vmul.f32 0.5, %v8458_v23  ;;  %v3142_v61 = vadd.f32 %v3141_v53, %v3140_v36  ;;  %v3365_v60 = vrot.slane %v3364_v63, 4 }
 0x366   :  { %11116 = vst [vmem:[#allocation182_spill] sm:$0xff] %v8823_v9  ;;  %11118 = vst [vmem:[#allocation184_spill] sm:$0xff] %v8829_v15  ;;  %v3501_v9 = vmul.f32 0.0625, %v3335_v18  ;;  %v2979_v18 = vmul.f32 0.5, %v8472_v1  ;;  %v2980_v44 = vmul.f32 0.5, %v8480_v8  ;;  %6600 = vrsqrt.f32 %v4382_v33 }
 0x367   :  { %v3356_v3 = vadd.f32 %v3355_v27, %v3354_v12  ;;  %v4842_v57 = vrot.slane %v3924_v52, %v8352_v34  ;;  %6602 = vrsqrt.f32 %v4349_v2  ;;  %v5270_v23 = vrot.slane %v4029_v20, %v8352_v34 }
 0x368   :  { %v4039_v36 = vcombine.high %v4029_v20, %v4029_v20  ;;  %v4008_v1 = vcombine.high %v8837_v35, %v8837_v35  ;;  %v4381_v8 = vadd.f32 1e-05, %v3501_v9  ;;  %v3472_v12 = vmul.f32 0.0625, %v3132_v42 }
 0x369   :  { %5080 = vperm.xlu1 %6460, %v4826_v7   ;;  %v8832_v5 = vpop.permute.xlu1 %4852  ;;  %5508 = vperm.xlu0 %6459, %v5254_v32   ;;  %v3966_v7 = vrot.slane %v8758_v19, %v8318_v37  ;;  %v3123_v32 = vadd.f32 %v3122_v10, %v3121_v24  ;;  %v3133_v39 = vadd.f32 %v2916_v43, %v2915_v40  ;;  %v8858_v19 = vpop.eup %6596  ;;  %v3143_v33 = vrot.slane %v3142_v61, 2 }
 0x36a   :  { %11121 = vst [vmem:[#allocation187_spill] sm:$0xff] %v8858_v19  ;;  %v3347_v49 = vadd.f32 %v3346_v56, %v3345_v13  ;;  %v3366_v2 = vadd.f32 %v3365_v60, %v3364_v63  ;;  %v3357_v53 = vadd.f32 %v2980_v44, %v2979_v18  ;;  %v8860_v27 = vpop.eup %6598  ;;  %v2922_v9 = vmul.f32 0.5, %v8493_v26 }
 0x36b   :  { %v5234_v24 = vrot.slane %v3966_v7, %v8352_v34  ;;  %v3988_v52 = vcombine.high %v3966_v7, %v3966_v7  ;;  %v5278_v13 = vrot.slane %v4039_v36, %v8352_v34  ;;  %v4036_v63 = vrot.slane %v4008_v1, %v8318_v37 }
 0x36c   :  { %v8843_v48 = vpop.permute.xlu0 %4848  ;;  %v8873_v10 = vrot.slane %v8856_v4, %v8318_v37  ;;  %v3134_v26 = vrot.slane %v3133_v39, 4  ;;  %v2985_v56 = vmul.f32 0.5, %v8507_v16  ;;  %v2986_v40 = vmul.f32 0.5, %v8512_v58 }
 0x36d   :  { %11119 = vst [vmem:[#allocation185_spill] sm:$0xff] %v8843_v48  ;;  %5088 = vperm.xlu1 %6460, %v4834_v30   ;;  %v8848_v17 = vpop.permute.xlu1 %4856  ;;  %5516 = vperm.xlu0 %6459, %v5262_v47   ;;  %v2921_v30 = vmul.f32 0.5, %v8488_v46  ;;  %v3504_v47 = vmul.f32 0.0625, %v3356_v3  ;;  %v3124_v46 = vrot.slane %v3123_v32, 1  ;;  %6604 = vrsqrt.f32 %v4381_v8 }
 0x36e   :  { %11120 = vst [vmem:[#allocation186_spill] sm:$0xff] %v8848_v17  ;;  %v3348_v43 = vrot.slane %v3347_v49, 1  ;;  %v3144_v60 = vadd.f32 %v3143_v33, %v3142_v61  ;;  %v3367_v18 = vrot.slane %v3366_v2, 2  ;;  %v3358_v44 = vrot.slane %v3357_v53, 4 }
 0x36f   :  { %v3154_v3 = vadd.f32 %v2922_v9, %v2921_v30  ;;  %v5242_v7 = vrot.slane %v3988_v52, %v8352_v34  ;;  %v4352_v36 = vadd.f32 1e-05, %v3472_v12  ;;  %v5286_v16 = vrot.slane %v4036_v63, %v8352_v34 }
 0x370   :  { %v8864_v42 = vpop.permute.xlu0 %4884  ;;  %v4040_v58 = vcombine.high %v4036_v63, %v4036_v63  ;;  %v4056_v61 = vcombine.high %v8873_v10, %v8873_v10  ;;  %v8887_v8 = vpop.eup %6600  ;;  %v4384_v33 = vadd.f32 1e-05, %v3504_v47  ;;  %v3125_v30 = vadd.f32 %v3124_v46, %v3123_v32 }
 0x371   :  { %5096 = vperm.xlu1 %6460, %v4842_v57   ;;  %v8867_v20 = vpop.permute.xlu1 %4860  ;;  %5524 = vperm.xlu0 %6459, %v5270_v23   ;;  %v3973_v23 = vrot.slane %v8775_v6, %v8318_v37  ;;  %11123 = vst [vmem:[#allocation189_spill] sm:$0xff] %v8887_v8  ;;  %v3135_v9 = vadd.f32 %v3134_v26, %v3133_v39  ;;  %v8889_v19 = vpop.eup %6602  ;;  %v3145_v12 = vrot.slane %v3144_v60, 1  ;;  %v3155_v63 = vrot.slane %v3154_v3, 4 }
 0x372   :  { %v3378_v52 = vadd.f32 %v2986_v40, %v2985_v56  ;;  %11124 = vst [vmem:[#allocation190_spill] sm:$0xff] %v8889_v19  ;;  %v3349_v6 = vadd.f32 %v3348_v43, %v3347_v49  ;;  %v3359_v17 = vadd.f32 %v3358_v44, %v3357_v53  ;;  %6606 = vrsqrt.f32 %v4352_v36 }
 0x373   :  { %v3989_v15 = vcombine.high %v3973_v23, %v3973_v23  ;;  %v5250_v32 = vrot.slane %v3973_v23, %v8352_v34  ;;  %v5294_v39 = vrot.slane %v4040_v58, %v8352_v34  ;;  %v4078_v49 = vrot.slane %v4056_v61, %v8318_v37 }
 0x374   :  { %v8877_v57 = vpop.permute.xlu0 %4892  ;;  %6608 = vrsqrt.f32 %v4384_v33  ;;  %v3503_v53 = vmul.f32 0.0625, %v3349_v6  ;;  %v3146_v46 = vadd.f32 %v3145_v12, %v3144_v60  ;;  %v4041_v56 = vcombine.high %v8856_v4, %v8856_v4  ;;  %v11128_v33 = vld [vmem:[#allocation159_spill] sm:$0xff] }
 0x375   :  { %5488 = vperm.xlu1 %6460, %v5234_v24   ;;  %v8882_v1 = vpop.permute.xlu1 %4864  ;;  %5532 = vperm.xlu0 %6459, %v5278_v13   ;;  %v2919_v24 = vmul.f32 0.5, %v8522_v0  ;;  %v2920_v13 = vmul.f32 0.5, %v11125_v22  ;;  %v3471_v0 = vmul.f32 0.0625, %v3125_v30  ;;  %v3136_v22 = vrot.slane %v3135_v9, 2 }
 0x376   :  { %11122 = vst [vmem:[#allocation188_spill] sm:$0xff] %v8882_v1  ;;  %v3368_v1 = vadd.f32 %v3367_v18, %v3366_v2  ;;  %v3379_v2 = vrot.slane %v3378_v52, 4  ;;  %v3360_v40 = vrot.slane %v3359_v17, 2  ;;  %v3156_v43 = vadd.f32 %v3155_v63, %v3154_v3 }
 0x377   :  { %v3147_v26 = vadd.f32 %v2920_v13, %v2919_v24  ;;  %v5258_v44 = vrot.slane %v3989_v15, %v8352_v34  ;;  %v8907_v23 = vpop.eup %6604  ;;  %v5302_v60 = vrot.slane %v4078_v49, %v8352_v34  ;;  %v4088_v58 = vcombine.high %v4078_v49, %v4078_v49 }
 0x378   :  { %v8893_v48 = vpop.permute.xlu0 %4900  ;;  %11126 = vst [vmem:[#allocation158_spill] sm:$0xff] %v8907_v23  ;;  %v3369_v36 = vrot.slane %v3368_v1, 1  ;;  %v8913_v4 = vrot.slane %v4041_v56, %v8318_v37  ;;  %v3137_v3 = vadd.f32 %v3136_v22, %v3135_v9  ;;  %v3380_v61 = vadd.f32 %v3379_v2, %v3378_v52 }
 0x379   :  { %5496 = vperm.xlu1 %6460, %v5242_v7   ;;  %v8895_v47 = vpop.permute.xlu1 %4868  ;;  %5540 = vperm.xlu0 %6459, %v5286_v16   ;;  %v4015_v7 = vrot.slane %v8811_v45, %v8318_v37  ;;  %v2983_v15 = vmul.f32 0.5, %v8532_v31  ;;  %v2984_v30 = vmul.f32 0.5, %v11128_v33  ;;  %v8920_v45 = vld [vmem:[%s10282_s3 + $0x18] sm:$0xff]  ;;  %v3148_v6 = vrot.slane %v3147_v26, 4 }
 0x37a   :  { %v2925_v12 = vmul.f32 0.5, %v8546_v59  ;;  %v2926_v24 = vmul.f32 0.5, %v8551_v14  ;;  %v4057_v13 = vcombine.high %v8913_v4, %v8913_v4  ;;  %v3361_v63 = vadd.f32 %v3360_v40, %v3359_v17 }
 0x37b   :  { %v3157_v9 = vrot.slane %v3156_v43, 2  ;;  %v5266_v31 = vrot.slane %v4015_v7, %v8352_v34  ;;  %v5310_v22 = vrot.slane %v4088_v58, %v8352_v34  ;;  %v8935_v14 = vrot.slane %v8920_v45, %v8318_v37 }
 0x37c   :  { %v8902_v18 = vpop.permute.xlu0 %4908  ;;  %v4085_v59 = vrot.slane %v4057_v13, %v8318_v37  ;;  %v4383_v17 = vadd.f32 1e-05, %v3503_v53  ;;  %v3474_v2 = vmul.f32 0.0625, %v3146_v46  ;;  %v3381_v56 = vrot.slane %v3380_v61, 2  ;;  %v8937_v33 = vpop.eup %6606 }
 0x37d   :  { %5504 = vperm.xlu1 %6460, %v5250_v32   ;;  %v8909_v16 = vpop.permute.xlu1 %4872  ;;  %5548 = vperm.xlu0 %6459, %v5294_v39   ;;  %v4037_v32 = vcombine.high %v4015_v7, %v4015_v7  ;;  %v4351_v39 = vadd.f32 1e-05, %v3471_v0  ;;  %v3371_v40 = vadd.f32 %v2984_v30, %v2983_v15  ;;  %v3370_v7 = vadd.f32 %v3369_v36, %v3368_v1 }
 0x37e   :  { %11127 = vst [vmem:[#allocation191_spill] sm:$0xff] %v8909_v16  ;;  %v3138_v0 = vrot.slane %v3137_v3, 1  ;;  %v3168_v23 = vadd.f32 %v2926_v24, %v2925_v12  ;;  %v8939_v8 = vpop.eup %6608  ;;  %v3158_v58 = vadd.f32 %v3157_v9, %v3156_v43  ;;  %v4022_v53 = vrot.slane %v8837_v35, %v8318_v37 }
 0x37f   :  { %11129 = vst [vmem:[#allocation159_spill] sm:$0xff] %v8939_v8  ;;  %v5274_v13 = vrot.slane %v4037_v32, %v8352_v34  ;;  %6610 = vrsqrt.f32 %v4351_v39  ;;  %v5318_v1 = vrot.slane %v4085_v59, %v8352_v34  ;;  %v4105_v36 = vcombine.high %v8935_v14, %v8935_v14 }
 0x380   :  { %v8926_v52 = vpop.permute.xlu0 %4916  ;;  %v3382_v15 = vadd.f32 %v3381_v56, %v3380_v61  ;;  %v3372_v43 = vrot.slane %v3371_v40, 4  ;;  %v2989_v30 = vmul.f32 0.5, %v8562_v29  ;;  %v3139_v12 = vadd.f32 %v3138_v0, %v3137_v3 }
 0x381   :  { %5512 = vperm.xlu1 %6460, %v5258_v44   ;;  %v8929_v49 = vpop.permute.xlu1 %4876  ;;  %5556 = vperm.xlu0 %6459, %v5302_v60   ;;  %v3149_v44 = vadd.f32 %v3148_v6, %v3147_v26  ;;  %v3362_v60 = vrot.slane %v3361_v63, 1  ;;  %v4089_v26 = vcombine.high %v4085_v59, %v4085_v59  ;;  %v2990_v6 = vmul.f32 0.5, %v8567_v11 }
 0x382   :  { %v3169_v35 = vrot.slane %v3168_v23, 4  ;;  %v4090_v9 = vcombine.high %v8920_v45, %v8920_v45  ;;  %6612 = vrsqrt.f32 %v4383_v17  ;;  %v3159_v59 = vrot.slane %v3158_v58, 1 }
 0x383   :  { %v3150_v24 = vrot.slane %v3149_v44, 2  ;;  %v3363_v32 = vadd.f32 %v3362_v60, %v3361_v63  ;;  %v5282_v29 = vrot.slane %v4022_v53, %v8352_v34  ;;  %v5326_v11 = vrot.slane %v4089_v26, %v8352_v34 }
 0x384   :  { %v8941_v19 = vpop.permute.xlu0 %4924  ;;  %v4127_v3 = vrot.slane %v4105_v36, %v8318_v37  ;;  %v3383_v56 = vrot.slane %v3382_v15, 1  ;;  %v3373_v0 = vadd.f32 %v3372_v43, %v3371_v40  ;;  %v3392_v45 = vadd.f32 %v2990_v6, %v2989_v30 }
 0x385   :  { %11130 = vst [vmem:[#allocation192_spill] sm:$0xff] %v8941_v19  ;;  %5520 = vperm.xlu1 %6460, %v5266_v31   ;;  %v8946_v46 = vpop.permute.xlu1 %4880  ;;  %5564 = vperm.xlu0 %6459, %v5310_v22   ;;  %v4354_v31 = vadd.f32 1e-05, %v3474_v2  ;;  %v4038_v22 = vcombine.high %v4022_v53, %v4022_v53  ;;  %v8963_v17 = vrot.slane %v4090_v9, %v8318_v37  ;;  %v3506_v63 = vmul.f32 0.0625, %v3370_v7 }
 0x386   :  { %11131 = vst [vmem:[#allocation193_spill] sm:$0xff] %v8946_v46  ;;  %v3473_v2 = vmul.f32 0.0625, %v3139_v12  ;;  %v3151_v60 = vadd.f32 %v3150_v24, %v3149_v44  ;;  %v3170_v8 = vadd.f32 %v3169_v35, %v3168_v23  ;;  %v4064_v53 = vrot.slane %v8873_v10, %v8318_v37  ;;  %v3931_v12 = vld [vmem:[%s10282_s3 + $0x20] sm:$0xff] }
 0x387   :  { %6614 = vrsqrt.f32 %v4354_v31  ;;  %v3505_v26 = vmul.f32 0.0625, %v3363_v32  ;;  %v5334_v40 = vrot.slane %v4127_v3, %v8352_v34  ;;  %v4137_v43 = vcombine.high %v4127_v3, %v4127_v3 }
 0x388   :  { %v8955_v39 = vpop.permute.xlu0 %4932  ;;  %v4106_v7 = vcombine.high %v8963_v17, %v8963_v17  ;;  %v3160_v23 = vadd.f32 %v3159_v59, %v3158_v58  ;;  %v3384_v44 = vadd.f32 %v3383_v56, %v3382_v15  ;;  %v3374_v30 = vrot.slane %v3373_v0, 2 }
 0x389   :  { %11132 = vst [vmem:[#allocation194_spill] sm:$0xff] %v8955_v39  ;;  %5528 = vperm.xlu1 %6460, %v5274_v13   ;;  %v8957_v61 = vpop.permute.xlu1 %4888  ;;  %5572 = vperm.xlu0 %6459, %v5318_v1   ;;  %v5290_v1 = vrot.slane %v4038_v22, %v8352_v34  ;;  %v3393_v6 = vrot.slane %v3392_v45, 4  ;;  %v8978_v10 = vpop.eup %6610  ;;  %v4386_v24 = vadd.f32 1e-05, %v3506_v63  ;;  %v4353_v35 = vadd.f32 1e-05, %v3473_v2 }
 0x38a   :  { %11133 = vst [vmem:[#allocation195_spill] sm:$0xff] %v8957_v61  ;;  %11136 = vst [vmem:[#allocation198_spill] sm:$0xff] %v8978_v10  ;;  %v3152_v9 = vrot.slane %v3151_v60, 1  ;;  %v3171_v31 = vrot.slane %v3170_v8, 2  ;;  %v2923_v32 = vmul.f32 0.5, %v8577_v54  ;;  %v2924_v22 = vmul.f32 0.5, %v8580_v38 }
 0x38b   :  { %v5298_v58 = vrot.slane %v4064_v53, %v8352_v34  ;;  %v4086_v15 = vcombine.high %v4064_v53, %v4064_v53  ;;  %v4385_v59 = vadd.f32 1e-05, %v3505_v26  ;;  %v5342_v3 = vrot.slane %v4137_v43, %v8352_v34  ;;  %v11140_v26 = vld [vmem:[#allocation164_spill] sm:$0xff] }
 0x38c   :  { %v8965_v13 = vpop.permute.xlu0 %4940  ;;  %v4134_v56 = vrot.slane %v4106_v7, %v8318_v37  ;;  %v8990_v63 = vrot.slane %v3931_v12, %v8318_v37  ;;  %v8992_v54 = vpop.eup %6612  ;;  %v3476_v38 = vmul.f32 0.0625, %v3160_v23  ;;  %v3508_v2 = vmul.f32 0.0625, %v3384_v44 }
 0x38d   :  { %11134 = vst [vmem:[#allocation196_spill] sm:$0xff] %v8965_v13  ;;  %5536 = vperm.xlu1 %6460, %v5282_v29   ;;  %v8970_v36 = vpop.permute.xlu1 %4896  ;;  %5580 = vperm.xlu0 %6459, %v5326_v11   ;;  %11139 = vst [vmem:[#allocation201_spill] sm:$0xff] %v8992_v54  ;;  %v3375_v10 = vadd.f32 %v3374_v30, %v3373_v0  ;;  %v3172_v53 = vadd.f32 %v3171_v31, %v3170_v8  ;;  %6616 = vrsqrt.f32 %v4386_v24 }
 0x38e   :  { %11135 = vst [vmem:[#allocation197_spill] sm:$0xff] %v8970_v36  ;;  %v3153_v36 = vadd.f32 %v3152_v9, %v3151_v60  ;;  %v5306_v43 = vrot.slane %v4086_v15, %v8352_v34  ;;  %v4071_v7 = vrot.slane %v8913_v4, %v8318_v37  ;;  %v4139_v61 = vcombine.high %v3931_v12, %v3931_v12 }
 0x38f   :  { %v5350_v8 = vrot.slane %v4134_v56, %v8352_v34  ;;  %v4138_v0 = vcombine.high %v4134_v56, %v4134_v56  ;;  %6618 = vrsqrt.f32 %v4353_v35  ;;  %v3376_v60 = vrot.slane %v3375_v10, 1 }
 0x390   :  { %v8982_v29 = vpop.permute.xlu0 %4948  ;;  %6620 = vrsqrt.f32 %v4385_v59  ;;  %v4356_v30 = vadd.f32 1e-05, %v3476_v38  ;;  %v4388_v4 = vadd.f32 1e-05, %v3508_v2  ;;  %v3173_v12 = vrot.slane %v3172_v53, 1  ;;  %v11145_v38 = vld [vmem:[#allocation166_spill] sm:$0xff] }
 0x391   :  { %11137 = vst [vmem:[#allocation199_spill] sm:$0xff] %v8982_v29  ;;  %5544 = vperm.xlu1 %6460, %v5290_v1   ;;  %v8985_v11 = vpop.permute.xlu1 %4904  ;;  %5588 = vperm.xlu0 %6459, %v5334_v40   ;;  %v3394_v29 = vadd.f32 %v3393_v6, %v3392_v45  ;;  %v2987_v1 = vmul.f32 0.5, %v11140_v26  ;;  %v3161_v40 = vadd.f32 %v2924_v22, %v2923_v32  ;;  %v9006_v45 = vpop.eup %6614  ;;  %v3475_v22 = vmul.f32 0.0625, %v3153_v36 }
 0x392   :  { %11138 = vst [vmem:[#allocation200_spill] sm:$0xff] %v8985_v11  ;;  %v2988_v11 = vmul.f32 0.5, %v8597_v21  ;;  %v4154_v21 = vcombine.high %v8990_v63, %v8990_v63  ;;  %v5314_v31 = vrot.slane %v4071_v7, %v8352_v34  ;;  %v9012_v32 = vrot.slane %v4139_v61, %v8318_v37 }
 0x393   :  { %v3395_v44 = vrot.slane %v3394_v29, 2  ;;  %v3162_v24 = vrot.slane %v3161_v40, 4  ;;  %v5358_v35 = vrot.slane %v4138_v0, %v8352_v34  ;;  %v4087_v15 = vcombine.high %v4071_v7, %v4071_v7 }
 0x394   :  { %v8996_v13 = vpop.permute.xlu0 %4956  ;;  %v3385_v6 = vadd.f32 %v2988_v11, %v2987_v1  ;;  %v4176_v59 = vrot.slane %v4154_v21, %v8318_v37  ;;  %v3377_v11 = vadd.f32 %v3376_v60, %v3375_v10  ;;  %v2929_v56 = vmul.f32 0.5, %v8601_v51 }
 0x395   :  { %11141 = vst [vmem:[#allocation164_spill] sm:$0xff] %v8996_v13  ;;  %5552 = vperm.xlu1 %6460, %v5298_v58   ;;  %v9001_v23 = vpop.permute.xlu1 %4912  ;;  %5596 = vperm.xlu0 %6459, %v5342_v3   ;;  %v3396_v3 = vadd.f32 %v3395_v44, %v3394_v29  ;;  %v2930_v2 = vmul.f32 0.5, %v11145_v38  ;;  %6622 = vrsqrt.f32 %v4356_v30  ;;  %v3174_v61 = vadd.f32 %v3173_v12, %v3172_v53  ;;  %v9033_v53 = vld [vmem:[%s10282_s3 + $0x28] sm:$0xff]  ;;  %v11202_v13 = vld [vmem:[#allocation157_spill] sm:$0xff] }
 0x396   :  { %11142 = vst [vmem:[#allocation202_spill] sm:$0xff] %v9001_v23  ;;  %v3386_v26 = vrot.slane %v3385_v6, 4  ;;  %v3163_v1 = vadd.f32 %v3162_v24, %v3161_v40  ;;  %v4155_v7 = vcombine.high %v9012_v32, %v9012_v32  ;;  %6624 = vrsqrt.f32 %v4388_v4  ;;  %v11149_v30 = vld [vmem:[#allocation123_spill] sm:$0xff]  ;;  %v11151_v24 = vld [vmem:[#allocation124_spill] sm:$0xff] }
 0x397   :  { %v5322_v51 = vrot.slane %v4087_v15, %v8352_v34  ;;  %v5366_v29 = vrot.slane %v4176_v59, %v8352_v34  ;;  %v4355_v40 = vadd.f32 1e-05, %v3475_v22  ;;  %v3397_v0 = vrot.slane %v3396_v3, 1  ;;  %v9035_v60 = vpop.eup %6616  ;;  %v11150_v4 = vld [vmem:[#allocation151_spill] sm:$0xff] }
 0x398   :  { %v9008_v9 = vpop.permute.xlu0 %4964  ;;  %v3182_v21 = vadd.f32 %v2930_v2, %v2929_v56  ;;  %11148 = vst [vmem:[#allocation206_spill] sm:$0xff] %v9035_v60  ;;  %v3387_v44 = vadd.f32 %v3386_v26, %v3385_v6  ;;  %v4529_v12 = vmul.f32 %v11150_v4, %v11149_v30  ;;  %v4183_v22 = vrot.slane %v4155_v7, %v8318_v37  ;;  %v11157_v7 = vld [vmem:[#allocation167_spill] sm:$0xff]  ;;  %v11158_v60 = vld [vmem:[#allocation168_spill] sm:$0xff] }
 0x399   :  { %11143 = vst [vmem:[#allocation203_spill] sm:$0xff] %v9008_v9  ;;  %5560 = vperm.xlu1 %6460, %v5306_v43   ;;  %v9014_v58 = vpop.permute.xlu1 %4920  ;;  %5604 = vperm.xlu0 %6459, %v5350_v8   ;;  %v4113_v43 = vrot.slane %v8935_v14, %v8318_v37  ;;  %v4186_v8 = vcombine.high %v4176_v59, %v4176_v59  ;;  %v3507_v14 = vmul.f32 0.0625, %v3377_v11  ;;  %v9041_v15 = vpop.eup %6618  ;;  %v3478_v59 = vmul.f32 0.0625, %v3174_v61 }
 0x39a   :  { %11144 = vst [vmem:[#allocation204_spill] sm:$0xff] %v9014_v58  ;;  %11152 = vst [vmem:[#allocation123_spill] sm:$0xff] %v9041_v15  ;;  %v9047_v11 = vrot.slane %v9033_v53, %v8318_v37  ;;  %v9049_v6 = vpop.eup %6620  ;;  %v3164_v56 = vrot.slane %v3163_v1, 2  ;;  %v11159_v58 = vld [vmem:[#allocation2_spill] sm:$0xff]  ;;  %6626 = vrsqrt.f32 %v4355_v40 }
 0x39b   :  { %v5330_v54 = vrot.slane %v4113_v43, %v8352_v34  ;;  %11153 = vst [vmem:[#allocation151_spill] sm:$0xff] %v9049_v6  ;;  %v5374_v61 = vrot.slane %v4186_v8, %v8352_v34  ;;  %v11160_v6 = vld [vmem:[#allocation155_spill] sm:$0xff]  ;;  %v4187_v8 = vcombine.high %v4183_v22, %v4183_v22  ;;  %v11167_v40 = vld [vmem:[#allocation10_spill] sm:$0xff] }
 0x39c   :  { %v9020_v36 = vpop.permute.xlu0 %4972  ;;  %v4533_v9 = vmul.f32 %v11160_v6, %v11159_v58 }
 0x39d   :  { %11146 = vst [vmem:[#allocation166_spill] sm:$0xff] %v9020_v36  ;;  %5568 = vperm.xlu1 %6460, %v5314_v31   ;;  %v9026_v10 = vpop.permute.xlu1 %4928  ;;  %5612 = vperm.xlu0 %6459, %v5358_v35   ;;  %v4530_v31 = vmul.f32 %v11150_v4, %v11151_v24  ;;  %v4135_v35 = vcombine.high %v4113_v43, %v4113_v43  ;;  %v3183_v4 = vrot.slane %v3182_v21, 4  ;;  %v2993_v24 = vmul.f32 0.5, %v11157_v7 }
 0x39e   :  { %11147 = vst [vmem:[#allocation205_spill] sm:$0xff] %v9026_v10  ;;  %v3398_v43 = vadd.f32 %v3397_v0, %v3396_v3  ;;  %v2994_v10 = vmul.f32 0.5, %v11158_v60  ;;  %v3388_v36 = vrot.slane %v3387_v44, 2  ;;  %v4120_v3 = vrot.slane %v8963_v17, %v8318_v37 }
 0x39f   :  { %v4203_v0 = vcombine.high %v9047_v11, %v9047_v11  ;;  %v9070_v60 = vpop.eup %6622  ;;  %v3165_v17 = vadd.f32 %v3164_v56, %v3163_v1 }
 0x3a0   :  { %v4981_v38 = vpop.permute.xlu0 %4980  ;;  %11162 = vst [vmem:[#allocation167_spill] sm:$0xff] %v9070_v60  ;;  %v3389_v15 = vadd.f32 %v3388_v36, %v3387_v44  ;;  %v11203_v60 = vld [vmem:[#allocation8_spill] sm:$0xff] }
 0x3a1   :  { %v9051_v2 = vmul.f32 %v4981_v38, %v4529_v12  ;;  %v9053_v26 = vmul.f32 %v4981_v38, %v4530_v31  ;;  %5576 = vperm.xlu1 %6460, %v5322_v51   ;;  %v9055_v30 = vpop.permute.xlu1 %4936  ;;  %5620 = vperm.xlu0 %6459, %v5366_v29   ;;  %v11161_v12 = vld [vmem:[#allocation6_spill] sm:$0xff]  ;;  %v5338_v51 = vrot.slane %v4135_v35, %v8352_v34 }
 0x3a2   :  { %11156 = vst [vmem:[#allocation208_spill] sm:$0xff] %v9055_v30  ;;  %v4534_v31 = vmul.f32 %v11160_v6, %v11161_v12  ;;  %v5382_v29 = vrot.slane %v4183_v22, %v8352_v34  ;;  %v4188_v35 = vcombine.high %v9033_v53, %v9033_v53  ;;  %v4387_v12 = vadd.f32 1e-05, %v3507_v14 }
 0x3a3   :  { %11154 = vst [vmem:[#allocation124_spill] sm:$0xff] %v9051_v2  ;;  %11155 = vst [vmem:[#allocation207_spill] sm:$0xff] %v9053_v26  ;;  %v3184_v22 = vadd.f32 %v3183_v4, %v3182_v21  ;;  %v3406_v26 = vadd.f32 %v2994_v10, %v2993_v24  ;;  %v9080_v2 = vpop.eup %6624  ;;  %v4358_v30 = vadd.f32 1e-05, %v3478_v59  ;;  %v4136_v53 = vcombine.high %v4120_v3, %v4120_v3  ;;  %v11173_v24 = vld [vmem:[#allocation130_spill] sm:$0xff] }
 0x3a4   :  { %v4989_v38 = vpop.permute.xlu0 %4988  ;;  %11166 = vst [vmem:[#allocation6_spill] sm:$0xff] %v9080_v2  ;;  %v4225_v1 = vrot.slane %v4203_v0, %v8318_v37  ;;  %v3510_v14 = vmul.f32 0.0625, %v3398_v43  ;;  %v9096_v44 = vrot.slane %v4188_v35, %v8318_v37  ;;  %v3166_v59 = vrot.slane %v3165_v17, 1  ;;  %v11175_v43 = vld [vmem:[#allocation18_spill] sm:$0xff] }
 0x3a5   :  { %v9072_v7 = vmul.f32 %v4989_v38, %v4533_v9  ;;  %v9074_v58 = vmul.f32 %v4989_v38, %v4534_v31  ;;  %5584 = vperm.xlu1 %6460, %v5330_v54   ;;  %v9076_v6 = vpop.permute.xlu1 %4944  ;;  %5628 = vperm.xlu0 %6459, %v5374_v61   ;;  %v11168_v9 = vld [vmem:[#allocation161_spill] sm:$0xff]  ;;  %v11169_v31 = vld [vmem:[#allocation14_spill] sm:$0xff]  ;;  %v5346_v61 = vrot.slane %v4120_v3, %v8352_v34  ;;  %v3185_v56 = vrot.slane %v3184_v22, 2 }
 0x3a6   :  { %11165 = vst [vmem:[#allocation155_spill] sm:$0xff] %v9076_v6  ;;  %v4538_v54 = vmul.f32 %v11168_v9, %v11169_v31  ;;  %v3407_v4 = vrot.slane %v3406_v26, 4  ;;  %v3390_v3 = vrot.slane %v3389_v15, 1  ;;  %v11177_v31 = vld [vmem:[#allocation22_spill] sm:$0xff]  ;;  %v5398_v35 = vrot.slane %v4225_v1, %v8352_v34 }
 0x3a7   :  { %11163 = vst [vmem:[#allocation168_spill] sm:$0xff] %v9072_v7  ;;  %11164 = vst [vmem:[#allocation2_spill] sm:$0xff] %v9074_v58  ;;  %v4537_v7 = vmul.f32 %v11168_v9, %v11167_v40  ;;  %v5390_v58 = vrot.slane %v4187_v8, %v8352_v34  ;;  %v2927_v8 = vmul.f32 0.5, %v11173_v24  ;;  %v11174_v40 = vld [vmem:[#allocation169_spill] sm:$0xff]  ;;  %v4235_v2 = vcombine.high %v4225_v1, %v4225_v1 }
 0x3a8   :  { %v4997_v38 = vpop.permute.xlu0 %4996  ;;  %v2928_v0 = vmul.f32 0.5, %v11174_v40  ;;  %6628 = vrsqrt.f32 %v4387_v12  ;;  %v3167_v1 = vadd.f32 %v3166_v59, %v3165_v17  ;;  %v11186_v59 = vld [vmem:[#allocation171_spill] sm:$0xff] }
 0x3a9   :  { %v9089_v10 = vmul.f32 %v4997_v38, %v4537_v7  ;;  %v9091_v21 = vmul.f32 %v4997_v38, %v4538_v54  ;;  %5592 = vperm.xlu1 %6460, %v5338_v51   ;;  %v9093_v36 = vpop.permute.xlu1 %4952  ;;  %5636 = vperm.xlu0 %6459, %v5382_v29   ;;  %v11176_v7 = vld [vmem:[#allocation131_spill] sm:$0xff]  ;;  %v5354_v29 = vrot.slane %v4136_v53, %v8352_v34  ;;  %6630 = vrsqrt.f32 %v4358_v30 }
 0x3aa   :  { %11172 = vst [vmem:[#allocation14_spill] sm:$0xff] %v9093_v36  ;;  %v4541_v9 = vmul.f32 %v11176_v7, %v11175_v43  ;;  %v4542_v51 = vmul.f32 %v11176_v7, %v11177_v31  ;;  %v4162_v38 = vrot.slane %v8990_v63, %v8318_v37  ;;  %v4204_v43 = vcombine.high %v9096_v44, %v9096_v44  ;;  %v3933_v7 = vld [vmem:[%s10282_s3 + $0x30] sm:$0xff]  ;;  %v9119_v63 = vpop.eup %6626  ;;  %v11182_v31 = vld [vmem:[#allocation121_spill] sm:$0xff] }
 0x3ab   :  { %11170 = vst [vmem:[#allocation10_spill] sm:$0xff] %v9089_v10  ;;  %11171 = vst [vmem:[#allocation161_spill] sm:$0xff] %v9091_v21  ;;  %v4390_v21 = vadd.f32 1e-05, %v3510_v14  ;;  %v3186_v53 = vadd.f32 %v3185_v56, %v3184_v22  ;;  %v9121_v14 = vadd.f32 %v3407_v4, %v3406_v26  ;;  %v5406_v26 = vrot.slane %v4235_v2, %v8352_v34  ;;  %v11193_v2 = vld [vmem:[#allocation153_spill] sm:$0xff] }
 0x3ac   :  { %v5005_v54 = vpop.permute.xlu0 %5004  ;;  %11181 = vst [vmem:[#allocation131_spill] sm:$0xff] %v9119_v63  ;;  %v5362_v12 = vrot.slane %v4162_v38, %v8352_v34  ;;  %v4184_v22 = vcombine.high %v4162_v38, %v4162_v38  ;;  %v4232_v30 = vrot.slane %v4204_v43, %v8318_v37  ;;  %v2991_v4 = vmul.f32 0.5, %v11186_v59  ;;  %v11189_v38 = vld [vmem:[#allocation176_spill] sm:$0xff] }
 0x3ad   :  { %v9108_v24 = vmul.f32 %v5005_v54, %v4541_v9  ;;  %v9110_v10 = vmul.f32 %v5005_v54, %v4542_v51  ;;  %5600 = vperm.xlu1 %6460, %v5346_v61   ;;  %v9112_v40 = vpop.permute.xlu1 %4960  ;;  %5644 = vperm.xlu0 %6459, %v5390_v58   ;;  %v3175_v9 = vadd.f32 %v2928_v0, %v2927_v8  ;;  %v11183_v58 = vld [vmem:[#allocation150_spill] sm:$0xff]  ;;  %6632 = vrsqrt.f32 %v4390_v21  ;;  %v11187_v8 = vld [vmem:[#allocation173_spill] sm:$0xff]  ;;  %v11188_v0 = vld [vmem:[#allocation175_spill] sm:$0xff] }
 0x3ae   :  { %11180 = vst [vmem:[#allocation18_spill] sm:$0xff] %v9112_v40  ;;  %v9123_v61 = vadd.f32 %v3390_v3, %v3389_v15  ;;  %v9127_v51 = vmul.f32 %v11183_v58, %v11182_v31  ;;  %v9137_v15 = vrot.slane %v3933_v7, %v8318_v37  ;;  %v3187_v17 = vrot.slane %v3186_v53, 1  ;;  %v11195_v40 = vld [vmem:[#allocation128_spill] sm:$0xff] }
 0x3af   :  { %11178 = vst [vmem:[#allocation130_spill] sm:$0xff] %v9108_v24  ;;  %11179 = vst [vmem:[#allocation169_spill] sm:$0xff] %v9110_v10  ;;  %v2992_v3 = vmul.f32 0.5, %v11187_v8  ;;  %v2933_v31 = vmul.f32 0.5, %v11188_v0  ;;  %v2934_v21 = vmul.f32 0.5, %v11189_v38  ;;  %v11192_v10 = vld [vmem:[#allocation127_spill] sm:$0xff]  ;;  %v4528_v36 = vmul.f32 %v11193_v2, %v11195_v40 }
 0x3b0   :  { %v9129_v54 = vpop.permute.xlu0 %5012  ;;  %v4527_v24 = vmul.f32 %v11193_v2, %v11192_v10  ;;  %v5370_v59 = vrot.slane %v4184_v22, %v8352_v34  ;;  %v4169_v8 = vrot.slane %v9012_v32, %v8318_v37  ;;  %v4237_v0 = vcombine.high %v3933_v7, %v3933_v7  ;;  %v11198_v7 = vld [vmem:[#allocation122_spill] sm:$0xff] }
 0x3b1   :  { %11184 = vst [vmem:[#allocation22_spill] sm:$0xff] %v9129_v54  ;;  %5608 = vperm.xlu1 %6460, %v5354_v29   ;;  %v9132_v56 = vpop.permute.xlu1 %4968  ;;  %5652 = vperm.xlu0 %6459, %v5398_v35   ;;  %v11190_v29 = vld [vmem:[#allocation133_spill] sm:$0xff]  ;;  %v3477_v6 = vmul.f32 0.0625, %v3167_v1  ;;  %v4252_v10 = vcombine.high %v9137_v15, %v9137_v15  ;;  %v3399_v63 = vadd.f32 %v2992_v3, %v2991_v4 }
 0x3b2   :  { %11185 = vst [vmem:[#allocation121_spill] sm:$0xff] %v9132_v56  ;;  %v2997_v54 = vmul.f32 0.5, %v11190_v29  ;;  %v11191_v56 = vld [vmem:[#allocation134_spill] sm:$0xff]  ;;  %v4236_v29 = vcombine.high %v4232_v30, %v4232_v30  ;;  %v3188_v22 = vadd.f32 %v3187_v17, %v3186_v53  ;;  %v3196_v2 = vadd.f32 %v2934_v21, %v2933_v31 }
 0x3b3   :  { %v2998_v35 = vmul.f32 0.5, %v11191_v56  ;;  %v5414_v56 = vrot.slane %v4232_v30, %v8352_v34  ;;  %v9163_v1 = vmul.f32 %v11183_v58, %v11198_v7  ;;  %v11201_v30 = vld [vmem:[#allocation4_spill] sm:$0xff]  ;;  %v4185_v4 = vcombine.high %v4169_v8, %v4169_v8 }
 0x3b4   :  { %v9147_v43 = vpop.permute.xlu0 %5020  ;;  %v4531_v39 = vmul.f32 %v11202_v13, %v11201_v30  ;;  %v5378_v17 = vrot.slane %v4169_v8, %v8352_v34  ;;  %v5422_v3 = vrot.slane %v4236_v29, %v8352_v34  ;;  %v4274_v31 = vrot.slane %v4252_v10, %v8318_v37  ;;  %v11208_v30 = vld [vmem:[#allocation137_spill] sm:$0xff]  ;;  %v11211_v8 = vld [vmem:[#allocation12_spill] sm:$0xff]  ;;  %v11212_v29 = vld [vmem:[#allocation163_spill] sm:$0xff] }
 0x3b5   :  { %11194 = vst [vmem:[#allocation150_spill] sm:$0xff] %v9147_v43  ;;  %5616 = vperm.xlu1 %6460, %v5362_v12   ;;  %v4977_v38 = vpop.permute.xlu1 %4976  ;;  %5660 = vperm.xlu0 %6459, %v5406_v26   ;;  %v3176_v43 = vrot.slane %v3175_v9, 4  ;;  %v3420_v32 = vadd.f32 %v2998_v35, %v2997_v54  ;;  %v9165_v12 = vpop.eup %6628  ;;  %v3409_v54 = vrot.slane %v9121_v14, 2  ;;  %v3400_v35 = vrot.slane %v3399_v63, 4  ;;  %v11213_v10 = vld [vmem:[#allocation16_spill] sm:$0xff] }
 0x3b6   :  { %v9157_v23 = vmul.f32 %v4977_v38, %v4527_v24  ;;  %v9159_v40 = vmul.f32 %v4977_v38, %v4528_v36  ;;  %11199 = vst [vmem:[#allocation175_spill] sm:$0xff] %v9165_v12  ;;  %v4532_v24 = vmul.f32 %v11202_v13, %v11203_v60  ;;  %v9174_v36 = vrot.slane %v4237_v0, %v8318_v37  ;;  %v9176_v53 = vpop.eup %6630  ;;  %v11209_v12 = vld [vmem:[#allocation138_spill] sm:$0xff] }
 0x3b7   :  { %11204 = vst [vmem:[#allocation133_spill] sm:$0xff] %v9176_v53  ;;  %v3177_v21 = vadd.f32 %v3176_v43, %v3175_v9  ;;  %v9186_v0 = vpop.eup %6632  ;;  %v3197_v38 = vrot.slane %v3196_v2, 4  ;;  %v3421_v7 = vrot.slane %v3420_v32, 4  ;;  %v4536_v9 = vmul.f32 %v11212_v29, %v11213_v10  ;;  %v11217_v53 = vld [vmem:[#allocation140_spill] sm:$0xff] }
 0x3b8   :  { %11196 = vst [vmem:[#allocation171_spill] sm:$0xff] %v9157_v23  ;;  %11197 = vst [vmem:[#allocation173_spill] sm:$0xff] %v9159_v40  ;;  %v9167_v26 = vpop.permute.xlu0 %5028  ;;  %v4535_v40 = vmul.f32 %v11212_v29, %v11211_v8  ;;  %v4253_v43 = vcombine.high %v9174_v36, %v9174_v36  ;;  %v3401_v8 = vadd.f32 %v3400_v35, %v3399_v63  ;;  %v3509_v35 = vmul.f32 0.0625, %v9123_v61 }
 0x3b9   :  { %11200 = vst [vmem:[#allocation176_spill] sm:$0xff] %v9167_v26  ;;  %5624 = vperm.xlu1 %6460, %v5370_v59   ;;  %v4985_v58 = vpop.permute.xlu1 %4984  ;;  %5668 = vperm.xlu0 %6459, %v5414_v56   ;;  %11207 = vst [vmem:[#allocation153_spill] sm:$0xff] %v9186_v0  ;;  %v2931_v59 = vmul.f32 0.5, %v11208_v30  ;;  %v2932_v56 = vmul.f32 0.5, %v11209_v12  ;;  %v5430_v30 = vrot.slane %v4274_v31, %v8352_v34 }
 0x3ba   :  { %v9182_v13 = vmul.f32 %v4985_v58, %v4531_v39  ;;  %v9184_v60 = vmul.f32 %v4985_v58, %v4532_v24  ;;  %v5386_v39 = vrot.slane %v4185_v4, %v8352_v34  ;;  %v4357_v24 = vadd.f32 1e-05, %v3477_v6  ;;  %v3934_v4 = vld [vmem:[%s10282_s3 + $0x38] sm:$0xff] }
 0x3bb   :  { %v4211_v12 = vrot.slane %v9047_v11, %v8318_v37  ;;  %v4284_v0 = vcombine.high %v4274_v31, %v4274_v31  ;;  %v3410_v6 = vadd.f32 %v3409_v54, %v9121_v14  ;;  %v3189_v10 = vadd.f32 %v2932_v56, %v2931_v59 }
 0x3bc   :  { %11205 = vst [vmem:[#allocation134_spill] sm:$0xff] %v9182_v13  ;;  %11206 = vst [vmem:[#allocation127_spill] sm:$0xff] %v9184_v60  ;;  %v9190_v26 = vpop.permute.xlu0 %5036  ;;  %v11216_v13 = vld [vmem:[#allocation139_spill] sm:$0xff]  ;;  %v2996_v11 = vmul.f32 0.5, %v11217_v53  ;;  %v3480_v54 = vmul.f32 0.0625, %v3188_v22  ;;  %v4218_v22 = vrot.slane %v9096_v44, %v8318_v37  ;;  %6634 = vrsqrt.f32 %v4357_v24 }
 0x3bd   :  { %11210 = vst [vmem:[#allocation128_spill] sm:$0xff] %v9190_v26  ;;  %5632 = vperm.xlu1 %6460, %v5378_v17   ;;  %v4993_v58 = vpop.permute.xlu1 %4992  ;;  %5676 = vperm.xlu0 %6459, %v5422_v3   ;;  %v3178_v26 = vrot.slane %v3177_v21, 2  ;;  %v3198_v17 = vadd.f32 %v3197_v38, %v3196_v2  ;;  %v3422_v3 = vadd.f32 %v3421_v7, %v3420_v32  ;;  %v2995_v23 = vmul.f32 0.5, %v11216_v13  ;;  %v11220_v38 = vld [vmem:[#allocation125_spill] sm:$0xff]  ;;  %v11221_v7 = vld [vmem:[#allocation152_spill] sm:$0xff] }
 0x3be   :  { %v9202_v60 = vmul.f32 %v4993_v58, %v4535_v40  ;;  %v9204_v29 = vmul.f32 %v4993_v58, %v4536_v9  ;;  %v4233_v63 = vcombine.high %v4211_v12, %v4211_v12  ;;  %v4281_v40 = vrot.slane %v4253_v43, %v8318_v37 }
 0x3bf   :  { %v5394_v14 = vrot.slane %v4211_v12, %v8352_v34  ;;  %v5438_v2 = vrot.slane %v4284_v0, %v8352_v34  ;;  %v9221_v32 = vrot.slane %v3934_v4, %v8318_v37  ;;  %v3179_v53 = vadd.f32 %v3178_v26, %v3177_v21 }
 0x3c0   :  { %11214 = vst [vmem:[#allocation122_spill] sm:$0xff] %v9202_v60  ;;  %11215 = vst [vmem:[#allocation4_spill] sm:$0xff] %v9204_v29  ;;  %v9212_v31 = vpop.permute.xlu0 %5044  ;;  %v3402_v13 = vrot.slane %v3401_v8, 2  ;;  %v9225_v59 = vmul.f32 %v11221_v7, %v11220_v38  ;;  %v3411_v56 = vrot.slane %v3410_v6, 1  ;;  %v3199_v61 = vrot.slane %v3198_v17, 2 }
 0x3c1   :  { %11218 = vst [vmem:[#allocation157_spill] sm:$0xff] %v9212_v31  ;;  %5640 = vperm.xlu1 %6460, %v5386_v39   ;;  %v9216_v9 = vpop.permute.xlu1 %5000  ;;  %5684 = vperm.xlu0 %6459, %v5430_v30   ;;  %v3423_v39 = vrot.slane %v3422_v3, 2  ;;  %v3190_v43 = vrot.slane %v3189_v10, 4  ;;  %v3413_v58 = vadd.f32 %v2996_v11, %v2995_v23  ;;  %v5402_v12 = vrot.slane %v4233_v63, %v8352_v34  ;;  %v11224_v63 = vld [vmem:[#allocation141_spill] sm:$0xff] }
 0x3c2   :  { %11219 = vst [vmem:[#allocation8_spill] sm:$0xff] %v9216_v9  ;;  %v5446_v0 = vrot.slane %v4281_v40, %v8352_v34  ;;  %v4389_v26 = vadd.f32 1e-05, %v3509_v35  ;;  %v4285_v38 = vcombine.high %v4281_v40, %v4281_v40  ;;  %v4301_v9 = vcombine.high %v9221_v32, %v9221_v32 }
 0x3c3   :  { %v4286_v31 = vcombine.high %v3934_v4, %v3934_v4  ;;  %v3180_v23 = vrot.slane %v3179_v53, 1  ;;  %v3403_v11 = vadd.f32 %v3402_v13, %v3401_v8  ;;  %v2938_v29 = vmul.f32 0.5, %v11224_v63 }
 0x3c4   :  { %v9227_v30 = vpop.permute.xlu0 %5052  ;;  %v4360_v60 = vadd.f32 1e-05, %v3480_v54  ;;  %v3200_v46 = vadd.f32 %v3199_v61, %v3198_v17  ;;  %v3424_v19 = vadd.f32 %v3423_v39, %v3422_v3  ;;  %v3191_v44 = vadd.f32 %v3190_v43, %v3189_v10  ;;  %v11227_v61 = vld [vmem:[#allocation126_spill] sm:$0xff] }
 0x3c5   :  { %11222 = vst [vmem:[#allocation137_spill] sm:$0xff] %v9227_v30  ;;  %5648 = vperm.xlu1 %6460, %v5394_v14   ;;  %v9233_v21 = vpop.permute.xlu1 %5008  ;;  %5692 = vperm.xlu0 %6459, %v5438_v2   ;;  %v2937_v30 = vmul.f32 0.5, %v8719_v50  ;;  %v3412_v35 = vadd.f32 %v3411_v56, %v3410_v6  ;;  %v3414_v14 = vrot.slane %v3413_v58, 4  ;;  %v5410_v40 = vrot.slane %v4218_v22, %v8352_v34 }
 0x3c6   :  { %11223 = vst [vmem:[#allocation138_spill] sm:$0xff] %v9233_v21  ;;  %v4234_v2 = vcombine.high %v4218_v22, %v4218_v22  ;;  %v5454_v50 = vrot.slane %v4285_v38, %v8352_v34  ;;  %v4323_v8 = vrot.slane %v4301_v9, %v8318_v37  ;;  %v9247_v17 = vrot.slane %v4286_v31, %v8318_v37  ;;  %v11230_v22 = vld [vmem:[#allocation3_spill] sm:$0xff]  ;;  %v11265_v21 = vld [vmem:[#allocation13_spill] sm:$0xff] }
 0x3c7   :  { %6636 = vrsqrt.f32 %v4389_v26  ;;  %v3181_v6 = vadd.f32 %v3180_v23, %v3179_v53  ;;  %v3404_v3 = vrot.slane %v3403_v11, 1  ;;  %v3210_v10 = vadd.f32 %v2938_v29, %v2937_v30  ;;  %v11231_v26 = vld [vmem:[#allocation156_spill] sm:$0xff] }
 0x3c8   :  { %v9239_v16 = vpop.permute.xlu0 %5060  ;;  %v3201_v54 = vrot.slane %v3200_v46, 1  ;;  %v3425_v13 = vrot.slane %v3424_v19, 1  ;;  %v3192_v56 = vrot.slane %v3191_v44, 2  ;;  %v9251_v24 = vmul.f32 %v11221_v7, %v11227_v61  ;;  %v11236_v61 = vld [vmem:[#allocation174_spill] sm:$0xff] }
 0x3c9   :  { %11225 = vst [vmem:[#allocation12_spill] sm:$0xff] %v9239_v16  ;;  %5656 = vperm.xlu1 %6460, %v5402_v12   ;;  %v9242_v4 = vpop.permute.xlu1 %5016  ;;  %5700 = vperm.xlu0 %6459, %v5446_v0   ;;  %6638 = vrsqrt.f32 %v4360_v60  ;;  %v3415_v39 = vadd.f32 %v3414_v14, %v3413_v58  ;;  %v5418_v9 = vrot.slane %v4234_v2, %v8352_v34  ;;  %v3512_v12 = vmul.f32 0.0625, %v3412_v35  ;;  %v11232_v35 = vld [vmem:[#allocation7_spill] sm:$0xff] }
 0x3ca   :  { %11226 = vst [vmem:[#allocation163_spill] sm:$0xff] %v9242_v4  ;;  %v4260_v31 = vrot.slane %v9137_v15, %v8318_v37  ;;  %v5462_v29 = vrot.slane %v4323_v8, %v8352_v34  ;;  %v4333_v30 = vcombine.high %v4323_v8, %v4323_v8  ;;  %v4302_v7 = vcombine.high %v9247_v17, %v9247_v17 }
 0x3cb   :  { %v3479_v60 = vmul.f32 0.0625, %v3181_v6  ;;  %v3405_v58 = vadd.f32 %v3404_v3, %v3403_v11  ;;  %v3211_v0 = vrot.slane %v3210_v10, 4  ;;  %v9265_v38 = vmul.f32 %v11231_v26, %v11230_v22  ;;  %v9284_v22 = vpop.eup %6634 }
 0x3cc   :  { %v9253_v43 = vpop.permute.xlu0 %5068  ;;  %v3202_v23 = vadd.f32 %v3201_v54, %v3200_v46  ;;  %v3426_v15 = vadd.f32 %v3425_v13, %v3424_v19  ;;  %v3193_v63 = vadd.f32 %v3192_v56, %v3191_v44  ;;  %v9269_v14 = vmul.f32 %v11231_v26, %v11232_v35  ;;  %v11237_v26 = vld [vmem:[#allocation142_spill] sm:$0xff] }
 0x3cd   :  { %11228 = vst [vmem:[#allocation16_spill] sm:$0xff] %v9253_v43  ;;  %5664 = vperm.xlu1 %6460, %v5410_v40   ;;  %v9258_v53 = vpop.permute.xlu1 %5024  ;;  %5708 = vperm.xlu0 %6459, %v5454_v50   ;;  %v3416_v40 = vrot.slane %v3415_v39, 2  ;;  %v2935_v2 = vmul.f32 0.5, %v8748_v55  ;;  %v2936_v50 = vmul.f32 0.5, %v8753_v25  ;;  %v4282_v11 = vcombine.high %v4260_v31, %v4260_v31  ;;  %v11235_v55 = vld [vmem:[#allocation25_spill] sm:$0xff] }
 0x3ce   :  { %11229 = vst [vmem:[#allocation139_spill] sm:$0xff] %v9258_v53  ;;  %v4392_v6 = vadd.f32 1e-05, %v3512_v12  ;;  %v5426_v19 = vrot.slane %v4260_v31, %v8352_v34  ;;  %v5470_v46 = vrot.slane %v4333_v30, %v8352_v34  ;;  %v4330_v44 = vrot.slane %v4302_v7, %v8318_v37 }
 0x3cf   :  { %v4359_v54 = vadd.f32 1e-05, %v3479_v60  ;;  %v3511_v13 = vmul.f32 0.0625, %v3405_v58  ;;  %v3212_v56 = vadd.f32 %v3211_v0, %v3210_v10  ;;  %v9282_v25 = vmul.f32 %v11236_v61, %v11235_v55 }
 0x3d0   :  { %v9273_v8 = vpop.permute.xlu0 %5076  ;;  %v3482_v12 = vmul.f32 0.0625, %v3202_v23  ;;  %v3001_v35 = vmul.f32 0.5, %v11237_v26  ;;  %v3514_v30 = vmul.f32 0.0625, %v3426_v15  ;;  %v3203_v7 = vadd.f32 %v2936_v50, %v2935_v2  ;;  %v11243_v50 = vld [vmem:[#allocation181_spill] sm:$0xff] }
 0x3d1   :  { %11233 = vst [vmem:[#allocation140_spill] sm:$0xff] %v9273_v8  ;;  %5672 = vperm.xlu1 %6460, %v5418_v9   ;;  %v9275_v3 = vpop.permute.xlu1 %5032  ;;  %5716 = vperm.xlu0 %6459, %v5462_v29   ;;  %v3194_v9 = vrot.slane %v3193_v63, 1  ;;  %v11238_v29 = vld [vmem:[#allocation143_spill] sm:$0xff]  ;;  %v9288_v31 = vpop.eup %6636  ;;  %v3417_v8 = vadd.f32 %v3416_v40, %v3415_v39  ;;  %v5434_v10 = vrot.slane %v4282_v11, %v8352_v34  ;;  %6640 = vrsqrt.f32 %v4392_v6  ;;  %v11242_v40 = vld [vmem:[#allocation180_spill] sm:$0xff] }
 0x3d2   :  { %11234 = vst [vmem:[#allocation125_spill] sm:$0xff] %v9275_v3  ;;  %v3002_v3 = vmul.f32 0.5, %v11238_v29  ;;  %11239 = vst [vmem:[#allocation152_spill] sm:$0xff] %v9288_v31  ;;  %v5478_v0 = vrot.slane %v4330_v44, %v8352_v34  ;;  %v4267_v23 = vrot.slane %v9174_v36, %v8318_v37  ;;  %v4334_v55 = vcombine.high %v4330_v44, %v4330_v44  ;;  %v11245_v36 = vld [vmem:[#allocation129_spill] sm:$0xff]  ;;  %v11246_v44 = vld [vmem:[#allocation154_spill] sm:$0xff] }
 0x3d3   :  { %v9298_v26 = vpop.eup %6638  ;;  %v4391_v15 = vadd.f32 1e-05, %v3511_v13  ;;  %v3213_v39 = vrot.slane %v3212_v56, 2  ;;  %v2941_v2 = vmul.f32 0.5, %v11242_v40  ;;  %v2942_v29 = vmul.f32 0.5, %v11243_v50 }
 0x3d4   :  { %v9290_v60 = vpop.permute.xlu0 %5084  ;;  %6642 = vrsqrt.f32 %v4359_v54  ;;  %v3195_v11 = vadd.f32 %v3194_v9, %v3193_v63  ;;  %v3434_v6 = vadd.f32 %v3002_v3, %v3001_v35  ;;  %v4362_v31 = vadd.f32 1e-05, %v3482_v12  ;;  %v11249_v9 = vld [vmem:[#allocation5_spill] sm:$0xff] }
 0x3d5   :  { %11240 = vst [vmem:[#allocation141_spill] sm:$0xff] %v9290_v60  ;;  %5680 = vperm.xlu1 %6460, %v5426_v19   ;;  %v9293_v58 = vpop.permute.xlu1 %5040  ;;  %5724 = vperm.xlu0 %6459, %v5470_v46   ;;  %v11244_v19 = vld [vmem:[#allocation29_spill] sm:$0xff]  ;;  %v3204_v60 = vrot.slane %v3203_v7, 4  ;;  %v4469_v53 = vmul.f32 %v11246_v44, %v11245_v36  ;;  %v3418_v13 = vrot.slane %v3417_v8, 1  ;;  %v5442_v63 = vrot.slane %v4267_v23, %v8352_v34 }
 0x3d6   :  { %11241 = vst [vmem:[#allocation126_spill] sm:$0xff] %v9293_v58  ;;  %v9304_v46 = vmul.f32 %v11236_v61, %v11244_v19  ;;  %v4394_v58 = vadd.f32 1e-05, %v3514_v30  ;;  %v5486_v3 = vrot.slane %v4334_v55, %v8352_v34  ;;  %v4283_v54 = vcombine.high %v4267_v23, %v4267_v23  ;;  %v11250_v19 = vld [vmem:[#allocation33_spill] sm:$0xff]  ;;  %v11253_v55 = vld [vmem:[#allocation11_spill] sm:$0xff]  ;;  %v11254_v23 = vld [vmem:[#allocation162_spill] sm:$0xff] }
 0x3d7   :  { %6644 = vrsqrt.f32 %v4391_v15  ;;  %v3214_v61 = vadd.f32 %v3213_v39, %v3212_v56  ;;  %v3224_v12 = vadd.f32 %v2942_v29, %v2941_v2  ;;  %v4470_v35 = vmul.f32 %v11246_v44, %v11249_v9  ;;  %v11251_v36 = vld [vmem:[#allocation177_spill] sm:$0xff]  ;;  %v11255_v56 = vld [vmem:[#allocation15_spill] sm:$0xff] }
 0x3d8   :  { %v9308_v43 = vpop.permute.xlu0 %5092  ;;  %v3481_v30 = vmul.f32 0.0625, %v3195_v11  ;;  %v3435_v50 = vrot.slane %v3434_v6, 4  ;;  %6646 = vrsqrt.f32 %v4362_v31  ;;  %v9326_v15 = vmul.f32 %v11254_v23, %v11253_v55 }
 0x3d9   :  { %11247 = vst [vmem:[#allocation3_spill] sm:$0xff] %v9308_v43  ;;  %5688 = vperm.xlu1 %6460, %v5434_v10   ;;  %v9310_v40 = vpop.permute.xlu1 %5048  ;;  %5732 = vperm.xlu0 %6459, %v5478_v0   ;;  %v9318_v43 = vmul.f32 %v11251_v36, %v11250_v19  ;;  %v11252_v10 = vld [vmem:[#allocation37_spill] sm:$0xff]  ;;  %v9330_v39 = vmul.f32 %v11254_v23, %v11255_v56  ;;  %6648 = vrsqrt.f32 %v4394_v58  ;;  %v11259_v19 = vld [vmem:[#allocation178_spill] sm:$0xff] }
 0x3da   :  { %11248 = vst [vmem:[#allocation156_spill] sm:$0xff] %v9310_v40  ;;  %v9322_v0 = vmul.f32 %v11251_v36, %v11252_v10  ;;  %v3205_v40 = vadd.f32 %v3204_v60, %v3203_v7  ;;  %v3419_v29 = vadd.f32 %v3418_v13, %v3417_v8  ;;  %v5450_v44 = vrot.slane %v4283_v54, %v8352_v34  ;;  %v11258_v60 = vld [vmem:[#allocation145_spill] sm:$0xff] }
 0x3db   :  { %v4309_v31 = vrot.slane %v9221_v32, %v8318_v37  ;;  %v3215_v7 = vrot.slane %v3214_v61, 1  ;;  %v2999_v9 = vmul.f32 0.5, %v11258_v60  ;;  %v3000_v36 = vmul.f32 0.5, %v11259_v19  ;;  %v9341_v55 = vpop.eup %6640  ;;  %v11261_v54 = vld [vmem:[#allocation41_spill] sm:$0xff] }
 0x3dc   :  { %v9332_v2 = vpop.permute.xlu0 %5100  ;;  %v3225_v10 = vrot.slane %v3224_v12, 4  ;;  %11260 = vst [vmem:[#allocation174_spill] sm:$0xff] %v9341_v55  ;;  %v4361_v23 = vadd.f32 1e-05, %v3481_v30  ;;  %v9343_v58 = vadd.f32 %v3435_v50, %v3434_v6  ;;  %v5105_v8 = vmul.f32 %v8832_v5, %v9127_v51 }
 0x3dd   :  { %11256 = vst [vmem:[#allocation7_spill] sm:$0xff] %v9332_v2  ;;  %5696 = vperm.xlu1 %6460, %v5442_v63   ;;  %v9334_v11 = vpop.permute.xlu1 %5056  ;;  %5740 = vperm.xlu0 %6459, %v5486_v3   ;;  %v5106_v13 = vmul.f32 %v8832_v5, %v9163_v1  ;;  %v3206_v63 = vrot.slane %v3205_v40, 2  ;;  %v2939_v32 = vmul.f32 0.5, %v8813_v62  ;;  %v2940_v3 = vmul.f32 0.5, %v8806_v28 }
 0x3de   :  { %11257 = vst [vmem:[#allocation25_spill] sm:$0xff] %v9334_v11  ;;  %v9353_v56 = vmul.f32 %v8803_v41, %v11261_v54  ;;  %v9355_v19 = vpop.eup %6642  ;;  %v5458_v51 = vrot.slane %v4309_v31, %v8352_v34  ;;  %v4331_v5 = vcombine.high %v4309_v31, %v4309_v31  ;;  %v3513_v1 = vmul.f32 0.0625, %v3419_v29 }
 0x3df   :  { %v3216_v11 = vadd.f32 %v3215_v7, %v3214_v61  ;;  %v9360_v62 = vadd.f32 %v3000_v36, %v2999_v9  ;;  %v3226_v28 = vadd.f32 %v3225_v10, %v3224_v12  ;;  %v5109_v2 = vmul.f32 %v8867_v20, %v4469_v53  ;;  %v11266_v9 = vld [vmem:[#allocation146_spill] sm:$0xff]  ;;  %v11267_v10 = vld [vmem:[#allocation147_spill] sm:$0xff] }
 0x3e0   :  { %v5493_v60 = vpop.permute.xlu0 %5492  ;;  %v5110_v54 = vmul.f32 %v8867_v20, %v4470_v35  ;;  %v5466_v12 = vrot.slane %v4331_v5, %v8352_v34  ;;  %v3005_v36 = vmul.f32 0.5, %v11266_v9  ;;  %v11270_v5 = vld [vmem:[#allocation21_spill] sm:$0xff]  ;;  %6650 = vrsqrt.f32 %v4361_v23 }
 0x3e1   :  { %v5745_v6 = vadd.f32 %v5493_v60, %v5105_v8  ;;  %v5746_v30 = vadd.f32 %v5493_v60, %v5106_v13  ;;  %5704 = vperm.xlu1 %6460, %v5450_v44   ;;  %v9357_v50 = vpop.permute.xlu1 %5064  ;;  %v9364_v16 = vpop.eup %6644  ;;  %v3207_v8 = vadd.f32 %v3206_v63, %v3205_v40  ;;  %v3217_v44 = vadd.f32 %v2940_v3, %v2939_v32  ;;  %v11263_v13 = vld [vmem:[#allocation9_spill] sm:$0xff]  ;;  %v11264_v60 = vld [vmem:[#allocation160_spill] sm:$0xff] }
 0x3e2   :  { %11262 = vst [vmem:[#allocation142_spill] sm:$0xff] %v9357_v50  ;;  %v4473_v50 = vmul.f32 %v11264_v60, %v11263_v13  ;;  %v4474_v29 = vmul.f32 %v11264_v60, %v11265_v21  ;;  %v4316_v21 = vrot.slane %v9247_v17, %v8318_v37  ;;  %v9383_v35 = vpop.eup %6646  ;;  %v3484_v31 = vmul.f32 0.0625, %v3216_v11  ;;  %v11269_v37 = vld [vmem:[#allocation165_spill] sm:$0xff] }
 0x3e3   :  { %v5873_v55 = vmax.f32 %v5745_v6, 0.0  ;;  %v5874_v4 = vmax.f32 %v5746_v30, 0.0  ;;  %v3227_v7 = vrot.slane %v3226_v28, 2  ;;  %v9387_v63 = vpop.eup %6648  ;;  %v3208_v6 = vrot.slane %v3207_v8, 1 }
 0x3e4   :  { %v5501_v61 = vpop.permute.xlu0 %5500  ;;  %v3218_v30 = vrot.slane %v3217_v44, 4  ;;  %v4478_v11 = vmul.f32 %v11269_v37, %v11270_v5  ;;  %v5474_v60 = vrot.slane %v4316_v21, %v8352_v34 }
 0x3e5   :  { %6001 = vst.msk [vmem:[%s10283_s4 + $0x10] sm:$0xff] %vm1212_vm1, %v5873_v55  ;;  %6002 = vst.msk [vmem:[%s10283_s4 + $0x18] sm:$0xff] %vm1212_vm1, %v5874_v4  ;;  %v5749_v20 = vadd.f32 %v5501_v61, %v5109_v2  ;;  %v5750_v53 = vadd.f32 %v5501_v61, %v5110_v54  ;;  %5712 = vperm.xlu1 %6460, %v5458_v51   ;;  %v9378_v40 = vpop.permute.xlu1 %5072  ;;  %v3006_v55 = vmul.f32 0.5, %v11267_v10  ;;  %v11268_v51 = vld [vmem:[#allocation17_spill] sm:$0xff]  ;;  %v3437_v61 = vrot.slane %v9343_v58, 2 }
 0x3e6   :  { %v5113_v4 = vmul.f32 %v8895_v47, %v4473_v50  ;;  %v5114_v2 = vmul.f32 %v8895_v47, %v4474_v29  ;;  %v4477_v17 = vmul.f32 %v11269_v37, %v11268_v51  ;;  %v4332_v29 = vcombine.high %v4316_v21, %v4316_v21 }
 0x3e7   :  { %v5877_v32 = vmax.f32 %v5749_v20, 0.0  ;;  %v5878_v3 = vmax.f32 %v5750_v53, 0.0  ;;  %v3228_v20 = vadd.f32 %v3227_v7, %v3226_v28  ;;  %v3448_v53 = vadd.f32 %v3006_v55, %v3005_v36 }
 0x3e8   :  { %v5509_v54 = vpop.permute.xlu0 %5508  ;;  %v5117_v9 = vmul.f32 %v8929_v49, %v4477_v17  ;;  %v5118_v10 = vmul.f32 %v8929_v49, %v4478_v11  ;;  %v3219_v5 = vadd.f32 %v3218_v30, %v3217_v44  ;;  %v5482_v28 = vrot.slane %v4332_v29, %v8352_v34  ;;  %v11274_v29 = vld [vmem:[#allocation19_spill] sm:$0xff] }
 0x3e9   :  { %6005 = vst.msk [vmem:[%s10283_s4 + $0x30] sm:$0xff] %vm1212_vm1, %v5877_v32  ;;  %6006 = vst.msk [vmem:[%s10283_s4 + $0x38] sm:$0xff] %vm1212_vm1, %v5878_v3  ;;  %v5753_v47 = vadd.f32 %v5509_v54, %v5113_v4  ;;  %v5754_v50 = vadd.f32 %v5509_v54, %v5114_v2  ;;  %5720 = vperm.xlu1 %6460, %v5466_v12   ;;  %v9403_v13 = vpop.permute.xlu1 %5080  ;;  %v4393_v3 = vadd.f32 1e-05, %v3513_v1  ;;  %v4364_v4 = vadd.f32 1e-05, %v3484_v31 }
 0x3ea   :  { %v3209_v2 = vadd.f32 %v3208_v6, %v3207_v8  ;;  %v3428_v12 = vrot.slane %v9360_v62, 4  ;;  %v9422_v8 = vadd.f32 %v3437_v61, %v9343_v58  ;;  %v3229_v44 = vrot.slane %v3228_v20, 1  ;;  %v11271_v31 = vld [vmem:[#allocation45_spill] sm:$0xff]  ;;  %v11275_v61 = vld [vmem:[#allocation170_spill] sm:$0xff] }
 0x3eb   :  { %v5881_v32 = vmax.f32 %v5753_v47, 0.0  ;;  %v5882_v51 = vmax.f32 %v5754_v50, 0.0  ;;  %v3449_v21 = vrot.slane %v3448_v53, 4  ;;  %v4490_v7 = vmul.f32 %v8803_v41, %v11271_v31  ;;  %v11272_v58 = vld [vmem:[#allocation49_spill] sm:$0xff] }
 0x3ec   :  { %v5517_v37 = vpop.permute.xlu0 %5516  ;;  %v5121_v36 = vmul.f32 %v8864_v42, %v9282_v25  ;;  %v5122_v55 = vmul.f32 %v8864_v42, %v9304_v46  ;;  %6652 = vrsqrt.f32 %v4393_v3  ;;  %v3483_v17 = vmul.f32 0.0625, %v3209_v2  ;;  %v11273_v50 = vld [vmem:[#allocation53_spill] sm:$0xff] }
 0x3ed   :  { %6009 = vst.msk [vmem:[%s10283_s4 + $0x50] sm:$0xff] %vm1212_vm1, %v5881_v32  ;;  %6010 = vst.msk [vmem:[%s10283_s4 + $0x58] sm:$0xff] %vm1212_vm1, %v5882_v51  ;;  %v5757_v49 = vadd.f32 %v5517_v37, %v5117_v9  ;;  %v5758_v23 = vadd.f32 %v5517_v37, %v5118_v10  ;;  %5728 = vperm.xlu1 %6460, %v5474_v60   ;;  %v9418_v1 = vpop.permute.xlu1 %5088  ;;  %v9431_v34 = vadd.f32 %v3428_v12, %v9360_v62 }
 0x3ee   :  { %v4493_v11 = vmul.f32 %v8860_v27, %v11272_v58  ;;  %6654 = vrsqrt.f32 %v4364_v4  ;;  %v3220_v47 = vrot.slane %v3219_v5, 2  ;;  %v3230_v46 = vadd.f32 %v3229_v44, %v3228_v20  ;;  %v9457_v4 = vpop.eup %6650 }
 0x3ef   :  { %v5885_v6 = vmax.f32 %v5757_v49, 0.0  ;;  %v5886_v30 = vmax.f32 %v5758_v23, 0.0  ;;  %v9445_v62 = vadd.f32 %v3449_v21, %v3448_v53  ;;  %v4494_v60 = vmul.f32 %v8860_v27, %v11273_v50  ;;  %v11276_v53 = vld [vmem:[#allocation184_spill] sm:$0xff]  ;;  %v11277_v27 = vld [vmem:[#allocation185_spill] sm:$0xff]  ;;  %v11279_v21 = vld [vmem:[#allocation23_spill] sm:$0xff] }
 0x3f0   :  { %v5525_v54 = vpop.permute.xlu0 %5524  ;;  %v9451_v9 = vmul.f32 %v11275_v61, %v11274_v29  ;;  %v5125_v10 = vmul.f32 %v8877_v57, %v9318_v43  ;;  %v5126_v32 = vmul.f32 %v8877_v57, %v9322_v0  ;;  %v9459_v20 = vadd.f32 1e-05, %v3483_v17  ;;  %v11278_v43 = vld [vmem:[#allocation182_spill] sm:$0xff]  ;;  %v11281_v29 = vld [vmem:[#allocation57_spill] sm:$0xff] }
 0x3f1   :  { %6013 = vst.msk [vmem:[%s10283_s4 + $0x70] sm:$0xff] %vm1212_vm1, %v5885_v6  ;;  %6014 = vst.msk [vmem:[%s10283_s4 + $0x78] sm:$0xff] %vm1212_vm1, %v5886_v30  ;;  %v5761_v41 = vadd.f32 %v5525_v54, %v5121_v36  ;;  %v5762_v42 = vadd.f32 %v5525_v54, %v5122_v55  ;;  %5736 = vperm.xlu1 %6460, %v5482_v28   ;;  %v9443_v25 = vpop.permute.xlu1 %5096  ;;  %v3003_v2 = vmul.f32 0.5, %v11276_v53  ;;  %v3004_v28 = vmul.f32 0.5, %v11278_v43  ;;  %v11280_v17 = vld [vmem:[#allocation186_spill] sm:$0xff] }
 0x3f2   :  { %v5103_v12 = vmul.f32 %v11277_v27, %v9225_v59  ;;  %v5104_v37 = vmul.f32 %v11277_v27, %v9251_v24  ;;  %v3221_v23 = vadd.f32 %v3220_v47, %v3219_v5  ;;  %v3486_v44 = vmul.f32 0.0625, %v3230_v46 }
 0x3f3   :  { %v5889_v51 = vmax.f32 %v5761_v41, 0.0  ;;  %v5890_v3 = vmax.f32 %v5762_v42, 0.0  ;;  %v4476_v24 = vmul.f32 %v11275_v61, %v11279_v21  ;;  %v5129_v36 = vmul.f32 %v8893_v48, %v9353_v56 }
 0x3f4   :  { %v5533_v49 = vpop.permute.xlu0 %5532  ;;  %v5130_v55 = vmul.f32 %v8893_v48, %v4490_v7  ;;  %v5107_v58 = vmul.f32 %v11280_v17, %v9265_v38  ;;  %v5108_v54 = vmul.f32 %v11280_v17, %v9269_v14  ;;  %v3222_v46 = vrot.slane %v3221_v23, 1 }
 0x3f5   :  { %6017 = vst.msk [vmem:[%s10283_s4 + $0x90] sm:$0xff] %vm1212_vm1, %v5889_v51  ;;  %6018 = vst.msk [vmem:[%s10283_s4 + $0x98] sm:$0xff] %vm1212_vm1, %v5890_v3  ;;  %v5765_v57 = vadd.f32 %v5533_v49, %v5125_v10  ;;  %v5766_v0 = vadd.f32 %v5533_v49, %v5126_v32  ;;  %v5489_v59 = vpop.permute.xlu1 %5488  ;;  %v9484_v50 = vadd.f32 %v3004_v28, %v3003_v2  ;;  %v4366_v7 = vadd.f32 1e-05, %v3486_v44 }
 0x3f6   :  { %v5743_v5 = vadd.f32 %v5489_v59, %v5103_v12  ;;  %v5744_v31 = vadd.f32 %v5489_v59, %v5104_v37  ;;  %v9494_v14 = vpop.eup %6652  ;;  %v4497_v61 = vmul.f32 %v8937_v33, %v11281_v29  ;;  %v5133_v3 = vmul.f32 %v8902_v18, %v4493_v11  ;;  %v11282_v12 = vld [vmem:[#allocation188_spill] sm:$0xff]  ;;  %v11283_v59 = vld [vmem:[#allocation61_spill] sm:$0xff] }
 0x3f7   :  { %v5893_v6 = vmax.f32 %v5765_v57, 0.0  ;;  %v5894_v30 = vmax.f32 %v5766_v0, 0.0  ;;  %v5134_v53 = vmul.f32 %v8902_v18, %v4494_v60  ;;  %v5111_v37 = vmul.f32 %v11282_v12, %v9326_v15  ;;  %v11284_v11 = vld [vmem:[#allocation65_spill] sm:$0xff] }
 0x3f8   :  { %v5871_v47 = vmax.f32 %v5743_v5, 0.0  ;;  %v5872_v41 = vmax.f32 %v5744_v31, 0.0  ;;  %v5541_v42 = vpop.permute.xlu0 %5540  ;;  %v9506_v51 = vpop.eup %6654  ;;  %v5112_v49 = vmul.f32 %v11282_v12, %v9330_v39  ;;  %v3223_v0 = vadd.f32 %v3222_v46, %v3221_v23  ;;  %v11287_v46 = vld [vmem:[#allocation27_spill] sm:$0xff] }
 0x3f9   :  { %6021 = vst.msk [vmem:[%s10283_s4 + $0xb0] sm:$0xff] %vm1212_vm1, %v5893_v6  ;;  %6022 = vst.msk [vmem:[%s10283_s4 + $0xb8] sm:$0xff] %vm1212_vm1, %v5894_v30  ;;  %v5769_v48 = vadd.f32 %v5541_v42, %v5129_v36  ;;  %v5770_v38 = vadd.f32 %v5541_v42, %v5130_v55  ;;  %v5497_v56 = vpop.permute.xlu1 %5496  ;;  %v4498_v44 = vmul.f32 %v8937_v33, %v11283_v59  ;;  %6656 = vrsqrt.f32 %v4366_v7  ;;  %v11285_v55 = vld [vmem:[#allocation191_spill] sm:$0xff]  ;;  %v11294_v59 = vld [vmem:[#allocation77_spill] sm:$0xff] }
 0x3fa   :  { %5999 = vst.msk [vmem:[%s10283_s4] sm:$0xff] %vm1212_vm1, %v5871_v47  ;;  %6000 = vst.msk [vmem:[%s10283_s4 + $0x8] sm:$0xff] %vm1212_vm1, %v5872_v41  ;;  %v5747_v10 = vadd.f32 %v5497_v56, %v5107_v58  ;;  %v5748_v32 = vadd.f32 %v5497_v56, %v5108_v54  ;;  %v4501_v60 = vmul.f32 %v9006_v45, %v11284_v11  ;;  %v9539_v47 = vmul.f32 0.0625, %v3223_v0  ;;  %v11286_v41 = vld [vmem:[#allocation69_spill] sm:$0xff]  ;;  %v11289_v56 = vld [vmem:[#allocation31_spill] sm:$0xff] }
 0x3fb   :  { %v5897_v2 = vmax.f32 %v5769_v48, 0.0  ;;  %v5898_v27 = vmax.f32 %v5770_v38, 0.0  ;;  %v5137_v21 = vmul.f32 %v8926_v52, %v4497_v61  ;;  %v5138_v5 = vmul.f32 %v8926_v52, %v4498_v44  ;;  %v11288_v48 = vld [vmem:[#allocation135_spill] sm:$0xff]  ;;  %v11290_v61 = vld [vmem:[#allocation192_spill] sm:$0xff] }
 0x3fc   :  { %v5875_v43 = vmax.f32 %v5747_v10, 0.0  ;;  %v5876_v28 = vmax.f32 %v5748_v32, 0.0  ;;  %v5549_v57 = vpop.permute.xlu0 %5548  ;;  %v5115_v6 = vmul.f32 %v11285_v55, %v9451_v9  ;;  %v5116_v30 = vmul.f32 %v11285_v55, %v4476_v24  ;;  %v11295_v11 = vld [vmem:[#allocation35_spill] sm:$0xff] }
 0x3fd   :  { %6025 = vst.msk [vmem:[%s10283_s4 + $0xd0] sm:$0xff] %vm1212_vm1, %v5897_v2  ;;  %6026 = vst.msk [vmem:[%s10283_s4 + $0xd8] sm:$0xff] %vm1212_vm1, %v5898_v27  ;;  %v5773_v18 = vadd.f32 %v5549_v57, %v5133_v3  ;;  %v5774_v15 = vadd.f32 %v5549_v57, %v5134_v53  ;;  %v5505_v39 = vpop.permute.xlu1 %5504  ;;  %v4502_v42 = vmul.f32 %v9006_v45, %v11286_v41  ;;  %v11291_v2 = vld [vmem:[#allocation193_spill] sm:$0xff]  ;;  %v11293_v57 = vld [vmem:[#allocation167_spill] sm:$0xff]  ;;  %6658 = vrsqrt.f32 %v9459_v20 }
 0x3fe   :  { %6003 = vst.msk [vmem:[%s10283_s4 + $0x20] sm:$0xff] %vm1212_vm1, %v5875_v43  ;;  %6004 = vst.msk [vmem:[%s10283_s4 + $0x28] sm:$0xff] %vm1212_vm1, %v5876_v28  ;;  %v5751_v33 = vadd.f32 %v5505_v39, %v5111_v37  ;;  %v5752_v23 = vadd.f32 %v5505_v39, %v5112_v49  ;;  %v4479_v38 = vmul.f32 %v11288_v48, %v11287_v46  ;;  %v11292_v28 = vld [vmem:[#allocation73_spill] sm:$0xff] }
 0x3ff   :  { %v5901_v31 = vmax.f32 %v5773_v18, 0.0  ;;  %v5902_v36 = vmax.f32 %v5774_v15, 0.0  ;;  %v4480_v7 = vmul.f32 %v11288_v48, %v11289_v56  ;;  %v5141_v10 = vmul.f32 %v11290_v61, %v4501_v60  ;;  %v11296_v60 = vld [vmem:[#allocation179_spill] sm:$0xff]  ;;  %v11300_v46 = vld [vmem:[#allocation81_spill] sm:$0xff] }
 0x400   :  { %v5879_v17 = vmax.f32 %v5751_v33, 0.0  ;;  %v5880_v58 = vmax.f32 %v5752_v23, 0.0  ;;  %v5557_v54 = vpop.permute.xlu0 %5556  ;;  %v5142_v32 = vmul.f32 %v11290_v61, %v4502_v42  ;;  %v5119_v27 = vmul.f32 %v11291_v2, %v4479_v38  ;;  %v11297_v23 = vld [vmem:[#allocation39_spill] sm:$0xff]  ;;  %v11301_v48 = vld [vmem:[#allocation133_spill] sm:$0xff] }
 0x401   :  { %6029 = vst.msk [vmem:[%s10283_s4 + $0xf0] sm:$0xff] %vm1212_vm1, %v5901_v31  ;;  %6030 = vst.msk [vmem:[%s10283_s4 + $0xf8] sm:$0xff] %vm1212_vm1, %v5902_v36  ;;  %v5777_v52 = vadd.f32 %v5557_v54, %v5137_v21  ;;  %v5778_v9 = vadd.f32 %v5557_v54, %v5138_v5  ;;  %v5513_v24 = vpop.permute.xlu1 %5512  ;;  %v5120_v12 = vmul.f32 %v11291_v2, %v4480_v7  ;;  %v11298_v36 = vld [vmem:[#allocation194_spill] sm:$0xff]  ;;  %v11299_v54 = vld [vmem:[#allocation195_spill] sm:$0xff] }
 0x402   :  { %6007 = vst.msk [vmem:[%s10283_s4 + $0x40] sm:$0xff] %vm1212_vm1, %v5879_v17  ;;  %6008 = vst.msk [vmem:[%s10283_s4 + $0x48] sm:$0xff] %vm1212_vm1, %v5880_v58  ;;  %v5755_v45 = vadd.f32 %v5513_v24, %v5115_v6  ;;  %v5756_v29 = vadd.f32 %v5513_v24, %v5116_v30  ;;  %v4505_v0 = vmul.f32 %v11293_v57, %v11292_v28  ;;  %v11302_v56 = vld [vmem:[#allocation85_spill] sm:$0xff] }
 0x403   :  { %v5905_v3 = vmax.f32 %v5777_v52, 0.0  ;;  %v5906_v53 = vmax.f32 %v5778_v9, 0.0  ;;  %v4506_v44 = vmul.f32 %v11293_v57, %v11294_v59  ;;  %v4483_v33 = vmul.f32 %v11296_v60, %v11295_v11  ;;  %v9593_v58 = vpop.eup %6656  ;;  %v11308_v11 = vld [vmem:[#allocation89_spill] sm:$0xff] }
 0x404   :  { %v5883_v37 = vmax.f32 %v5755_v45, 0.0  ;;  %v5884_v49 = vmax.f32 %v5756_v29, 0.0  ;;  %v5565_v43 = vpop.permute.xlu0 %5564  ;;  %v4484_v21 = vmul.f32 %v11296_v60, %v11297_v23  ;;  %v5145_v55 = vmul.f32 %v11298_v36, %v4505_v0  ;;  %v11307_v0 = vld [vmem:[#allocation197_spill] sm:$0xff] }
 0x405   :  { %6033 = vst.msk [vmem:[%s10283_s4 + $0x110] sm:$0xff] %vm1212_vm1, %v5905_v3  ;;  %6034 = vst.msk [vmem:[%s10283_s4 + $0x118] sm:$0xff] %vm1212_vm1, %v5906_v53  ;;  %v5781_v18 = vadd.f32 %v5565_v43, %v5141_v10  ;;  %v5782_v15 = vadd.f32 %v5565_v43, %v5142_v32  ;;  %v5521_v39 = vpop.permute.xlu1 %5520  ;;  %v5146_v6 = vmul.f32 %v11298_v36, %v4506_v44  ;;  %v11303_v10 = vld [vmem:[#allocation43_spill] sm:$0xff] }
 0x406   :  { %6011 = vst.msk [vmem:[%s10283_s4 + $0x60] sm:$0xff] %vm1212_vm1, %v5883_v37  ;;  %6012 = vst.msk [vmem:[%s10283_s4 + $0x68] sm:$0xff] %vm1212_vm1, %v5884_v49  ;;  %v5759_v5 = vadd.f32 %v5521_v39, %v5119_v27  ;;  %v5760_v31 = vadd.f32 %v5521_v39, %v5120_v12  ;;  %v5123_v41 = vmul.f32 %v11299_v54, %v4483_v33  ;;  %v11304_v32 = vld [vmem:[#allocation183_spill] sm:$0xff]  ;;  %v11306_v37 = vld [vmem:[#allocation196_spill] sm:$0xff] }
 0x407   :  { %v5909_v30 = vmax.f32 %v5781_v18, 0.0  ;;  %v5910_v17 = vmax.f32 %v5782_v15, 0.0  ;;  %v5124_v42 = vmul.f32 %v11299_v54, %v4484_v21  ;;  %v4509_v38 = vmul.f32 %v11301_v48, %v11300_v46  ;;  %v11305_v53 = vld [vmem:[#allocation47_spill] sm:$0xff]  ;;  %v11309_v33 = vld [vmem:[#allocation93_spill] sm:$0xff]  ;;  %v11314_v46 = vld [vmem:[#allocation200_spill] sm:$0xff] }
 0x408   :  { %v5887_v52 = vmax.f32 %v5759_v5, 0.0  ;;  %v5888_v9 = vmax.f32 %v5760_v31, 0.0  ;;  %v5573_v24 = vpop.permute.xlu0 %5572  ;;  %v4510_v7 = vmul.f32 %v11301_v48, %v11302_v56  ;;  %v4487_v3 = vmul.f32 %v11304_v32, %v11303_v10  ;;  %v11310_v36 = vld [vmem:[#allocation51_spill] sm:$0xff]  ;;  %v11316_v10 = vld [vmem:[#allocation101_spill] sm:$0xff] }
 0x409   :  { %6037 = vst.msk [vmem:[%s10283_s4 + $0x130] sm:$0xff] %vm1212_vm1, %v5909_v30  ;;  %6038 = vst.msk [vmem:[%s10283_s4 + $0x138] sm:$0xff] %vm1212_vm1, %v5910_v17  ;;  %v5785_v45 = vadd.f32 %v5573_v24, %v5145_v55  ;;  %v5786_v29 = vadd.f32 %v5573_v24, %v5146_v6  ;;  %v5529_v61 = vpop.permute.xlu1 %5528  ;;  %v4488_v2 = vmul.f32 %v11304_v32, %v11305_v53  ;;  %v11311_v55 = vld [vmem:[#allocation190_spill] sm:$0xff]  ;;  %v11312_v30 = vld [vmem:[#allocation55_spill] sm:$0xff] }
 0x40a   :  { %6015 = vst.msk [vmem:[%s10283_s4 + $0x80] sm:$0xff] %vm1212_vm1, %v5887_v52  ;;  %6016 = vst.msk [vmem:[%s10283_s4 + $0x88] sm:$0xff] %vm1212_vm1, %v5888_v9  ;;  %v5763_v27 = vadd.f32 %v5529_v61, %v5123_v41  ;;  %v5764_v12 = vadd.f32 %v5529_v61, %v5124_v42  ;;  %v5149_v49 = vmul.f32 %v11306_v37, %v4509_v38  ;;  %v11313_v41 = vld [vmem:[#allocation199_spill] sm:$0xff] }
 0x40b   :  { %v5150_v43 = vmul.f32 %v11306_v37, %v4510_v7  ;;  %v5913_v28 = vmax.f32 %v5785_v45, 0.0  ;;  %v5914_v57 = vmax.f32 %v5786_v29, 0.0  ;;  %v5127_v59 = vmul.f32 %v11307_v0, %v4487_v3  ;;  %v11315_v29 = vld [vmem:[#allocation97_spill] sm:$0xff] }
 0x40c   :  { %v5128_v44 = vmul.f32 %v11307_v0, %v4488_v2  ;;  %v5891_v18 = vmax.f32 %v5763_v27, 0.0  ;;  %v5892_v15 = vmax.f32 %v5764_v12, 0.0  ;;  %v5581_v39 = vpop.permute.xlu0 %5580  ;;  %v4513_v60 = vmul.f32 %v9298_v26, %v11308_v11  ;;  %v11317_v27 = vld [vmem:[#allocation59_spill] sm:$0xff]  ;;  %v11318_v12 = vld [vmem:[#allocation198_spill] sm:$0xff] }
 0x40d   :  { %v4514_v23 = vmul.f32 %v9298_v26, %v11309_v33  ;;  %6041 = vst.msk [vmem:[%s10283_s4 + $0x150] sm:$0xff] %vm1212_vm1, %v5913_v28  ;;  %6042 = vst.msk [vmem:[%s10283_s4 + $0x158] sm:$0xff] %vm1212_vm1, %v5914_v57  ;;  %v5789_v21 = vadd.f32 %v5581_v39, %v5149_v49  ;;  %v5790_v5 = vadd.f32 %v5581_v39, %v5150_v43  ;;  %v5537_v31 = vpop.permute.xlu1 %5536  ;;  %v11319_v49 = vld [vmem:[#allocation63_spill] sm:$0xff]  ;;  %v11320_v57 = vld [vmem:[#allocation164_spill] sm:$0xff] }
 0x40e   :  { %v4491_v6 = vmul.f32 %v11311_v55, %v11310_v36  ;;  %v4492_v17 = vmul.f32 %v11311_v55, %v11312_v30  ;;  %6019 = vst.msk [vmem:[%s10283_s4 + $0xa0] sm:$0xff] %vm1212_vm1, %v5891_v18  ;;  %6020 = vst.msk [vmem:[%s10283_s4 + $0xa8] sm:$0xff] %vm1212_vm1, %v5892_v15  ;;  %v5767_v26 = vadd.f32 %v5537_v31, %v5127_v59  ;;  %v11321_v15 = vld [vmem:[#allocation202_spill] sm:$0xff] }
 0x40f   :  { %v5768_v54 = vadd.f32 %v5537_v31, %v5128_v44  ;;  %v5153_v42 = vmul.f32 %v11313_v41, %v4513_v60  ;;  %v5154_v52 = vmul.f32 %v11313_v41, %v4514_v23  ;;  %v5917_v9 = vmax.f32 %v5789_v21, 0.0  ;;  %v11322_v21 = vld [vmem:[#allocation105_spill] sm:$0xff]  ;;  %v11326_v41 = vld [vmem:[#allocation71_spill] sm:$0xff] }
 0x410   :  { %v5918_v24 = vmax.f32 %v5790_v5, 0.0  ;;  %v5131_v48 = vmul.f32 %v11314_v46, %v4491_v6  ;;  %v5132_v38 = vmul.f32 %v11314_v46, %v4492_v17  ;;  %v5895_v56 = vmax.f32 %v5767_v26, 0.0  ;;  %v5589_v45 = vpop.permute.xlu0 %5588  ;;  %v11323_v31 = vld [vmem:[#allocation109_spill] sm:$0xff]  ;;  %v11324_v17 = vld [vmem:[#allocation67_spill] sm:$0xff] }
 0x411   :  { %v5896_v7 = vmax.f32 %v5768_v54, 0.0  ;;  %v4517_v61 = vmul.f32 %v9383_v35, %v11315_v29  ;;  %v4518_v32 = vmul.f32 %v9383_v35, %v11316_v10  ;;  %6045 = vst.msk [vmem:[%s10283_s4 + $0x170] sm:$0xff] %vm1212_vm1, %v5917_v9  ;;  %v5793_v3 = vadd.f32 %v5589_v45, %v5153_v42  ;;  %v5545_v2 = vpop.permute.xlu1 %5544  ;;  %v11325_v26 = vld [vmem:[#allocation123_spill] sm:$0xff] }
 0x412   :  { %6046 = vst.msk [vmem:[%s10283_s4 + $0x178] sm:$0xff] %vm1212_vm1, %v5918_v24  ;;  %v5794_v53 = vadd.f32 %v5589_v45, %v5154_v52  ;;  %v4495_v37 = vmul.f32 %v11318_v12, %v11317_v27  ;;  %v4496_v43 = vmul.f32 %v11318_v12, %v11319_v49  ;;  %6023 = vst.msk [vmem:[%s10283_s4 + $0xc0] sm:$0xff] %vm1212_vm1, %v5895_v56  ;;  %v11327_v9 = vld [vmem:[#allocation203_spill] sm:$0xff]  ;;  %v11328_v56 = vld [vmem:[#allocation204_spill] sm:$0xff] }
 0x413   :  { %6024 = vst.msk [vmem:[%s10283_s4 + $0xc8] sm:$0xff] %vm1212_vm1, %v5896_v7  ;;  %v5771_v35 = vadd.f32 %v5545_v2, %v5131_v48  ;;  %v5772_v28 = vadd.f32 %v5545_v2, %v5132_v38  ;;  %v5157_v0 = vmul.f32 %v11320_v57, %v4517_v61  ;;  %v5158_v59 = vmul.f32 %v11320_v57, %v4518_v32  ;;  %v11329_v32 = vld [vmem:[#allocation113_spill] sm:$0xff]  ;;  %v11331_v49 = vld [vmem:[#allocation75_spill] sm:$0xff] }
 0x414   :  { %v5921_v44 = vmax.f32 %v5793_v3, 0.0  ;;  %v5922_v18 = vmax.f32 %v5794_v53, 0.0  ;;  %v5135_v39 = vmul.f32 %v11321_v15, %v4495_v37  ;;  %v5136_v11 = vmul.f32 %v11321_v15, %v4496_v43  ;;  %v5597_v23 = vpop.permute.xlu0 %5596  ;;  %v11330_v53 = vld [vmem:[#allocation117_spill] sm:$0xff]  ;;  %v11332_v43 = vld [vmem:[#allocation131_spill] sm:$0xff] }
 0x415   :  { %v5899_v60 = vmax.f32 %v5771_v35, 0.0  ;;  %v5900_v33 = vmax.f32 %v5772_v28, 0.0  ;;  %v4521_v5 = vmul.f32 %v9506_v51, %v11322_v21  ;;  %v4522_v36 = vmul.f32 %v9506_v51, %v11323_v31  ;;  %v5553_v30 = vpop.permute.xlu1 %5552  ;;  %v11333_v28 = vld [vmem:[#allocation79_spill] sm:$0xff] }
 0x416   :  { %6049 = vst.msk [vmem:[%s10283_s4 + $0x190] sm:$0xff] %vm1212_vm1, %v5921_v44  ;;  %6050 = vst.msk [vmem:[%s10283_s4 + $0x198] sm:$0xff] %vm1212_vm1, %v5922_v18  ;;  %v5797_v55 = vadd.f32 %v5597_v23, %v5157_v0  ;;  %v5798_v6 = vadd.f32 %v5597_v23, %v5158_v59  ;;  %v4499_v54 = vmul.f32 %v11325_v26, %v11324_v17  ;;  %v11334_v59 = vld [vmem:[#allocation166_spill] sm:$0xff]  ;;  %v4365_v31 = vadd.f32 1e-05, %v9539_v47 }
 0x417   :  { %v4500_v42 = vmul.f32 %v11325_v26, %v11326_v41  ;;  %6027 = vst.msk [vmem:[%s10283_s4 + $0xe0] sm:$0xff] %vm1212_vm1, %v5899_v60  ;;  %6028 = vst.msk [vmem:[%s10283_s4 + $0xe8] sm:$0xff] %vm1212_vm1, %v5900_v33  ;;  %v5775_v51 = vadd.f32 %v5553_v30, %v5135_v39  ;;  %v5776_v52 = vadd.f32 %v5553_v30, %v5136_v11  ;;  %v11335_v11 = vld [vmem:[#allocation205_spill] sm:$0xff]  ;;  %v11336_v30 = vld [vmem:[#allocation83_spill] sm:$0xff]  ;;  %v3451_v41 = vrot.slane %v9445_v62, 2 }
 0x418   :  { %v5161_v24 = vmul.f32 %v11327_v9, %v4521_v5  ;;  %v5162_v46 = vmul.f32 %v11327_v9, %v4522_v36  ;;  %v5925_v48 = vmax.f32 %v5797_v55, 0.0  ;;  %v5926_v38 = vmax.f32 %v5798_v6, 0.0  ;;  %v5605_v10 = vpop.permute.xlu0 %5604  ;;  %v11337_v26 = vld [vmem:[#allocation87_spill] sm:$0xff]  ;;  %v11338_v9 = vld [vmem:[#allocation208_spill] sm:$0xff] }
 0x419   :  { %v5139_v7 = vmul.f32 %v11328_v56, %v4499_v54  ;;  %v5140_v45 = vmul.f32 %v11328_v56, %v4500_v42  ;;  %v5903_v29 = vmax.f32 %v5775_v51, 0.0  ;;  %v5904_v61 = vmax.f32 %v5776_v52, 0.0  ;;  %v5561_v37 = vpop.permute.xlu1 %5560 }
 0x41a   :  { %v4525_v3 = vmul.f32 %v9593_v58, %v11329_v32  ;;  %v4526_v2 = vmul.f32 %v9593_v58, %v11330_v53  ;;  %6053 = vst.msk [vmem:[%s10283_s4 + $0x1b0] sm:$0xff] %vm1212_vm1, %v5925_v48  ;;  %6054 = vst.msk [vmem:[%s10283_s4 + $0x1b8] sm:$0xff] %vm1212_vm1, %v5926_v38  ;;  %v5801_v27 = vadd.f32 %v5605_v10, %v5161_v24  ;;  %v3442_v42 = vrot.slane %v9484_v50, 4  ;;  %v11341_v32 = vld [vmem:[#allocation91_spill] sm:$0xff] }
 0x41b   :  { %v5802_v12 = vadd.f32 %v5605_v10, %v5162_v46  ;;  %v4503_v35 = vmul.f32 %v11332_v43, %v11331_v49  ;;  %v4504_v57 = vmul.f32 %v11332_v43, %v11333_v28  ;;  %6031 = vst.msk [vmem:[%s10283_s4 + $0x100] sm:$0xff] %vm1212_vm1, %v5903_v29  ;;  %6032 = vst.msk [vmem:[%s10283_s4 + $0x108] sm:$0xff] %vm1212_vm1, %v5904_v61  ;;  %v3430_v56 = vrot.slane %v9431_v34, 2  ;;  %v11340_v29 = vld [vmem:[#allocation207_spill] sm:$0xff] }
 0x41c   :  { %v5779_v58 = vadd.f32 %v5561_v37, %v5139_v7  ;;  %v5780_v0 = vadd.f32 %v5561_v37, %v5140_v45  ;;  %v5165_v44 = vmul.f32 %v11334_v59, %v4525_v3  ;;  %v5166_v18 = vmul.f32 %v11334_v59, %v4526_v2  ;;  %v5613_v5 = vpop.permute.xlu0 %5612  ;;  %v11339_v7 = vld [vmem:[#allocation124_spill] sm:$0xff]  ;;  %v11342_v53 = vld [vmem:[#allocation95_spill] sm:$0xff] }
 0x41d   :  { %v5929_v15 = vmax.f32 %v5801_v27, 0.0  ;;  %v5930_v39 = vmax.f32 %v5802_v12, 0.0  ;;  %v5143_v60 = vmul.f32 %v11335_v11, %v4503_v35  ;;  %v5144_v33 = vmul.f32 %v11335_v11, %v4504_v57  ;;  %v5569_v6 = vpop.permute.xlu1 %5568  ;;  %v11343_v28 = vld [vmem:[#allocation155_spill] sm:$0xff] }
 0x41e   :  { %v5907_v23 = vmax.f32 %v5779_v58, 0.0  ;;  %v5908_v21 = vmax.f32 %v5780_v0, 0.0  ;;  %v5805_v36 = vadd.f32 %v5613_v5, %v5165_v44  ;;  %v5806_v55 = vadd.f32 %v5613_v5, %v5166_v18 }
 0x41f   :  { %6057 = vst.msk [vmem:[%s10283_s4 + $0x1d0] sm:$0xff] %vm1212_vm1, %v5929_v15  ;;  %6058 = vst.msk [vmem:[%s10283_s4 + $0x1d8] sm:$0xff] %vm1212_vm1, %v5930_v39  ;;  %v4507_v17 = vmul.f32 %v9284_v22, %v11336_v30  ;;  %v4508_v20 = vmul.f32 %v9284_v22, %v11337_v26  ;;  %v5783_v47 = vadd.f32 %v5569_v6, %v5143_v60  ;;  %6660 = vrsqrt.f32 %v4365_v31  ;;  %v11345_v15 = vld [vmem:[#allocation2_spill] sm:$0xff]  ;;  %v11346_v60 = vld [vmem:[#allocation99_spill] sm:$0xff]  ;;  %v6659_v31 = vpop.eup %6658 }
 0x420   :  { %6035 = vst.msk [vmem:[%s10283_s4 + $0x120] sm:$0xff] %vm1212_vm1, %v5907_v23  ;;  %6036 = vst.msk [vmem:[%s10283_s4 + $0x128] sm:$0xff] %vm1212_vm1, %v5908_v21  ;;  %v5784_v54 = vadd.f32 %v5569_v6, %v5144_v33  ;;  %v5933_v51 = vmax.f32 %v5805_v36, 0.0  ;;  %v5934_v52 = vmax.f32 %v5806_v55, 0.0  ;;  %v5621_v38 = vpop.permute.xlu0 %5620  ;;  %v4511_v3 = vmul.f32 %v9355_v19, %v11341_v32 }
 0x421   :  { %v5147_v22 = vmul.f32 %v11338_v9, %v4507_v17  ;;  %v5148_v24 = vmul.f32 %v11338_v9, %v4508_v20  ;;  %v5911_v46 = vmax.f32 %v5783_v47, 0.0  ;;  %v5809_v45 = vadd.f32 %v5621_v38, %v11339_v7  ;;  %v5577_v10 = vpop.permute.xlu1 %5576  ;;  %v11348_v17 = vld [vmem:[#allocation14_spill] sm:$0xff]  ;;  %v11350_v9 = vld [vmem:[#allocation161_spill] sm:$0xff] }
 0x422   :  { %v5912_v48 = vmax.f32 %v5784_v54, 0.0  ;;  %6061 = vst.msk [vmem:[%s10283_s4 + $0x1f0] sm:$0xff] %vm1212_vm1, %v5933_v51  ;;  %6062 = vst.msk [vmem:[%s10283_s4 + $0x1f8] sm:$0xff] %vm1212_vm1, %v5934_v52  ;;  %v5810_v61 = vadd.f32 %v5621_v38, %v11340_v29  ;;  %v4512_v2 = vmul.f32 %v9355_v19, %v11342_v53  ;;  %v3452_v37 = vadd.f32 %v3451_v41, %v9445_v62  ;;  %v11344_v62 = vld [vmem:[#allocation168_spill] sm:$0xff]  ;;  %v11349_v51 = vld [vmem:[#allocation10_spill] sm:$0xff] }
 0x423   :  { %6039 = vst.msk [vmem:[%s10283_s4 + $0x140] sm:$0xff] %vm1212_vm1, %v5911_v46  ;;  %v5787_v27 = vadd.f32 %v5577_v10, %v5147_v22  ;;  %v5788_v12 = vadd.f32 %v5577_v10, %v5148_v24  ;;  %v3443_v49 = vadd.f32 %v3442_v42, %v9484_v50  ;;  %v5937_v43 = vmax.f32 %v5809_v45, 0.0  ;;  %v11351_v46 = vld [vmem:[#allocation107_spill] sm:$0xff] }
 0x424   :  { %6040 = vst.msk [vmem:[%s10283_s4 + $0x148] sm:$0xff] %vm1212_vm1, %v5912_v48  ;;  %v5938_v35 = vmax.f32 %v5810_v61, 0.0  ;;  %v5151_v19 = vmul.f32 %v11343_v28, %v4511_v3  ;;  %v5152_v57 = vmul.f32 %v11343_v28, %v4512_v2  ;;  %v5629_v59 = vpop.permute.xlu0 %5628  ;;  %v3439_v44 = vrot.slane %v9422_v8, 1  ;;  %v11353_v3 = vld [vmem:[#allocation18_spill] sm:$0xff]  ;;  %v11355_v28 = vld [vmem:[#allocation132_spill] sm:$0xff] }
 0x425   :  { %v5915_v58 = vmax.f32 %v5787_v27, 0.0  ;;  %v5916_v0 = vmax.f32 %v5788_v12, 0.0  ;;  %v9792_v18 = vadd.f32 %v3430_v56, %v9431_v34  ;;  %6065 = vst.msk [vmem:[%s10283_s4 + $0x210] sm:$0xff] %vm1212_vm1, %v5937_v43  ;;  %v5813_v50 = vadd.f32 %v5629_v59, %v11344_v62  ;;  %v5585_v11 = vpop.permute.xlu1 %5584  ;;  %v11347_v34 = vld [vmem:[#allocation103_spill] sm:$0xff] }
 0x426   :  { %6066 = vst.msk [vmem:[%s10283_s4 + $0x218] sm:$0xff] %vm1212_vm1, %v5938_v35  ;;  %v5814_v39 = vadd.f32 %v5629_v59, %v11345_v15  ;;  %v4515_v33 = vmul.f32 %v9457_v4, %v11346_v60  ;;  %v4516_v23 = vmul.f32 %v9457_v4, %v11347_v34  ;;  %v5791_v21 = vadd.f32 %v5585_v11, %v5151_v19  ;;  %v11354_v35 = vld [vmem:[#allocation26_spill] sm:$0xff]  ;;  %v11359_v62 = vld [vmem:[#allocation115_spill] sm:$0xff] }
 0x427   :  { %6043 = vst.msk [vmem:[%s10283_s4 + $0x160] sm:$0xff] %vm1212_vm1, %v5915_v58  ;;  %6044 = vst.msk [vmem:[%s10283_s4 + $0x168] sm:$0xff] %vm1212_vm1, %v5916_v0  ;;  %v5792_v5 = vadd.f32 %v5585_v11, %v5152_v57  ;;  %v3453_v36 = vrot.slane %v3452_v37, 1  ;;  %v3444_v55 = vrot.slane %v3443_v49, 2  ;;  %v5941_v6 = vmax.f32 %v5813_v50, 0.0  ;;  %v11356_v57 = vld [vmem:[#allocation30_spill] sm:$0xff] }
 0x428   :  { %v5942_v30 = vmax.f32 %v5814_v39, 0.0  ;;  %v5155_v26 = vmul.f32 %v11348_v17, %v4515_v33  ;;  %v5156_v4 = vmul.f32 %v11348_v17, %v4516_v23  ;;  %v5919_v20 = vmax.f32 %v5791_v21, 0.0  ;;  %v5637_v54 = vpop.permute.xlu0 %5636  ;;  %v11358_v0 = vld [vmem:[#allocation169_spill] sm:$0xff]  ;;  %v11360_v15 = vld [vmem:[#allocation119_spill] sm:$0xff]  ;;  %v11361_v33 = vld [vmem:[#allocation22_spill] sm:$0xff] }
 0x429   :  { %v5920_v47 = vmax.f32 %v5792_v5, 0.0  ;;  %v3440_v41 = vadd.f32 %v3439_v44, %v9422_v8  ;;  %v3432_v42 = vrot.slane %v9792_v18, 1  ;;  %6069 = vst.msk [vmem:[%s10283_s4 + $0x230] sm:$0xff] %vm1212_vm1, %v5941_v6  ;;  %v5817_v52 = vadd.f32 %v5637_v54, %v11349_v51  ;;  %v5593_v24 = vpop.permute.xlu1 %5592  ;;  %v11352_v8 = vld [vmem:[#allocation111_spill] sm:$0xff]  ;;  %v6661_v45 = vpop.eup %6660 }
 0x42a   :  { %6070 = vst.msk [vmem:[%s10283_s4 + $0x238] sm:$0xff] %vm1212_vm1, %v5942_v30  ;;  %v5818_v22 = vadd.f32 %v5637_v54, %v11350_v9  ;;  %v4519_v48 = vmul.f32 %v6659_v31, %v11351_v46  ;;  %v4520_v38 = vmul.f32 %v6659_v31, %v11352_v8  ;;  %6047 = vst.msk [vmem:[%s10283_s4 + $0x180] sm:$0xff] %vm1212_vm1, %v5919_v20  ;;  %v11362_v31 = vld [vmem:[#allocation121_spill] sm:$0xff]  ;;  %v11366_v8 = vld [vmem:[#allocation150_spill] sm:$0xff] }
 0x42b   :  { %6048 = vst.msk [vmem:[%s10283_s4 + $0x188] sm:$0xff] %vm1212_vm1, %v5920_v47  ;;  %v5795_v56 = vadd.f32 %v5593_v24, %v5155_v26  ;;  %v5796_v7 = vadd.f32 %v5593_v24, %v5156_v4  ;;  %v3454_v29 = vadd.f32 %v3453_v36, %v3452_v37  ;;  %v9840_v61 = vadd.f32 %v3444_v55, %v3443_v49  ;;  %v11357_v37 = vld [vmem:[#allocation130_spill] sm:$0xff]  ;;  %v11364_v4 = vld [vmem:[#allocation144_spill] sm:$0xff] }
 0x42c   :  { %v5945_v10 = vmax.f32 %v5817_v52, 0.0  ;;  %v5946_v32 = vmax.f32 %v5818_v22, 0.0  ;;  %v5159_v53 = vmul.f32 %v11353_v3, %v4519_v48  ;;  %v5160_v2 = vmul.f32 %v11353_v3, %v4520_v38  ;;  %v5645_v43 = vpop.permute.xlu0 %5644  ;;  %v11363_v26 = vld [vmem:[#allocation34_spill] sm:$0xff] }
 0x42d   :  { %v5923_v27 = vmax.f32 %v5795_v56, 0.0  ;;  %v5924_v12 = vmax.f32 %v5796_v7, 0.0  ;;  %v4545_v19 = vmul.f32 %v11355_v28, %v11354_v35  ;;  %v4546_v58 = vmul.f32 %v11355_v28, %v11356_v57  ;;  %v5601_v44 = vpop.permute.xlu1 %5600  ;;  %v11365_v47 = vld [vmem:[#allocation38_spill] sm:$0xff]  ;;  %v11370_v57 = vld [vmem:[#allocation171_spill] sm:$0xff] }
 0x42e   :  { %6073 = vst.msk [vmem:[%s10283_s4 + $0x250] sm:$0xff] %vm1212_vm1, %v5945_v10  ;;  %6074 = vst.msk [vmem:[%s10283_s4 + $0x258] sm:$0xff] %vm1212_vm1, %v5946_v32  ;;  %v5821_v49 = vadd.f32 %v5645_v43, %v11357_v37  ;;  %v5822_v59 = vadd.f32 %v5645_v43, %v11358_v0  ;;  %v4523_v50 = vmul.f32 %v6661_v45, %v11359_v62  ;;  %v3516_v22 = vmul.f32 0.0625, %v3440_v41  ;;  %v11367_v3 = vld [vmem:[#allocation42_spill] sm:$0xff]  ;;  %v11371_v37 = vld [vmem:[#allocation173_spill] sm:$0xff] }
 0x42f   :  { %v4524_v39 = vmul.f32 %v6661_v45, %v11360_v15  ;;  %6051 = vst.msk [vmem:[%s10283_s4 + $0x1a0] sm:$0xff] %vm1212_vm1, %v5923_v27  ;;  %6052 = vst.msk [vmem:[%s10283_s4 + $0x1a8] sm:$0xff] %vm1212_vm1, %v5924_v12  ;;  %v5799_v11 = vadd.f32 %v5601_v44, %v5159_v53  ;;  %v5800_v60 = vadd.f32 %v5601_v44, %v5160_v2  ;;  %v3518_v45 = vmul.f32 0.0625, %v3454_v29  ;;  %v11368_v53 = vld [vmem:[#allocation149_spill] sm:$0xff]  ;;  %v11369_v27 = vld [vmem:[#allocation46_spill] sm:$0xff] }
 0x430   :  { %v5185_v34 = vmul.f32 %v11361_v33, %v4545_v19  ;;  %v5186_v23 = vmul.f32 %v11361_v33, %v4546_v58  ;;  %v5949_v21 = vmax.f32 %v5821_v49, 0.0  ;;  %v5950_v5 = vmax.f32 %v5822_v59, 0.0  ;;  %v5653_v17 = vpop.permute.xlu0 %5652  ;;  %v11372_v0 = vld [vmem:[#allocation176_spill] sm:$0xff] }
 0x431   :  { %v5163_v36 = vmul.f32 %v11362_v31, %v4523_v50  ;;  %v5164_v55 = vmul.f32 %v11362_v31, %v4524_v39  ;;  %v5927_v6 = vmax.f32 %v5799_v11, 0.0  ;;  %v5928_v30 = vmax.f32 %v5800_v60, 0.0  ;;  %v5609_v9 = vpop.permute.xlu1 %5608 }
 0x432   :  { %v4549_v20 = vmul.f32 %v11364_v4, %v11363_v26  ;;  %v4550_v54 = vmul.f32 %v11364_v4, %v11365_v47  ;;  %6077 = vst.msk [vmem:[%s10283_s4 + $0x270] sm:$0xff] %vm1212_vm1, %v5949_v21  ;;  %6078 = vst.msk [vmem:[%s10283_s4 + $0x278] sm:$0xff] %vm1212_vm1, %v5950_v5  ;;  %v5825_v51 = vadd.f32 %v5653_v17, %v5185_v34  ;;  %v4396_v28 = vadd.f32 1e-05, %v3516_v22  ;;  %v11373_v34 = vld [vmem:[#allocation50_spill] sm:$0xff]  ;;  %v11377_v26 = vld [vmem:[#allocation127_spill] sm:$0xff] }
 0x433   :  { %v5826_v52 = vadd.f32 %v5653_v17, %v5186_v23  ;;  %v3433_v24 = vadd.f32 %v3432_v42, %v9792_v18  ;;  %6055 = vst.msk [vmem:[%s10283_s4 + $0x1c0] sm:$0xff] %vm1212_vm1, %v5927_v6  ;;  %6056 = vst.msk [vmem:[%s10283_s4 + $0x1c8] sm:$0xff] %vm1212_vm1, %v5928_v30  ;;  %v5803_v46 = vadd.f32 %v5609_v9, %v5163_v36  ;;  %v3446_v18 = vrot.slane %v9840_v61, 1  ;;  %v11374_v23 = vld [vmem:[#allocation189_spill] sm:$0xff]  ;;  %v11375_v5 = vld [vmem:[#allocation54_spill] sm:$0xff] }
 0x434   :  { %v5804_v48 = vadd.f32 %v5609_v9, %v5164_v55  ;;  %v5189_v38 = vmul.f32 %v11366_v8, %v4549_v20  ;;  %v5190_v56 = vmul.f32 %v11366_v8, %v4550_v54  ;;  %v5953_v7 = vmax.f32 %v5825_v51, 0.0  ;;  %v5661_v32 = vpop.permute.xlu0 %5660  ;;  %v11376_v30 = vld [vmem:[#allocation134_spill] sm:$0xff]  ;;  %v11378_v20 = vld [vmem:[#allocation128_spill] sm:$0xff]  ;;  %v11380_v8 = vld [vmem:[#allocation159_spill] sm:$0xff] }
 0x435   :  { %v5954_v41 = vmax.f32 %v5826_v52, 0.0  ;;  %v5931_v42 = vmax.f32 %v5803_v46, 0.0  ;;  %v4553_v2 = vmul.f32 %v11368_v53, %v11367_v3  ;;  %v4554_v12 = vmul.f32 %v11368_v53, %v11369_v27  ;;  %v5617_v35 = vpop.permute.xlu1 %5616  ;;  %v11384_v3 = vld [vmem:[#allocation24_spill] sm:$0xff] }
 0x436   :  { %v5932_v10 = vmax.f32 %v5804_v48, 0.0  ;;  %6081 = vst.msk [vmem:[%s10283_s4 + $0x290] sm:$0xff] %vm1212_vm1, %v5953_v7  ;;  %v5829_v29 = vadd.f32 %v5661_v32, %v5189_v38  ;;  %v5830_v43 = vadd.f32 %v5661_v32, %v5190_v56  ;;  %v3515_v19 = vmul.f32 0.0625, %v3433_v24  ;;  %v11379_v48 = vld [vmem:[#allocation58_spill] sm:$0xff] }
 0x437   :  { %6082 = vst.msk [vmem:[%s10283_s4 + $0x298] sm:$0xff] %vm1212_vm1, %v5954_v41  ;;  %6059 = vst.msk [vmem:[%s10283_s4 + $0x1e0] sm:$0xff] %vm1212_vm1, %v5931_v42  ;;  %v5807_v58 = vadd.f32 %v5617_v35, %v11370_v57  ;;  %v5808_v49 = vadd.f32 %v5617_v35, %v11371_v37  ;;  %v5193_v59 = vmul.f32 %v11372_v0, %v4553_v2  ;;  %v4398_v15 = vadd.f32 1e-05, %v3518_v45  ;;  %v11381_v56 = vld [vmem:[#allocation62_spill] sm:$0xff]  ;;  %v11382_v42 = vld [vmem:[#allocation20_spill] sm:$0xff] }
 0x438   :  { %6060 = vst.msk [vmem:[%s10283_s4 + $0x1e8] sm:$0xff] %vm1212_vm1, %v5932_v10  ;;  %v5194_v44 = vmul.f32 %v11372_v0, %v4554_v12  ;;  %v5957_v62 = vmax.f32 %v5829_v29, 0.0  ;;  %v5958_v50 = vmax.f32 %v5830_v43, 0.0  ;;  %v3447_v39 = vadd.f32 %v3446_v18, %v9840_v61  ;;  %v5669_v33 = vpop.permute.xlu0 %5668  ;;  %v11383_v10 = vld [vmem:[#allocation172_spill] sm:$0xff]  ;;  %v11385_v2 = vld [vmem:[#allocation122_spill] sm:$0xff]  ;;  %v11387_v43 = vld [vmem:[#allocation157_spill] sm:$0xff] }
 0x439   :  { %v5935_v11 = vmax.f32 %v5807_v58, 0.0  ;;  %v5936_v60 = vmax.f32 %v5808_v49, 0.0  ;;  %v4557_v21 = vmul.f32 %v11374_v23, %v11373_v34  ;;  %v4558_v31 = vmul.f32 %v11374_v23, %v11375_v5  ;;  %v5625_v55 = vpop.permute.xlu1 %5624  ;;  %v11386_v12 = vld [vmem:[#allocation4_spill] sm:$0xff] }
 0x43a   :  { %6085 = vst.msk [vmem:[%s10283_s4 + $0x2b0] sm:$0xff] %vm1212_vm1, %v5957_v62  ;;  %6086 = vst.msk [vmem:[%s10283_s4 + $0x2b8] sm:$0xff] %vm1212_vm1, %v5958_v50  ;;  %v5833_v61 = vadd.f32 %v5669_v33, %v5193_v59  ;;  %v5834_v36 = vadd.f32 %v5669_v33, %v5194_v44  ;;  %6662 = vrsqrt.f32 %v4396_v28  ;;  %v9933_v6 = vadd.f32 1e-05, %v3515_v19  ;;  %v11388_v58 = vld [vmem:[#allocation8_spill] sm:$0xff]  ;;  %v11389_v62 = vld [vmem:[#allocation66_spill] sm:$0xff] }
 0x43b   :  { %6063 = vst.msk [vmem:[%s10283_s4 + $0x200] sm:$0xff] %vm1212_vm1, %v5935_v11  ;;  %6064 = vst.msk [vmem:[%s10283_s4 + $0x208] sm:$0xff] %vm1212_vm1, %v5936_v60  ;;  %v5811_v17 = vadd.f32 %v5625_v55, %v11376_v30  ;;  %v5812_v4 = vadd.f32 %v5625_v55, %v11377_v26  ;;  %v5197_v47 = vmul.f32 %v11378_v20, %v4557_v21  ;;  %6664 = vrsqrt.f32 %v4398_v15  ;;  %v11390_v50 = vld [vmem:[#allocation206_spill] sm:$0xff]  ;;  %v11392_v23 = vld [vmem:[#allocation28_spill] sm:$0xff] }
 0x43c   :  { %v5198_v54 = vmul.f32 %v11378_v20, %v4558_v31  ;;  %v5961_v51 = vmax.f32 %v5833_v61, 0.0  ;;  %v5962_v52 = vmax.f32 %v5834_v36, 0.0  ;;  %v9947_v9 = vmul.f32 0.0625, %v3447_v39  ;;  %v5677_v46 = vpop.permute.xlu0 %5676  ;;  %v11391_v39 = vld [vmem:[#allocation70_spill] sm:$0xff]  ;;  %v11393_v21 = vld [vmem:[#allocation136_spill] sm:$0xff]  ;;  %v11395_v30 = vld [vmem:[#allocation137_spill] sm:$0xff] }
 0x43d   :  { %v5939_v22 = vmax.f32 %v5811_v17, 0.0  ;;  %v5940_v24 = vmax.f32 %v5812_v4, 0.0  ;;  %v4561_v38 = vmul.f32 %v11380_v8, %v11379_v48  ;;  %v4562_v7 = vmul.f32 %v11380_v8, %v11381_v56  ;;  %v5633_v18 = vpop.permute.xlu1 %5632  ;;  %v11394_v31 = vld [vmem:[#allocation32_spill] sm:$0xff]  ;;  %v11397_v48 = vld [vmem:[#allocation74_spill] sm:$0xff] }
 0x43e   :  { %6089 = vst.msk [vmem:[%s10283_s4 + $0x2d0] sm:$0xff] %vm1212_vm1, %v5961_v51  ;;  %6090 = vst.msk [vmem:[%s10283_s4 + $0x2d8] sm:$0xff] %vm1212_vm1, %v5962_v52  ;;  %v5837_v41 = vadd.f32 %v5677_v46, %v5197_v47  ;;  %v5838_v45 = vadd.f32 %v5677_v46, %v5198_v54  ;;  %v4539_v32 = vmul.f32 %v11383_v10, %v11382_v42  ;;  %v11396_v54 = vld [vmem:[#allocation138_spill] sm:$0xff]  ;;  %6666 = vrsqrt.f32 %v9933_v6 }
 0x43f   :  { %v4540_v53 = vmul.f32 %v11383_v10, %v11384_v3  ;;  %6067 = vst.msk [vmem:[%s10283_s4 + $0x220] sm:$0xff] %vm1212_vm1, %v5939_v22  ;;  %6068 = vst.msk [vmem:[%s10283_s4 + $0x228] sm:$0xff] %vm1212_vm1, %v5940_v24  ;;  %v5815_v27 = vadd.f32 %v5633_v18, %v11385_v2  ;;  %v5816_v29 = vadd.f32 %v5633_v18, %v11386_v12  ;;  %v11398_v8 = vld [vmem:[#allocation6_spill] sm:$0xff]  ;;  %v11400_v10 = vld [vmem:[#allocation36_spill] sm:$0xff] }
 0x440   :  { %v5201_v35 = vmul.f32 %v11387_v43, %v4561_v38  ;;  %v5202_v28 = vmul.f32 %v11387_v43, %v4562_v7  ;;  %v5965_v19 = vmax.f32 %v5837_v41, 0.0  ;;  %v5966_v57 = vmax.f32 %v5838_v45, 0.0  ;;  %v5685_v44 = vpop.permute.xlu0 %5684  ;;  %v11399_v56 = vld [vmem:[#allocation78_spill] sm:$0xff] }
 0x441   :  { %v5179_v37 = vmul.f32 %v11388_v58, %v4539_v32  ;;  %v5180_v49 = vmul.f32 %v11388_v58, %v4540_v53  ;;  %v5943_v0 = vmax.f32 %v5815_v27, 0.0  ;;  %v5944_v59 = vmax.f32 %v5816_v29, 0.0  ;;  %v5641_v34 = vpop.permute.xlu1 %5640  ;;  %v11401_v32 = vld [vmem:[#allocation148_spill] sm:$0xff] }
 0x442   :  { %v4565_v15 = vmul.f32 %v11390_v50, %v11389_v62  ;;  %v4566_v11 = vmul.f32 %v11390_v50, %v11391_v39  ;;  %6093 = vst.msk [vmem:[%s10283_s4 + $0x2f0] sm:$0xff] %vm1212_vm1, %v5965_v19  ;;  %6094 = vst.msk [vmem:[%s10283_s4 + $0x2f8] sm:$0xff] %vm1212_vm1, %v5966_v57  ;;  %v5841_v60 = vadd.f32 %v5685_v44, %v5201_v35  ;;  %v11402_v53 = vld [vmem:[#allocation40_spill] sm:$0xff]  ;;  %v11404_v57 = vld [vmem:[#allocation163_spill] sm:$0xff] }
 0x443   :  { %v5842_v33 = vadd.f32 %v5685_v44, %v5202_v28  ;;  %v4543_v5 = vmul.f32 %v11393_v21, %v11392_v23  ;;  %v4544_v61 = vmul.f32 %v11393_v21, %v11394_v31  ;;  %6071 = vst.msk [vmem:[%s10283_s4 + $0x240] sm:$0xff] %vm1212_vm1, %v5943_v0  ;;  %6072 = vst.msk [vmem:[%s10283_s4 + $0x248] sm:$0xff] %vm1212_vm1, %v5944_v59  ;;  %v11403_v29 = vld [vmem:[#allocation12_spill] sm:$0xff]  ;;  %v11405_v44 = vld [vmem:[#allocation82_spill] sm:$0xff] }
 0x444   :  { %v5819_v36 = vadd.f32 %v5641_v34, %v5179_v37  ;;  %v5820_v55 = vadd.f32 %v5641_v34, %v5180_v49  ;;  %v5205_v17 = vmul.f32 %v11395_v30, %v4565_v15  ;;  %v5206_v26 = vmul.f32 %v11395_v30, %v4566_v11  ;;  %v10005_v47 = vpop.eup %6662  ;;  %v5693_v46 = vpop.permute.xlu0 %5692  ;;  %v11406_v62 = vld [vmem:[#allocation153_spill] sm:$0xff]  ;;  %v11407_v15 = vld [vmem:[#allocation86_spill] sm:$0xff]  ;;  %v11408_v34 = vld [vmem:[#allocation44_spill] sm:$0xff] }
 0x445   :  { %v5969_v4 = vmax.f32 %v5841_v60, 0.0  ;;  %v5970_v20 = vmax.f32 %v5842_v33, 0.0  ;;  %v5183_v51 = vmul.f32 %v11396_v54, %v4543_v5  ;;  %v5184_v52 = vmul.f32 %v11396_v54, %v4544_v61  ;;  %v5649_v18 = vpop.permute.xlu1 %5648  ;;  %v10021_v42 = vpop.eup %6664  ;;  %v11409_v23 = vld [vmem:[#allocation187_spill] sm:$0xff]  ;;  %v11410_v5 = vld [vmem:[#allocation48_spill] sm:$0xff] }
 0x446   :  { %v5947_v22 = vmax.f32 %v5819_v36, 0.0  ;;  %v5948_v24 = vmax.f32 %v5820_v55, 0.0  ;;  %v4569_v38 = vmul.f32 %v11398_v8, %v11397_v48  ;;  %v4570_v7 = vmul.f32 %v11398_v8, %v11399_v56  ;;  %v11411_v55 = vld [vmem:[#allocation16_spill] sm:$0xff]  ;;  %v11414_v48 = vld [vmem:[#allocation174_spill] sm:$0xff] }
 0x447   :  { %6097 = vst.msk [vmem:[%s10283_s4 + $0x310] sm:$0xff] %vm1212_vm1, %v5969_v4  ;;  %6098 = vst.msk [vmem:[%s10283_s4 + $0x318] sm:$0xff] %vm1212_vm1, %v5970_v20  ;;  %v5845_v41 = vadd.f32 %v5693_v46, %v5205_v17  ;;  %v5846_v45 = vadd.f32 %v5693_v46, %v5206_v26  ;;  %v4547_v3 = vmul.f32 %v11401_v32, %v11400_v10  ;;  %v11412_v20 = vld [vmem:[#allocation139_spill] sm:$0xff]  ;;  %v11413_v46 = vld [vmem:[#allocation90_spill] sm:$0xff] }
 0x448   :  { %v4548_v2 = vmul.f32 %v11401_v32, %v11402_v53  ;;  %6075 = vst.msk [vmem:[%s10283_s4 + $0x260] sm:$0xff] %vm1212_vm1, %v5947_v22  ;;  %6076 = vst.msk [vmem:[%s10283_s4 + $0x268] sm:$0xff] %vm1212_vm1, %v5948_v24  ;;  %v5823_v27 = vadd.f32 %v5649_v18, %v5183_v51  ;;  %v5824_v12 = vadd.f32 %v5649_v18, %v5184_v52  ;;  %v5701_v59 = vpop.permute.xlu0 %5700  ;;  %v11416_v18 = vld [vmem:[#allocation52_spill] sm:$0xff]  ;;  %v11417_v10 = vld [vmem:[#allocation158_spill] sm:$0xff] }
 0x449   :  { %v5209_v43 = vmul.f32 %v11403_v29, %v4569_v38  ;;  %v5210_v35 = vmul.f32 %v11403_v29, %v4570_v7  ;;  %v5973_v28 = vmax.f32 %v5845_v41, 0.0  ;;  %v5974_v19 = vmax.f32 %v5846_v45, 0.0  ;;  %v5657_v33 = vpop.permute.xlu1 %5656  ;;  %v11415_v38 = vld [vmem:[#allocation94_spill] sm:$0xff] }
 0x44a   :  { %v5187_v58 = vmul.f32 %v11404_v57, %v4547_v3  ;;  %v5188_v37 = vmul.f32 %v11404_v57, %v4548_v2  ;;  %v5951_v49 = vmax.f32 %v5823_v27, 0.0  ;;  %v5952_v0 = vmax.f32 %v5824_v12, 0.0  ;;  %v11418_v3 = vld [vmem:[#allocation56_spill] sm:$0xff] }
 0x44b   :  { %v4573_v50 = vmul.f32 %v11406_v62, %v11405_v44  ;;  %v4574_v39 = vmul.f32 %v11406_v62, %v11407_v15  ;;  %6101 = vst.msk [vmem:[%s10283_s4 + $0x330] sm:$0xff] %vm1212_vm1, %v5973_v28  ;;  %6102 = vst.msk [vmem:[%s10283_s4 + $0x338] sm:$0xff] %vm1212_vm1, %v5974_v19  ;;  %v5849_v11 = vadd.f32 %v5701_v59, %v5209_v43  ;;  %v11419_v12 = vld [vmem:[#allocation140_spill] sm:$0xff]  ;;  %v11420_v19 = vld [vmem:[#allocation125_spill] sm:$0xff] }
 0x44c   :  { %v5850_v60 = vadd.f32 %v5701_v59, %v5210_v35  ;;  %v4551_v21 = vmul.f32 %v11409_v23, %v11408_v34  ;;  %v4552_v31 = vmul.f32 %v11409_v23, %v11410_v5  ;;  %6079 = vst.msk [vmem:[%s10283_s4 + $0x280] sm:$0xff] %vm1212_vm1, %v5951_v49  ;;  %6080 = vst.msk [vmem:[%s10283_s4 + $0x288] sm:$0xff] %vm1212_vm1, %v5952_v0  ;;  %v5709_v24 = vpop.permute.xlu0 %5708  ;;  %v11421_v59 = vld [vmem:[#allocation98_spill] sm:$0xff]  ;;  %v11425_v23 = vld [vmem:[#allocation64_spill] sm:$0xff] }
 0x44d   :  { %v5827_v61 = vadd.f32 %v5657_v33, %v5187_v58  ;;  %v5828_v36 = vadd.f32 %v5657_v33, %v5188_v37  ;;  %v5213_v30 = vmul.f32 %v11411_v55, %v4573_v50  ;;  %v5214_v17 = vmul.f32 %v11411_v55, %v4574_v39  ;;  %v5665_v45 = vpop.permute.xlu1 %5664  ;;  %v11422_v62 = vld [vmem:[#allocation102_spill] sm:$0xff]  ;;  %v11424_v33 = vld [vmem:[#allocation201_spill] sm:$0xff] }
 0x44e   :  { %v5977_v26 = vmax.f32 %v5849_v11, 0.0  ;;  %v5978_v4 = vmax.f32 %v5850_v60, 0.0  ;;  %v5191_v54 = vmul.f32 %v11412_v20, %v4551_v21  ;;  %v5192_v51 = vmul.f32 %v11412_v20, %v4552_v31  ;;  %v11423_v60 = vld [vmem:[#allocation60_spill] sm:$0xff]  ;;  %v11426_v31 = vld [vmem:[#allocation141_spill] sm:$0xff] }
 0x44f   :  { %v5955_v52 = vmax.f32 %v5827_v61, 0.0  ;;  %v5956_v22 = vmax.f32 %v5828_v36, 0.0  ;;  %v4577_v8 = vmul.f32 %v11414_v48, %v11413_v46  ;;  %v4578_v56 = vmul.f32 %v11414_v48, %v11415_v38 }
 0x450   :  { %6105 = vst.msk [vmem:[%s10283_s4 + $0x350] sm:$0xff] %vm1212_vm1, %v5977_v26  ;;  %6106 = vst.msk [vmem:[%s10283_s4 + $0x358] sm:$0xff] %vm1212_vm1, %v5978_v4  ;;  %v5853_v7 = vadd.f32 %v5709_v24, %v5213_v30  ;;  %v5854_v41 = vadd.f32 %v5709_v24, %v5214_v17  ;;  %v4555_v32 = vmul.f32 %v11417_v10, %v11416_v18  ;;  %v5717_v0 = vpop.permute.xlu0 %5716  ;;  %v11427_v17 = vld [vmem:[#allocation126_spill] sm:$0xff] }
 0x451   :  { %v4556_v53 = vmul.f32 %v11417_v10, %v11418_v3  ;;  %6083 = vst.msk [vmem:[%s10283_s4 + $0x2a0] sm:$0xff] %vm1212_vm1, %v5955_v52  ;;  %6084 = vst.msk [vmem:[%s10283_s4 + $0x2a8] sm:$0xff] %vm1212_vm1, %v5956_v22  ;;  %v5831_v2 = vadd.f32 %v5665_v45, %v5191_v54  ;;  %v5832_v27 = vadd.f32 %v5665_v45, %v5192_v51  ;;  %v5673_v11 = vpop.permute.xlu1 %5672  ;;  %v11428_v52 = vld [vmem:[#allocation106_spill] sm:$0xff]  ;;  %v11432_v45 = vld [vmem:[#allocation72_spill] sm:$0xff] }
 0x452   :  { %v5217_v29 = vmul.f32 %v11419_v12, %v4577_v8  ;;  %v5218_v43 = vmul.f32 %v11419_v12, %v4578_v56  ;;  %v5981_v35 = vmax.f32 %v5853_v7, 0.0  ;;  %v5982_v28 = vmax.f32 %v5854_v41, 0.0  ;;  %v11429_v24 = vld [vmem:[#allocation110_spill] sm:$0xff]  ;;  %v11430_v56 = vld [vmem:[#allocation68_spill] sm:$0xff]  ;;  %v11431_v7 = vld [vmem:[#allocation151_spill] sm:$0xff] }
 0x453   :  { %v5195_v57 = vmul.f32 %v11420_v19, %v4555_v32  ;;  %v5196_v58 = vmul.f32 %v11420_v19, %v4556_v53  ;;  %v5959_v37 = vmax.f32 %v5831_v2, 0.0  ;;  %v5960_v49 = vmax.f32 %v5832_v27, 0.0  ;;  %v11433_v32 = vld [vmem:[#allocation3_spill] sm:$0xff]  ;;  %v11434_v12 = vld [vmem:[#allocation156_spill] sm:$0xff] }
 0x454   :  { %v4581_v44 = vmul.f32 %v9387_v63, %v11421_v59  ;;  %v4582_v50 = vmul.f32 %v9387_v63, %v11422_v62  ;;  %6109 = vst.msk [vmem:[%s10283_s4 + $0x370] sm:$0xff] %vm1212_vm1, %v5981_v35  ;;  %6110 = vst.msk [vmem:[%s10283_s4 + $0x378] sm:$0xff] %vm1212_vm1, %v5982_v28  ;;  %v5857_v15 = vadd.f32 %v5717_v0, %v5217_v29  ;;  %v5725_v51 = vpop.permute.xlu0 %5724  ;;  %v11437_v62 = vld [vmem:[#allocation76_spill] sm:$0xff] }
 0x455   :  { %v5858_v39 = vadd.f32 %v5717_v0, %v5218_v43  ;;  %v4559_v34 = vmul.f32 %v11424_v33, %v11423_v60  ;;  %v4560_v21 = vmul.f32 %v11424_v33, %v11425_v23  ;;  %6087 = vst.msk [vmem:[%s10283_s4 + $0x2c0] sm:$0xff] %vm1212_vm1, %v5959_v37  ;;  %6088 = vst.msk [vmem:[%s10283_s4 + $0x2c8] sm:$0xff] %vm1212_vm1, %v5960_v49  ;;  %v5681_v38 = vpop.permute.xlu1 %5680  ;;  %v11436_v37 = vld [vmem:[#allocation118_spill] sm:$0xff]  ;;  %v11440_v33 = vld [vmem:[#allocation7_spill] sm:$0xff] }
 0x456   :  { %v5835_v63 = vadd.f32 %v5673_v11, %v5195_v57  ;;  %v5836_v5 = vadd.f32 %v5673_v11, %v5196_v58  ;;  %v5221_v61 = vmul.f32 %v11426_v31, %v4581_v44  ;;  %v5222_v36 = vmul.f32 %v11426_v31, %v4582_v50  ;;  %v11435_v57 = vld [vmem:[#allocation114_spill] sm:$0xff]  ;;  %v11438_v50 = vld [vmem:[#allocation175_spill] sm:$0xff] }
 0x457   :  { %v5985_v55 = vmax.f32 %v5857_v15, 0.0  ;;  %v5986_v30 = vmax.f32 %v5858_v39, 0.0  ;;  %v5199_v26 = vmul.f32 %v11427_v17, %v4559_v34  ;;  %v5200_v4 = vmul.f32 %v11427_v17, %v4560_v21  ;;  %v11439_v39 = vld [vmem:[#allocation80_spill] sm:$0xff] }
 0x458   :  { %v5963_v20 = vmax.f32 %v5835_v63, 0.0  ;;  %v5964_v54 = vmax.f32 %v5836_v5, 0.0  ;;  %v4585_v22 = vmul.f32 %v10005_v47, %v11428_v52  ;;  %v4586_v46 = vmul.f32 %v10005_v47, %v11429_v24  ;;  %v5733_v19 = vpop.permute.xlu0 %5732  ;;  %v11441_v5 = vld [vmem:[#allocation25_spill] sm:$0xff] }
 0x459   :  { %6113 = vst.msk [vmem:[%s10283_s4 + $0x390] sm:$0xff] %vm1212_vm1, %v5985_v55  ;;  %6114 = vst.msk [vmem:[%s10283_s4 + $0x398] sm:$0xff] %vm1212_vm1, %v5986_v30  ;;  %v5861_v48 = vadd.f32 %v5725_v51, %v5221_v61  ;;  %v5862_v8 = vadd.f32 %v5725_v51, %v5222_v36  ;;  %v4563_v41 = vmul.f32 %v11431_v7, %v11430_v56  ;;  %v5689_v44 = vpop.permute.xlu1 %5688  ;;  %v4397_v17 = vadd.f32 1e-05, %v9947_v9  ;;  %v11443_v51 = vld [vmem:[#allocation152_spill] sm:$0xff] }
 0x45a   :  { %v4564_v18 = vmul.f32 %v11431_v7, %v11432_v45  ;;  %6091 = vst.msk [vmem:[%s10283_s4 + $0x2e0] sm:$0xff] %vm1212_vm1, %v5963_v20  ;;  %6092 = vst.msk [vmem:[%s10283_s4 + $0x2e8] sm:$0xff] %vm1212_vm1, %v5964_v54  ;;  %v5839_v47 = vadd.f32 %v5681_v38, %v5199_v26  ;;  %v5840_v10 = vadd.f32 %v5681_v38, %v5200_v4  ;;  %v11442_v54 = vld [vmem:[#allocation84_spill] sm:$0xff] }
 0x45b   :  { %v5225_v3 = vmul.f32 %v11433_v32, %v4585_v22  ;;  %v5226_v53 = vmul.f32 %v11433_v32, %v4586_v46  ;;  %v5989_v2 = vmax.f32 %v5861_v48, 0.0  ;;  %v5990_v27 = vmax.f32 %v5862_v8, 0.0  ;;  %v11444_v22 = vld [vmem:[#allocation88_spill] sm:$0xff]  ;;  %v11445_v8 = vld [vmem:[#allocation142_spill] sm:$0xff] }
 0x45c   :  { %v5203_v29 = vmul.f32 %v11434_v12, %v4563_v41  ;;  %v5204_v43 = vmul.f32 %v11434_v12, %v4564_v18  ;;  %v5967_v35 = vmax.f32 %v5839_v47, 0.0  ;;  %v5968_v28 = vmax.f32 %v5840_v10, 0.0  ;;  %v5741_v30 = vpop.permute.xlu0 %5740  ;;  %v11446_v18 = vld [vmem:[#allocation92_spill] sm:$0xff] }
 0x45d   :  { %v4589_v58 = vmul.f32 %v10021_v42, %v11435_v57  ;;  %v4590_v49 = vmul.f32 %v10021_v42, %v11436_v37  ;;  %6117 = vst.msk [vmem:[%s10283_s4 + $0x3b0] sm:$0xff] %vm1212_vm1, %v5989_v2  ;;  %6118 = vst.msk [vmem:[%s10283_s4 + $0x3b8] sm:$0xff] %vm1212_vm1, %v5990_v27  ;;  %v5865_v0 = vadd.f32 %v5733_v19, %v5225_v3  ;;  %v5697_v20 = vpop.permute.xlu1 %5696  ;;  %6668 = vrsqrt.f32 %v4397_v17  ;;  %v11447_v10 = vld [vmem:[#allocation96_spill] sm:$0xff] }
 0x45e   :  { %v5866_v59 = vadd.f32 %v5733_v19, %v5226_v53  ;;  %v4567_v15 = vmul.f32 %v11438_v50, %v11437_v62  ;;  %v4568_v11 = vmul.f32 %v11438_v50, %v11439_v39  ;;  %6095 = vst.msk [vmem:[%s10283_s4 + $0x300] sm:$0xff] %vm1212_vm1, %v5967_v35  ;;  %6096 = vst.msk [vmem:[%s10283_s4 + $0x308] sm:$0xff] %vm1212_vm1, %v5968_v28  ;;  %v11449_v28 = vld [vmem:[#allocation104_spill] sm:$0xff] }
 0x45f   :  { %v5843_v42 = vadd.f32 %v5689_v44, %v5203_v29  ;;  %v5844_v60 = vadd.f32 %v5689_v44, %v5204_v43  ;;  %v5229_v34 = vmul.f32 %v11440_v33, %v4589_v58  ;;  %v5230_v23 = vmul.f32 %v11440_v33, %v4590_v49  ;;  %v6667_v58 = vpop.eup %6666  ;;  %v11450_v44 = vld [vmem:[#allocation108_spill] sm:$0xff] }
 0x460   :  { %v5993_v21 = vmax.f32 %v5865_v0, 0.0  ;;  %v5994_v63 = vmax.f32 %v5866_v59, 0.0  ;;  %v5207_v31 = vmul.f32 %v11441_v5, %v4567_v15  ;;  %v5208_v61 = vmul.f32 %v11441_v5, %v4568_v11  ;;  %v11451_v50 = vld [vmem:[#allocation112_spill] sm:$0xff] }
 0x461   :  { %v5971_v36 = vmax.f32 %v5843_v42, 0.0  ;;  %v5972_v55 = vmax.f32 %v5844_v60, 0.0  ;;  %v5869_v26 = vadd.f32 %v5741_v30, %v5229_v34  ;;  %v5870_v4 = vadd.f32 %v5741_v30, %v5230_v23  ;;  %v5705_v45 = vpop.permute.xlu1 %5704  ;;  %v11453_v5 = vld [vmem:[#allocation120_spill] sm:$0xff] }
 0x462   :  { %6121 = vst.msk [vmem:[%s10283_s4 + $0x3d0] sm:$0xff] %vm1212_vm1, %v5993_v21  ;;  %6122 = vst.msk [vmem:[%s10283_s4 + $0x3d8] sm:$0xff] %vm1212_vm1, %v5994_v63  ;;  %v4571_v52 = vmul.f32 %v11443_v51, %v11442_v54  ;;  %v4572_v6 = vmul.f32 %v11443_v51, %v11444_v22  ;;  %v5847_v9 = vadd.f32 %v5697_v20, %v5207_v31  ;;  %v11452_v21 = vld [vmem:[#allocation116_spill] sm:$0xff] }
 0x463   :  { %6099 = vst.msk [vmem:[%s10283_s4 + $0x320] sm:$0xff] %vm1212_vm1, %v5971_v36  ;;  %6100 = vst.msk [vmem:[%s10283_s4 + $0x328] sm:$0xff] %vm1212_vm1, %v5972_v55  ;;  %v5848_v24 = vadd.f32 %v5697_v20, %v5208_v61  ;;  %v5997_v46 = vmax.f32 %v5869_v26, 0.0  ;;  %v5998_v48 = vmax.f32 %v5870_v4, 0.0  ;;  %v4575_v47 = vmul.f32 %v9364_v16, %v11446_v18 }
 0x464   :  { %v5211_v38 = vmul.f32 %v11445_v8, %v4571_v52  ;;  %v5212_v56 = vmul.f32 %v11445_v8, %v4572_v6  ;;  %v5975_v7 = vmax.f32 %v5847_v9, 0.0  ;;  %v4576_v32 = vmul.f32 %v9364_v16, %v11447_v10  ;;  %v11448_v16 = vld [vmem:[#allocation100_spill] sm:$0xff] }
 0x465   :  { %v5976_v41 = vmax.f32 %v5848_v24, 0.0  ;;  %6125 = vst.msk [vmem:[%s10283_s4 + $0x3f0] sm:$0xff] %vm1212_vm1, %v5997_v46  ;;  %6126 = vst.msk [vmem:[%s10283_s4 + $0x3f8] sm:$0xff] %vm1212_vm1, %v5998_v48  ;;  %v5215_v2 = vmul.f32 %v9378_v40, %v4575_v47  ;;  %v5713_v43 = vpop.permute.xlu1 %5712  ;;  %v4579_v35 = vmul.f32 %v9494_v14, %v11448_v16  ;;  %v4580_v19 = vmul.f32 %v9494_v14, %v11449_v28 }
 0x466   :  { %6103 = vst.msk [vmem:[%s10283_s4 + $0x340] sm:$0xff] %vm1212_vm1, %v5975_v7  ;;  %v5851_v3 = vadd.f32 %v5705_v45, %v5211_v38  ;;  %v5852_v53 = vadd.f32 %v5705_v45, %v5212_v56  ;;  %v5216_v27 = vmul.f32 %v9378_v40, %v4576_v32  ;;  %v4583_v62 = vmul.f32 %v6667_v58, %v11450_v44 }
 0x467   :  { %6104 = vst.msk [vmem:[%s10283_s4 + $0x348] sm:$0xff] %vm1212_vm1, %v5976_v41  ;;  %v5855_v40 = vadd.f32 %v5713_v43, %v5215_v2  ;;  %v5219_v37 = vmul.f32 %v9403_v13, %v4579_v35  ;;  %v5220_v49 = vmul.f32 %v9403_v13, %v4580_v19  ;;  %v4584_v15 = vmul.f32 %v6667_v58, %v11451_v50  ;;  %v6669_v13 = vpop.eup %6668 }
 0x468   :  { %v5979_v12 = vmax.f32 %v5851_v3, 0.0  ;;  %v5980_v29 = vmax.f32 %v5852_v53, 0.0  ;;  %v5856_v57 = vadd.f32 %v5713_v43, %v5216_v27  ;;  %v5223_v42 = vmul.f32 %v9418_v1, %v4583_v62 }
 0x469   :  { %v5983_v0 = vmax.f32 %v5855_v40, 0.0  ;;  %v5721_v14 = vpop.permute.xlu1 %5720  ;;  %v5224_v60 = vmul.f32 %v9418_v1, %v4584_v15  ;;  %v4587_v63 = vmul.f32 %v6669_v13, %v11452_v21  ;;  %v4588_v31 = vmul.f32 %v6669_v13, %v11453_v5 }
 0x46a   :  { %6107 = vst.msk [vmem:[%s10283_s4 + $0x360] sm:$0xff] %vm1212_vm1, %v5979_v12  ;;  %6108 = vst.msk [vmem:[%s10283_s4 + $0x368] sm:$0xff] %vm1212_vm1, %v5980_v29  ;;  %v5984_v59 = vmax.f32 %v5856_v57, 0.0  ;;  %v5859_v39 = vadd.f32 %v5721_v14, %v5219_v37  ;;  %v5860_v11 = vadd.f32 %v5721_v14, %v5220_v49 }
 0x46b   :  { %6111 = vst.msk [vmem:[%s10283_s4 + $0x380] sm:$0xff] %vm1212_vm1, %v5983_v0  ;;  %v5227_v1 = vmul.f32 %v9443_v25, %v4587_v63  ;;  %v5228_v55 = vmul.f32 %v9443_v25, %v4588_v31 }
 0x46c   :  { %6112 = vst.msk [vmem:[%s10283_s4 + $0x388] sm:$0xff] %vm1212_vm1, %v5984_v59  ;;  %v5987_v33 = vmax.f32 %v5859_v39, 0.0  ;;  %v5988_v34 = vmax.f32 %v5860_v11, 0.0 }
 0x46d   :  { %v5729_v23 = vpop.permute.xlu1 %5728 }
 0x46e   :  { %6115 = vst.msk [vmem:[%s10283_s4 + $0x3a0] sm:$0xff] %vm1212_vm1, %v5987_v33  ;;  %6116 = vst.msk [vmem:[%s10283_s4 + $0x3a8] sm:$0xff] %vm1212_vm1, %v5988_v34  ;;  %v5863_v61 = vadd.f32 %v5729_v23, %v5223_v42  ;;  %v5864_v36 = vadd.f32 %v5729_v23, %v5224_v60 }
 0x470   :  { %v5991_v30 = vmax.f32 %v5863_v61, 0.0  ;;  %v5992_v17 = vmax.f32 %v5864_v36, 0.0 }
 0x471   :  { %v5737_v26 = vpop.permute.xlu1 %5736 }
 0x472   :  { %6119 = vst.msk [vmem:[%s10283_s4 + $0x3c0] sm:$0xff] %vm1212_vm1, %v5991_v30  ;;  %6120 = vst.msk [vmem:[%s10283_s4 + $0x3c8] sm:$0xff] %vm1212_vm1, %v5992_v17  ;;  %v5867_v4 = vadd.f32 %v5737_v26, %v5227_v1  ;;  %v5868_v20 = vadd.f32 %v5737_v26, %v5228_v55 }
 0x474   :  { %v5995_v54 = vmax.f32 %v5867_v4, 0.0  ;;  %v5996_v51 = vmax.f32 %v5868_v20, 0.0 }
 0x476   :  { %6123 = vst.msk [vmem:[%s10283_s4 + $0x3e0] sm:$0xff] %vm1212_vm1, %v5995_v54  ;;  %6124 = vst.msk [vmem:[%s10283_s4 + $0x3e8] sm:$0xff] %vm1212_vm1, %v5996_v51 }

// kernel: generator_forward.5
= control target key start
LH: loop header
LB: loop body
LE: loop exit
PB: predicated region body
PF: predicated region fallthrough
CT: control target
= control target key end

     0   :  { %vm828_vm0 = vcmask 261120   ;;  %s1589_s8 = smov 64   ;;  %vm1110_vm1 = vcmask 523520   ;;  %vm1143_vm2 = vcmask 785920   ;;  %vm1176_vm3 = vcmask 1048320   ;;  %s2096_s0 = inlined_call_operand.vmem [shape: bf16[4,256,32], index: 0, kind: input, shape index: {}]   ;;  %s2097_s1 = inlined_call_operand.vmem [shape: bf16[4,32,256], index: 1, kind: input, shape index: {}]   ;;  %s2098_s2 = inlined_call_operand.vmem [shape: f32[32,1], index: 2, kind: input, shape index: {}]   ;;  %s2099_s3 = inlined_call_operand.vmem [shape: f32[32,1], index: 3, kind: input, shape index: {}]   ;;  %s2100_s4 = inlined_call_operand.vmem [shape: f32[32,128], index: 4, kind: output, shape index: {}]  }
   0x1   :  { %v1491_v0 = vld [vmem:[%s2096_s0 + $0x40] sm:$0xff]   ;;  %v1495_v4 = vld [vmem:[%s2096_s0 + $0x48] sm:$0xff]   ;;  %v1499_v8 = vld [vmem:[%s2096_s0 + $0x50] sm:$0xff]  }
   0x2   :  { %v1492_v1 = vld [vmem:[%s2096_s0] sm:$0xff]   ;;  %1373 = vmatprep.subr.bf16.mxu0 %v1491_v0  ;;  %v1496_v5 = vld [vmem:[%s2096_s0 + $0x8] sm:$0xff]   ;;  %v1500_v9 = vld [vmem:[%s2096_s0 + $0x10] sm:$0xff]  }
   0x3   :  { %v1493_v2 = vld [vmem:[%s2096_s0 + $0xc0] sm:$0xff]   ;;  %1374 = vmatpush3.bf16.msra.mxu0 %v1492_v1  ;;  %v1497_v6 = vld [vmem:[%s2096_s0 + $0xc8] sm:$0xff]   ;;  %v1501_v10 = vld [vmem:[%s2096_s0 + $0xd0] sm:$0xff]  }
   0x4   :  { %v1494_v3 = vld [vmem:[%s2096_s0 + $0x80] sm:$0xff]   ;;  %1401 = vmatprep.subr.bf16.mxu1 %v1493_v2  ;;  %1375 = vmatprep.subr.bf16.mxu0 %v1495_v4  ;;  %v1498_v7 = vld [vmem:[%s2096_s0 + $0x88] sm:$0xff]   ;;  %v1502_v11 = vld [vmem:[%s2096_s0 + $0x90] sm:$0xff]  }
   0x5   :  { %1402 = vmatpush3.bf16.msra.mxu1 %v1494_v3  ;;  %v1503_v12 = vld [vmem:[%s2096_s0 + $0x58] sm:$0xff]   ;;  %v1507_v16 = vld [vmem:[%s2096_s0 + $0x60] sm:$0xff]   ;;  %v1511_v20 = vld [vmem:[%s2096_s0 + $0x68] sm:$0xff]  }
   0x6   :  { %1403 = vmatprep.subr.bf16.mxu1 %v1497_v6  ;;  %v1504_v13 = vld [vmem:[%s2096_s0 + $0x18] sm:$0xff]   ;;  %v1508_v17 = vld [vmem:[%s2096_s0 + $0x20] sm:$0xff]   ;;  %v1512_v21 = vld [vmem:[%s2096_s0 + $0x28] sm:$0xff]  }
   0x7   :  { %1376 = vmatpush3.bf16.msra.mxu0 %v1496_v5  ;;  %v1505_v14 = vld [vmem:[%s2096_s0 + $0xd8] sm:$0xff]   ;;  %v1509_v18 = vld [vmem:[%s2096_s0 + $0xe0] sm:$0xff]   ;;  %v1513_v22 = vld [vmem:[%s2096_s0 + $0xe8] sm:$0xff]  }
   0x8   :  { %1377 = vmatprep.subr.bf16.mxu0 %v1499_v8  ;;  %v1506_v15 = vld [vmem:[%s2096_s0 + $0x98] sm:$0xff]   ;;  %v1510_v19 = vld [vmem:[%s2096_s0 + $0xa0] sm:$0xff]   ;;  %v1514_v23 = vld [vmem:[%s2096_s0 + $0xa8] sm:$0xff]  }
   0x9   :  { %1404 = vmatpush3.bf16.msra.mxu1 %v1498_v7  ;;  %v1515_v24 = vld [vmem:[%s2096_s0 + $0x70] sm:$0xff]   ;;  %v1519_v28 = vld [vmem:[%s2096_s0 + $0x78] sm:$0xff]   ;;  %v1523_v32 = vld [vmem:[%s2097_s1] ss:$8 sps:$4 sm:$0xff]  }
   0xa   :  { %1405 = vmatprep.subr.bf16.mxu1 %v1501_v10  ;;  %v1516_v25 = vld [vmem:[%s2096_s0 + $0x30] sm:$0xff]   ;;  %v1520_v29 = vld [vmem:[%s2096_s0 + $0x38] sm:$0xff]   ;;  %v1525_v33 = vld [vmem:[%s2097_s1 + $0x4] ss:$8 sps:$4 sm:$0xff]  }
   0xb   :  { %1378 = vmatpush3.bf16.msra.mxu0 %v1500_v9  ;;  %v1517_v26 = vld [vmem:[%s2096_s0 + $0xf0] sm:$0xff]   ;;  %v1521_v30 = vld [vmem:[%s2096_s0 + $0xf8] sm:$0xff]   ;;  %v1526_v34 = vld [vmem:[%s2096_s0 + $0x140] sm:$0xff]   ;;  %202 = vmatprep.mubr.bf16.mxu0 %v1525_v33 }
   0xc   :  { %1379 = vmatprep.subr.bf16.mxu0 %v1503_v12  ;;  %v1518_v27 = vld [vmem:[%s2096_s0 + $0xb0] sm:$0xff]   ;;  %v1522_v31 = vld [vmem:[%s2096_s0 + $0xb8] sm:$0xff]   ;;  %v1527_v35 = vld [vmem:[%s2097_s1 + $0x20] ss:$8 sps:$4 sm:$0xff]  }
   0xd   :  { %1406 = vmatpush3.bf16.msra.mxu1 %v1502_v11  ;;  %v1529_v36 = vld [vmem:[%s2097_s1 + $0x24] ss:$8 sps:$4 sm:$0xff]   ;;  %v1537_v44 = vld [vmem:[%s2096_s0 + $0x150] sm:$0xff]   ;;  %v1541_v48 = vld [vmem:[%s2096_s0 + $0x158] sm:$0xff]  }
   0xe   :  { %1407 = vmatprep.subr.bf16.mxu1 %v1505_v14  ;;  %v1530_v37 = vld [vmem:[%s2096_s0 + $0x100] sm:$0xff]   ;;  %405 = vmatprep.mubr.bf16.mxu1 %v1529_v36  ;;  %v1533_v40 = vld [vmem:[%s2096_s0 + $0x148] sm:$0xff]   ;;  %v1538_v45 = vld [vmem:[%s2096_s0 + $0x110] sm:$0xff]  }
   0xf   :  { %1380 = vmatpush3.bf16.msra.mxu0 %v1504_v13  ;;  %v1531_v38 = vld [vmem:[%s2096_s0 + $0x1c0] sm:$0xff]   ;;  %v1534_v41 = vld [vmem:[%s2096_s0 + $0x108] sm:$0xff]   ;;  %v1539_v46 = vld [vmem:[%s2096_s0 + $0x1d0] sm:$0xff]  }
  0x10   :  { %1381 = vmatprep.subr.bf16.mxu0 %v1507_v16  ;;  %v1532_v39 = vld [vmem:[%s2096_s0 + $0x180] sm:$0xff]   ;;  %v1535_v42 = vld [vmem:[%s2096_s0 + $0x1c8] sm:$0xff]   ;;  %v1540_v47 = vld [vmem:[%s2096_s0 + $0x190] sm:$0xff]  }
  0x11   :  { %1408 = vmatpush3.bf16.msra.mxu1 %v1506_v15  ;;  %v1536_v43 = vld [vmem:[%s2096_s0 + $0x188] sm:$0xff]   ;;  %v1542_v49 = vld [vmem:[%s2096_s0 + $0x118] sm:$0xff]   ;;  %v1548_v54 = vld [vmem:[%s2096_s0 + $0x160] sm:$0xff]  }
  0x12   :  { %1409 = vmatprep.subr.bf16.mxu1 %v1509_v18  ;;  %v1543_v50 = vld [vmem:[%s2096_s0 + $0x1d8] sm:$0xff]   ;;  %v1549_v55 = vld [vmem:[%s2096_s0 + $0x120] sm:$0xff]   ;;  %v1554_v59 = vld [vmem:[%s2096_s0 + $0x168] sm:$0xff]  }
  0x13   :  { %1382 = vmatpush3.bf16.msra.mxu0 %v1508_v17  ;;  %v1544_v51 = vld [vmem:[%s2097_s1 + $0x14] ss:$8 sps:$4 sm:$0xff]   ;;  %v1547_v53 = vld [vmem:[%s2097_s1 + $0x10] ss:$8 sps:$4 sm:$0xff]   ;;  %v1550_v56 = vld [vmem:[%s2096_s0 + $0x1e0] sm:$0xff]  }
  0x14   :  { %1383 = vmatprep.subr.bf16.mxu0 %v1511_v20  ;;  %v1546_v52 = vld [vmem:[%s2096_s0 + $0x198] sm:$0xff]   ;;  %v1551_v57 = vld [vmem:[%s2096_s0 + $0x1a0] sm:$0xff]   ;;  %v1556_v61 = vld [vmem:[%s2096_s0 + $0x128] sm:$0xff]  }
  0x15   :  { %1410 = vmatpush3.bf16.msra.mxu1 %v1510_v19  ;;  %v1552_v58 = vld [vmem:[%s2097_s1 + $0x34] ss:$8 sps:$4 sm:$0xff]   ;;  %v1555_v60 = vld [vmem:[%s2097_s1 + $0x30] ss:$8 sps:$4 sm:$0xff]   ;;  %v1557_v62 = vld [vmem:[%s2096_s0 + $0x1e8] sm:$0xff]  }
  0x16   :  { %1411 = vmatprep.subr.bf16.mxu1 %v1513_v22  ;;  %v1558_v63 = vld [vmem:[%s2096_s0 + $0x1a8] sm:$0xff]   ;;  %v1559_v0 = vld [vmem:[%s2096_s0 + $0x170] sm:$0xff]   ;;  %v1563_v4 = vld [vmem:[%s2096_s0 + $0x178] sm:$0xff]  }
  0x17   :  { %1384 = vmatpush3.bf16.msra.mxu0 %v1512_v21  ;;  %v1560_v1 = vld [vmem:[%s2096_s0 + $0x130] sm:$0xff]   ;;  %v1564_v5 = vld [vmem:[%s2096_s0 + $0x138] sm:$0xff]   ;;  %v1567_v8 = vld [vmem:[%s2097_s1 + $0x40] ss:$8 sps:$4 sm:$0xff]  }
  0x18   :  { %1385 = vmatprep.subr.bf16.mxu0 %v1515_v24  ;;  %v1561_v2 = vld [vmem:[%s2096_s0 + $0x1f0] sm:$0xff]   ;;  %v1565_v6 = vld [vmem:[%s2096_s0 + $0x1f8] sm:$0xff]   ;;  %v1569_v9 = vld [vmem:[%s2097_s1 + $0x44] ss:$8 sps:$4 sm:$0xff]  }
  0x19   :  { %1412 = vmatpush3.bf16.msra.mxu1 %v1514_v23  ;;  %v1562_v3 = vld [vmem:[%s2096_s0 + $0x1b0] sm:$0xff]   ;;  %v1566_v7 = vld [vmem:[%s2096_s0 + $0x1b8] sm:$0xff]   ;;  %v1570_v10 = vld [vmem:[%s2097_s1 + $0x60] ss:$8 sps:$4 sm:$0xff]   ;;  %s1590_s0 = smov 96  }
  0x1a   :  { %1413 = vmatprep.subr.bf16.mxu1 %v1517_v26  ;;  %v1572_v11 = vld [vmem:[%s2097_s1 + $0x64] ss:$8 sps:$4 sm:$0xff]   ;;  %v1573_v12 = vld [vmem:[%s2097_s1 + $0x54] ss:$8 sps:$4 sm:$0xff]   ;;  %v1575_v14 = vld [vmem:[%s2097_s1 + $0x50] ss:$8 sps:$4 sm:$0xff]  }
  0x1b   :  { %1386 = vmatpush3.bf16.msra.mxu0 %v1516_v25  ;;  %v1576_v13 = vld [vmem:[%s2097_s1 + $0x74] ss:$8 sps:$4 sm:$0xff]   ;;  %v1578_v15 = vld [vmem:[%s2097_s1 + $0x70] ss:$8 sps:$4 sm:$0xff]  }
  0x1c   :  { %1387 = vmatprep.subr.bf16.mxu0 %v1519_v28 }
  0x1d   :  { %1414 = vmatpush3.bf16.msra.mxu1 %v1518_v27 }
  0x1e   :  { %1415 = vmatprep.subr.bf16.mxu1 %v1521_v30 }
  0x1f   :  { %1388 = vmatpush3.bf16.msra.mxu0 %v1520_v29 }
  0x20   :  { %1429 = vmatprep.subr.bf16.mxu0 %v1526_v34 }
  0x21   :  { %1416 = vmatpush3.bf16.msra.mxu1 %v1522_v31 }
  0x22   :  { %203 = vmatmul.mubr.bf16.vlgmr.msra.gmra.mrb[0].mxu0 %v1523_v32  ;;  %1457 = vmatprep.subr.bf16.mxu1 %v1531_v38 }
  0x23   :  { %1430 = vmatpush3.bf16.msra.mxu0 %v1530_v37  ;;  %210 = vmatprep.mubr.bf16.mxu0 %v1544_v51 }
  0x24   :  { %406 = vmatmul.mubr.bf16.vlgmr.msra.gmra.mrb[0].mxu1 %v1527_v35  ;;  %1431 = vmatprep.subr.bf16.mxu0 %v1533_v40 }
  0x25   :  { %1458 = vmatpush3.bf16.msra.mxu1 %v1532_v39  ;;  %413 = vmatprep.mubr.bf16.mxu1 %v1552_v58 }
  0x26   :  { %1459 = vmatprep.subr.bf16.mxu1 %v1535_v42 }
  0x27   :  { %1432 = vmatpush3.bf16.msra.mxu0 %v1534_v41 }
  0x28   :  { %1433 = vmatprep.subr.bf16.mxu0 %v1537_v44 }
  0x29   :  { %1460 = vmatpush3.bf16.msra.mxu1 %v1536_v43 }
  0x2a   :  { %1461 = vmatprep.subr.bf16.mxu1 %v1539_v46  ;;  %211 = vmatmul.mubr.bf16.gmra.mrb[4].mxu0 %v1547_v53 }
  0x2b   :  { %1434 = vmatpush3.bf16.msra.mxu0 %v1538_v45  ;;  %608 = vmatprep.mubr.bf16.mxu0 %v1569_v9 }
  0x2c   :  { %1435 = vmatprep.subr.bf16.mxu0 %v1541_v48  ;;  %414 = vmatmul.mubr.bf16.gmra.mrb[4].mxu1 %v1555_v60 }
  0x2d   :  { %1462 = vmatpush3.bf16.msra.mxu1 %v1540_v47  ;;  %811 = vmatprep.mubr.bf16.mxu1 %v1572_v11 }
  0x2e   :  { %1463 = vmatprep.subr.bf16.mxu1 %v1543_v50 }
  0x2f   :  { %1436 = vmatpush3.bf16.msra.mxu0 %v1542_v49 }
  0x30   :  { %1437 = vmatprep.subr.bf16.mxu0 %v1548_v54 }
  0x31   :  { %1464 = vmatpush3.bf16.msra.mxu1 %v1546_v52 }
  0x32   :  { %1465 = vmatprep.subr.bf16.mxu1 %v1550_v56 }
  0x33   :  { %1438 = vmatpush3.bf16.msra.mxu0 %v1549_v55 }
  0x34   :  { %1439 = vmatprep.subr.bf16.mxu0 %v1554_v59 }
  0x35   :  { %1466 = vmatpush3.bf16.msra.mxu1 %v1551_v57 }
  0x36   :  { %1467 = vmatprep.subr.bf16.mxu1 %v1557_v62 }
  0x37   :  { %1440 = vmatpush3.bf16.msra.mxu0 %v1556_v61 }
  0x38   :  { %1441 = vmatprep.subr.bf16.mxu0 %v1559_v0 }
  0x39   :  { %1468 = vmatpush3.bf16.msra.mxu1 %v1558_v63 }
  0x3a   :  { %1469 = vmatprep.subr.bf16.mxu1 %v1561_v2 }
  0x3b   :  { %1442 = vmatpush3.bf16.msra.mxu0 %v1560_v1 }
  0x3c   :  { %1443 = vmatprep.subr.bf16.mxu0 %v1563_v4 }
  0x3d   :  { %1470 = vmatpush3.bf16.msra.mxu1 %v1562_v3 }
  0x3e   :  { %1471 = vmatprep.subr.bf16.mxu1 %v1565_v6 }
  0x3f   :  { %1444 = vmatpush3.bf16.msra.mxu0 %v1564_v5 }
  0x41   :  { %1472 = vmatpush3.bf16.msra.mxu1 %v1566_v7 }
  0x42   :  { %609 = vmatmul.mubr.bf16.vlgmr.msra.gmra.mrb[8].mxu0 %v1567_v8 }
  0x43   :  { %616 = vmatprep.mubr.bf16.mxu0 %v1573_v12 }
  0x44   :  { %812 = vmatmul.mubr.bf16.vlgmr.msra.gmra.mrb[8].mxu1 %v1570_v10 }
  0x45   :  { %819 = vmatprep.mubr.bf16.mxu1 %v1576_v13 }
  0x4a   :  { %617 = vmatmul.mubr.bf16.gmra.mrb[12].mxu0 %v1575_v14 }
  0x4c   :  { %820 = vmatmul.mubr.bf16.gmra.mrb[12].mxu1 %v1578_v15 }
  0xf5   :  { %v1389_v16 = vpop.f32.mrb[0].mxu0 }
  0xf6   :  { %v1390_v17 = vpop.f32.mrb[1].mxu0 }
  0xf7   :  { %v1856_v18 = vadd.f32 %v1390_v17, %v1389_v16  ;;  %v1392_v19 = vpop.f32.mrb[2].mxu0  ;;  %v1417_v20 = vpop.f32.mrb[0].mxu1 }
  0xf8   :  { %v1393_v21 = vpop.f32.mrb[3].mxu0  ;;  %v1418_v22 = vpop.f32.mrb[1].mxu1 }
  0xf9   :  { %v1858_v23 = vadd.f32 %v1393_v21, %v1392_v19  ;;  %v1860_v24 = vadd.f32 %v1418_v22, %v1417_v20  ;;  %v1420_v25 = vpop.f32.mrb[2].mxu1  ;;  %v829_v26 = vsel %vm828_vm0, %v1856_v18, 0.0 }
  0xfa   :  { %v1421_v27 = vpop.f32.mrb[3].mxu1  ;;  %830 = vadd.xlane.f32.xlu0 %v829_v26 }
  0xfb   :  { %v1864_v28 = vadd.f32 %v1421_v27, %v1420_v25  ;;  %v845_v29 = vsel %vm828_vm0, %v1860_v24, 0.0  ;;  %v832_v31 = vsel %vm828_vm0, %v1858_v23, 0.0 }
  0xfd   :  { %v848_v30 = vsel %vm828_vm0, %v1864_v28, 0.0  ;;  %v1395_v32 = vpop.f32.mrb[4].mxu0 }
  0xfe   :  { %849 = vadd.xlane.f32.xlu1 %v848_v30  ;;  %846 = vadd.xlane.f32.xlu0 %v845_v29  ;;  %v1396_v33 = vpop.f32.mrb[5].mxu0 }
  0xff   :  { %v1872_v34 = vadd.f32 %v1396_v33, %v1395_v32  ;;  %v1398_v35 = vpop.f32.mrb[6].mxu0  ;;  %v1423_v40 = vpop.f32.mrb[4].mxu1 }
 0x100   :  { %v1399_v36 = vpop.f32.mrb[7].mxu0  ;;  %v1424_v41 = vpop.f32.mrb[5].mxu1 }
 0x101   :  { %v1874_v37 = vadd.f32 %v1399_v36, %v1398_v35  ;;  %v835_v38 = vsel %vm828_vm0, %v1872_v34, 0.0  ;;  %v1880_v42 = vadd.f32 %v1424_v41, %v1423_v40  ;;  %v1426_v43 = vpop.f32.mrb[6].mxu1 }
 0x102   :  { %833 = vadd.xlane.f32.xlu0 %v832_v31  ;;  %836 = vadd.xlane.f32.xlu1 %v835_v38  ;;  %v1427_v44 = vpop.f32.mrb[7].mxu1 }
 0x103   :  { %v838_v39 = vsel %vm828_vm0, %v1874_v37, 0.0  ;;  %v1882_v45 = vadd.f32 %v1427_v44, %v1426_v43  ;;  %v851_v46 = vsel %vm828_vm0, %v1880_v42, 0.0 }
 0x105   :  { %v854_v47 = vsel %vm828_vm0, %v1882_v45, 0.0 }
 0x106   :  { %839 = vadd.xlane.f32.xlu1 %v838_v39  ;;  %852 = vadd.xlane.f32.xlu0 %v851_v46 }
 0x10a   :  { %855 = vadd.xlane.f32.xlu1 %v854_v47 }
 0x115   :  { %v1445_v48 = vpop.f32.mrb[8].mxu0 }
 0x116   :  { %v1446_v49 = vpop.f32.mrb[9].mxu0 }
 0x117   :  { %v1473_v50 = vpop.f32.mrb[8].mxu1  ;;  %v1888_v51 = vadd.f32 %v1446_v49, %v1445_v48  ;;  %v1448_v52 = vpop.f32.mrb[10].mxu0 }
 0x118   :  { %v1474_v53 = vpop.f32.mrb[9].mxu1  ;;  %v1449_v55 = vpop.f32.mrb[11].mxu0 }
 0x119   :  { %v1890_v54 = vadd.f32 %v1474_v53, %v1473_v50  ;;  %v1476_v56 = vpop.f32.mrb[10].mxu1  ;;  %v1892_v57 = vadd.f32 %v1449_v55, %v1448_v52  ;;  %v861_v59 = vsel %vm828_vm0, %v1888_v51, 0.0 }
 0x11a   :  { %v1477_v58 = vpop.f32.mrb[11].mxu1  ;;  %862 = vadd.xlane.f32.xlu0 %v861_v59 }
 0x11b   :  { %v1896_v60 = vadd.f32 %v1477_v58, %v1476_v56  ;;  %v864_v61 = vsel %vm828_vm0, %v1892_v57, 0.0  ;;  %v877_v62 = vsel %vm828_vm0, %v1890_v54, 0.0 }
 0x11c   :  { %865 = vadd.xlane.f32.xlu1 %v864_v61 }
 0x11d   :  { %v1451_v63 = vpop.f32.mrb[12].mxu0  ;;  %v880_v4 = vsel %vm828_vm0, %v1896_v60, 0.0 }
 0x11e   :  { %v1452_v0 = vpop.f32.mrb[13].mxu0  ;;  %878 = vadd.xlane.f32.xlu0 %v877_v62 }
 0x11f   :  { %v1479_v1 = vpop.f32.mrb[12].mxu1  ;;  %v1902_v2 = vadd.f32 %v1452_v0, %v1451_v63  ;;  %v1454_v3 = vpop.f32.mrb[14].mxu0 }
 0x120   :  { %v1480_v5 = vpop.f32.mrb[13].mxu1  ;;  %v1455_v6 = vpop.f32.mrb[15].mxu0  ;;  %881 = vadd.xlane.f32.xlu1 %v880_v4 }
 0x121   :  { %v1906_v7 = vadd.f32 %v1480_v5, %v1479_v1  ;;  %v1482_v8 = vpop.f32.mrb[14].mxu1  ;;  %v1908_v9 = vadd.f32 %v1455_v6, %v1454_v3  ;;  %v867_v10 = vsel %vm828_vm0, %v1902_v2, 0.0 }
 0x122   :  { %v1483_v11 = vpop.f32.mrb[15].mxu1  ;;  %868 = vadd.xlane.f32.xlu0 %v867_v10 }
 0x123   :  { %v1912_v12 = vadd.f32 %v1483_v11, %v1482_v8  ;;  %v870_v13 = vsel %vm828_vm0, %v1908_v9, 0.0  ;;  %v883_v14 = vsel %vm828_vm0, %v1906_v7, 0.0 }
 0x124   :  { %871 = vadd.xlane.f32.xlu1 %v870_v13 }
 0x125   :  { %v886_v15 = vsel %vm828_vm0, %v1912_v12, 0.0 }
 0x126   :  { %884 = vadd.xlane.f32.xlu0 %v883_v14 }
 0x128   :  { %887 = vadd.xlane.f32.xlu1 %v886_v15 }
 0x187   :  { %v831_v16 = vpop.xlane.xlu0 %830 }
 0x18b   :  { %v850_v17 = vpop.xlane.xlu1 %849  ;;  %v847_v19 = vpop.xlane.xlu0 %846 }
 0x18c   :  { %v857_v29 = vadd.f32 %v847_v19, %v831_v16 }
 0x18f   :  { %v837_v20 = vpop.xlane.xlu1 %836  ;;  %v834_v21 = vpop.xlane.xlu0 %833 }
 0x190   :  { %v858_v31 = vadd.f32 %v850_v17, %v834_v21 }
 0x193   :  { %v840_v22 = vpop.xlane.xlu1 %839  ;;  %v853_v25 = vpop.xlane.xlu0 %852 }
 0x194   :  { %v859_v43 = vadd.f32 %v853_v25, %v837_v20 }
 0x197   :  { %v856_v26 = vpop.xlane.xlu1 %855 }
 0x198   :  { %v860_v48 = vadd.f32 %v856_v26, %v840_v22 }
 0x1a7   :  { %v863_v27 = vpop.xlane.xlu0 %862 }
 0x1a8   :  { %v873_v32 = vadd.f32 %v863_v27, %v857_v29 }
 0x1a9   :  { %v866_v30 = vpop.xlane.xlu1 %865 }
 0x1aa   :  { %v874_v35 = vadd.f32 %v866_v30, %v858_v31 }
 0x1ab   :  { %v879_v33 = vpop.xlane.xlu0 %878 }
 0x1ac   :  { %v889_v36 = vadd.f32 %v879_v33, %v873_v32 }
 0x1ad   :  { %v882_v38 = vpop.xlane.xlu1 %881 }
 0x1ae   :  { %v1920_v39 = vmul.f32 0.0078125, %v889_v36  ;;  %v890_v40 = vadd.f32 %v882_v38, %v874_v35 }
 0x1af   :  { %v869_v41 = vpop.xlane.xlu0 %868 }
 0x1b0   :  { %v1922_v44 = vmul.f32 0.0078125, %v890_v40  ;;  %v898_v46 = vsub.f32 %v1856_v18, %v1920_v39  ;;  %v922_v47 = vsub.f32 %v1860_v24, %v1920_v39  ;;  %v875_v50 = vadd.f32 %v869_v41, %v859_v43 }
 0x1b1   :  { %v872_v49 = vpop.xlane.xlu1 %871  ;;  %v946_v59 = vsub.f32 %v1888_v51, %v1920_v39  ;;  %v970_v13 = vsub.f32 %v1890_v54, %v1920_v39 }
 0x1b2   :  { %v902_v52 = vmul.f32 %v898_v46, %v898_v46  ;;  %v899_v53 = vsub.f32 %v1858_v23, %v1922_v44  ;;  %v876_v55 = vadd.f32 %v872_v49, %v860_v48  ;;  %v923_v58 = vsub.f32 %v1864_v28, %v1922_v44 }
 0x1b3   :  { %v885_v56 = vpop.xlane.xlu0 %884  ;;  %v926_v0 = vmul.f32 %v922_v47, %v922_v47  ;;  %v947_v6 = vsub.f32 %v1892_v57, %v1922_v44  ;;  %v950_v11 = vmul.f32 %v946_v59, %v946_v59  ;;  %v971_v17 = vsub.f32 %v1896_v60, %v1922_v44 }
 0x1b4   :  { %v891_v61 = vadd.f32 %v885_v56, %v875_v50  ;;  %v906_v62 = vsel %vm828_vm0, %v902_v52, 0.0  ;;  %v903_v63 = vmul.f32 %v899_v53, %v899_v53  ;;  %v927_v5 = vmul.f32 %v923_v58, %v923_v58 }
 0x1b5   :  { %v888_v1 = vpop.xlane.xlu1 %887  ;;  %907 = vadd.xlane.f32.xlu0 %v906_v62  ;;  %v930_v10 = vsel %vm828_vm0, %v926_v0, 0.0  ;;  %v951_v16 = vmul.f32 %v947_v6, %v947_v6  ;;  %v954_v19 = vsel %vm828_vm0, %v950_v11, 0.0  ;;  %v974_v20 = vmul.f32 %v970_v13, %v970_v13 }
 0x1b6   :  { %v892_v3 = vadd.f32 %v888_v1, %v876_v55  ;;  %v909_v4 = vsel %vm828_vm0, %v903_v63, 0.0  ;;  %v1938_v8 = vmul.f32 0.0078125, %v891_v61  ;;  %v933_v15 = vsel %vm828_vm0, %v927_v5, 0.0 }
 0x1b7   :  { %910 = vadd.xlane.f32.xlu1 %v909_v4  ;;  %v957_v22 = vsel %vm828_vm0, %v951_v16, 0.0  ;;  %v975_v25 = vmul.f32 %v971_v17, %v971_v17  ;;  %v978_v27 = vsel %vm828_vm0, %v974_v20, 0.0  ;;  %v1587_v62 = vmov 0  }
 0x1b8   :  { %v1943_v14 = vmul.f32 0.0078125, %v892_v3  ;;  %v900_v21 = vsub.f32 %v1872_v34, %v1938_v8  ;;  %v924_v30 = vsub.f32 %v1880_v42, %v1938_v8  ;;  %v948_v38 = vsub.f32 %v1902_v2, %v1938_v8  ;;  %1489 = vset.pattern.permute.xlu0 %v1587_v62  ;;  %1490 = vset.pattern.permute.xlu1 %v1587_v62 }
 0x1b9   :  { %931 = vadd.xlane.f32.xlu0 %v930_v10  ;;  %v981_v31 = vsel %vm828_vm0, %v975_v25, 0.0  ;;  %v972_v48 = vsub.f32 %v1906_v7, %v1938_v8 }
 0x1ba   :  { %v901_v26 = vsub.f32 %v1874_v37, %v1943_v14  ;;  %v904_v29 = vmul.f32 %v900_v21, %v900_v21  ;;  %v925_v33 = vsub.f32 %v1882_v45, %v1943_v14  ;;  %v928_v36 = vmul.f32 %v924_v30, %v924_v30 }
 0x1bb   :  { %934 = vadd.xlane.f32.xlu1 %v933_v15  ;;  %v949_v43 = vsub.f32 %v1908_v9, %v1943_v14  ;;  %v952_v47 = vmul.f32 %v948_v38, %v948_v38  ;;  %v973_v52 = vsub.f32 %v1912_v12, %v1943_v14  ;;  %v976_v55 = vmul.f32 %v972_v48, %v972_v48  ;;  %v1006_v38 = vld [vmem:[%s2098_s2] sm:$0xff] }
 0x1bc   :  { %v905_v32 = vmul.f32 %v901_v26, %v901_v26  ;;  %v912_v35 = vsel %vm828_vm0, %v904_v29, 0.0  ;;  %v929_v41 = vmul.f32 %v925_v33, %v925_v33  ;;  %v936_v46 = vsel %vm828_vm0, %v928_v36, 0.0 }
 0x1bd   :  { %955 = vadd.xlane.f32.xlu0 %v954_v19  ;;  %v953_v50 = vmul.f32 %v949_v43, %v949_v43  ;;  %v960_v53 = vsel %vm828_vm0, %v952_v47, 0.0  ;;  %v977_v58 = vmul.f32 %v973_v52, %v973_v52  ;;  %v984_v59 = vsel %vm828_vm0, %v976_v55, 0.0  ;;  %v1007_v47 = vld [vmem:[%s2098_s2 + $0x8] sm:$0xff] }
 0x1be   :  { %v915_v40 = vsel %vm828_vm0, %v905_v32, 0.0  ;;  %v939_v49 = vsel %vm828_vm0, %v929_v41, 0.0 }
 0x1bf   :  { %958 = vadd.xlane.f32.xlu1 %v957_v22  ;;  %v963_v56 = vsel %vm828_vm0, %v953_v50, 0.0  ;;  %v987_v61 = vsel %vm828_vm0, %v977_v58, 0.0 }
 0x1c1   :  { %979 = vadd.xlane.f32.xlu0 %v978_v27 }
 0x1c3   :  { %982 = vadd.xlane.f32.xlu1 %v981_v31 }
 0x1c5   :  { %913 = vadd.xlane.f32.xlu0 %v912_v35 }
 0x1c7   :  { %916 = vadd.xlane.f32.xlu1 %v915_v40 }
 0x1c9   :  { %937 = vadd.xlane.f32.xlu0 %v936_v46 }
 0x1cb   :  { %940 = vadd.xlane.f32.xlu1 %v939_v49 }
 0x1cd   :  { %961 = vadd.xlane.f32.xlu0 %v960_v53 }
 0x1cf   :  { %964 = vadd.xlane.f32.xlu1 %v963_v56 }
 0x1d1   :  { %985 = vadd.xlane.f32.xlu0 %v984_v59 }
 0x1d3   :  { %988 = vadd.xlane.f32.xlu1 %v987_v61  ;;  %v1014_v61 = vld [vmem:[%s2099_s3] sm:$0xff] }
 0x242   :  { %v908_v63 = vpop.xlane.xlu0 %907 }
 0x244   :  { %v911_v0 = vpop.xlane.xlu1 %910 }
 0x246   :  { %v932_v1 = vpop.xlane.xlu0 %931 }
 0x247   :  { %v942_v5 = vadd.f32 %v932_v1, %v908_v63  ;;  %v1015_v1 = vld [vmem:[%s2099_s3 + $0x8] sm:$0xff] }
 0x248   :  { %v935_v3 = vpop.xlane.xlu1 %934 }
 0x249   :  { %v943_v10 = vadd.f32 %v935_v3, %v911_v0 }
 0x24a   :  { %v956_v4 = vpop.xlane.xlu0 %955 }
 0x24b   :  { %v966_v11 = vadd.f32 %v956_v4, %v942_v5 }
 0x24c   :  { %v959_v6 = vpop.xlane.xlu1 %958 }
 0x24d   :  { %v967_v15 = vadd.f32 %v959_v6, %v943_v10  ;;  %v1009_v10 = vld [vmem:[%s2098_s2 + $0x18] sm:$0xff] }
 0x24e   :  { %v980_v13 = vpop.xlane.xlu0 %979 }
 0x24f   :  { %v990_v16 = vadd.f32 %v980_v13, %v966_v11  ;;  %v1016_v13 = vld [vmem:[%s2099_s3 + $0x10] sm:$0xff] }
 0x250   :  { %v983_v17 = vpop.xlane.xlu1 %982 }
 0x251   :  { %v994_v19 = vmul.f32 0.0078125, %v990_v16  ;;  %v991_v20 = vadd.f32 %v983_v17, %v967_v15  ;;  %v1017_v17 = vld [vmem:[%s2099_s3 + $0x18] sm:$0xff] }
 0x252   :  { %v914_v21 = vpop.xlane.xlu0 %913 }
 0x253   :  { %v998_v22 = vadd.f32 1e-05, %v994_v19  ;;  %v995_v25 = vmul.f32 0.0078125, %v991_v20 }
 0x254   :  { %v917_v26 = vpop.xlane.xlu1 %916 }
 0x255   :  { %1579 = vrsqrt.f32 %v998_v22  ;;  %v999_v27 = vadd.f32 1e-05, %v995_v25 }
 0x256   :  { %v938_v29 = vpop.xlane.xlu0 %937 }
 0x257   :  { %1581 = vrsqrt.f32 %v999_v27  ;;  %v944_v32 = vadd.f32 %v938_v29, %v914_v21 }
 0x258   :  { %v941_v30 = vpop.xlane.xlu1 %940 }
 0x259   :  { %v945_v35 = vadd.f32 %v941_v30, %v917_v26 }
 0x25a   :  { %v962_v31 = vpop.xlane.xlu0 %961 }
 0x25b   :  { %v968_v36 = vadd.f32 %v962_v31, %v944_v32 }
 0x25c   :  { %v965_v33 = vpop.xlane.xlu1 %964 }
 0x25d   :  { %v969_v43 = vadd.f32 %v965_v33, %v945_v35 }
 0x25e   :  { %v986_v40 = vpop.xlane.xlu0 %985 }
 0x25f   :  { %v1580_v41 = vpop.eup %1579  ;;  %v992_v46 = vadd.f32 %v986_v40, %v968_v36 }
 0x260   :  { %v989_v48 = vpop.xlane.xlu1 %988  ;;  %v1010_v49 = vmul.f32 %v1580_v41, %v1006_v38 }
 0x261   :  { %v1582_v50 = vpop.eup %1581  ;;  %v996_v52 = vmul.f32 0.0078125, %v992_v46  ;;  %v993_v53 = vadd.f32 %v989_v48, %v969_v43 }
 0x262   :  { %1028 = vperm.xlu0 %1489, %v1010_v49   ;;  %v1011_v55 = vmul.f32 %v1582_v50, %v1007_v47  ;;  %v1018_v56 = vmul.f32 %v1010_v49, %v1920_v39  ;;  %v1008_v39 = vld [vmem:[%s2098_s2 + $0x10] sm:$0xff]  ;;  %s1588_s2 = smov 32  }
 0x263   :  { %v1000_v58 = vadd.f32 1e-05, %v996_v52  ;;  %v997_v59 = vmul.f32 0.0078125, %v993_v53 }
 0x264   :  { %1033 = vperm.xlu1 %1490, %v1011_v55   ;;  %v1022_v63 = vsub.f32 %v1014_v61, %v1018_v56  ;;  %v1019_v0 = vmul.f32 %v1011_v55, %v1922_v44 }
 0x265   :  { %1583 = vrsqrt.f32 %v1000_v58  ;;  %v1001_v62 = vadd.f32 1e-05, %v997_v59 }
 0x266   :  { %v1023_v3 = vsub.f32 %v1015_v1, %v1019_v0 }
 0x267   :  { %1585 = vrsqrt.f32 %v1001_v62 }
 0x268   :  { %1052 = vperm.xlu1 %1490, %v1022_v63  }
 0x26c   :  { %1057 = vperm.xlu1 %1490, %v1023_v3  }
 0x26f   :  { %v1584_v4 = vpop.eup %1583 }
 0x270   :  { %v1012_v5 = vmul.f32 %v1584_v4, %v1008_v39 }
 0x271   :  { %v1586_v6 = vpop.eup %1585 }
 0x272   :  { %1038 = vperm.xlu1 %1490, %v1012_v5   ;;  %v1013_v44 = vmul.f32 %v1586_v6, %v1009_v10  ;;  %v1020_v11 = vmul.f32 %v1012_v5, %v1938_v8 }
 0x274   :  { %v1024_v15 = vsub.f32 %v1016_v13, %v1020_v11  ;;  %v1021_v16 = vmul.f32 %v1013_v44, %v1943_v14 }
 0x276   :  { %1043 = vperm.xlu1 %1490, %v1013_v44   ;;  %v1025_v19 = vsub.f32 %v1017_v17, %v1021_v16 }
 0x27a   :  { %1062 = vperm.xlu1 %1490, %v1024_v15  }
 0x27e   :  { %1067 = vperm.xlu1 %1490, %v1025_v19  }
 0x2e1   :  { %v1029_v20 = vpop.permute.xlu0 %1028 }
 0x2e2   :  { %v1046_v22 = vmul.f32 %v1856_v18, %v1029_v20  ;;  %v1082_v8 = vmul.f32 %v1860_v24, %v1029_v20  ;;  %v1115_v26 = vmul.f32 %v1888_v51, %v1029_v20  ;;  %v1148_v35 = vmul.f32 %v1890_v54, %v1029_v20 }
 0x2e3   :  { %v1034_v21 = vpop.permute.xlu1 %1033 }
 0x2e4   :  { %v1047_v14 = vmul.f32 %v1858_v23, %v1034_v21  ;;  %v1083_v30 = vmul.f32 %v1864_v28, %v1034_v21  ;;  %v1116_v38 = vmul.f32 %v1892_v57, %v1034_v21  ;;  %v1149_v54 = vmul.f32 %v1896_v60, %v1034_v21 }
 0x2e7   :  { %v1053_v25 = vpop.permute.xlu1 %1052 }
 0x2e8   :  { %v1070_v27 = vadd.f32 %v1053_v25, %v1046_v22  ;;  %v1086_v29 = vadd.f32 %v1082_v8, %v1053_v25  ;;  %v1119_v33 = vadd.f32 %v1115_v26, %v1053_v25  ;;  %v1152_v23 = vadd.f32 %v1148_v35, %v1053_v25 }
 0x2ea   :  { %v1074_v31 = vmax.f32 %v1070_v27, 0.0  ;;  %v1090_v32 = vmax.f32 %v1086_v29, 0.0  ;;  %v1123_v40 = vmax.f32 %v1119_v33, 0.0  ;;  %v1156_v46 = vmax.f32 %v1152_v23, 0.0 }
 0x2eb   :  { %v1058_v36 = vpop.permute.xlu1 %1057 }
 0x2ec   :  { %v1071_v18 = vadd.f32 %v1058_v36, %v1047_v14  ;;  %1098 = vrot.lane.b32.xlu1 %v1090_v32, %s1588_s2  ;;  %v1087_v24 = vadd.f32 %v1083_v30, %v1058_v36  ;;  %1078 = vst.msk [vmem:[%s2100_s4] sm:$0xff] %vm828_vm0, %v1074_v31  ;;  %v1120_v41 = vadd.f32 %v1116_v38, %v1058_v36 }
 0x2ed   :  { %v1153_v47 = vadd.f32 %v1149_v54, %v1058_v36 }
 0x2ee   :  { %v1075_v28 = vmax.f32 %v1071_v18, 0.0  ;;  %v1091_v51 = vmax.f32 %v1087_v24, 0.0  ;;  %v1124_v43 = vmax.f32 %v1120_v41, 0.0 }
 0x2ef   :  { %v1157_v48 = vmax.f32 %v1153_v47, 0.0 }
 0x2f0   :  { %1100 = vrot.lane.b32.xlu0 %v1091_v51, %s1588_s2  ;;  %1131 = vrot.lane.b32.xlu1 %v1123_v40, %s1589_s8  ;;  %1079 = vst.msk [vmem:[%s2100_s4 + $0x8] sm:$0xff] %vm828_vm0, %v1075_v28 }
 0x2f1   :  { %v1039_v57 = vpop.permute.xlu1 %1038 }
 0x2f2   :  { %v1048_v49 = vmul.f32 %v1872_v34, %v1039_v57  ;;  %v1084_v50 = vmul.f32 %v1880_v42, %v1039_v57  ;;  %v1117_v53 = vmul.f32 %v1902_v2, %v1039_v57  ;;  %v1150_v0 = vmul.f32 %v1906_v7, %v1039_v57 }
 0x2f4   :  { %1133 = vrot.lane.b32.xlu0 %v1124_v43, %s1589_s8  ;;  %1164 = vrot.lane.b32.xlu1 %v1156_v46, %s1590_s0 }
 0x2f5   :  { %v1044_v60 = vpop.permute.xlu1 %1043 }
 0x2f6   :  { %v1049_v58 = vmul.f32 %v1874_v37, %v1044_v60  ;;  %v1085_v59 = vmul.f32 %v1882_v45, %v1044_v60  ;;  %v1118_v34 = vmul.f32 %v1908_v9, %v1044_v60  ;;  %v1151_v5 = vmul.f32 %v1912_v12, %v1044_v60 }
 0x2f8   :  { %1166 = vrot.lane.b32.xlu0 %v1157_v48, %s1590_s0 }
 0x2f9   :  { %v1063_v52 = vpop.permute.xlu1 %1062 }
 0x2fa   :  { %v1072_v55 = vadd.f32 %v1063_v52, %v1048_v49  ;;  %v1088_v56 = vadd.f32 %v1084_v50, %v1063_v52  ;;  %v1121_v63 = vadd.f32 %v1117_v53, %v1063_v52  ;;  %v1154_v37 = vadd.f32 %v1150_v0, %v1063_v52 }
 0x2fc   :  { %v1076_v61 = vmax.f32 %v1072_v55, 0.0  ;;  %v1092_v62 = vmax.f32 %v1088_v56, 0.0  ;;  %v1125_v39 = vmax.f32 %v1121_v63, 0.0  ;;  %v1158_v9 = vmax.f32 %v1154_v37, 0.0 }
 0x2fd   :  { %v1068_v1 = vpop.permute.xlu1 %1067 }
 0x2fe   :  { %v1073_v42 = vadd.f32 %v1068_v1, %v1049_v58  ;;  %1102 = vrot.lane.b32.xlu1 %v1092_v62, %s1588_s2  ;;  %v1089_v3 = vadd.f32 %v1085_v59, %v1068_v1  ;;  %1080 = vst.msk [vmem:[%s2100_s4 + $0x10] sm:$0xff] %vm828_vm0, %v1076_v61  ;;  %v1122_v4 = vadd.f32 %v1118_v34, %v1068_v1 }
 0x2ff   :  { %v1155_v6 = vadd.f32 %v1151_v5, %v1068_v1 }
 0x300   :  { %v1077_v2 = vmax.f32 %v1073_v42, 0.0  ;;  %v1093_v45 = vmax.f32 %v1089_v3, 0.0  ;;  %v1126_v7 = vmax.f32 %v1122_v4, 0.0 }
 0x301   :  { %v1159_v10 = vmax.f32 %v1155_v6, 0.0 }
 0x302   :  { %1104 = vrot.lane.b32.xlu0 %v1093_v45, %s1588_s2  ;;  %1135 = vrot.lane.b32.xlu1 %v1125_v39, %s1589_s8  ;;  %1081 = vst.msk [vmem:[%s2100_s4 + $0x18] sm:$0xff] %vm828_vm0, %v1077_v2 }
 0x306   :  { %1137 = vrot.lane.b32.xlu0 %v1126_v7, %s1589_s8  ;;  %1168 = vrot.lane.b32.xlu1 %v1158_v9, %s1590_s0 }
 0x30a   :  { %1170 = vrot.lane.b32.xlu0 %v1159_v10, %s1590_s0 }
 0x35e   :  { %v1099_v12 = vpop.permute.xlu1 %1098 }
 0x35f   :  { %1111 = vst.msk [vmem:[%s2100_s4] sm:$0xff] %vm1110_vm1, %v1099_v12 }
 0x362   :  { %v1132_v44 = vpop.permute.xlu1 %1131  ;;  %v1101_v11 = vpop.permute.xlu0 %1100 }
 0x363   :  { %1144 = vst.msk [vmem:[%s2100_s4] sm:$0xff] %vm1143_vm2, %v1132_v44 }
 0x364   :  { %1112 = vst.msk [vmem:[%s2100_s4 + $0x8] sm:$0xff] %vm1110_vm1, %v1101_v11 }
 0x366   :  { %v1165_v13 = vpop.permute.xlu1 %1164  ;;  %v1134_v15 = vpop.permute.xlu0 %1133 }
 0x367   :  { %1177 = vst.msk [vmem:[%s2100_s4] sm:$0xff] %vm1176_vm3, %v1165_v13 }
 0x368   :  { %1145 = vst.msk [vmem:[%s2100_s4 + $0x8] sm:$0xff] %vm1143_vm2, %v1134_v15 }
 0x36a   :  { %v1167_v16 = vpop.permute.xlu0 %1166 }
 0x36b   :  { %1178 = vst.msk [vmem:[%s2100_s4 + $0x8] sm:$0xff] %vm1176_vm3, %v1167_v16 }
 0x370   :  { %v1103_v17 = vpop.permute.xlu1 %1102 }
 0x371   :  { %1113 = vst.msk [vmem:[%s2100_s4 + $0x10] sm:$0xff] %vm1110_vm1, %v1103_v17 }
 0x374   :  { %v1136_v19 = vpop.permute.xlu1 %1135  ;;  %v1105_v20 = vpop.permute.xlu0 %1104 }
 0x375   :  { %1146 = vst.msk [vmem:[%s2100_s4 + $0x10] sm:$0xff] %vm1143_vm2, %v1136_v19 }
 0x376   :  { %1114 = vst.msk [vmem:[%s2100_s4 + $0x18] sm:$0xff] %vm1110_vm1, %v1105_v20 }
 0x378   :  { %v1169_v21 = vpop.permute.xlu1 %1168  ;;  %v1138_v22 = vpop.permute.xlu0 %1137 }
 0x379   :  { %1179 = vst.msk [vmem:[%s2100_s4 + $0x10] sm:$0xff] %vm1176_vm3, %v1169_v21 }
 0x37a   :  { %1147 = vst.msk [vmem:[%s2100_s4 + $0x18] sm:$0xff] %vm1143_vm2, %v1138_v22 }
 0x37c   :  { %v1171_v8 = vpop.permute.xlu0 %1170 }
 0x37d   :  { %1180 = vst.msk [vmem:[%s2100_s4 + $0x18] sm:$0xff] %vm1176_vm3, %v1171_v8 }

// kernel: generator_forward.6
= control target key start
LH: loop header
LB: loop body
LE: loop exit
PB: predicated region body
PF: predicated region fallthrough
CT: control target
= control target key end

     0   :  { %v866_v0 = vmov 0.0   ;;  %vm867_vm0 = vmmov 0   ;;  %s1118_s0 = inlined_call_operand.vmem [shape: bf16[4,128,128], index: 0, kind: input, shape index: {}]   ;;  %s1119_s1 = inlined_call_operand.vmem [shape: bf16[4,16,128], index: 1, kind: input, shape index: {}]   ;;  %s1120_s2 = inlined_call_operand.vmem [shape: f32[16,1], index: 2, kind: input, shape index: {}]   ;;  %s1121_s3 = inlined_call_operand.vmem [shape: f32[16,1], index: 3, kind: input, shape index: {}]   ;;  %s1122_s4 = inlined_call_operand.vmem [shape: f32[16,512], index: 4, kind: output, shape index: {}]  }
   0x1   :  { %741 = vmatprep.subr.bf16.mxu0 %v866_v0  ;;  %761 = vmatprep.subr.bf16.mxu1 %v866_v0  ;;  %v826_v1 = vld [vmem:[%s1118_s0] sm:$0xff]   ;;  %v828_v3 = vld [vmem:[%s1118_s0 + $0x8] sm:$0xff]   ;;  %v830_v5 = vld [vmem:[%s1118_s0 + $0x10] sm:$0xff]  }
   0x2   :  { %v827_v2 = vld [vmem:[%s1118_s0 + $0x40] sm:$0xff]   ;;  %757 = vmatprep.mubr.msk.bf16.mxu0 %vm867_vm0, %v866_v0  ;;  %777 = vmatprep.mubr.msk.bf16.mxu1 %vm867_vm0, %v866_v0  ;;  %v829_v4 = vld [vmem:[%s1118_s0 + $0x48] sm:$0xff]   ;;  %v831_v6 = vld [vmem:[%s1118_s0 + $0x50] sm:$0xff]  }
   0x3   :  { %742 = vmatpush3.bf16.msra.mxu0 %v826_v1  ;;  %762 = vmatpush3.bf16.msra.mxu1 %v827_v2  ;;  %v832_v7 = vld [vmem:[%s1118_s0 + $0x18] sm:$0xff]   ;;  %v834_v9 = vld [vmem:[%s1118_s0 + $0x20] sm:$0xff]   ;;  %v836_v11 = vld [vmem:[%s1118_s0 + $0x28] sm:$0xff]  }
   0x4   :  { %743 = vmatprep.subr.bf16.mxu0 %v866_v0  ;;  %763 = vmatprep.subr.bf16.mxu1 %v866_v0  ;;  %v833_v8 = vld [vmem:[%s1118_s0 + $0x58] sm:$0xff]   ;;  %v835_v10 = vld [vmem:[%s1118_s0 + $0x60] sm:$0xff]   ;;  %v837_v12 = vld [vmem:[%s1118_s0 + $0x68] sm:$0xff]  }
   0x5   :  { %v838_v13 = vld [vmem:[%s1118_s0 + $0x30] sm:$0xff]   ;;  %v840_v15 = vld [vmem:[%s1118_s0 + $0x38] sm:$0xff]   ;;  %v842_v17 = vld [vmem:[%s1119_s1] sm:$0xff]  }
   0x6   :  { %v839_v14 = vld [vmem:[%s1118_s0 + $0x70] sm:$0xff]   ;;  %v841_v16 = vld [vmem:[%s1118_s0 + $0x78] sm:$0xff]   ;;  %v843_v18 = vld [vmem:[%s1119_s1 + $0x8] sm:$0xff]  }
   0x7   :  { %744 = vmatpush3.bf16.msra.mxu0 %v828_v3  ;;  %764 = vmatpush3.bf16.msra.mxu1 %v829_v4  ;;  %v844_v19 = vld [vmem:[%s1118_s0 + $0x80] sm:$0xff]   ;;  %v846_v21 = vld [vmem:[%s1118_s0 + $0x88] sm:$0xff]   ;;  %v848_v23 = vld [vmem:[%s1118_s0 + $0x90] sm:$0xff]  }
   0x8   :  { %745 = vmatprep.subr.bf16.mxu0 %v866_v0  ;;  %765 = vmatprep.subr.bf16.mxu1 %v866_v0  ;;  %v845_v20 = vld [vmem:[%s1118_s0 + $0xc0] sm:$0xff]   ;;  %v847_v22 = vld [vmem:[%s1118_s0 + $0xc8] sm:$0xff]   ;;  %v849_v24 = vld [vmem:[%s1118_s0 + $0xd0] sm:$0xff]  }
   0x9   :  { %v850_v25 = vld [vmem:[%s1118_s0 + $0x98] sm:$0xff]   ;;  %v852_v27 = vld [vmem:[%s1118_s0 + $0xa0] sm:$0xff]   ;;  %v854_v29 = vld [vmem:[%s1118_s0 + $0xa8] sm:$0xff]  }
   0xa   :  { %v851_v26 = vld [vmem:[%s1118_s0 + $0xd8] sm:$0xff]   ;;  %v853_v28 = vld [vmem:[%s1118_s0 + $0xe0] sm:$0xff]   ;;  %v855_v30 = vld [vmem:[%s1118_s0 + $0xe8] sm:$0xff]  }
   0xb   :  { %746 = vmatpush3.bf16.msra.mxu0 %v830_v5  ;;  %766 = vmatpush3.bf16.msra.mxu1 %v831_v6  ;;  %v856_v31 = vld [vmem:[%s1118_s0 + $0xb0] sm:$0xff]   ;;  %v858_v33 = vld [vmem:[%s1118_s0 + $0xb8] sm:$0xff]  }
   0xc   :  { %747 = vmatprep.subr.bf16.mxu0 %v866_v0  ;;  %767 = vmatprep.subr.bf16.mxu1 %v866_v0  ;;  %v857_v32 = vld [vmem:[%s1118_s0 + $0xf0] sm:$0xff]   ;;  %v859_v34 = vld [vmem:[%s1118_s0 + $0xf8] sm:$0xff]  }
   0xd   :  { %v860_v35 = vld [vmem:[%s1119_s1 + $0x10] sm:$0xff]   ;;  %v861_v36 = vld [vmem:[%s1119_s1 + $0x18] sm:$0xff]  }
   0xf   :  { %748 = vmatpush3.bf16.msra.mxu0 %v832_v7  ;;  %768 = vmatpush3.bf16.msra.mxu1 %v833_v8 }
  0x10   :  { %749 = vmatprep.subr.bf16.mxu0 %v866_v0  ;;  %769 = vmatprep.subr.bf16.mxu1 %v866_v0 }
  0x13   :  { %750 = vmatpush3.bf16.msra.mxu0 %v834_v9  ;;  %770 = vmatpush3.bf16.msra.mxu1 %v835_v10 }
  0x14   :  { %751 = vmatprep.subr.bf16.mxu0 %v866_v0  ;;  %771 = vmatprep.subr.bf16.mxu1 %v866_v0 }
  0x17   :  { %752 = vmatpush3.bf16.msra.mxu0 %v836_v11  ;;  %772 = vmatpush3.bf16.msra.mxu1 %v837_v12 }
  0x18   :  { %753 = vmatprep.subr.bf16.mxu0 %v866_v0  ;;  %773 = vmatprep.subr.bf16.mxu1 %v866_v0 }
  0x1b   :  { %754 = vmatpush3.bf16.msra.mxu0 %v838_v13  ;;  %774 = vmatpush3.bf16.msra.mxu1 %v839_v14 }
  0x1c   :  { %755 = vmatprep.subr.bf16.mxu0 %v866_v0  ;;  %775 = vmatprep.subr.bf16.mxu1 %v866_v0 }
  0x1f   :  { %756 = vmatpush3.bf16.msra.mxu0 %v840_v15  ;;  %776 = vmatpush3.bf16.msra.mxu1 %v841_v16 }
  0x20   :  { %781 = vmatprep.subr.bf16.mxu0 %v866_v0  ;;  %801 = vmatprep.subr.bf16.mxu1 %v866_v0 }
  0x22   :  { %758 = vmatmul.mubr.bf16.vlgmr.msra.gmra.mrb[0].mxu0 %v842_v17  ;;  %778 = vmatmul.mubr.bf16.vlgmr.msra.gmra.mrb[0].mxu1 %v843_v18 }
  0x23   :  { %782 = vmatpush3.bf16.msra.mxu0 %v844_v19  ;;  %802 = vmatpush3.bf16.msra.mxu1 %v845_v20 }
  0x24   :  { %783 = vmatprep.subr.bf16.mxu0 %v866_v0  ;;  %803 = vmatprep.subr.bf16.mxu1 %v866_v0 }
  0x25   :  { %797 = vmatprep.mubr.msk.bf16.mxu0 %vm867_vm0, %v866_v0  ;;  %817 = vmatprep.mubr.msk.bf16.mxu1 %vm867_vm0, %v866_v0 }
  0x27   :  { %784 = vmatpush3.bf16.msra.mxu0 %v846_v21  ;;  %804 = vmatpush3.bf16.msra.mxu1 %v847_v22  ;;  %v868_v21 = vmov 0  }
  0x28   :  { %785 = vmatprep.subr.bf16.mxu0 %v866_v0  ;;  %805 = vmatprep.subr.bf16.mxu1 %v866_v0 }
  0x29   :  { %824 = vset.pattern.permute.xlu0 %v868_v21  ;;  %825 = vset.pattern.permute.xlu1 %v868_v21 }
  0x2b   :  { %786 = vmatpush3.bf16.msra.mxu0 %v848_v23  ;;  %806 = vmatpush3.bf16.msra.mxu1 %v849_v24 }
  0x2c   :  { %787 = vmatprep.subr.bf16.mxu0 %v866_v0  ;;  %807 = vmatprep.subr.bf16.mxu1 %v866_v0 }
  0x2f   :  { %788 = vmatpush3.bf16.msra.mxu0 %v850_v25  ;;  %808 = vmatpush3.bf16.msra.mxu1 %v851_v26 }
  0x30   :  { %789 = vmatprep.subr.bf16.mxu0 %v866_v0  ;;  %809 = vmatprep.subr.bf16.mxu1 %v866_v0 }
  0x33   :  { %790 = vmatpush3.bf16.msra.mxu0 %v852_v27  ;;  %810 = vmatpush3.bf16.msra.mxu1 %v853_v28 }
  0x34   :  { %791 = vmatprep.subr.bf16.mxu0 %v866_v0  ;;  %811 = vmatprep.subr.bf16.mxu1 %v866_v0 }
  0x37   :  { %792 = vmatpush3.bf16.msra.mxu0 %v854_v29  ;;  %812 = vmatpush3.bf16.msra.mxu1 %v855_v30 }
  0x38   :  { %793 = vmatprep.subr.bf16.mxu0 %v866_v0  ;;  %813 = vmatprep.subr.bf16.mxu1 %v866_v0 }
  0x3b   :  { %794 = vmatpush3.bf16.msra.mxu0 %v856_v31  ;;  %814 = vmatpush3.bf16.msra.mxu1 %v857_v32 }
  0x3c   :  { %795 = vmatprep.subr.bf16.mxu0 %v866_v0  ;;  %815 = vmatprep.subr.bf16.mxu1 %v866_v0 }
  0x3f   :  { %796 = vmatpush3.bf16.msra.mxu0 %v858_v33  ;;  %816 = vmatpush3.bf16.msra.mxu1 %v859_v34 }
  0x42   :  { %798 = vmatmul.mubr.bf16.vlgmr.msra.gmra.mrb[4].mxu0 %v860_v35  ;;  %818 = vmatmul.mubr.bf16.vlgmr.msra.gmra.mrb[4].mxu1 %v861_v36 }
  0xf5   :  { %v1042_v37 = vpop.f32.mrb[0].mxu0  ;;  %v1044_v38 = vpop.f32.mrb[0].mxu1 }
  0xf6   :  { %476 = vadd.xlane.f32.xlu0 %v1042_v37  ;;  %v759_v39 = vpop.f32.mrb[1].mxu0  ;;  %482 = vadd.xlane.f32.xlu1 %v1044_v38  ;;  %v779_v41 = vpop.f32.mrb[1].mxu1 }
  0xf7   :  { %v1048_v40 = vpop.f32.mrb[2].mxu0  ;;  %v1050_v43 = vpop.f32.mrb[2].mxu1 }
  0xf8   :  { %v760_v42 = vpop.f32.mrb[3].mxu0  ;;  %v780_v44 = vpop.f32.mrb[3].mxu1 }
  0xf9   :  { %v549_v44 = vld [vmem:[%s1120_s2] sm:$0xff] }
  0xfa   :  { %478 = vadd.xlane.f32.xlu0 %v1048_v40  ;;  %484 = vadd.xlane.f32.xlu1 %v1050_v43 }
 0x115   :  { %v1054_v45 = vpop.f32.mrb[4].mxu0  ;;  %v1056_v46 = vpop.f32.mrb[4].mxu1 }
 0x116   :  { %488 = vadd.xlane.f32.xlu0 %v1054_v45  ;;  %v799_v47 = vpop.f32.mrb[5].mxu0  ;;  %v819_v49 = vpop.f32.mrb[5].mxu1 }
 0x117   :  { %v1059_v48 = vpop.f32.mrb[6].mxu0  ;;  %v1061_v50 = vpop.f32.mrb[6].mxu1  ;;  %v550_v49 = vld [vmem:[%s1120_s2 + $0x8] sm:$0xff] }
 0x118   :  { %490 = vadd.xlane.f32.xlu1 %v1059_v48  ;;  %v800_v51 = vpop.f32.mrb[7].mxu0  ;;  %v820_v52 = vpop.f32.mrb[7].mxu1 }
 0x11a   :  { %494 = vadd.xlane.f32.xlu0 %v1056_v46 }
 0x11c   :  { %496 = vadd.xlane.f32.xlu1 %v1061_v50 }
 0x183   :  { %v477_v53 = vpop.xlane.xlu0 %476  ;;  %v483_v54 = vpop.xlane.xlu1 %482 }
 0x184   :  { %v486_v58 = vadd.f32 %v483_v54, %v477_v53 }
 0x187   :  { %v479_v55 = vpop.xlane.xlu0 %478  ;;  %v485_v56 = vpop.xlane.xlu1 %484 }
 0x188   :  { %v487_v60 = vadd.f32 %v485_v56, %v479_v55  ;;  %v553_v55 = vld [vmem:[%s1121_s3] sm:$0xff] }
 0x1a3   :  { %v489_v57 = vpop.xlane.xlu0 %488 }
 0x1a4   :  { %v492_v61 = vadd.f32 %v489_v57, %v486_v58  ;;  %v554_v58 = vld [vmem:[%s1121_s3 + $0x8] sm:$0xff] }
 0x1a5   :  { %v491_v59 = vpop.xlane.xlu1 %490 }
 0x1a6   :  { %v493_v63 = vadd.f32 %v491_v59, %v487_v60 }
 0x1a7   :  { %v495_v62 = vpop.xlane.xlu0 %494 }
 0x1a8   :  { %v498_v0 = vadd.f32 %v495_v62, %v492_v61 }
 0x1a9   :  { %v497_v1 = vpop.xlane.xlu1 %496 }
 0x1aa   :  { %v501_v2 = vmul.f32 0.001953125, %v498_v0  ;;  %v499_v3 = vadd.f32 %v497_v1, %v493_v63 }
 0x1ac   :  { %v502_v4 = vmul.f32 0.001953125, %v499_v3  ;;  %v503_v5 = vsub.f32 %v1042_v37, %v501_v2  ;;  %v513_v8 = vsub.f32 %v1044_v38, %v501_v2  ;;  %v523_v12 = vsub.f32 %v1054_v45, %v501_v2 }
 0x1ad   :  { %v533_v16 = vsub.f32 %v1056_v46, %v501_v2 }
 0x1ae   :  { %v505_v6 = vmul.f32 %v503_v5, %v503_v5  ;;  %v504_v7 = vsub.f32 %v1048_v40, %v502_v4  ;;  %v514_v10 = vsub.f32 %v1050_v43, %v502_v4  ;;  %v515_v11 = vmul.f32 %v513_v8, %v513_v8 }
 0x1af   :  { %v524_v14 = vsub.f32 %v1059_v48, %v502_v4  ;;  %v525_v15 = vmul.f32 %v523_v12, %v523_v12  ;;  %v534_v18 = vsub.f32 %v1061_v50, %v502_v4  ;;  %v535_v19 = vmul.f32 %v533_v16, %v533_v16 }
 0x1b0   :  { %507 = vadd.xlane.f32.xlu0 %v505_v6  ;;  %v506_v9 = vmul.f32 %v504_v7, %v504_v7  ;;  %v516_v13 = vmul.f32 %v514_v10, %v514_v10 }
 0x1b1   :  { %v526_v17 = vmul.f32 %v524_v14, %v524_v14  ;;  %v536_v20 = vmul.f32 %v534_v18, %v534_v18 }
 0x1b2   :  { %509 = vadd.xlane.f32.xlu1 %v506_v9 }
 0x1b4   :  { %517 = vadd.xlane.f32.xlu0 %v515_v11 }
 0x1b6   :  { %519 = vadd.xlane.f32.xlu1 %v516_v13 }
 0x1b8   :  { %527 = vadd.xlane.f32.xlu0 %v525_v15 }
 0x1ba   :  { %529 = vadd.xlane.f32.xlu1 %v526_v17 }
 0x1bc   :  { %537 = vadd.xlane.f32.xlu0 %v535_v19 }
 0x1be   :  { %539 = vadd.xlane.f32.xlu1 %v536_v20 }
 0x23d   :  { %v508_v22 = vpop.xlane.xlu0 %507 }
 0x23f   :  { %v510_v23 = vpop.xlane.xlu1 %509 }
 0x241   :  { %v518_v24 = vpop.xlane.xlu0 %517 }
 0x242   :  { %v521_v27 = vadd.f32 %v518_v24, %v508_v22 }
 0x243   :  { %v520_v25 = vpop.xlane.xlu1 %519 }
 0x244   :  { %v522_v29 = vadd.f32 %v520_v25, %v510_v23 }
 0x245   :  { %v528_v26 = vpop.xlane.xlu0 %527 }
 0x246   :  { %v531_v30 = vadd.f32 %v528_v26, %v521_v27 }
 0x247   :  { %v530_v28 = vpop.xlane.xlu1 %529 }
 0x248   :  { %v532_v32 = vadd.f32 %v530_v28, %v522_v29 }
 0x249   :  { %v538_v31 = vpop.xlane.xlu0 %537 }
 0x24a   :  { %v541_v33 = vadd.f32 %v538_v31, %v531_v30 }
 0x24b   :  { %v540_v34 = vpop.xlane.xlu1 %539 }
 0x24c   :  { %v543_v35 = vmul.f32 0.001953125, %v541_v33  ;;  %v542_v36 = vadd.f32 %v540_v34, %v532_v32 }
 0x24e   :  { %v545_v39 = vadd.f32 1e-05, %v543_v35  ;;  %v544_v41 = vmul.f32 0.001953125, %v542_v36 }
 0x250   :  { %862 = vrsqrt.f32 %v545_v39  ;;  %v546_v42 = vadd.f32 1e-05, %v544_v41 }
 0x252   :  { %864 = vrsqrt.f32 %v546_v42 }
 0x25a   :  { %v863_v47 = vpop.eup %862 }
 0x25b   :  { %v551_v51 = vmul.f32 %v863_v47, %v549_v44 }
 0x25c   :  { %v865_v52 = vpop.eup %864 }
 0x25d   :  { %561 = vperm.xlu0 %824, %v551_v51   ;;  %v552_v53 = vmul.f32 %v865_v52, %v550_v49  ;;  %v555_v54 = vmul.f32 %v551_v51, %v501_v2 }
 0x25f   :  { %566 = vperm.xlu1 %825, %v552_v53   ;;  %v557_v56 = vsub.f32 %v553_v55, %v555_v54  ;;  %v556_v57 = vmul.f32 %v552_v53, %v502_v4 }
 0x261   :  { %v558_v59 = vsub.f32 %v554_v58, %v556_v57 }
 0x263   :  { %573 = vperm.xlu1 %825, %v557_v56  }
 0x267   :  { %578 = vperm.xlu1 %825, %v558_v59  }
 0x2dc   :  { %v562_v60 = vpop.permute.xlu0 %561 }
 0x2dd   :  { %v569_v62 = vmul.f32 %v562_v60, %v1042_v37  ;;  %v587_v63 = vmul.f32 %v562_v60, %v1044_v38  ;;  %v595_v0 = vmul.f32 %v562_v60, %v1054_v45  ;;  %v603_v1 = vmul.f32 %v562_v60, %v1056_v46 }
 0x2de   :  { %v567_v61 = vpop.permute.xlu1 %566 }
 0x2df   :  { %v570_v7 = vmul.f32 %v567_v61, %v1048_v40  ;;  %v588_v8 = vmul.f32 %v567_v61, %v1050_v43  ;;  %v596_v9 = vmul.f32 %v567_v61, %v1059_v48  ;;  %v604_v10 = vmul.f32 %v567_v61, %v1061_v50 }
 0x2e2   :  { %v574_v2 = vpop.permute.xlu1 %573 }
 0x2e3   :  { %v581_v3 = vadd.f32 %v574_v2, %v569_v62  ;;  %v589_v4 = vadd.f32 %v587_v63, %v574_v2  ;;  %v597_v5 = vadd.f32 %v595_v0, %v574_v2  ;;  %v605_v6 = vadd.f32 %v603_v1, %v574_v2 }
 0x2e5   :  { %v583_v37 = vmax.f32 %v581_v3, 0.0  ;;  %v591_v11 = vmax.f32 %v589_v4, 0.0  ;;  %v599_v38 = vmax.f32 %v597_v5, 0.0  ;;  %v607_v12 = vmax.f32 %v605_v6, 0.0 }
 0x2e6   :  { %v579_v45 = vpop.permute.xlu1 %578 }
 0x2e7   :  { %585 = vst [vmem:[%s1122_s4] sm:$0xff] %v583_v37  ;;  %593 = vst [vmem:[%s1122_s4 + $0x8] sm:$0xff] %v591_v11  ;;  %v582_v40 = vadd.f32 %v579_v45, %v570_v7  ;;  %v590_v43 = vadd.f32 %v588_v8, %v579_v45  ;;  %v598_v46 = vadd.f32 %v596_v9, %v579_v45 }
 0x2e8   :  { %601 = vst [vmem:[%s1122_s4 + $0x10] sm:$0xff] %v599_v38  ;;  %609 = vst [vmem:[%s1122_s4 + $0x18] sm:$0xff] %v607_v12  ;;  %v606_v48 = vadd.f32 %v604_v10, %v579_v45 }
 0x2e9   :  { %v584_v50 = vmax.f32 %v582_v40, 0.0  ;;  %v592_v13 = vmax.f32 %v590_v43, 0.0  ;;  %v600_v14 = vmax.f32 %v598_v46, 0.0 }
 0x2ea   :  { %v608_v15 = vmax.f32 %v606_v48, 0.0 }
 0x2eb   :  { %586 = vst [vmem:[%s1122_s4 + $0x20] sm:$0xff] %v584_v50  ;;  %594 = vst [vmem:[%s1122_s4 + $0x28] sm:$0xff] %v592_v13 }
 0x2ec   :  { %602 = vst [vmem:[%s1122_s4 + $0x30] sm:$0xff] %v600_v14  ;;  %610 = vst [vmem:[%s1122_s4 + $0x38] sm:$0xff] %v608_v15 }

// kernel: generator_forward.7
= control target key start
LH: loop header
LB: loop body
LE: loop exit
PB: predicated region body
PF: predicated region fallthrough
CT: control target
= control target key end

     0   :  { %v1423_v1 = vmov 0   ;;  %vm118_vm0 = vcmask 523264   ;;  %s1883_s0 = inlined_call_operand.vmem [shape: bf16[4,64,512], index: 0, kind: input, shape index: {}]   ;;  %s1884_s1 = inlined_call_operand.vmem [shape: bf16[4,8,64], index: 1, kind: input, shape index: {}]   ;;  %s1885_s2 = inlined_call_operand.vmem [shape: f32[8,1], index: 2, kind: input, shape index: {}]   ;;  %s1886_s3 = inlined_call_operand.vmem [shape: f32[8,1], index: 3, kind: input, shape index: {}]   ;;  %s1887_s4 = inlined_call_operand.vmem [shape: f32[8,1], index: 4, kind: input, shape index: {}]   ;;  %s1888_s5 = inlined_call_operand.vmem [shape: f32[1,2048], index: 5, kind: output, shape index: {}]  }
   0x1   :  { %v1293_v0 = vld [vmem:[%s1883_s0 + $0x4] ss:$16 sps:$4 sm:$0xff]   ;;  %154 = vmatprep.mubr.bf16.mxu0 %v1423_v1  ;;  %195 = vmatprep.mubr.bf16.mxu1 %v1423_v1  ;;  %v1295_v2 = vld [vmem:[%s1883_s0 + $0xc] ss:$16 sps:$4 sm:$0xff]   ;;  %v1297_v3 = vld [vmem:[%s1883_s0] ss:$16 sps:$4 sm:$0xff]  }
   0x2   :  { %1291 = vset.pattern.permute.xlu0 %v1423_v1  ;;  %1292 = vset.pattern.permute.xlu1 %v1423_v1  ;;  %v1298_v4 = vld [vmem:[%s1883_s0 + $0x8] ss:$16 sps:$4 sm:$0xff]   ;;  %v1299_v5 = vld [vmem:[%s1883_s0 + $0x24] ss:$16 sps:$4 sm:$0xff]   ;;  %v1301_v6 = vld [vmem:[%s1883_s0 + $0x2c] ss:$16 sps:$4 sm:$0xff]  }
   0x3   :  { %122 = vmatprep.subr.bf16.mxu0 %v1293_v0  ;;  %163 = vmatprep.subr.bf16.mxu1 %v1295_v2  ;;  %v1303_v7 = vld [vmem:[%s1883_s0 + $0x20] ss:$16 sps:$4 sm:$0xff]   ;;  %v1304_v8 = vld [vmem:[%s1883_s0 + $0x28] ss:$16 sps:$4 sm:$0xff]   ;;  %v1305_v9 = vld [vmem:[%s1883_s0 + $0x44] ss:$16 sps:$4 sm:$0xff]  }
   0x4   :  { %123 = vmatpush1.bf16.msra.mxu0 %v1297_v3  ;;  %164 = vmatpush1.bf16.msra.mxu1 %v1298_v4  ;;  %v1307_v10 = vld [vmem:[%s1883_s0 + $0x4c] ss:$16 sps:$4 sm:$0xff]   ;;  %v1309_v11 = vld [vmem:[%s1883_s0 + $0x40] ss:$16 sps:$4 sm:$0xff]   ;;  %v1310_v12 = vld [vmem:[%s1883_s0 + $0x48] ss:$16 sps:$4 sm:$0xff]  }
   0x5   :  { %124 = vmatprep.subr.bf16.mxu0 %v1299_v5  ;;  %165 = vmatprep.subr.bf16.mxu1 %v1301_v6  ;;  %v1311_v13 = vld [vmem:[%s1883_s0 + $0x64] ss:$16 sps:$4 sm:$0xff]   ;;  %v1313_v14 = vld [vmem:[%s1883_s0 + $0x6c] ss:$16 sps:$4 sm:$0xff]   ;;  %v1315_v15 = vld [vmem:[%s1883_s0 + $0x60] ss:$16 sps:$4 sm:$0xff]  }
   0x6   :  { %v1316_v16 = vld [vmem:[%s1883_s0 + $0x68] ss:$16 sps:$4 sm:$0xff]   ;;  %v1319_v17 = vld [vmem:[%s1883_s0 + $0x84] ss:$16 sps:$4 sm:$0xff]   ;;  %v1322_v18 = vld [vmem:[%s1883_s0 + $0x8c] ss:$16 sps:$4 sm:$0xff]  }
   0x7   :  { %v21_v19 = vld [vmem:[%s1884_s1] sm:$0xf]  ;;  %v1320_v21 = vld [vmem:[%s1883_s0 + $0x88] ss:$16 sps:$4 sm:$0xff]   ;;  %v1325_v22 = vld [vmem:[%s1883_s0 + $0xa4] ss:$16 sps:$4 sm:$0xff]  }
   0x8   :  { %125 = vmatpush1.bf16.msra.mxu0 %v1303_v7  ;;  %166 = vmatpush1.bf16.msra.mxu1 %v1304_v8  ;;  %v1317_v20 = vld [vmem:[%s1883_s0 + $0x80] ss:$16 sps:$4 sm:$0xff]   ;;  %v1328_v23 = vld [vmem:[%s1883_s0 + $0xac] ss:$16 sps:$4 sm:$0xff]   ;;  %v1326_v25 = vld [vmem:[%s1883_s0 + $0xa8] ss:$16 sps:$4 sm:$0xff]  }
   0x9   :  { %126 = vmatprep.subr.bf16.mxu0 %v1305_v9  ;;  %167 = vmatprep.subr.bf16.mxu1 %v1307_v10  ;;  %v1323_v24 = vld [vmem:[%s1883_s0 + $0xa0] ss:$16 sps:$4 sm:$0xff]   ;;  %v1331_v26 = vld [vmem:[%s1883_s0 + $0xc4] ss:$16 sps:$4 sm:$0xff]   ;;  %v1334_v27 = vld [vmem:[%s1883_s0 + $0xcc] ss:$16 sps:$4 sm:$0xff]  }
   0xa   :  { %v1329_v28 = vld [vmem:[%s1883_s0 + $0xc0] ss:$16 sps:$4 sm:$0xff]   ;;  %v1332_v29 = vld [vmem:[%s1883_s0 + $0xc8] ss:$16 sps:$4 sm:$0xff]   ;;  %v1337_v30 = vld [vmem:[%s1883_s0 + $0xe4] ss:$16 sps:$4 sm:$0xff]  }
   0xb   :  { %v1340_v31 = vld [vmem:[%s1883_s0 + $0xec] ss:$16 sps:$4 sm:$0xff]   ;;  %v1335_v32 = vld [vmem:[%s1883_s0 + $0xe0] ss:$16 sps:$4 sm:$0xff]   ;;  %v1338_v33 = vld [vmem:[%s1883_s0 + $0xe8] ss:$16 sps:$4 sm:$0xff]  }
   0xc   :  { %127 = vmatpush1.bf16.msra.mxu0 %v1309_v11  ;;  %168 = vmatpush1.bf16.msra.mxu1 %v1310_v12  ;;  %v1343_v34 = vld [vmem:[%s1883_s0 + $0x104] ss:$16 sps:$4 sm:$0xff]   ;;  %v1346_v35 = vld [vmem:[%s1883_s0 + $0x10c] ss:$16 sps:$4 sm:$0xff]   ;;  %v1341_v37 = vld [vmem:[%s1883_s0 + $0x100] ss:$16 sps:$4 sm:$0xff]  }
   0xd   :  { %128 = vmatprep.subr.bf16.mxu0 %v1311_v13  ;;  %169 = vmatprep.subr.bf16.mxu1 %v1313_v14  ;;  %v1184_v36 = vld [vmem:[%s1884_s1 + $0x4] sm:$0xf]  ;;  %v1344_v38 = vld [vmem:[%s1883_s0 + $0x108] ss:$16 sps:$4 sm:$0xff]   ;;  %v1352_v40 = vld [vmem:[%s1883_s0 + $0x12c] ss:$16 sps:$4 sm:$0xff]  }
   0xe   :  { %v1349_v39 = vld [vmem:[%s1883_s0 + $0x124] ss:$16 sps:$4 sm:$0xff]   ;;  %v1347_v41 = vld [vmem:[%s1883_s0 + $0x120] ss:$16 sps:$4 sm:$0xff]   ;;  %v1350_v42 = vld [vmem:[%s1883_s0 + $0x128] ss:$16 sps:$4 sm:$0xff]  }
   0xf   :  { %v1355_v43 = vld [vmem:[%s1883_s0 + $0x144] ss:$16 sps:$4 sm:$0xff]   ;;  %v1358_v44 = vld [vmem:[%s1883_s0 + $0x14c] ss:$16 sps:$4 sm:$0xff]   ;;  %v1353_v45 = vld [vmem:[%s1883_s0 + $0x140] ss:$16 sps:$4 sm:$0xff]  }
  0x10   :  { %129 = vmatpush1.bf16.msra.mxu0 %v1315_v15  ;;  %170 = vmatpush1.bf16.msra.mxu1 %v1316_v16  ;;  %v1356_v46 = vld [vmem:[%s1883_s0 + $0x148] ss:$16 sps:$4 sm:$0xff]   ;;  %v1361_v47 = vld [vmem:[%s1883_s0 + $0x164] ss:$16 sps:$4 sm:$0xff]   ;;  %v1364_v48 = vld [vmem:[%s1883_s0 + $0x16c] ss:$16 sps:$4 sm:$0xff]  }
  0x11   :  { %306 = vmatprep.subr.bf16.mxu0 %v1319_v17  ;;  %347 = vmatprep.subr.bf16.mxu1 %v1322_v18  ;;  %v1359_v49 = vld [vmem:[%s1883_s0 + $0x160] ss:$16 sps:$4 sm:$0xff]   ;;  %v1362_v50 = vld [vmem:[%s1883_s0 + $0x168] ss:$16 sps:$4 sm:$0xff]   ;;  %v1367_v51 = vld [vmem:[%s1883_s0 + $0x184] ss:$16 sps:$4 sm:$0xff]  }
  0x12   :  { %v1370_v52 = vld [vmem:[%s1883_s0 + $0x18c] ss:$16 sps:$4 sm:$0xff]   ;;  %v1219_v53 = vld [vmem:[%s1884_s1 + $0x8] sm:$0xf]  ;;  %v1365_v54 = vld [vmem:[%s1883_s0 + $0x180] ss:$16 sps:$4 sm:$0xff]  }
  0x13   :  { %1182 = vmatmul.mubr.msk.bf16.vlgmr.msra.gmra.mrb[0].mxu0 %vm118_vm0, %v21_v19  ;;  %1183 = vmatmul.mubr.msk.bf16.vlgmr.msra.gmra.mrb[0].mxu1 %vm118_vm0, %v21_v19  ;;  %v1368_v55 = vld [vmem:[%s1883_s0 + $0x188] ss:$16 sps:$4 sm:$0xff]   ;;  %v1373_v56 = vld [vmem:[%s1883_s0 + $0x1a4] ss:$16 sps:$4 sm:$0xff]   ;;  %v1376_v57 = vld [vmem:[%s1883_s0 + $0x1ac] ss:$16 sps:$4 sm:$0xff]  }
  0x14   :  { %307 = vmatpush1.bf16.msra.mxu0 %v1317_v20  ;;  %348 = vmatpush1.bf16.msra.mxu1 %v1320_v21  ;;  %v1371_v58 = vld [vmem:[%s1883_s0 + $0x1a0] ss:$16 sps:$4 sm:$0xff]   ;;  %v1374_v59 = vld [vmem:[%s1883_s0 + $0x1a8] ss:$16 sps:$4 sm:$0xff]   ;;  %v1379_v60 = vld [vmem:[%s1883_s0 + $0x1c4] ss:$16 sps:$4 sm:$0xff]  }
  0x15   :  { %308 = vmatprep.subr.bf16.mxu0 %v1325_v22  ;;  %349 = vmatprep.subr.bf16.mxu1 %v1328_v23  ;;  %v1382_v61 = vld [vmem:[%s1883_s0 + $0x1cc] ss:$16 sps:$4 sm:$0xff]   ;;  %v1377_v62 = vld [vmem:[%s1883_s0 + $0x1c0] ss:$16 sps:$4 sm:$0xff]   ;;  %v1380_v63 = vld [vmem:[%s1883_s0 + $0x1c8] ss:$16 sps:$4 sm:$0xff]  }
  0x16   :  { %338 = vmatprep.mubr.bf16.mxu0 %v1423_v1  ;;  %379 = vmatprep.mubr.bf16.mxu1 %v1423_v1  ;;  %v1385_v0 = vld [vmem:[%s1883_s0 + $0x1e4] ss:$16 sps:$4 sm:$0xff]   ;;  %v1383_v2 = vld [vmem:[%s1883_s0 + $0x1e0] ss:$16 sps:$4 sm:$0xff]   ;;  %v1386_v3 = vld [vmem:[%s1883_s0 + $0x1e8] ss:$16 sps:$4 sm:$0xff]  }
  0x17   :  { %v1254_v4 = vld [vmem:[%s1884_s1 + $0xc] sm:$0xf] }
  0x18   :  { %309 = vmatpush1.bf16.msra.mxu0 %v1323_v24  ;;  %350 = vmatpush1.bf16.msra.mxu1 %v1326_v25 }
  0x19   :  { %310 = vmatprep.subr.bf16.mxu0 %v1331_v26  ;;  %351 = vmatprep.subr.bf16.mxu1 %v1334_v27 }
  0x1c   :  { %311 = vmatpush1.bf16.msra.mxu0 %v1329_v28  ;;  %352 = vmatpush1.bf16.msra.mxu1 %v1332_v29 }
  0x1d   :  { %312 = vmatprep.subr.bf16.mxu0 %v1337_v30  ;;  %353 = vmatprep.subr.bf16.mxu1 %v1340_v31 }
  0x20   :  { %313 = vmatpush1.bf16.msra.mxu0 %v1335_v32  ;;  %354 = vmatpush1.bf16.msra.mxu1 %v1338_v33 }
  0x21   :  { %490 = vmatprep.subr.bf16.mxu0 %v1343_v34  ;;  %531 = vmatprep.subr.bf16.mxu1 %v1346_v35 }
  0x23   :  { %1217 = vmatmul.mubr.msk.bf16.vlgmr.msra.gmra.mrb[4].mxu0 %vm118_vm0, %v1184_v36  ;;  %1218 = vmatmul.mubr.msk.bf16.vlgmr.msra.gmra.mrb[4].mxu1 %vm118_vm0, %v1184_v36 }
  0x24   :  { %491 = vmatpush1.bf16.msra.mxu0 %v1341_v37  ;;  %532 = vmatpush1.bf16.msra.mxu1 %v1344_v38 }
  0x25   :  { %492 = vmatprep.subr.bf16.mxu0 %v1349_v39  ;;  %533 = vmatprep.subr.bf16.mxu1 %v1352_v40 }
  0x26   :  { %522 = vmatprep.mubr.bf16.mxu0 %v1423_v1  ;;  %563 = vmatprep.mubr.bf16.mxu1 %v1423_v1 }
  0x28   :  { %493 = vmatpush1.bf16.msra.mxu0 %v1347_v41  ;;  %534 = vmatpush1.bf16.msra.mxu1 %v1350_v42 }
  0x29   :  { %494 = vmatprep.subr.bf16.mxu0 %v1355_v43  ;;  %535 = vmatprep.subr.bf16.mxu1 %v1358_v44 }
  0x2c   :  { %495 = vmatpush1.bf16.msra.mxu0 %v1353_v45  ;;  %536 = vmatpush1.bf16.msra.mxu1 %v1356_v46 }
  0x2d   :  { %496 = vmatprep.subr.bf16.mxu0 %v1361_v47  ;;  %537 = vmatprep.subr.bf16.mxu1 %v1364_v48 }
  0x30   :  { %497 = vmatpush1.bf16.msra.mxu0 %v1359_v49  ;;  %538 = vmatpush1.bf16.msra.mxu1 %v1362_v50 }
  0x31   :  { %674 = vmatprep.subr.bf16.mxu0 %v1367_v51  ;;  %715 = vmatprep.subr.bf16.mxu1 %v1370_v52 }
  0x33   :  { %1252 = vmatmul.mubr.msk.bf16.vlgmr.msra.gmra.mrb[8].mxu0 %vm118_vm0, %v1219_v53  ;;  %1253 = vmatmul.mubr.msk.bf16.vlgmr.msra.gmra.mrb[8].mxu1 %vm118_vm0, %v1219_v53 }
  0x34   :  { %675 = vmatpush1.bf16.msra.mxu0 %v1365_v54  ;;  %716 = vmatpush1.bf16.msra.mxu1 %v1368_v55 }
  0x35   :  { %676 = vmatprep.subr.bf16.mxu0 %v1373_v56  ;;  %717 = vmatprep.subr.bf16.mxu1 %v1376_v57 }
  0x36   :  { %706 = vmatprep.mubr.bf16.mxu0 %v1423_v1  ;;  %747 = vmatprep.mubr.bf16.mxu1 %v1423_v1  ;;  %v1388_v1 = vld [vmem:[%s1883_s0 + $0x1ec] ss:$16 sps:$4 sm:$0xff]  }
  0x38   :  { %677 = vmatpush1.bf16.msra.mxu0 %v1371_v58  ;;  %718 = vmatpush1.bf16.msra.mxu1 %v1374_v59 }
  0x39   :  { %678 = vmatprep.subr.bf16.mxu0 %v1379_v60  ;;  %719 = vmatprep.subr.bf16.mxu1 %v1382_v61 }
  0x3c   :  { %679 = vmatpush1.bf16.msra.mxu0 %v1377_v62  ;;  %720 = vmatpush1.bf16.msra.mxu1 %v1380_v63 }
  0x3d   :  { %680 = vmatprep.subr.bf16.mxu0 %v1385_v0  ;;  %721 = vmatprep.subr.bf16.mxu1 %v1388_v1 }
  0x40   :  { %681 = vmatpush1.bf16.msra.mxu0 %v1383_v2  ;;  %722 = vmatpush1.bf16.msra.mxu1 %v1386_v3 }
  0x43   :  { %1287 = vmatmul.mubr.msk.bf16.vlgmr.msra.gmra.mrb[12].mxu0 %vm118_vm0, %v1254_v4  ;;  %1288 = vmatmul.mubr.msk.bf16.vlgmr.msra.gmra.mrb[12].mxu1 %vm118_vm0, %v1254_v4 }
  0xe6   :  { %v1677_v5 = vpop.f32.mrb[0].mxu0  ;;  %v1679_v6 = vpop.f32.mrb[0].mxu1 }
  0xe7   :  { %v1681_v7 = vpop.f32.mrb[1].mxu0  ;;  %v1683_v8 = vpop.f32.mrb[1].mxu1 }
  0xe8   :  { %v756_v9 = vadd.f32 %v1681_v7, %v1677_v5  ;;  %v160_v10 = vpop.f32.mrb[2].mxu0  ;;  %v201_v11 = vpop.f32.mrb[2].mxu1 }
  0xe9   :  { %v161_v12 = vpop.f32.mrb[3].mxu0  ;;  %v202_v13 = vpop.f32.mrb[3].mxu1 }
  0xea   :  { %v757_v14 = vadd.f32 %v756_v9, %v1679_v6 }
  0xec   :  { %v758_v15 = vadd.f32 %v757_v14, %v1683_v8 }
  0xee   :  { %759 = vadd.xlane.f32.xlu0 %v758_v15 }
  0xf6   :  { %v1689_v16 = vpop.f32.mrb[4].mxu0  ;;  %v1691_v17 = vpop.f32.mrb[4].mxu1 }
  0xf7   :  { %v1693_v18 = vpop.f32.mrb[5].mxu0  ;;  %v1695_v19 = vpop.f32.mrb[5].mxu1 }
  0xf8   :  { %v762_v20 = vadd.f32 %v1693_v18, %v1689_v16  ;;  %v344_v21 = vpop.f32.mrb[6].mxu0  ;;  %v385_v22 = vpop.f32.mrb[6].mxu1 }
  0xf9   :  { %v345_v23 = vpop.f32.mrb[7].mxu0  ;;  %v386_v24 = vpop.f32.mrb[7].mxu1 }
  0xfa   :  { %v763_v25 = vadd.f32 %v762_v20, %v1691_v17 }
  0xfc   :  { %v764_v26 = vadd.f32 %v763_v25, %v1695_v19 }
  0xfe   :  { %765 = vadd.xlane.f32.xlu0 %v764_v26 }
 0x106   :  { %v1701_v27 = vpop.f32.mrb[8].mxu0  ;;  %v1703_v28 = vpop.f32.mrb[8].mxu1 }
 0x107   :  { %v1705_v29 = vpop.f32.mrb[9].mxu0  ;;  %v1707_v30 = vpop.f32.mrb[9].mxu1 }
 0x108   :  { %v768_v31 = vadd.f32 %v1705_v29, %v1701_v27  ;;  %v528_v32 = vpop.f32.mrb[10].mxu0  ;;  %v569_v33 = vpop.f32.mrb[10].mxu1 }
 0x109   :  { %v529_v34 = vpop.f32.mrb[11].mxu0  ;;  %v570_v35 = vpop.f32.mrb[11].mxu1 }
 0x10a   :  { %v769_v36 = vadd.f32 %v768_v31, %v1703_v28 }
 0x10c   :  { %v770_v37 = vadd.f32 %v769_v36, %v1707_v30 }
 0x10e   :  { %771 = vadd.xlane.f32.xlu1 %v770_v37 }
 0x116   :  { %v1713_v38 = vpop.f32.mrb[12].mxu0  ;;  %v1715_v39 = vpop.f32.mrb[12].mxu1 }
 0x117   :  { %v1717_v40 = vpop.f32.mrb[13].mxu0  ;;  %v1719_v41 = vpop.f32.mrb[13].mxu1 }
 0x118   :  { %v774_v42 = vadd.f32 %v1717_v40, %v1713_v38  ;;  %v712_v43 = vpop.f32.mrb[14].mxu0  ;;  %v753_v44 = vpop.f32.mrb[14].mxu1 }
 0x119   :  { %v713_v45 = vpop.f32.mrb[15].mxu0  ;;  %v754_v46 = vpop.f32.mrb[15].mxu1 }
 0x11a   :  { %v775_v47 = vadd.f32 %v774_v42, %v1715_v39 }
 0x11c   :  { %v776_v48 = vadd.f32 %v775_v47, %v1719_v41 }
 0x11e   :  { %777 = vadd.xlane.f32.xlu1 %v776_v48 }
 0x17b   :  { %v760_v49 = vpop.xlane.xlu0 %759 }
 0x18b   :  { %v766_v50 = vpop.xlane.xlu0 %765 }
 0x18c   :  { %v767_v52 = vadd.f32 %v766_v50, %v760_v49 }
 0x19b   :  { %v772_v51 = vpop.xlane.xlu1 %771 }
 0x19c   :  { %v773_v53 = vadd.f32 %v772_v51, %v767_v52 }
 0x1ab   :  { %v778_v54 = vpop.xlane.xlu1 %777 }
 0x1ac   :  { %v779_v55 = vadd.f32 %v778_v54, %v773_v53 }
 0x1ae   :  { %v1725_v56 = vmul.f32 0.00048828125, %v779_v55 }
 0x1b0   :  { %v796_v57 = vsub.f32 %v1689_v16, %v1725_v56  ;;  %v797_v58 = vsub.f32 %v1693_v18, %v1725_v56  ;;  %v798_v59 = vsub.f32 %v1691_v17, %v1725_v56  ;;  %v799_v60 = vsub.f32 %v1695_v19, %v1725_v56 }
 0x1b1   :  { %v782_v61 = vsub.f32 %v1677_v5, %v1725_v56  ;;  %v783_v62 = vsub.f32 %v1681_v7, %v1725_v56  ;;  %v784_v63 = vsub.f32 %v1679_v6, %v1725_v56  ;;  %v785_v0 = vsub.f32 %v1683_v8, %v1725_v56 }
 0x1b2   :  { %v800_v1 = vmul.f32 %v796_v57, %v796_v57  ;;  %v801_v2 = vmul.f32 %v797_v58, %v797_v58  ;;  %v802_v3 = vmul.f32 %v798_v59, %v798_v59  ;;  %v803_v4 = vmul.f32 %v799_v60, %v799_v60 }
 0x1b3   :  { %v786_v9 = vmul.f32 %v782_v61, %v782_v61  ;;  %v787_v10 = vmul.f32 %v783_v62, %v783_v62  ;;  %v788_v11 = vmul.f32 %v784_v63, %v784_v63  ;;  %v824_v13 = vsub.f32 %v1713_v38, %v1725_v56  ;;  %v841_v63 = vld [vmem:[%s1885_s2] sm:$0xff] }
 0x1b4   :  { %v804_v12 = vadd.f32 %v801_v2, %v800_v1  ;;  %v825_v14 = vsub.f32 %v1717_v40, %v1725_v56  ;;  %v826_v15 = vsub.f32 %v1715_v39, %v1725_v56  ;;  %v789_v20 = vmul.f32 %v785_v0, %v785_v0  ;;  %v843_v2 = vld [vmem:[%s1886_s3] sm:$0xff] }
 0x1b5   :  { %v790_v21 = vadd.f32 %v787_v10, %v786_v9  ;;  %v810_v22 = vsub.f32 %v1701_v27, %v1725_v56  ;;  %v811_v23 = vsub.f32 %v1705_v29, %v1725_v56  ;;  %v827_v25 = vsub.f32 %v1719_v41, %v1725_v56  ;;  %v846_v9 = vld [vmem:[%s1887_s4] sm:$0xff] }
 0x1b6   :  { %v805_v24 = vadd.f32 %v804_v12, %v802_v3  ;;  %v828_v26 = vmul.f32 %v824_v13, %v824_v13  ;;  %v829_v31 = vmul.f32 %v825_v14, %v825_v14  ;;  %v830_v33 = vmul.f32 %v826_v15, %v826_v15 }
 0x1b7   :  { %v791_v32 = vadd.f32 %v790_v21, %v788_v11  ;;  %v812_v34 = vsub.f32 %v1703_v28, %v1725_v56  ;;  %v813_v35 = vsub.f32 %v1707_v30, %v1725_v56  ;;  %v814_v42 = vmul.f32 %v810_v22, %v810_v22 }
 0x1b8   :  { %v806_v36 = vadd.f32 %v805_v24, %v803_v4  ;;  %v832_v37 = vadd.f32 %v829_v31, %v828_v26  ;;  %v815_v43 = vmul.f32 %v811_v23, %v811_v23  ;;  %v831_v45 = vmul.f32 %v827_v25, %v827_v25 }
 0x1b9   :  { %v792_v44 = vadd.f32 %v791_v32, %v789_v20  ;;  %v816_v47 = vmul.f32 %v812_v34, %v812_v34  ;;  %v817_v50 = vmul.f32 %v813_v35, %v813_v35  ;;  %v1424_v10 = vmov 1966171168  }
 0x1ba   :  { %807 = vadd.xlane.f32.xlu1 %v806_v36  ;;  %v833_v46 = vadd.f32 %v832_v37, %v830_v33  ;;  %v818_v48 = vadd.f32 %v815_v43, %v814_v42  ;;  %v913_v11 = vunpack.c.l.s4 %v1424_v10  ;;  %v915_v12 = vlaneseq }
 0x1bb   :  { %793 = vadd.xlane.f32.xlu0 %v792_v44 }
 0x1bc   :  { %v834_v49 = vadd.f32 %v833_v46, %v831_v45  ;;  %v819_v51 = vadd.f32 %v818_v48, %v816_v47  ;;  %v914_v13 = vunpack.c.0.s8 %v913_v11  ;;  %v916_v14 = vshrl.u32 %v915_v12, 7 }
 0x1bd   :  { %vm1850_vm1 = vcmp.lt.s32.totalorder %v915_v12, 512 }
 0x1be   :  { %835 = vadd.xlane.f32.xlu1 %v834_v49  ;;  %v820_v52 = vadd.f32 %v819_v51, %v817_v50  ;;  %v1770_v20 = vsub.s32 %v914_v13, %v916_v14 }
 0x1c0   :  { %821 = vadd.xlane.f32.xlu0 %v820_v52 }
 0x247   :  { %v808_v54 = vpop.xlane.xlu1 %807 }
 0x248   :  { %v794_v53 = vpop.xlane.xlu0 %793 }
 0x249   :  { %v809_v55 = vadd.f32 %v808_v54, %v794_v53 }
 0x24b   :  { %v836_v59 = vpop.xlane.xlu1 %835 }
 0x24d   :  { %v822_v57 = vpop.xlane.xlu0 %821 }
 0x24e   :  { %v823_v58 = vadd.f32 %v822_v57, %v809_v55 }
 0x250   :  { %v837_v60 = vadd.f32 %v836_v59, %v823_v58 }
 0x252   :  { %v838_v61 = vmul.f32 0.00048828125, %v837_v60 }
 0x254   :  { %v839_v62 = vadd.f32 1e-05, %v838_v61 }
 0x256   :  { %1389 = vrsqrt.f32 %v839_v62 }
 0x260   :  { %v1390_v0 = vpop.eup %1389 }
 0x261   :  { %v842_v1 = vmul.f32 %v1390_v0, %v841_v63 }
 0x263   :  { %849 = vperm.xlu0 %1291, %v842_v1   ;;  %v844_v3 = vmul.f32 %v842_v1, %v1725_v56 }
 0x265   :  { %v845_v4 = vsub.f32 %v843_v2, %v844_v3 }
 0x267   :  { %858 = vperm.xlu1 %1292, %v845_v4  }
 0x26b   :  { %871 = vperm.xlu1 %1292, %v846_v9  }
 0x2e2   :  { %v850_v15 = vpop.permute.xlu0 %849 }
 0x2e3   :  { %v852_v21 = vmul.f32 %v850_v15, %v1677_v5  ;;  %v853_v56 = vmul.f32 %v850_v15, %v1681_v7  ;;  %v854_v22 = vmul.f32 %v850_v15, %v1679_v6  ;;  %v855_v23 = vmul.f32 %v850_v15, %v1683_v8 }
 0x2e4   :  { %v940_v24 = vmul.f32 %v850_v15, %v1689_v16  ;;  %v941_v25 = vmul.f32 %v850_v15, %v1693_v18  ;;  %v942_v26 = vmul.f32 %v850_v15, %v1691_v17  ;;  %v943_v31 = vmul.f32 %v850_v15, %v1695_v19 }
 0x2e5   :  { %v1014_v32 = vmul.f32 %v850_v15, %v1701_v27  ;;  %v1015_v33 = vmul.f32 %v850_v15, %v1705_v29  ;;  %v1016_v5 = vmul.f32 %v850_v15, %v1703_v28  ;;  %v1017_v7 = vmul.f32 %v850_v15, %v1707_v30 }
 0x2e6   :  { %v1088_v6 = vmul.f32 %v850_v15, %v1713_v38  ;;  %v1089_v8 = vmul.f32 %v850_v15, %v1717_v40  ;;  %v1090_v16 = vmul.f32 %v850_v15, %v1715_v39  ;;  %v1091_v18 = vmul.f32 %v850_v15, %v1719_v41  ;;  %v859_v34 = vpop.permute.xlu1 %858 }
 0x2e7   :  { %v861_v17 = vadd.f32 %v859_v34, %v852_v21  ;;  %v862_v35 = vadd.f32 %v859_v34, %v853_v56  ;;  %v863_v19 = vadd.f32 %v859_v34, %v854_v22  ;;  %v864_v36 = vadd.f32 %v859_v34, %v855_v23 }
 0x2e8   :  { %v944_v27 = vadd.f32 %v940_v24, %v859_v34  ;;  %v945_v37 = vadd.f32 %v941_v25, %v859_v34  ;;  %v946_v29 = vadd.f32 %v942_v26, %v859_v34  ;;  %v947_v42 = vadd.f32 %v943_v31, %v859_v34 }
 0x2e9   :  { %v865_v28 = vmax.f32 %v861_v17, 0.0  ;;  %v866_v43 = vmax.f32 %v862_v35, 0.0  ;;  %v867_v30 = vmax.f32 %v863_v19, 0.0  ;;  %v868_v44 = vmax.f32 %v864_v36, 0.0 }
 0x2ea   :  { %v948_v38 = vmax.f32 %v944_v27, 0.0  ;;  %v949_v45 = vmax.f32 %v945_v37, 0.0  ;;  %v950_v40 = vmax.f32 %v946_v29, 0.0  ;;  %v951_v46 = vmax.f32 %v947_v42, 0.0  ;;  %v1804_v53 = vpop.permute.xlu1 %871 }
 0x2eb   :  { %v1788_v39 = vadd.f32 %v1014_v32, %v859_v34  ;;  %v1790_v41 = vadd.f32 %v1015_v33, %v859_v34  ;;  %v1792_v47 = vadd.f32 %v1016_v5, %v859_v34  ;;  %v1794_v48 = vadd.f32 %v1017_v7, %v859_v34 }
 0x2ec   :  { %v1796_v49 = vadd.f32 %v1088_v6, %v859_v34  ;;  %v1798_v50 = vadd.f32 %v1089_v8, %v859_v34  ;;  %v1800_v51 = vadd.f32 %v1090_v16, %v859_v34  ;;  %v1802_v52 = vadd.f32 %v1091_v18, %v859_v34 }
 0x2ed   :  { %v1022_v54 = vmax.f32 %v1788_v39, 0.0  ;;  %v1023_v55 = vmax.f32 %v1790_v41, 0.0  ;;  %v1024_v57 = vmax.f32 %v1792_v47, 0.0  ;;  %v1025_v58 = vmax.f32 %v1794_v48, 0.0 }
 0x2ee   :  { %v1096_v59 = vmax.f32 %v1796_v49, 0.0  ;;  %v1097_v60 = vmax.f32 %v1798_v50, 0.0  ;;  %v1098_v61 = vmax.f32 %v1800_v51, 0.0  ;;  %v1099_v62 = vmax.f32 %v1802_v52, 0.0 }
 0x2ef   :  { %v874_v63 = vmul.f32 %v1804_v53, %v865_v28  ;;  %v875_v0 = vmul.f32 %v1804_v53, %v866_v43  ;;  %v876_v1 = vmul.f32 %v1804_v53, %v867_v30  ;;  %v877_v2 = vmul.f32 %v1804_v53, %v868_v44 }
 0x2f0   :  { %v952_v3 = vmul.f32 %v948_v38, %v1804_v53  ;;  %v953_v4 = vmul.f32 %v949_v45, %v1804_v53  ;;  %v954_v9 = vmul.f32 %v950_v40, %v1804_v53  ;;  %v955_v10 = vmul.f32 %v951_v46, %v1804_v53 }
 0x2f1   :  { %v878_v11 = vrot.slane %v874_v63, 4  ;;  %v884_v13 = vrot.slane %v875_v0, 4  ;;  %v890_v14 = vrot.slane %v876_v1, 4  ;;  %v896_v15 = vrot.slane %v877_v2, 4 }
 0x2f2   :  { %v956_v21 = vrot.slane %v952_v3, 4  ;;  %v962_v56 = vrot.slane %v953_v4, 4  ;;  %v968_v22 = vrot.slane %v954_v9, 4  ;;  %v974_v23 = vrot.slane %v955_v10, 4 }
 0x2f3   :  { %v879_v24 = vadd.f32 %v878_v11, %v874_v63  ;;  %v885_v25 = vadd.f32 %v884_v13, %v875_v0  ;;  %v891_v26 = vadd.f32 %v890_v14, %v876_v1  ;;  %v897_v31 = vadd.f32 %v896_v15, %v877_v2 }
 0x2f4   :  { %v957_v32 = vadd.f32 %v956_v21, %v952_v3  ;;  %v963_v33 = vadd.f32 %v962_v56, %v953_v4  ;;  %v969_v5 = vadd.f32 %v968_v22, %v954_v9  ;;  %v975_v7 = vadd.f32 %v974_v23, %v955_v10 }
 0x2f5   :  { %v880_v6 = vrot.slane %v879_v24, 2  ;;  %v886_v8 = vrot.slane %v885_v25, 2  ;;  %v892_v16 = vrot.slane %v891_v26, 2  ;;  %v898_v18 = vrot.slane %v897_v31, 2 }
 0x2f6   :  { %v958_v34 = vrot.slane %v957_v32, 2  ;;  %v964_v17 = vrot.slane %v963_v33, 2  ;;  %v970_v35 = vrot.slane %v969_v5, 2  ;;  %v976_v19 = vrot.slane %v975_v7, 2 }
 0x2f7   :  { %v881_v36 = vadd.f32 %v880_v6, %v879_v24  ;;  %v887_v27 = vadd.f32 %v886_v8, %v885_v25  ;;  %v893_v37 = vadd.f32 %v892_v16, %v891_v26  ;;  %v899_v29 = vadd.f32 %v898_v18, %v897_v31 }
 0x2f8   :  { %v959_v42 = vadd.f32 %v958_v34, %v957_v32  ;;  %v965_v28 = vadd.f32 %v964_v17, %v963_v33  ;;  %v971_v43 = vadd.f32 %v970_v35, %v969_v5  ;;  %v977_v30 = vadd.f32 %v976_v19, %v975_v7 }
 0x2f9   :  { %v882_v44 = vrot.slane %v881_v36, 1  ;;  %v888_v38 = vrot.slane %v887_v27, 1  ;;  %v894_v45 = vrot.slane %v893_v37, 1  ;;  %v900_v40 = vrot.slane %v899_v29, 1 }
 0x2fa   :  { %v960_v46 = vrot.slane %v959_v42, 1  ;;  %v966_v63 = vrot.slane %v965_v28, 1  ;;  %v972_v0 = vrot.slane %v971_v43, 1  ;;  %v978_v1 = vrot.slane %v977_v30, 1 }
 0x2fb   :  { %v883_v2 = vadd.f32 %v882_v44, %v881_v36  ;;  %v889_v3 = vadd.f32 %v888_v38, %v887_v27  ;;  %v895_v4 = vadd.f32 %v894_v45, %v893_v37  ;;  %v901_v9 = vadd.f32 %v900_v40, %v899_v29 }
 0x2fc   :  { %v961_v10 = vadd.f32 %v960_v46, %v959_v42  ;;  %v967_v11 = vadd.f32 %v966_v63, %v965_v28  ;;  %v973_v13 = vadd.f32 %v972_v0, %v971_v43  ;;  %v979_v14 = vadd.f32 %v978_v1, %v977_v30 }
 0x2fd   :  { %1391 = vtanh.f32 %v883_v2  ;;  %v1026_v15 = vmul.f32 %v1022_v54, %v1804_v53  ;;  %v1027_v21 = vmul.f32 %v1023_v55, %v1804_v53  ;;  %v1028_v56 = vmul.f32 %v1024_v57, %v1804_v53 }
 0x2fe   :  { %1393 = vtanh.f32 %v889_v3  ;;  %v1029_v22 = vmul.f32 %v1025_v58, %v1804_v53  ;;  %v1100_v23 = vmul.f32 %v1096_v59, %v1804_v53  ;;  %v1101_v39 = vmul.f32 %v1097_v60, %v1804_v53 }
 0x2ff   :  { %1395 = vtanh.f32 %v895_v4  ;;  %v1030_v41 = vrot.slane %v1026_v15, 4  ;;  %v1036_v54 = vrot.slane %v1027_v21, 4  ;;  %v1042_v55 = vrot.slane %v1028_v56, 4 }
 0x300   :  { %1397 = vtanh.f32 %v901_v9  ;;  %v1048_v47 = vrot.slane %v1029_v22, 4  ;;  %v1102_v57 = vmul.f32 %v1098_v61, %v1804_v53  ;;  %v1103_v48 = vmul.f32 %v1099_v62, %v1804_v53 }
 0x301   :  { %1399 = vtanh.f32 %v961_v10  ;;  %v1031_v49 = vadd.f32 %v1030_v41, %v1026_v15  ;;  %v1037_v58 = vadd.f32 %v1036_v54, %v1027_v21  ;;  %v1043_v59 = vadd.f32 %v1042_v55, %v1028_v56 }
 0x302   :  { %1401 = vtanh.f32 %v967_v11  ;;  %v1049_v50 = vadd.f32 %v1048_v47, %v1029_v22  ;;  %v1104_v60 = vrot.slane %v1100_v23, 4  ;;  %v1110_v24 = vrot.slane %v1101_v39, 4 }
 0x303   :  { %1403 = vtanh.f32 %v973_v13  ;;  %v1032_v25 = vrot.slane %v1031_v49, 2  ;;  %v1038_v26 = vrot.slane %v1037_v58, 2  ;;  %v1044_v31 = vrot.slane %v1043_v59, 2 }
 0x304   :  { %1405 = vtanh.f32 %v979_v14  ;;  %v1050_v32 = vrot.slane %v1049_v50, 2  ;;  %v1105_v51 = vadd.f32 %v1104_v60, %v1100_v23  ;;  %v1111_v61 = vadd.f32 %v1110_v24, %v1101_v39 }
 0x305   :  { %v1033_v33 = vadd.f32 %v1032_v25, %v1031_v49  ;;  %v1039_v5 = vadd.f32 %v1038_v26, %v1037_v58  ;;  %v1045_v52 = vadd.f32 %v1044_v31, %v1043_v59  ;;  %v1116_v53 = vrot.slane %v1102_v57, 4 }
 0x306   :  { %v1051_v62 = vadd.f32 %v1050_v32, %v1049_v50  ;;  %v1106_v7 = vrot.slane %v1105_v51, 2  ;;  %v1112_v6 = vrot.slane %v1111_v61, 2  ;;  %v1122_v8 = vrot.slane %v1103_v48, 4 }
 0x307   :  { %v1392_v16 = vpop.eup %1391  ;;  %v1034_v18 = vrot.slane %v1033_v33, 1  ;;  %v1040_v34 = vrot.slane %v1039_v5, 1  ;;  %v1046_v17 = vrot.slane %v1045_v52, 1  ;;  %v1117_v35 = vadd.f32 %v1116_v53, %v1102_v57 }
 0x308   :  { %v1394_v19 = vpop.eup %1393  ;;  %v1052_v36 = vrot.slane %v1051_v62, 1  ;;  %v1107_v27 = vadd.f32 %v1106_v7, %v1105_v51  ;;  %v1113_v37 = vadd.f32 %v1112_v6, %v1111_v61  ;;  %v1123_v29 = vadd.f32 %v1122_v8, %v1103_v48 }
 0x309   :  { %v1396_v42 = vpop.eup %1395  ;;  %v910_v28 = vcombine.low %v1392_v16, %v1394_v19  ;;  %v1035_v43 = vadd.f32 %v1034_v18, %v1033_v33  ;;  %v1041_v30 = vadd.f32 %v1040_v34, %v1039_v5  ;;  %v1047_v44 = vadd.f32 %v1046_v17, %v1045_v52 }
 0x30a   :  { %v1398_v38 = vpop.eup %1397  ;;  %v1053_v45 = vadd.f32 %v1052_v36, %v1051_v62  ;;  %v1108_v40 = vrot.slane %v1107_v27, 1  ;;  %v1114_v46 = vrot.slane %v1113_v37, 1  ;;  %v1118_v63 = vrot.slane %v1117_v35, 2 }
 0x30b   :  { %v1400_v0 = vpop.eup %1399  ;;  %v911_v1 = vcombine.low %v1396_v42, %v1398_v38  ;;  %v918_v2 = vrot.slane %v910_v28, %v1770_v20  ;;  %1407 = vtanh.f32 %v1035_v43  ;;  %v1124_v3 = vrot.slane %v1123_v29, 2 }
 0x30c   :  { %v1402_v4 = vpop.eup %1401  ;;  %1409 = vtanh.f32 %v1041_v30  ;;  %v1109_v9 = vadd.f32 %v1108_v40, %v1107_v27  ;;  %v1115_v10 = vadd.f32 %v1114_v46, %v1113_v37  ;;  %v1119_v11 = vadd.f32 %v1118_v63, %v1117_v35 }
 0x30d   :  { %v1404_v13 = vpop.eup %1403  ;;  %v925_v14 = vrot.slane %v911_v1, %v1770_v20  ;;  %v988_v15 = vcombine.low %v1400_v0, %v1402_v4  ;;  %1411 = vtanh.f32 %v1047_v44  ;;  %v1125_v21 = vadd.f32 %v1124_v3, %v1123_v29 }
 0x30e   :  { %v1406_v56 = vpop.eup %1405  ;;  %1413 = vtanh.f32 %v1053_v45  ;;  %v1120_v22 = vrot.slane %v1119_v11, 1 }
 0x30f   :  { %v926_v23 = vcombine.low %v918_v2, %v925_v14  ;;  %v989_v39 = vcombine.low %v1404_v13, %v1406_v56  ;;  %v996_v41 = vrot.slane %v988_v15, %v1770_v20  ;;  %v1126_v54 = vrot.slane %v1125_v21, 1 }
 0x310   :  { %v1121_v47 = vadd.f32 %v1120_v22, %v1119_v11  ;;  %1415 = vtanh.f32 %v1109_v9 }
 0x311   :  { %v933_v57 = vrot.slane %v926_v23, %v1770_v20  ;;  %v1003_v48 = vrot.slane %v989_v39, %v1770_v20  ;;  %v1127_v49 = vadd.f32 %v1126_v54, %v1125_v21  ;;  %1417 = vtanh.f32 %v1115_v10 }
 0x312   :  { %1419 = vtanh.f32 %v1121_v47 }
 0x313   :  { %939 = vst.msk [vmem:[%s1888_s5] sm:$0xf] %vm1850_vm1, %v933_v57  ;;  %v1004_v58 = vcombine.low %v996_v41, %v1003_v48  ;;  %1421 = vtanh.f32 %v1127_v49 }
 0x315   :  { %v1408_v12 = vpop.eup %1407  ;;  %v1011_v59 = vrot.slane %v1004_v58, %v1770_v20 }
 0x316   :  { %v1410_v50 = vpop.eup %1409 }
 0x317   :  { %v1412_v60 = vpop.eup %1411  ;;  %1013 = vst.msk [vmem:[%s1888_s5 + $0x4] sm:$0xf] %vm1850_vm1, %v1011_v59  ;;  %v1062_v24 = vcombine.low %v1408_v12, %v1410_v50 }
 0x318   :  { %v1414_v25 = vpop.eup %1413 }
 0x319   :  { %v1063_v26 = vcombine.low %v1412_v60, %v1414_v25  ;;  %v1070_v31 = vrot.slane %v1062_v24, %v1770_v20 }
 0x31a   :  { %v1416_v32 = vpop.eup %1415 }
 0x31b   :  { %v1418_v51 = vpop.eup %1417  ;;  %v1077_v61 = vrot.slane %v1063_v26, %v1770_v20 }
 0x31c   :  { %v1420_v33 = vpop.eup %1419  ;;  %v1136_v5 = vcombine.low %v1416_v32, %v1418_v51 }
 0x31d   :  { %v1422_v52 = vpop.eup %1421  ;;  %v1078_v53 = vcombine.low %v1070_v31, %v1077_v61 }
 0x31e   :  { %v1137_v62 = vcombine.low %v1420_v33, %v1422_v52  ;;  %v1144_v7 = vrot.slane %v1136_v5, %v1770_v20 }
 0x31f   :  { %v1085_v6 = vrot.slane %v1078_v53, %v1770_v20 }
 0x320   :  { %v1151_v8 = vrot.slane %v1137_v62, %v1770_v20 }
 0x321   :  { %1087 = vst.msk [vmem:[%s1888_s5 + $0x8] sm:$0xf] %vm1850_vm1, %v1085_v6 }
 0x322   :  { %v1152_v16 = vcombine.low %v1144_v7, %v1151_v8 }
 0x324   :  { %v1159_v18 = vrot.slane %v1152_v16, %v1770_v20 }
 0x326   :  { %1161 = vst.msk [vmem:[%s1888_s5 + $0xc] sm:$0xf] %vm1850_vm1, %v1159_v18 }

</bundles_post_ra>
